<compile_context>
chip_gen: v6e
topology: v6e:2x2x1
jax: 0.10.0
libtpu: 0.0.40
codegen_flags: <defaults>
</compile_context>

<pallas_src>
import math
import functools

import jax
import jax.numpy as jnp
from jax.experimental import pallas as pl
from jax.experimental.pallas import tpu as pltpu

FEAT_DIM = 640      # value_head out channels (hard-coded in the module)
PROJ_DIM = 160      # key_head / query_head out channels
L2_EPS = 1e-16      # _l2norm: x / (1e-16 + ||x||_2)


# ----------------------- fused per-batch ST kernel --------------------------
def _st_fused_kernel(qpix_ref, spix_ref, spixt_ref, wq_ref, wkt_ref, wv_ref,
                     out_ref, *, n_way, M_s, M_q, q):
    # qpix_ref : (1, q*M_q, C)  raw query pixels, bf16
    # spix_ref : (1, NMs, C)    raw support pixels (class-major rows), bf16
    # spixt_ref: (1, C, NMs)    same, channels-as-rows, bf16
    # wq_ref   : (C, P)         query_head weight, pre-scaled by 1/sqrt(P), bf16
    # wkt_ref  : (P, C)         key_head weight transposed, bf16
    # wv_ref   : (C, C)         value_head weight, bf16
    # out_ref  : (1, q, n_way)  per-class similarity scores, f32
    NMs = n_way * M_s
    f32 = jnp.float32
    bf16 = jnp.bfloat16

    qpix = qpix_ref[0]
    spix = spix_ref[0]
    spixt = spixt_ref[0]
    Wq = wq_ref[...]
    Wkt = wkt_ref[...]
    Wv = wv_ref[...]

    # ---- fused 1x1-conv projections (bf16 MXU operands, f32 accumulation) ----
    qp = jnp.dot(qpix, Wq, preferred_element_type=f32)        # (q*M_q, P), scaled
    vq = jnp.dot(qpix, Wv, preferred_element_type=f32)        # (q*M_q, C)
    kt = jnp.dot(Wkt, spixt, preferred_element_type=f32)      # (P, NMs)
    v = jnp.dot(spix, Wv, preferred_element_type=f32)         # (NMs, C)
    v_bf = v.astype(bf16)

    # scores for every query pixel of every query image at once: (q*M_q, NMs)
    merged_all = jnp.dot(qp.astype(bf16), kt.astype(bf16),
                         preferred_element_type=f32)

    # l2-normalize query values over channels (torch: dim=-2 of (c, M_q))
    inv_vq = pl.reciprocal(
        jnp.sqrt(jnp.sum(vq * vq, axis=1, keepdims=True)) + L2_EPS, approx=True)
    vq_n_all = vq * inv_vq                                    # (q*M_q, C)

    col_idx = jax.lax.broadcasted_iota(jnp.int32, (M_q, NMs), 1)
    row_idx = jax.lax.broadcasted_iota(jnp.int32, (M_q, NMs), 0)

    for qi in range(q):
        r0 = qi * M_q
        merged = merged_all[r0:r0 + M_q, :]                   # (M_q, NMs)
        vq_n = vq_n_all[r0:r0 + M_q, :]                       # (M_q, C)

        # ---- _MNN mutual-nearest-neighbor mask (compensate_for_single=True) ----
        row_max = jnp.max(merged, axis=1, keepdims=True)      # (M_q, 1)
        # argmax over N*M_s (first occurrence)
        query_nearest = jnp.min(jnp.where(merged == row_max, col_idx, NMs),
                                axis=1, keepdims=True)        # (M_q, 1)
        one_hot_qn = (col_idx == query_nearest)               # (M_q, NMs)

        class_wise_max = row_max + 1.0                        # (M_q, 1)
        class_m = jnp.where(one_hot_qn, class_wise_max, 0.0)  # (M_q, NMs)
        col_max = jnp.max(class_m, axis=0, keepdims=True)     # (1, NMs)
        support_nearest = jnp.min(jnp.where(class_m == col_max, row_idx, M_q),
                                  axis=0, keepdims=True)      # (1, NMs)

        # mask[m] = (support_nearest[query_nearest[m]] == m)
        mutual = jnp.where(jnp.logical_and(one_hot_qn, support_nearest == row_idx),
                           1.0, 0.0)
        mask_f = jnp.max(mutual, axis=1, keepdims=True)       # (M_q, 1) in {0,1}

        vals = []
        for n in range(n_way):
            # mask rows, then softmax over M_s (masked rows -> uniform, matching
            # the PyTorch reference which multiplies the scores by the mask).
            s_n = merged[:, n * M_s:(n + 1) * M_s] * mask_f   # (M_q, M_s)
            mx = jnp.max(s_n, axis=1, keepdims=True)
            e = jnp.exp(s_n - mx)
            att = e * pl.reciprocal(jnp.sum(e, axis=1, keepdims=True), approx=True)

            aligned = jnp.dot(att.astype(bf16), v_bf[n * M_s:(n + 1) * M_s, :],
                              preferred_element_type=f32)     # (M_q, C)
            inv_al = pl.reciprocal(
                jnp.sqrt(jnp.sum(aligned * aligned, axis=1, keepdims=True)) + L2_EPS,
                approx=True)
            aligned_n = aligned * inv_al

            # cosine: aligned (M_q, C) x query values (M_q, C)^T -> (M_q, M_q)
            sim2 = jax.lax.dot_general(aligned_n, vq_n,
                                       dimension_numbers=(((1,), (1,)), ((), ())),
                                       preferred_element_type=f32)
            top1 = jnp.max(sim2, axis=0, keepdims=True)       # topk(k=1,-2).mean(-2)
            vals.append(jnp.sum(top1, axis=1, keepdims=True))  # sum over query pixels
        out_ref[0, qi:qi + 1, :] = jnp.concatenate(vals, axis=1)  # (1, n_way)


# ------------------------------- JAX glue -----------------------------------
def st_forward_eval(support_xf, query_xf, w_query, w_key, w_value, *, n_way, k_shot):
    b, q, c, h, w_ = query_xf.shape
    s = support_xf.shape[1]
    assert s == n_way * k_shot and c == FEAT_DIM
    M_q = h * w_
    M_s = k_shot * h * w_
    NMs = n_way * M_s
    QM = q * M_q

    # NCHW -> pixels-as-rows / channels-last.  bf16 operands halve HBM traffic;
    # all contractions accumulate in f32.
    q_pix = jnp.transpose(query_xf, (0, 1, 3, 4, 2)).reshape(b, QM, c)
    s_pix_f = jnp.transpose(support_xf, (0, 1, 3, 4, 2)).reshape(b, NMs, c)
    q_pix = q_pix.astype(jnp.bfloat16)
    s_pix = s_pix_f.astype(jnp.bfloat16)
    s_pix_t = jnp.transpose(s_pix_f, (0, 2, 1)).astype(jnp.bfloat16)   # (b, C, NMs)

    # fold 1/sqrt(P) into the query projection; pre-transpose the key weight so
    # the in-kernel score path uses only natural (M,K)@(K,N) contractions.
    scale = 1.0 / math.sqrt(PROJ_DIM)
    wq_scaled = (w_query * scale).astype(jnp.bfloat16)                 # (C, P)
    wk_t = jnp.transpose(w_key).astype(jnp.bfloat16)                   # (P, C)
    wv = w_value.astype(jnp.bfloat16)                                  # (C, C)

    kernel = functools.partial(_st_fused_kernel, n_way=n_way, M_s=M_s,
                               M_q=M_q, q=q)
    out = pl.pallas_call(
        kernel,
        out_shape=jax.ShapeDtypeStruct((b, q, n_way), jnp.float32),
        grid=(b,),
        in_specs=[
            pl.BlockSpec((1, QM, c), lambda i: (i, 0, 0)),          # query pixels
            pl.BlockSpec((1, NMs, c), lambda i: (i, 0, 0)),         # support pixels
            pl.BlockSpec((1, c, NMs), lambda i: (i, 0, 0)),         # support pixels^T
            pl.BlockSpec((c, PROJ_DIM), lambda i: (0, 0)),          # w_query (scaled)
            pl.BlockSpec((PROJ_DIM, c), lambda i: (0, 0)),          # w_key^T
            pl.BlockSpec((c, c), lambda i: (0, 0)),                 # w_value
        ],
        out_specs=pl.BlockSpec((1, q, n_way), lambda i: (i, 0, 0)),
        compiler_params=pltpu.CompilerParams(
            dimension_semantics=("parallel",),          # batch steps independent
            vmem_limit_bytes=64 * 1024 * 1024),
    )(q_pix, s_pix, s_pix_t, wq_scaled, wk_t, wv)
    return out.reshape(b * q, n_way)


if __name__ == "__main__":
    b, q, n_way, k_shot = 2, 3, 2, 1
    h = w = 5
    s = n_way * k_shot

    key = jax.random.PRNGKey(0)
    k_sx, k_qx, k_qy, k_wq, k_wk, k_wv = jax.random.split(key, 6)

    support_xf = jax.random.normal(k_sx, (b, s, FEAT_DIM, h, w), jnp.float32)
    query_xf = jax.random.normal(k_qx, (b, q, FEAT_DIM, h, w), jnp.float32)
    support_y = jnp.tile(jnp.repeat(jnp.arange(n_way), k_shot)[None], (b, 1))  # unused by forward
    query_y = jax.random.randint(k_qy, (b, q), 0, n_way)

    # Conv2d weight init: normal(0, sqrt(2 / (kh*kw*out_channels))), bias=None.
    w_query = jax.random.normal(k_wq, (FEAT_DIM, PROJ_DIM), jnp.float32) * math.sqrt(2.0 / PROJ_DIM)
    w_key = jax.random.normal(k_wk, (FEAT_DIM, PROJ_DIM), jnp.float32) * math.sqrt(2.0 / PROJ_DIM)
    w_value = jax.random.normal(k_wv, (FEAT_DIM, FEAT_DIM), jnp.float32) * math.sqrt(2.0 / FEAT_DIM)

    st_fn = jax.jit(functools.partial(st_forward_eval, n_way=n_way, k_shot=k_shot))
    similarity = st_fn(support_xf, query_xf, w_query, w_key, w_value)
    similarity = jax.block_until_ready(similarity)

    # eval branch: argmax over classes, 0/1 rewards vs query_y
    predict_labels = jnp.argmax(similarity, axis=1)
    query_y_flat = query_y.reshape(-1)
    rewards = [1 if int(predict_labels[j]) == int(query_y_flat[j]) else 0
               for j in range(b * q)]

    assert similarity.shape == (b * q, n_way)
    assert bool(jnp.all(jnp.isfinite(similarity)))
    assert len(rewards) == b * q
    print("KERNEL_OK")
</pallas_src>

<mosaic_0001>
module attributes {stable_mosaic.version = 11 : i64} {
  func.func @_st_fused_kernel(%arg0: i32, %arg1: memref<1x75x640xbf16, #tpu.memory_space<vmem>>, %arg2: memref<1x50x640xbf16, #tpu.memory_space<vmem>>, %arg3: memref<1x640x50xbf16, #tpu.memory_space<vmem>>, %arg4: memref<640x160xbf16, #tpu.memory_space<vmem>>, %arg5: memref<160x640xbf16, #tpu.memory_space<vmem>>, %arg6: memref<640x640xbf16, #tpu.memory_space<vmem>>, %arg7: memref<1x3x2xf32, #tpu.memory_space<vmem>>) attributes {dimension_semantics = [#tpu.dimension_semantics<parallel>], iteration_bounds = array<i64: 2>, scalar_prefetch = 0 : i64, scratch_operands = 0 : i64, tpu.core_type = #tpu.core_type<tc>, window_params = [{transform_indices = @transform_0, window_bounds = array<i64: 1, 75, 640>}, {transform_indices = @transform_1, window_bounds = array<i64: 1, 50, 640>}, {transform_indices = @transform_2, window_bounds = array<i64: 1, 640, 50>}, {pipeline_mode = #tpu.pipeline_mode<synchronous>, transform_indices = @transform_3, window_bounds = array<i64: 640, 160>}, {pipeline_mode = #tpu.pipeline_mode<synchronous>, transform_indices = @transform_4, window_bounds = array<i64: 160, 640>}, {pipeline_mode = #tpu.pipeline_mode<synchronous>, transform_indices = @transform_5, window_bounds = array<i64: 640, 640>}, {transform_indices = @transform_6, window_bounds = array<i64: 1, 3, 2>}]} {
    %c0 = arith.constant 0 : index
    %c0_0 = arith.constant 0 : index
    %c0_1 = arith.constant 0 : index
    %0 = vector.load %arg1[%c0, %c0_0, %c0_1] : memref<1x75x640xbf16, #tpu.memory_space<vmem>>, vector<1x75x640xbf16>
    %1 = vector.shape_cast %0 : vector<1x75x640xbf16> to vector<75x640xbf16>
    %c0_2 = arith.constant 0 : index
    %c0_3 = arith.constant 0 : index
    %c0_4 = arith.constant 0 : index
    %2 = vector.load %arg2[%c0_2, %c0_3, %c0_4] : memref<1x50x640xbf16, #tpu.memory_space<vmem>>, vector<1x50x640xbf16>
    %3 = vector.shape_cast %2 : vector<1x50x640xbf16> to vector<50x640xbf16>
    %c0_5 = arith.constant 0 : index
    %c0_6 = arith.constant 0 : index
    %c0_7 = arith.constant 0 : index
    %4 = vector.load %arg3[%c0_5, %c0_6, %c0_7] : memref<1x640x50xbf16, #tpu.memory_space<vmem>>, vector<1x640x50xbf16>
    %5 = vector.shape_cast %4 : vector<1x640x50xbf16> to vector<640x50xbf16>
    %c0_8 = arith.constant 0 : index
    %c0_9 = arith.constant 0 : index
    %6 = vector.load %arg4[%c0_8, %c0_9] : memref<640x160xbf16, #tpu.memory_space<vmem>>, vector<640x160xbf16>
    %c0_10 = arith.constant 0 : index
    %c0_11 = arith.constant 0 : index
    %7 = vector.load %arg5[%c0_10, %c0_11] : memref<160x640xbf16, #tpu.memory_space<vmem>>, vector<160x640xbf16>
    %c0_12 = arith.constant 0 : index
    %c0_13 = arith.constant 0 : index
    %8 = vector.load %arg6[%c0_12, %c0_13] : memref<640x640xbf16, #tpu.memory_space<vmem>>, vector<640x640xbf16>
    %cst = arith.constant dense<0.000000e+00> : vector<75x160xf32>
    %9 = tpu.matmul %1, %6, %cst {dimension_numbers = #tpu.dot_dimension_numbers<[1], [0], [0], [1], [0, 0, 1, 1], [], []>} : vector<75x640xbf16>, vector<640x160xbf16>, vector<75x160xf32> -> vector<75x160xf32>
    %cst_14 = arith.constant dense<0.000000e+00> : vector<75x640xf32>
    %10 = tpu.matmul %1, %8, %cst_14 {dimension_numbers = #tpu.dot_dimension_numbers<[1], [0], [0], [1], [0, 0, 1, 1], [], []>} : vector<75x640xbf16>, vector<640x640xbf16>, vector<75x640xf32> -> vector<75x640xf32>
    %cst_15 = arith.constant dense<0.000000e+00> : vector<160x50xf32>
    %11 = tpu.matmul %7, %5, %cst_15 {dimension_numbers = #tpu.dot_dimension_numbers<[1], [0], [0], [1], [0, 0, 1, 1], [], []>} : vector<160x640xbf16>, vector<640x50xbf16>, vector<160x50xf32> -> vector<160x50xf32>
    %cst_16 = arith.constant dense<0.000000e+00> : vector<50x640xf32>
    %12 = tpu.matmul %3, %8, %cst_16 {dimension_numbers = #tpu.dot_dimension_numbers<[1], [0], [0], [1], [0, 0, 1, 1], [], []>} : vector<50x640xbf16>, vector<640x640xbf16>, vector<50x640xf32> -> vector<50x640xf32>
    %13 = arith.truncf %12 : vector<50x640xf32> to vector<50x640xbf16>
    %14 = arith.truncf %9 : vector<75x160xf32> to vector<75x160xbf16>
    %15 = arith.truncf %11 : vector<160x50xf32> to vector<160x50xbf16>
    %cst_17 = arith.constant dense<0.000000e+00> : vector<75x50xf32>
    %16 = tpu.matmul %14, %15, %cst_17 {dimension_numbers = #tpu.dot_dimension_numbers<[1], [0], [0], [1], [0, 0, 1, 1], [], []>} : vector<75x160xbf16>, vector<160x50xbf16>, vector<75x50xf32> -> vector<75x50xf32>
    %17 = arith.mulf %10, %10 : vector<75x640xf32>
    %cst_18 = arith.constant dense<0.000000e+00> : vector<75xf32>
    %18 = vector.multi_reduction <add>, %17, %cst_18 [1] : vector<75x640xf32> to vector<75xf32>
    %19 = vector.shape_cast %18 : vector<75xf32> to vector<75x1xf32>
    %20 = math.sqrt %19 : vector<75x1xf32>
    %cst_19 = arith.constant 1.000000e-16 : f32
    %21 = vector.broadcast %cst_19 : f32 to vector<75x1xf32>
    %22 = arith.addf %20, %21 : vector<75x1xf32>
    %23 = tpu.reciprocal %22 {approx = true} : vector<75x1xf32> -> vector<75x1xf32>
    %24 = vector.broadcast %23 : vector<75x1xf32> to vector<75x640xf32>
    %25 = arith.mulf %10, %24 : vector<75x640xf32>
    %26 = tpu.iota {dimensions = array<i32: 1>} : vector<25x50xi32>
    %27 = tpu.iota {dimensions = array<i32: 0>} : vector<25x50xi32>
    %28 = vector.extract_strided_slice %16 {offsets = [0, 0], sizes = [25, 50], strides = [1, 1]} : vector<75x50xf32> to vector<25x50xf32>
    %29 = vector.extract_strided_slice %25 {offsets = [0, 0], sizes = [25, 640], strides = [1, 1]} : vector<75x640xf32> to vector<25x640xf32>
    %cst_20 = arith.constant dense<0xFF800000> : vector<25xf32>
    %30 = vector.multi_reduction <maximumf>, %28, %cst_20 [1] : vector<25x50xf32> to vector<25xf32>
    %31 = vector.shape_cast %30 : vector<25xf32> to vector<25x1xf32>
    %32 = vector.broadcast %31 : vector<25x1xf32> to vector<25x50xf32>
    %33 = arith.cmpf oeq, %28, %32 : vector<25x50xf32>
    %c50_i32 = arith.constant 50 : i32
    %34 = vector.broadcast %c50_i32 : i32 to vector<25x50xi32>
    %35 = arith.select %33, %26, %34 : vector<25x50xi1>, vector<25x50xi32>
    %cst_21 = arith.constant dense<2147483647> : vector<25xi32>
    %36 = vector.multi_reduction <minsi>, %35, %cst_21 [1] : vector<25x50xi32> to vector<25xi32>
    %37 = vector.shape_cast %36 : vector<25xi32> to vector<25x1xi32>
    %38 = vector.broadcast %37 : vector<25x1xi32> to vector<25x50xi32>
    %39 = arith.cmpi eq, %26, %38 : vector<25x50xi32>
    %cst_22 = arith.constant 1.000000e+00 : f32
    %40 = vector.broadcast %cst_22 : f32 to vector<25x1xf32>
    %41 = arith.addf %31, %40 : vector<25x1xf32>
    %cst_23 = arith.constant 0.000000e+00 : f32
    %42 = vector.shape_cast %41 : vector<25x1xf32> to vector<25x1xf32>
    %43 = vector.broadcast %42 : vector<25x1xf32> to vector<25x50xf32>
    %44 = vector.broadcast %cst_23 : f32 to vector<25x50xf32>
    %45 = arith.select %39, %43, %44 : vector<25x50xi1>, vector<25x50xf32>
    %cst_24 = arith.constant dense<0xFF800000> : vector<50xf32>
    %46 = vector.multi_reduction <maximumf>, %45, %cst_24 [0] : vector<25x50xf32> to vector<50xf32>
    %47 = vector.shape_cast %46 : vector<50xf32> to vector<1x50xf32>
    %48 = vector.broadcast %47 : vector<1x50xf32> to vector<25x50xf32>
    %49 = arith.cmpf oeq, %45, %48 : vector<25x50xf32>
    %c25_i32 = arith.constant 25 : i32
    %50 = vector.broadcast %c25_i32 : i32 to vector<25x50xi32>
    %51 = arith.select %49, %27, %50 : vector<25x50xi1>, vector<25x50xi32>
    %cst_25 = arith.constant dense<2147483647> : vector<50xi32>
    %52 = vector.multi_reduction <minsi>, %51, %cst_25 [0] : vector<25x50xi32> to vector<50xi32>
    %53 = vector.shape_cast %52 : vector<50xi32> to vector<1x50xi32>
    %54 = vector.broadcast %53 : vector<1x50xi32> to vector<25x50xi32>
    %55 = arith.cmpi eq, %54, %27 : vector<25x50xi32>
    %56 = arith.andi %39, %55 : vector<25x50xi1>
    %cst_26 = arith.constant 1.000000e+00 : f32
    %cst_27 = arith.constant 0.000000e+00 : f32
    %57 = vector.broadcast %cst_26 : f32 to vector<25x50xf32>
    %58 = vector.broadcast %cst_27 : f32 to vector<25x50xf32>
    %59 = arith.select %56, %57, %58 : vector<25x50xi1>, vector<25x50xf32>
    %cst_28 = arith.constant dense<0xFF800000> : vector<25xf32>
    %60 = vector.multi_reduction <maximumf>, %59, %cst_28 [1] : vector<25x50xf32> to vector<25xf32>
    %61 = vector.shape_cast %60 : vector<25xf32> to vector<25x1xf32>
    %62 = vector.extract_strided_slice %28 {offsets = [0, 0], sizes = [25, 25], strides = [1, 1]} : vector<25x50xf32> to vector<25x25xf32>
    %63 = vector.broadcast %61 : vector<25x1xf32> to vector<25x25xf32>
    %64 = arith.mulf %62, %63 : vector<25x25xf32>
    %cst_29 = arith.constant dense<0xFF800000> : vector<25xf32>
    %65 = vector.multi_reduction <maximumf>, %64, %cst_29 [1] : vector<25x25xf32> to vector<25xf32>
    %66 = vector.shape_cast %65 : vector<25xf32> to vector<25x1xf32>
    %67 = vector.broadcast %66 : vector<25x1xf32> to vector<25x25xf32>
    %68 = arith.subf %64, %67 : vector<25x25xf32>
    %69 = math.exp %68 : vector<25x25xf32>
    %cst_30 = arith.constant dense<0.000000e+00> : vector<25xf32>
    %70 = vector.multi_reduction <add>, %69, %cst_30 [1] : vector<25x25xf32> to vector<25xf32>
    %71 = vector.shape_cast %70 : vector<25xf32> to vector<25x1xf32>
    %72 = tpu.reciprocal %71 {approx = true} : vector<25x1xf32> -> vector<25x1xf32>
    %73 = vector.broadcast %72 : vector<25x1xf32> to vector<25x25xf32>
    %74 = arith.mulf %69, %73 : vector<25x25xf32>
    %75 = arith.truncf %74 : vector<25x25xf32> to vector<25x25xbf16>
    %76 = vector.extract_strided_slice %13 {offsets = [0, 0], sizes = [25, 640], strides = [1, 1]} : vector<50x640xbf16> to vector<25x640xbf16>
    %cst_31 = arith.constant dense<0.000000e+00> : vector<25x640xf32>
    %77 = tpu.matmul %75, %76, %cst_31 {dimension_numbers = #tpu.dot_dimension_numbers<[1], [0], [0], [1], [0, 0, 1, 1], [], []>} : vector<25x25xbf16>, vector<25x640xbf16>, vector<25x640xf32> -> vector<25x640xf32>
    %78 = arith.mulf %77, %77 : vector<25x640xf32>
    %cst_32 = arith.constant dense<0.000000e+00> : vector<25xf32>
    %79 = vector.multi_reduction <add>, %78, %cst_32 [1] : vector<25x640xf32> to vector<25xf32>
    %80 = vector.shape_cast %79 : vector<25xf32> to vector<25x1xf32>
    %81 = math.sqrt %80 : vector<25x1xf32>
    %cst_33 = arith.constant 1.000000e-16 : f32
    %82 = vector.broadcast %cst_33 : f32 to vector<25x1xf32>
    %83 = arith.addf %81, %82 : vector<25x1xf32>
    %84 = tpu.reciprocal %83 {approx = true} : vector<25x1xf32> -> vector<25x1xf32>
    %85 = vector.broadcast %84 : vector<25x1xf32> to vector<25x640xf32>
    %86 = arith.mulf %77, %85 : vector<25x640xf32>
    %cst_34 = arith.constant dense<0.000000e+00> : vector<25x25xf32>
    %87 = tpu.matmul %86, %29, %cst_34 {dimension_numbers = #tpu.dot_dimension_numbers<[1], [1], [0], [0], [0, 0, 1, 0], [], []>} : vector<25x640xf32>, vector<25x640xf32>, vector<25x25xf32> -> vector<25x25xf32>
    %cst_35 = arith.constant dense<0xFF800000> : vector<25xf32>
    %88 = vector.multi_reduction <maximumf>, %87, %cst_35 [0] : vector<25x25xf32> to vector<25xf32>
    %89 = vector.shape_cast %88 : vector<25xf32> to vector<1x25xf32>
    %cst_36 = arith.constant dense<0.000000e+00> : vector<1xf32>
    %90 = vector.multi_reduction <add>, %89, %cst_36 [1] : vector<1x25xf32> to vector<1xf32>
    %91 = vector.shape_cast %90 : vector<1xf32> to vector<1x1xf32>
    %92 = vector.extract_strided_slice %28 {offsets = [0, 25], sizes = [25, 25], strides = [1, 1]} : vector<25x50xf32> to vector<25x25xf32>
    %93 = vector.broadcast %61 : vector<25x1xf32> to vector<25x25xf32>
    %94 = arith.mulf %92, %93 : vector<25x25xf32>
    %cst_37 = arith.constant dense<0xFF800000> : vector<25xf32>
    %95 = vector.multi_reduction <maximumf>, %94, %cst_37 [1] : vector<25x25xf32> to vector<25xf32>
    %96 = vector.shape_cast %95 : vector<25xf32> to vector<25x1xf32>
    %97 = vector.broadcast %96 : vector<25x1xf32> to vector<25x25xf32>
    %98 = arith.subf %94, %97 : vector<25x25xf32>
    %99 = math.exp %98 : vector<25x25xf32>
    %cst_38 = arith.constant dense<0.000000e+00> : vector<25xf32>
    %100 = vector.multi_reduction <add>, %99, %cst_38 [1] : vector<25x25xf32> to vector<25xf32>
    %101 = vector.shape_cast %100 : vector<25xf32> to vector<25x1xf32>
    %102 = tpu.reciprocal %101 {approx = true} : vector<25x1xf32> -> vector<25x1xf32>
    %103 = vector.broadcast %102 : vector<25x1xf32> to vector<25x25xf32>
    %104 = arith.mulf %99, %103 : vector<25x25xf32>
    %105 = arith.truncf %104 : vector<25x25xf32> to vector<25x25xbf16>
    %106 = vector.extract_strided_slice %13 {offsets = [25, 0], sizes = [25, 640], strides = [1, 1]} : vector<50x640xbf16> to vector<25x640xbf16>
    %cst_39 = arith.constant dense<0.000000e+00> : vector<25x640xf32>
    %107 = tpu.matmul %105, %106, %cst_39 {dimension_numbers = #tpu.dot_dimension_numbers<[1], [0], [0], [1], [0, 0, 1, 1], [], []>} : vector<25x25xbf16>, vector<25x640xbf16>, vector<25x640xf32> -> vector<25x640xf32>
    %108 = arith.mulf %107, %107 : vector<25x640xf32>
    %cst_40 = arith.constant dense<0.000000e+00> : vector<25xf32>
    %109 = vector.multi_reduction <add>, %108, %cst_40 [1] : vector<25x640xf32> to vector<25xf32>
    %110 = vector.shape_cast %109 : vector<25xf32> to vector<25x1xf32>
    %111 = math.sqrt %110 : vector<25x1xf32>
    %cst_41 = arith.constant 1.000000e-16 : f32
    %112 = vector.broadcast %cst_41 : f32 to vector<25x1xf32>
    %113 = arith.addf %111, %112 : vector<25x1xf32>
    %114 = tpu.reciprocal %113 {approx = true} : vector<25x1xf32> -> vector<25x1xf32>
    %115 = vector.broadcast %114 : vector<25x1xf32> to vector<25x640xf32>
    %116 = arith.mulf %107, %115 : vector<25x640xf32>
    %cst_42 = arith.constant dense<0.000000e+00> : vector<25x25xf32>
    %117 = tpu.matmul %116, %29, %cst_42 {dimension_numbers = #tpu.dot_dimension_numbers<[1], [1], [0], [0], [0, 0, 1, 0], [], []>} : vector<25x640xf32>, vector<25x640xf32>, vector<25x25xf32> -> vector<25x25xf32>
    %cst_43 = arith.constant dense<0xFF800000> : vector<25xf32>
    %118 = vector.multi_reduction <maximumf>, %117, %cst_43 [0] : vector<25x25xf32> to vector<25xf32>
    %119 = vector.shape_cast %118 : vector<25xf32> to vector<1x25xf32>
    %cst_44 = arith.constant dense<0.000000e+00> : vector<1xf32>
    %120 = vector.multi_reduction <add>, %119, %cst_44 [1] : vector<1x25xf32> to vector<1xf32>
    %121 = vector.shape_cast %120 : vector<1xf32> to vector<1x1xf32>
    %122 = tpu.concatenate %91, %121 in 1 : vector<1x1xf32>, vector<1x1xf32> -> vector<1x2xf32>
    %c0_45 = arith.constant 0 : index
    %c0_46 = arith.constant 0 : index
    %c0_47 = arith.constant 0 : index
    %123 = vector.load %arg7[%c0_45, %c0_46, %c0_47] : memref<1x3x2xf32, #tpu.memory_space<vmem>>, vector<1x1x2xf32>
    %124 = vector.shape_cast %123 : vector<1x1x2xf32> to vector<1x2xf32>
    %125 = vector.shape_cast %122 : vector<1x2xf32> to vector<1x1x2xf32>
    tpu.vector_store %arg7[%c0_45, %c0_46, %c0_47], %125 {strides = array<i32>} : memref<1x3x2xf32, #tpu.memory_space<vmem>>, vector<1x1x2xf32>,
    %126 = vector.extract_strided_slice %16 {offsets = [25, 0], sizes = [25, 50], strides = [1, 1]} : vector<75x50xf32> to vector<25x50xf32>
    %127 = vector.extract_strided_slice %25 {offsets = [25, 0], sizes = [25, 640], strides = [1, 1]} : vector<75x640xf32> to vector<25x640xf32>
    %cst_48 = arith.constant dense<0xFF800000> : vector<25xf32>
    %128 = vector.multi_reduction <maximumf>, %126, %cst_48 [1] : vector<25x50xf32> to vector<25xf32>
    %129 = vector.shape_cast %128 : vector<25xf32> to vector<25x1xf32>
    %130 = vector.broadcast %129 : vector<25x1xf32> to vector<25x50xf32>
    %131 = arith.cmpf oeq, %126, %130 : vector<25x50xf32>
    %c50_i32_49 = arith.constant 50 : i32
    %132 = vector.broadcast %c50_i32_49 : i32 to vector<25x50xi32>
    %133 = arith.select %131, %26, %132 : vector<25x50xi1>, vector<25x50xi32>
    %cst_50 = arith.constant dense<2147483647> : vector<25xi32>
    %134 = vector.multi_reduction <minsi>, %133, %cst_50 [1] : vector<25x50xi32> to vector<25xi32>
    %135 = vector.shape_cast %134 : vector<25xi32> to vector<25x1xi32>
    %136 = vector.broadcast %135 : vector<25x1xi32> to vector<25x50xi32>
    %137 = arith.cmpi eq, %26, %136 : vector<25x50xi32>
    %cst_51 = arith.constant 1.000000e+00 : f32
    %138 = vector.broadcast %cst_51 : f32 to vector<25x1xf32>
    %139 = arith.addf %129, %138 : vector<25x1xf32>
    %cst_52 = arith.constant 0.000000e+00 : f32
    %140 = vector.shape_cast %139 : vector<25x1xf32> to vector<25x1xf32>
    %141 = vector.broadcast %140 : vector<25x1xf32> to vector<25x50xf32>
    %142 = vector.broadcast %cst_52 : f32 to vector<25x50xf32>
    %143 = arith.select %137, %141, %142 : vector<25x50xi1>, vector<25x50xf32>
    %cst_53 = arith.constant dense<0xFF800000> : vector<50xf32>
    %144 = vector.multi_reduction <maximumf>, %143, %cst_53 [0] : vector<25x50xf32> to vector<50xf32>
    %145 = vector.shape_cast %144 : vector<50xf32> to vector<1x50xf32>
    %146 = vector.broadcast %145 : vector<1x50xf32> to vector<25x50xf32>
    %147 = arith.cmpf oeq, %143, %146 : vector<25x50xf32>
    %c25_i32_54 = arith.constant 25 : i32
    %148 = vector.broadcast %c25_i32_54 : i32 to vector<25x50xi32>
    %149 = arith.select %147, %27, %148 : vector<25x50xi1>, vector<25x50xi32>
    %cst_55 = arith.constant dense<2147483647> : vector<50xi32>
    %150 = vector.multi_reduction <minsi>, %149, %cst_55 [0] : vector<25x50xi32> to vector<50xi32>
    %151 = vector.shape_cast %150 : vector<50xi32> to vector<1x50xi32>
    %152 = vector.broadcast %151 : vector<1x50xi32> to vector<25x50xi32>
    %153 = arith.cmpi eq, %152, %27 : vector<25x50xi32>
    %154 = arith.andi %137, %153 : vector<25x50xi1>
    %cst_56 = arith.constant 1.000000e+00 : f32
    %cst_57 = arith.constant 0.000000e+00 : f32
    %155 = vector.broadcast %cst_56 : f32 to vector<25x50xf32>
    %156 = vector.broadcast %cst_57 : f32 to vector<25x50xf32>
    %157 = arith.select %154, %155, %156 : vector<25x50xi1>, vector<25x50xf32>
    %cst_58 = arith.constant dense<0xFF800000> : vector<25xf32>
    %158 = vector.multi_reduction <maximumf>, %157, %cst_58 [1] : vector<25x50xf32> to vector<25xf32>
    %159 = vector.shape_cast %158 : vector<25xf32> to vector<25x1xf32>
    %160 = vector.extract_strided_slice %126 {offsets = [0, 0], sizes = [25, 25], strides = [1, 1]} : vector<25x50xf32> to vector<25x25xf32>
    %161 = vector.broadcast %159 : vector<25x1xf32> to vector<25x25xf32>
    %162 = arith.mulf %160, %161 : vector<25x25xf32>
    %cst_59 = arith.constant dense<0xFF800000> : vector<25xf32>
    %163 = vector.multi_reduction <maximumf>, %162, %cst_59 [1] : vector<25x25xf32> to vector<25xf32>
    %164 = vector.shape_cast %163 : vector<25xf32> to vector<25x1xf32>
    %165 = vector.broadcast %164 : vector<25x1xf32> to vector<25x25xf32>
    %166 = arith.subf %162, %165 : vector<25x25xf32>
    %167 = math.exp %166 : vector<25x25xf32>
    %cst_60 = arith.constant dense<0.000000e+00> : vector<25xf32>
    %168 = vector.multi_reduction <add>, %167, %cst_60 [1] : vector<25x25xf32> to vector<25xf32>
    %169 = vector.shape_cast %168 : vector<25xf32> to vector<25x1xf32>
    %170 = tpu.reciprocal %169 {approx = true} : vector<25x1xf32> -> vector<25x1xf32>
    %171 = vector.broadcast %170 : vector<25x1xf32> to vector<25x25xf32>
    %172 = arith.mulf %167, %171 : vector<25x25xf32>
    %173 = arith.truncf %172 : vector<25x25xf32> to vector<25x25xbf16>
    %174 = vector.extract_strided_slice %13 {offsets = [0, 0], sizes = [25, 640], strides = [1, 1]} : vector<50x640xbf16> to vector<25x640xbf16>
    %cst_61 = arith.constant dense<0.000000e+00> : vector<25x640xf32>
    %175 = tpu.matmul %173, %174, %cst_61 {dimension_numbers = #tpu.dot_dimension_numbers<[1], [0], [0], [1], [0, 0, 1, 1], [], []>} : vector<25x25xbf16>, vector<25x640xbf16>, vector<25x640xf32> -> vector<25x640xf32>
    %176 = arith.mulf %175, %175 : vector<25x640xf32>
    %cst_62 = arith.constant dense<0.000000e+00> : vector<25xf32>
    %177 = vector.multi_reduction <add>, %176, %cst_62 [1] : vector<25x640xf32> to vector<25xf32>
    %178 = vector.shape_cast %177 : vector<25xf32> to vector<25x1xf32>
    %179 = math.sqrt %178 : vector<25x1xf32>
    %cst_63 = arith.constant 1.000000e-16 : f32
    %180 = vector.broadcast %cst_63 : f32 to vector<25x1xf32>
    %181 = arith.addf %179, %180 : vector<25x1xf32>
    %182 = tpu.reciprocal %181 {approx = true} : vector<25x1xf32> -> vector<25x1xf32>
    %183 = vector.broadcast %182 : vector<25x1xf32> to vector<25x640xf32>
    %184 = arith.mulf %175, %183 : vector<25x640xf32>
    %cst_64 = arith.constant dense<0.000000e+00> : vector<25x25xf32>
    %185 = tpu.matmul %184, %127, %cst_64 {dimension_numbers = #tpu.dot_dimension_numbers<[1], [1], [0], [0], [0, 0, 1, 0], [], []>} : vector<25x640xf32>, vector<25x640xf32>, vector<25x25xf32> -> vector<25x25xf32>
    %cst_65 = arith.constant dense<0xFF800000> : vector<25xf32>
    %186 = vector.multi_reduction <maximumf>, %185, %cst_65 [0] : vector<25x25xf32> to vector<25xf32>
    %187 = vector.shape_cast %186 : vector<25xf32> to vector<1x25xf32>
    %cst_66 = arith.constant dense<0.000000e+00> : vector<1xf32>
    %188 = vector.multi_reduction <add>, %187, %cst_66 [1] : vector<1x25xf32> to vector<1xf32>
    %189 = vector.shape_cast %188 : vector<1xf32> to vector<1x1xf32>
    %190 = vector.extract_strided_slice %126 {offsets = [0, 25], sizes = [25, 25], strides = [1, 1]} : vector<25x50xf32> to vector<25x25xf32>
    %191 = vector.broadcast %159 : vector<25x1xf32> to vector<25x25xf32>
    %192 = arith.mulf %190, %191 : vector<25x25xf32>
    %cst_67 = arith.constant dense<0xFF800000> : vector<25xf32>
    %193 = vector.multi_reduction <maximumf>, %192, %cst_67 [1] : vector<25x25xf32> to vector<25xf32>
    %194 = vector.shape_cast %193 : vector<25xf32> to vector<25x1xf32>
    %195 = vector.broadcast %194 : vector<25x1xf32> to vector<25x25xf32>
    %196 = arith.subf %192, %195 : vector<25x25xf32>
    %197 = math.exp %196 : vector<25x25xf32>
    %cst_68 = arith.constant dense<0.000000e+00> : vector<25xf32>
    %198 = vector.multi_reduction <add>, %197, %cst_68 [1] : vector<25x25xf32> to vector<25xf32>
    %199 = vector.shape_cast %198 : vector<25xf32> to vector<25x1xf32>
    %200 = tpu.reciprocal %199 {approx = true} : vector<25x1xf32> -> vector<25x1xf32>
    %201 = vector.broadcast %200 : vector<25x1xf32> to vector<25x25xf32>
    %202 = arith.mulf %197, %201 : vector<25x25xf32>
    %203 = arith.truncf %202 : vector<25x25xf32> to vector<25x25xbf16>
    %204 = vector.extract_strided_slice %13 {offsets = [25, 0], sizes = [25, 640], strides = [1, 1]} : vector<50x640xbf16> to vector<25x640xbf16>
    %cst_69 = arith.constant dense<0.000000e+00> : vector<25x640xf32>
    %205 = tpu.matmul %203, %204, %cst_69 {dimension_numbers = #tpu.dot_dimension_numbers<[1], [0], [0], [1], [0, 0, 1, 1], [], []>} : vector<25x25xbf16>, vector<25x640xbf16>, vector<25x640xf32> -> vector<25x640xf32>
    %206 = arith.mulf %205, %205 : vector<25x640xf32>
    %cst_70 = arith.constant dense<0.000000e+00> : vector<25xf32>
    %207 = vector.multi_reduction <add>, %206, %cst_70 [1] : vector<25x640xf32> to vector<25xf32>
    %208 = vector.shape_cast %207 : vector<25xf32> to vector<25x1xf32>
    %209 = math.sqrt %208 : vector<25x1xf32>
    %cst_71 = arith.constant 1.000000e-16 : f32
    %210 = vector.broadcast %cst_71 : f32 to vector<25x1xf32>
    %211 = arith.addf %209, %210 : vector<25x1xf32>
    %212 = tpu.reciprocal %211 {approx = true} : vector<25x1xf32> -> vector<25x1xf32>
    %213 = vector.broadcast %212 : vector<25x1xf32> to vector<25x640xf32>
    %214 = arith.mulf %205, %213 : vector<25x640xf32>
    %cst_72 = arith.constant dense<0.000000e+00> : vector<25x25xf32>
    %215 = tpu.matmul %214, %127, %cst_72 {dimension_numbers = #tpu.dot_dimension_numbers<[1], [1], [0], [0], [0, 0, 1, 0], [], []>} : vector<25x640xf32>, vector<25x640xf32>, vector<25x25xf32> -> vector<25x25xf32>
    %cst_73 = arith.constant dense<0xFF800000> : vector<25xf32>
    %216 = vector.multi_reduction <maximumf>, %215, %cst_73 [0] : vector<25x25xf32> to vector<25xf32>
    %217 = vector.shape_cast %216 : vector<25xf32> to vector<1x25xf32>
    %cst_74 = arith.constant dense<0.000000e+00> : vector<1xf32>
    %218 = vector.multi_reduction <add>, %217, %cst_74 [1] : vector<1x25xf32> to vector<1xf32>
    %219 = vector.shape_cast %218 : vector<1xf32> to vector<1x1xf32>
    %220 = tpu.concatenate %189, %219 in 1 : vector<1x1xf32>, vector<1x1xf32> -> vector<1x2xf32>
    %c0_75 = arith.constant 0 : index
    %c1 = arith.constant 1 : index
    %c0_76 = arith.constant 0 : index
    %221 = vector.load %arg7[%c0_75, %c1, %c0_76] : memref<1x3x2xf32, #tpu.memory_space<vmem>>, vector<1x1x2xf32>
    %222 = vector.shape_cast %221 : vector<1x1x2xf32> to vector<1x2xf32>
    %223 = vector.shape_cast %220 : vector<1x2xf32> to vector<1x1x2xf32>
    tpu.vector_store %arg7[%c0_75, %c1, %c0_76], %223 {strides = array<i32>} : memref<1x3x2xf32, #tpu.memory_space<vmem>>, vector<1x1x2xf32>,
    %224 = vector.extract_strided_slice %16 {offsets = [50, 0], sizes = [25, 50], strides = [1, 1]} : vector<75x50xf32> to vector<25x50xf32>
    %225 = vector.extract_strided_slice %25 {offsets = [50, 0], sizes = [25, 640], strides = [1, 1]} : vector<75x640xf32> to vector<25x640xf32>
    %cst_77 = arith.constant dense<0xFF800000> : vector<25xf32>
    %226 = vector.multi_reduction <maximumf>, %224, %cst_77 [1] : vector<25x50xf32> to vector<25xf32>
    %227 = vector.shape_cast %226 : vector<25xf32> to vector<25x1xf32>
    %228 = vector.broadcast %227 : vector<25x1xf32> to vector<25x50xf32>
    %229 = arith.cmpf oeq, %224, %228 : vector<25x50xf32>
    %c50_i32_78 = arith.constant 50 : i32
    %230 = vector.broadcast %c50_i32_78 : i32 to vector<25x50xi32>
    %231 = arith.select %229, %26, %230 : vector<25x50xi1>, vector<25x50xi32>
    %cst_79 = arith.constant dense<2147483647> : vector<25xi32>
    %232 = vector.multi_reduction <minsi>, %231, %cst_79 [1] : vector<25x50xi32> to vector<25xi32>
    %233 = vector.shape_cast %232 : vector<25xi32> to vector<25x1xi32>
    %234 = vector.broadcast %233 : vector<25x1xi32> to vector<25x50xi32>
    %235 = arith.cmpi eq, %26, %234 : vector<25x50xi32>
    %cst_80 = arith.constant 1.000000e+00 : f32
    %236 = vector.broadcast %cst_80 : f32 to vector<25x1xf32>
    %237 = arith.addf %227, %236 : vector<25x1xf32>
    %cst_81 = arith.constant 0.000000e+00 : f32
    %238 = vector.shape_cast %237 : vector<25x1xf32> to vector<25x1xf32>
    %239 = vector.broadcast %238 : vector<25x1xf32> to vector<25x50xf32>
    %240 = vector.broadcast %cst_81 : f32 to vector<25x50xf32>
    %241 = arith.select %235, %239, %240 : vector<25x50xi1>, vector<25x50xf32>
    %cst_82 = arith.constant dense<0xFF800000> : vector<50xf32>
    %242 = vector.multi_reduction <maximumf>, %241, %cst_82 [0] : vector<25x50xf32> to vector<50xf32>
    %243 = vector.shape_cast %242 : vector<50xf32> to vector<1x50xf32>
    %244 = vector.broadcast %243 : vector<1x50xf32> to vector<25x50xf32>
    %245 = arith.cmpf oeq, %241, %244 : vector<25x50xf32>
    %c25_i32_83 = arith.constant 25 : i32
    %246 = vector.broadcast %c25_i32_83 : i32 to vector<25x50xi32>
    %247 = arith.select %245, %27, %246 : vector<25x50xi1>, vector<25x50xi32>
    %cst_84 = arith.constant dense<2147483647> : vector<50xi32>
    %248 = vector.multi_reduction <minsi>, %247, %cst_84 [0] : vector<25x50xi32> to vector<50xi32>
    %249 = vector.shape_cast %248 : vector<50xi32> to vector<1x50xi32>
    %250 = vector.broadcast %249 : vector<1x50xi32> to vector<25x50xi32>
    %251 = arith.cmpi eq, %250, %27 : vector<25x50xi32>
    %252 = arith.andi %235, %251 : vector<25x50xi1>
    %cst_85 = arith.constant 1.000000e+00 : f32
    %cst_86 = arith.constant 0.000000e+00 : f32
    %253 = vector.broadcast %cst_85 : f32 to vector<25x50xf32>
    %254 = vector.broadcast %cst_86 : f32 to vector<25x50xf32>
    %255 = arith.select %252, %253, %254 : vector<25x50xi1>, vector<25x50xf32>
    %cst_87 = arith.constant dense<0xFF800000> : vector<25xf32>
    %256 = vector.multi_reduction <maximumf>, %255, %cst_87 [1] : vector<25x50xf32> to vector<25xf32>
    %257 = vector.shape_cast %256 : vector<25xf32> to vector<25x1xf32>
    %258 = vector.extract_strided_slice %224 {offsets = [0, 0], sizes = [25, 25], strides = [1, 1]} : vector<25x50xf32> to vector<25x25xf32>
    %259 = vector.broadcast %257 : vector<25x1xf32> to vector<25x25xf32>
    %260 = arith.mulf %258, %259 : vector<25x25xf32>
    %cst_88 = arith.constant dense<0xFF800000> : vector<25xf32>
    %261 = vector.multi_reduction <maximumf>, %260, %cst_88 [1] : vector<25x25xf32> to vector<25xf32>
    %262 = vector.shape_cast %261 : vector<25xf32> to vector<25x1xf32>
    %263 = vector.broadcast %262 : vector<25x1xf32> to vector<25x25xf32>
    %264 = arith.subf %260, %263 : vector<25x25xf32>
    %265 = math.exp %264 : vector<25x25xf32>
    %cst_89 = arith.constant dense<0.000000e+00> : vector<25xf32>
    %266 = vector.multi_reduction <add>, %265, %cst_89 [1] : vector<25x25xf32> to vector<25xf32>
    %267 = vector.shape_cast %266 : vector<25xf32> to vector<25x1xf32>
    %268 = tpu.reciprocal %267 {approx = true} : vector<25x1xf32> -> vector<25x1xf32>
    %269 = vector.broadcast %268 : vector<25x1xf32> to vector<25x25xf32>
    %270 = arith.mulf %265, %269 : vector<25x25xf32>
    %271 = arith.truncf %270 : vector<25x25xf32> to vector<25x25xbf16>
    %272 = vector.extract_strided_slice %13 {offsets = [0, 0], sizes = [25, 640], strides = [1, 1]} : vector<50x640xbf16> to vector<25x640xbf16>
    %cst_90 = arith.constant dense<0.000000e+00> : vector<25x640xf32>
    %273 = tpu.matmul %271, %272, %cst_90 {dimension_numbers = #tpu.dot_dimension_numbers<[1], [0], [0], [1], [0, 0, 1, 1], [], []>} : vector<25x25xbf16>, vector<25x640xbf16>, vector<25x640xf32> -> vector<25x640xf32>
    %274 = arith.mulf %273, %273 : vector<25x640xf32>
    %cst_91 = arith.constant dense<0.000000e+00> : vector<25xf32>
    %275 = vector.multi_reduction <add>, %274, %cst_91 [1] : vector<25x640xf32> to vector<25xf32>
    %276 = vector.shape_cast %275 : vector<25xf32> to vector<25x1xf32>
    %277 = math.sqrt %276 : vector<25x1xf32>
    %cst_92 = arith.constant 1.000000e-16 : f32
    %278 = vector.broadcast %cst_92 : f32 to vector<25x1xf32>
    %279 = arith.addf %277, %278 : vector<25x1xf32>
    %280 = tpu.reciprocal %279 {approx = true} : vector<25x1xf32> -> vector<25x1xf32>
    %281 = vector.broadcast %280 : vector<25x1xf32> to vector<25x640xf32>
    %282 = arith.mulf %273, %281 : vector<25x640xf32>
    %cst_93 = arith.constant dense<0.000000e+00> : vector<25x25xf32>
    %283 = tpu.matmul %282, %225, %cst_93 {dimension_numbers = #tpu.dot_dimension_numbers<[1], [1], [0], [0], [0, 0, 1, 0], [], []>} : vector<25x640xf32>, vector<25x640xf32>, vector<25x25xf32> -> vector<25x25xf32>
    %cst_94 = arith.constant dense<0xFF800000> : vector<25xf32>
    %284 = vector.multi_reduction <maximumf>, %283, %cst_94 [0] : vector<25x25xf32> to vector<25xf32>
    %285 = vector.shape_cast %284 : vector<25xf32> to vector<1x25xf32>
    %cst_95 = arith.constant dense<0.000000e+00> : vector<1xf32>
    %286 = vector.multi_reduction <add>, %285, %cst_95 [1] : vector<1x25xf32> to vector<1xf32>
    %287 = vector.shape_cast %286 : vector<1xf32> to vector<1x1xf32>
    %288 = vector.extract_strided_slice %224 {offsets = [0, 25], sizes = [25, 25], strides = [1, 1]} : vector<25x50xf32> to vector<25x25xf32>
    %289 = vector.broadcast %257 : vector<25x1xf32> to vector<25x25xf32>
    %290 = arith.mulf %288, %289 : vector<25x25xf32>
    %cst_96 = arith.constant dense<0xFF800000> : vector<25xf32>
    %291 = vector.multi_reduction <maximumf>, %290, %cst_96 [1] : vector<25x25xf32> to vector<25xf32>
    %292 = vector.shape_cast %291 : vector<25xf32> to vector<25x1xf32>
    %293 = vector.broadcast %292 : vector<25x1xf32> to vector<25x25xf32>
    %294 = arith.subf %290, %293 : vector<25x25xf32>
    %295 = math.exp %294 : vector<25x25xf32>
    %cst_97 = arith.constant dense<0.000000e+00> : vector<25xf32>
    %296 = vector.multi_reduction <add>, %295, %cst_97 [1] : vector<25x25xf32> to vector<25xf32>
    %297 = vector.shape_cast %296 : vector<25xf32> to vector<25x1xf32>
    %298 = tpu.reciprocal %297 {approx = true} : vector<25x1xf32> -> vector<25x1xf32>
    %299 = vector.broadcast %298 : vector<25x1xf32> to vector<25x25xf32>
    %300 = arith.mulf %295, %299 : vector<25x25xf32>
    %301 = arith.truncf %300 : vector<25x25xf32> to vector<25x25xbf16>
    %302 = vector.extract_strided_slice %13 {offsets = [25, 0], sizes = [25, 640], strides = [1, 1]} : vector<50x640xbf16> to vector<25x640xbf16>
    %cst_98 = arith.constant dense<0.000000e+00> : vector<25x640xf32>
    %303 = tpu.matmul %301, %302, %cst_98 {dimension_numbers = #tpu.dot_dimension_numbers<[1], [0], [0], [1], [0, 0, 1, 1], [], []>} : vector<25x25xbf16>, vector<25x640xbf16>, vector<25x640xf32> -> vector<25x640xf32>
    %304 = arith.mulf %303, %303 : vector<25x640xf32>
    %cst_99 = arith.constant dense<0.000000e+00> : vector<25xf32>
    %305 = vector.multi_reduction <add>, %304, %cst_99 [1] : vector<25x640xf32> to vector<25xf32>
    %306 = vector.shape_cast %305 : vector<25xf32> to vector<25x1xf32>
    %307 = math.sqrt %306 : vector<25x1xf32>
    %cst_100 = arith.constant 1.000000e-16 : f32
    %308 = vector.broadcast %cst_100 : f32 to vector<25x1xf32>
    %309 = arith.addf %307, %308 : vector<25x1xf32>
    %310 = tpu.reciprocal %309 {approx = true} : vector<25x1xf32> -> vector<25x1xf32>
    %311 = vector.broadcast %310 : vector<25x1xf32> to vector<25x640xf32>
    %312 = arith.mulf %303, %311 : vector<25x640xf32>
    %cst_101 = arith.constant dense<0.000000e+00> : vector<25x25xf32>
    %313 = tpu.matmul %312, %225, %cst_101 {dimension_numbers = #tpu.dot_dimension_numbers<[1], [1], [0], [0], [0, 0, 1, 0], [], []>} : vector<25x640xf32>, vector<25x640xf32>, vector<25x25xf32> -> vector<25x25xf32>
    %cst_102 = arith.constant dense<0xFF800000> : vector<25xf32>
    %314 = vector.multi_reduction <maximumf>, %313, %cst_102 [0] : vector<25x25xf32> to vector<25xf32>
    %315 = vector.shape_cast %314 : vector<25xf32> to vector<1x25xf32>
    %cst_103 = arith.constant dense<0.000000e+00> : vector<1xf32>
    %316 = vector.multi_reduction <add>, %315, %cst_103 [1] : vector<1x25xf32> to vector<1xf32>
    %317 = vector.shape_cast %316 : vector<1xf32> to vector<1x1xf32>
    %318 = tpu.concatenate %287, %317 in 1 : vector<1x1xf32>, vector<1x1xf32> -> vector<1x2xf32>
    %c0_104 = arith.constant 0 : index
    %c2 = arith.constant 2 : index
    %c0_105 = arith.constant 0 : index
    %319 = vector.load %arg7[%c0_104, %c2, %c0_105] : memref<1x3x2xf32, #tpu.memory_space<vmem>>, vector<1x1x2xf32>
    %320 = vector.shape_cast %319 : vector<1x1x2xf32> to vector<1x2xf32>
    %321 = vector.shape_cast %318 : vector<1x2xf32> to vector<1x1x2xf32>
    tpu.vector_store %arg7[%c0_104, %c2, %c0_105], %321 {strides = array<i32>} : memref<1x3x2xf32, #tpu.memory_space<vmem>>, vector<1x1x2xf32>,
    return
  }
  func.func @transform_0(%arg0: i32) -> (i32, i32, i32) {
    %c0_i32 = arith.constant 0 : i32
    %c0_i32_0 = arith.constant 0 : i32
    %c0_i32_1 = arith.constant 0 : i32
    return %arg0, %c0_i32, %c0_i32_0 : i32, i32, i32
  }
  func.func @transform_1(%arg0: i32) -> (i32, i32, i32) {
    %c0_i32 = arith.constant 0 : i32
    %c0_i32_0 = arith.constant 0 : i32
    %c0_i32_1 = arith.constant 0 : i32
    return %arg0, %c0_i32, %c0_i32_0 : i32, i32, i32
  }
  func.func @transform_2(%arg0: i32) -> (i32, i32, i32) {
    %c0_i32 = arith.constant 0 : i32
    %c0_i32_0 = arith.constant 0 : i32
    %c0_i32_1 = arith.constant 0 : i32
    return %arg0, %c0_i32, %c0_i32_0 : i32, i32, i32
  }
  func.func @transform_3(%arg0: i32) -> (i32, i32) {
    %c0_i32 = arith.constant 0 : i32
    %c0_i32_0 = arith.constant 0 : i32
    %c0_i32_1 = arith.constant 0 : i32
    return %c0_i32, %c0_i32_0 : i32, i32
  }
  func.func @transform_4(%arg0: i32) -> (i32, i32) {
    %c0_i32 = arith.constant 0 : i32
    %c0_i32_0 = arith.constant 0 : i32
    %c0_i32_1 = arith.constant 0 : i32
    return %c0_i32, %c0_i32_0 : i32, i32
  }
  func.func @transform_5(%arg0: i32) -> (i32, i32) {
    %c0_i32 = arith.constant 0 : i32
    %c0_i32_0 = arith.constant 0 : i32
    %c0_i32_1 = arith.constant 0 : i32
    return %c0_i32, %c0_i32_0 : i32, i32
  }
  func.func @transform_6(%arg0: i32) -> (i32, i32, i32) {
    %c0_i32 = arith.constant 0 : i32
    %c0_i32_0 = arith.constant 0 : i32
    %c0_i32_1 = arith.constant 0 : i32
    return %arg0, %c0_i32, %c0_i32_0 : i32, i32, i32
  }
}

</mosaic_0001>

<bundles_post_ra>
// kernel: st_forward_eval.1
= control target key start
LH: loop header
LB: loop body
LE: loop exit
PB: predicated region body
PF: predicated region fallthrough
CT: control target
= control target key end

     0   :  { %s12056_s21 = smov 0   ;;  %s16914_s0 = inlined_call_operand.vmem [shape: bf16[2,75,640], index: 0, kind: input, shape index: {}]   ;;  %s16915_s1 = inlined_call_operand.vmem [shape: bf16[2,50,640], index: 1, kind: input, shape index: {}]   ;;  %s16916_s2 = inlined_call_operand.vmem [shape: bf16[2,640,50], index: 2, kind: input, shape index: {}]   ;;  %s16917_s3 = inlined_call_operand.vmem [shape: bf16[640,160], index: 3, kind: input, shape index: {}]   ;;  %s16918_s4 = inlined_call_operand.vmem [shape: bf16[160,640], index: 4, kind: input, shape index: {}]   ;;  %s16919_s5 = inlined_call_operand.vmem [shape: bf16[640,640], index: 5, kind: input, shape index: {}]   ;;  %s16920_s6 = inlined_call_operand.vmem [shape: f32[2,3,2], index: 6, kind: output, shape index: {}]  }
   0x1 LB: > { %s9826_s22 = sadd.s32 4294967295, %s12014_s21   ;;  %p9830_p0 = scmp.ge.s32.totalorder %s12014_s21, 1  ;;  %s12014_s21 = sphi %s12056_s21, %s16_s21  }
   0x2   : > { %p232_p1 = scmp.lt.s32.totalorder %s12014_s21, 3 }
   0x4   : > { %p233_p2 = pnand %p9830_p0, %p232_p1 }
   0x6   : > { %236 = sbr.rel (%p233_p2) target bundleno = 5081 (0x13d9), region = 44 }
   0xb   : > { %v10976_v0 = vld [vmem:[%s16917_s3 + $0x74] ss:$8 sps:$4 sm:$0xff]   ;;  %v10980_v2 = vld [vmem:[%s16917_s3 + $0x70] ss:$8 sps:$4 sm:$0xff]   ;;  %v10982_v4 = vld [vmem:[%s16917_s3 + $0x64] ss:$8 sps:$4 sm:$0xff]  }
   0xc   : > { %v10978_v1 = vld [vmem:[%s16917_s3 + $0x174] ss:$8 sps:$4 sm:$0xff]   ;;  %1332 = vmatprep.subr.bf16.mxu0 %v10976_v0  ;;  %v10981_v3 = vld [vmem:[%s16917_s3 + $0x170] ss:$8 sps:$4 sm:$0xff]   ;;  %v10984_v5 = vld [vmem:[%s16917_s3 + $0x164] ss:$8 sps:$4 sm:$0xff]  }
   0xd   : > { %1415 = vmatprep.subr.bf16.mxu1 %v10978_v1  ;;  %1333 = vmatpush1.bf16.msra.mxu0 %v10980_v2  ;;  %v10986_v6 = vld [vmem:[%s16917_s3 + $0x60] ss:$8 sps:$4 sm:$0xff]   ;;  %v10988_v8 = vld [vmem:[%s16917_s3 + $0x54] ss:$8 sps:$4 sm:$0xff]   ;;  %v10992_v10 = vld [vmem:[%s16917_s3 + $0x50] ss:$8 sps:$4 sm:$0xff]  }
   0xe   : > { %1416 = vmatpush1.bf16.msra.mxu1 %v10981_v3  ;;  %1334 = vmatprep.subr.bf16.mxu0 %v10982_v4  ;;  %v10987_v7 = vld [vmem:[%s16917_s3 + $0x160] ss:$8 sps:$4 sm:$0xff]   ;;  %v10990_v9 = vld [vmem:[%s16917_s3 + $0x154] ss:$8 sps:$4 sm:$0xff]   ;;  %v10993_v11 = vld [vmem:[%s16917_s3 + $0x150] ss:$8 sps:$4 sm:$0xff]  }
   0xf   : > { %1417 = vmatprep.subr.bf16.mxu1 %v10984_v5  ;;  %v10994_v12 = vld [vmem:[%s16917_s3 + $0x44] ss:$8 sps:$4 sm:$0xff]   ;;  %v10998_v14 = vld [vmem:[%s16917_s3 + $0x40] ss:$8 sps:$4 sm:$0xff]   ;;  %v11000_v16 = vld [vmem:[%s16917_s3 + $0x34] ss:$8 sps:$4 sm:$0xff]  }
  0x10   : > { %v10996_v13 = vld [vmem:[%s16917_s3 + $0x144] ss:$8 sps:$4 sm:$0xff]   ;;  %v10999_v15 = vld [vmem:[%s16917_s3 + $0x140] ss:$8 sps:$4 sm:$0xff]   ;;  %v11002_v17 = vld [vmem:[%s16917_s3 + $0x134] ss:$8 sps:$4 sm:$0xff]  }
  0x11   : > { %1335 = vmatpush1.bf16.msra.mxu0 %v10986_v6  ;;  %v11004_v18 = vld [vmem:[%s16917_s3 + $0x30] ss:$8 sps:$4 sm:$0xff]   ;;  %v11006_v20 = vld [vmem:[%s16917_s3 + $0x24] ss:$8 sps:$4 sm:$0xff]   ;;  %v11010_v22 = vld [vmem:[%s16917_s3 + $0x20] ss:$8 sps:$4 sm:$0xff]  }
  0x12   : > { %1418 = vmatpush1.bf16.msra.mxu1 %v10987_v7  ;;  %1336 = vmatprep.subr.bf16.mxu0 %v10988_v8  ;;  %v11005_v19 = vld [vmem:[%s16917_s3 + $0x130] ss:$8 sps:$4 sm:$0xff]   ;;  %v11008_v21 = vld [vmem:[%s16917_s3 + $0x124] ss:$8 sps:$4 sm:$0xff]   ;;  %v11011_v23 = vld [vmem:[%s16917_s3 + $0x120] ss:$8 sps:$4 sm:$0xff]  }
  0x13   : > { %1419 = vmatprep.subr.bf16.mxu1 %v10990_v9  ;;  %v11012_v24 = vld [vmem:[%s16917_s3 + $0x14] ss:$8 sps:$4 sm:$0xff]   ;;  %v11016_v26 = vld [vmem:[%s16917_s3 + $0x10] ss:$8 sps:$4 sm:$0xff]   ;;  %v11018_v28 = vld [vmem:[%s16917_s3 + $0x4] ss:$8 sps:$4 sm:$0xff]  }
  0x14   : > { %v11014_v25 = vld [vmem:[%s16917_s3 + $0x114] ss:$8 sps:$4 sm:$0xff]   ;;  %v11017_v27 = vld [vmem:[%s16917_s3 + $0x110] ss:$8 sps:$4 sm:$0xff]   ;;  %v11020_v29 = vld [vmem:[%s16917_s3 + $0x104] ss:$8 sps:$4 sm:$0xff]  }
  0x15   : > { %1337 = vmatpush1.bf16.msra.mxu0 %v10992_v10  ;;  %v11022_v30 = vld [vmem:[%s16917_s3] ss:$8 sps:$4 sm:$0xff]   ;;  %v11024_v32 = vld [vmem:[%s16917_s3 + $0xf4] ss:$8 sps:$4 sm:$0xff]   ;;  %p271_p3 = scmp.lt.s32.totalorder %s9826_s22, 1  ;;  %vm12018_vm0 = vmmov 0  }
  0x16   : > { %1420 = vmatpush1.bf16.msra.mxu1 %v10993_v11  ;;  %1338 = vmatprep.subr.bf16.mxu0 %v10994_v12  ;;  %v11023_v31 = vld [vmem:[%s16917_s3 + $0x100] ss:$8 sps:$4 sm:$0xff]   ;;  %v11026_v33 = vld [vmem:[%s16917_s3 + $0x1f4] ss:$8 sps:$4 sm:$0xff]   ;;  %v11028_v34 = vld [vmem:[%s16917_s3 + $0xf0] ss:$8 sps:$4 sm:$0xff]  }
  0x17   : > { %1421 = vmatprep.subr.bf16.mxu1 %v10996_v13  ;;  %v11029_v35 = vld [vmem:[%s16917_s3 + $0x1f0] ss:$8 sps:$4 sm:$0xff]   ;;  %v11030_v36 = vld [vmem:[%s16917_s3 + $0xe4] ss:$8 sps:$4 sm:$0xff]   ;;  %s17522_s22 = smov (!%p271_p3, %s9826_s22), 1  ;;  %vm4931_vm1 = vcmask 261120  }
  0x18   : > { %v11032_v37 = vld [vmem:[%s16917_s3 + $0x1e4] ss:$8 sps:$4 sm:$0xff]   ;;  %v11034_v38 = vld [vmem:[%s16917_s3 + $0xe0] ss:$8 sps:$4 sm:$0xff]   ;;  %v11036_v40 = vld [vmem:[%s16917_s3 + $0xd4] ss:$8 sps:$4 sm:$0xff]  }
  0x19   : > { %1339 = vmatpush1.bf16.msra.mxu0 %v10998_v14  ;;  %v11035_v39 = vld [vmem:[%s16917_s3 + $0x1e0] ss:$8 sps:$4 sm:$0xff]   ;;  %s10960_s15 = smul.u32 200, %s17522_s22  ;;  %v11038_v41 = vld [vmem:[%s16917_s3 + $0x1d4] ss:$8 sps:$4 sm:$0xff]   ;;  %vm5499_vm2 = vcmask 1043456  }
  0x1a   : > { %1422 = vmatpush1.bf16.msra.mxu1 %v10999_v15  ;;  %1340 = vmatprep.subr.bf16.mxu0 %v11000_v16  ;;  %v11040_v42 = vld [vmem:[%s16917_s3 + $0xd0] ss:$8 sps:$4 sm:$0xff]   ;;  %v11042_v44 = vld [vmem:[%s16917_s3 + $0xc4] ss:$8 sps:$4 sm:$0xff]   ;;  %v11046_v46 = vld [vmem:[%s16917_s3 + $0xc0] ss:$8 sps:$4 sm:$0xff]  }
  0x1b   : > { %1423 = vmatprep.subr.bf16.mxu1 %v11002_v17  ;;  %v11041_v43 = vld [vmem:[%s16917_s3 + $0x1d0] ss:$8 sps:$4 sm:$0xff]   ;;  %s12209_s28 = scalar_lea.vmem %s16914_s0, %s10960_s15  ;;  %v11044_v45 = vld [vmem:[%s16917_s3 + $0x1c4] ss:$8 sps:$4 sm:$0xff]   ;;  %v11047_v47 = vld [vmem:[%s16917_s3 + $0x1c0] ss:$8 sps:$4 sm:$0xff]  }
  0x1c   : > { %v12221_v48 = vld [vmem:[%s12209_s28 + $0x4] ss:$20 sps:$4 sm:$0xff]   ;;  %v11048_v49 = vld [vmem:[%s16917_s3 + $0xb4] ss:$8 sps:$4 sm:$0xff]   ;;  %v12227_v50 = vld [vmem:[%s12209_s28 + $0xc] ss:$20 sps:$4 sm:$0xff]  }
  0x1d   : > { %1341 = vmatpush1.bf16.msra.mxu0 %v11004_v18  ;;  %v11050_v51 = vld [vmem:[%s16917_s3 + $0x1b4] ss:$8 sps:$4 sm:$0xff]   ;;  %1364 = vmatprep.mubr.bf16.mxu0 %v12221_v48  ;;  %v11052_v52 = vld [vmem:[%s16917_s3 + $0xb0] ss:$8 sps:$4 sm:$0xff]   ;;  %v11054_v54 = vld [vmem:[%s16917_s3 + $0xa4] ss:$8 sps:$4 sm:$0xff]  }
  0x1e   : > { %1424 = vmatpush1.bf16.msra.mxu1 %v11005_v19  ;;  %1342 = vmatprep.subr.bf16.mxu0 %v11006_v20  ;;  %v11053_v53 = vld [vmem:[%s16917_s3 + $0x1b0] ss:$8 sps:$4 sm:$0xff]   ;;  %v11056_v55 = vld [vmem:[%s16917_s3 + $0x1a4] ss:$8 sps:$4 sm:$0xff]   ;;  %v11058_v56 = vld [vmem:[%s16917_s3 + $0xa0] ss:$8 sps:$4 sm:$0xff]  }
  0x1f   : > { %1425 = vmatprep.subr.bf16.mxu1 %v11008_v21  ;;  %1447 = vmatprep.mubr.bf16.mxu1 %v12227_v50  ;;  %v11059_v57 = vld [vmem:[%s16917_s3 + $0x1a0] ss:$8 sps:$4 sm:$0xff]   ;;  %v11060_v58 = vld [vmem:[%s16917_s3 + $0x94] ss:$8 sps:$4 sm:$0xff]   ;;  %v11064_v60 = vld [vmem:[%s16917_s3 + $0x90] ss:$8 sps:$4 sm:$0xff]  }
  0x20   : > { %v11062_v59 = vld [vmem:[%s16917_s3 + $0x194] ss:$8 sps:$4 sm:$0xff]   ;;  %v11065_v61 = vld [vmem:[%s16917_s3 + $0x190] ss:$8 sps:$4 sm:$0xff]   ;;  %v11066_v62 = vld [vmem:[%s16917_s3 + $0x84] ss:$8 sps:$4 sm:$0xff]  }
  0x21   : > { %1343 = vmatpush1.bf16.msra.mxu0 %v11010_v22  ;;  %v11068_v63 = vld [vmem:[%s16917_s3 + $0x184] ss:$8 sps:$4 sm:$0xff]   ;;  %v11070_v0 = vld [vmem:[%s16917_s3 + $0x80] ss:$8 sps:$4 sm:$0xff]   ;;  %v11080_v2 = vld [vmem:[%s16917_s3 + $0x274] ss:$8 sps:$4 sm:$0xff]  }
  0x22   : > { %1426 = vmatpush1.bf16.msra.mxu1 %v11011_v23  ;;  %1344 = vmatprep.subr.bf16.mxu0 %v11012_v24  ;;  %v11071_v1 = vld [vmem:[%s16917_s3 + $0x180] ss:$8 sps:$4 sm:$0xff]   ;;  %v11083_v4 = vld [vmem:[%s16919_s5 + $0x11c] ss:$20 sps:$4 sm:$0xff]   ;;  %v11081_v7 = vld [vmem:[%s16919_s5 + $0x118] ss:$20 sps:$4 sm:$0xff]  }
  0x23   : > { %1427 = vmatprep.subr.bf16.mxu1 %v11014_v25  ;;  %v12280_v3 = vld [vmem:[%s12209_s28] ss:$20 sps:$4 sm:$0xff]   ;;  %v12286_v5 = vld [vmem:[%s12209_s28 + $0x8] ss:$20 sps:$4 sm:$0xff]   ;;  %v11078_v6 = vld [vmem:[%s16917_s3 + $0x270] ss:$8 sps:$4 sm:$0xff]  }
  0x24   : > { %v11086_v8 = vld [vmem:[%s16919_s5 + $0xf4] ss:$20 sps:$4 sm:$0xff]   ;;  %v11089_v9 = vld [vmem:[%s16917_s3 + $0x264] ss:$8 sps:$4 sm:$0xff]   ;;  %v11099_v19 = vld [vmem:[%s16917_s3 + $0x250] ss:$8 sps:$4 sm:$0xff]  }
  0x25   : > { %1345 = vmatpush1.bf16.msra.mxu0 %v11016_v26  ;;  %v12301_v10 = vld [vmem:[%s12209_s28 + $0x2c] ss:$20 sps:$4 sm:$0xff]   ;;  %v12304_v11 = vld [vmem:[%s12209_s28 + $0x34] ss:$20 sps:$4 sm:$0xff]   ;;  %v11084_v12 = vld [vmem:[%s16919_s5 + $0xf0] ss:$20 sps:$4 sm:$0xff]  }
  0x26   : > { %1428 = vmatpush1.bf16.msra.mxu1 %v11017_v27  ;;  %1346 = vmatprep.subr.bf16.mxu0 %v11018_v28  ;;  %v11087_v13 = vld [vmem:[%s16917_s3 + $0x260] ss:$8 sps:$4 sm:$0xff]   ;;  %v11101_v16 = vld [vmem:[%s16917_s3 + $0x254] ss:$8 sps:$4 sm:$0xff]   ;;  %v12326_v17 = vld [vmem:[%s12209_s28 + $0x30] ss:$20 sps:$4 sm:$0xff]  }
  0x27   : > { %1429 = vmatprep.subr.bf16.mxu1 %v11020_v29  ;;  %v11098_v14 = vld [vmem:[%s16919_s5 + $0xcc] ss:$20 sps:$4 sm:$0xff]   ;;  %v12318_v15 = vld [vmem:[%s12209_s28 + $0x28] ss:$20 sps:$4 sm:$0xff]   ;;  %v11104_v20 = vld [vmem:[%s16919_s5 + $0xa4] ss:$20 sps:$4 sm:$0xff]  }
  0x28   : > { %v11096_v18 = vld [vmem:[%s16919_s5 + $0xc8] ss:$20 sps:$4 sm:$0xff]   ;;  %v11111_v23 = vld [vmem:[%s16917_s3 + $0x244] ss:$8 sps:$4 sm:$0xff]   ;;  %v11102_v24 = vld [vmem:[%s16919_s5 + $0xa0] ss:$20 sps:$4 sm:$0xff]  }
  0x29   : > { %1347 = vmatpush1.bf16.msra.mxu0 %v11022_v30  ;;  %v12338_v21 = vld [vmem:[%s12209_s28 + $0x54] ss:$20 sps:$4 sm:$0xff]   ;;  %v12341_v22 = vld [vmem:[%s12209_s28 + $0x5c] ss:$20 sps:$4 sm:$0xff]   ;;  %v12366_v29 = vld [vmem:[%s12209_s28 + $0x58] ss:$20 sps:$4 sm:$0xff]  }
  0x2a   : > { %1430 = vmatpush1.bf16.msra.mxu1 %v11023_v31  ;;  %1348 = vmatprep.subr.bf16.mxu0 %v11024_v32  ;;  %v11109_v25 = vld [vmem:[%s16917_s3 + $0x240] ss:$8 sps:$4 sm:$0xff]   ;;  %v12356_v26 = vld [vmem:[%s12209_s28 + $0x50] ss:$20 sps:$4 sm:$0xff]   ;;  %v11119_v28 = vld [vmem:[%s16917_s3 + $0x234] ss:$8 sps:$4 sm:$0xff]  }
  0x2b   : > { %1431 = vmatprep.subr.bf16.mxu1 %v11026_v33  ;;  %v11116_v27 = vld [vmem:[%s16919_s5 + $0x7c] ss:$20 sps:$4 sm:$0xff]   ;;  %v11114_v30 = vld [vmem:[%s16919_s5 + $0x78] ss:$20 sps:$4 sm:$0xff]   ;;  %v11122_v32 = vld [vmem:[%s16919_s5 + $0x54] ss:$20 sps:$4 sm:$0xff]  }
  0x2c   : > { %v11117_v31 = vld [vmem:[%s16917_s3 + $0x230] ss:$8 sps:$4 sm:$0xff]   ;;  %s10962_s14 = smul.u32 320, %s17522_s22  ;;  %vm5500_vm3 = vcmask 1044480   ;;  %vm6120_vm4 = vsmask.f32 3328 }
  0x2d   : > { %1349 = vmatpush2.bf16.msra.mxu0 %v11028_v34  ;;  %v12378_v33 = vld [vmem:[%s12209_s28 + $0x7c] ss:$20 sps:$4 sm:$0xff]   ;;  %v12381_v34 = vld [vmem:[%s12209_s28 + $0x84] ss:$20 sps:$4 sm:$0xff]   ;;  %s10961_s25 = smul.u32 140, %s17522_s22  ;;  %vm5283_vm5 = vcmask 408576  }
  0x2e   : > { %1432 = vmatpush2.bf16.msra.mxu1 %v11029_v35  ;;  %1350 = vmatprep.subr.bf16.mxu0 %v11030_v36  ;;  %v11134_v35 = vld [vmem:[%s16917_s3 + $0x224] ss:$8 sps:$4 sm:$0xff]   ;;  %s12864_s10 = scalar_lea.vmem %s16916_s2, %s10962_s14  ;;  %vm5293_vm6 = vcmask 401408   ;;  %s12020_s30 = smov 103  }
  0x2f   : > { %1433 = vmatprep.subr.bf16.mxu1 %v11032_v37  ;;  %v11120_v36 = vld [vmem:[%s16919_s5 + $0x50] ss:$20 sps:$4 sm:$0xff]   ;;  %v11131_v37 = vld [vmem:[%s16919_s5 + $0x2c] ss:$20 sps:$4 sm:$0xff]   ;;  %s13232_s29 = scalar_lea.vmem %s16915_s1, %s10961_s25  ;;  %s9834_s7 = sshll.u32 %s17522_s22, 2 }
  0x30   : > { %s16868_s9 = scalar_lea.vmem %s16920_s6, %s9834_s7 }
  0x31   : > { %1351 = vmatpush2.bf16.msra.mxu0 %v11034_v38  ;;  %v11132_v38 = vld [vmem:[%s16917_s3 + $0x220] ss:$8 sps:$4 sm:$0xff]  }
  0x32   : > { %1434 = vmatpush2.bf16.msra.mxu1 %v11035_v39  ;;  %1352 = vmatprep.subr.bf16.mxu0 %v11036_v40  ;;  %v11140_v39 = vld [vmem:[%s16917_s3 + $0x214] ss:$8 sps:$4 sm:$0xff]   ;;  %v12403_v40 = vld [vmem:[%s12209_s28 + $0x78] ss:$20 sps:$4 sm:$0xff]  }
  0x33   : > { %1435 = vmatprep.subr.bf16.mxu1 %v11038_v41  ;;  %v12406_v41 = vld [vmem:[%s12209_s28 + $0x80] ss:$20 sps:$4 sm:$0xff]  }
  0x35   : > { %1353 = vmatpush2.bf16.msra.mxu0 %v11040_v42  ;;  %v11129_v42 = vld [vmem:[%s16919_s5 + $0x28] ss:$20 sps:$4 sm:$0xff]  }
  0x36   : > { %1436 = vmatpush2.bf16.msra.mxu1 %v11041_v43  ;;  %1354 = vmatprep.subr.bf16.mxu0 %v11042_v44  ;;  %v12412_v43 = vld [vmem:[%s12209_s28 + $0xa4] ss:$20 sps:$4 sm:$0x3f]  }
  0x37   : > { %1437 = vmatprep.subr.bf16.mxu1 %v11044_v45  ;;  %v11137_v44 = vld [vmem:[%s16919_s5 + $0x4] ss:$20 sps:$4 sm:$0xff]   ;;  %v12418_v45 = vld [vmem:[%s12209_s28 + $0xac] ss:$20 sps:$4 sm:$0x3f]  }
  0x39   : > { %1355 = vmatpush2.bf16.msra.mxu0 %v11046_v46  ;;  %v11138_v46 = vld [vmem:[%s16917_s3 + $0x210] ss:$8 sps:$4 sm:$0xff]  }
  0x3a   : > { %1438 = vmatpush2.bf16.msra.mxu1 %v11047_v47  ;;  %1356 = vmatprep.subr.bf16.mxu0 %v11048_v49  ;;  %v11152_v47 = vld [vmem:[%s16917_s3 + $0x204] ss:$8 sps:$4 sm:$0xff]   ;;  %v11135_v49 = vld [vmem:[%s16919_s5] ss:$20 sps:$4 sm:$0xff]  }
  0x3b   : > { %1439 = vmatprep.subr.bf16.mxu1 %v11050_v51  ;;  %v12434_v51 = vld [vmem:[%s12209_s28 + $0xa0] ss:$20 sps:$4 sm:$0x3f]  }
  0x3d   : > { %1357 = vmatpush2.bf16.msra.mxu0 %v11052_v52  ;;  %v11149_v52 = vld [vmem:[%s16919_s5 + $0x25c] ss:$20 sps:$4 sm:$0xff]  }
  0x3e   : > { %1440 = vmatpush2.bf16.msra.mxu1 %v11053_v53  ;;  %1358 = vmatprep.subr.bf16.mxu0 %v11054_v54  ;;  %v11150_v53 = vld [vmem:[%s16917_s3 + $0x200] ss:$8 sps:$4 sm:$0xff]  }
  0x3f   : > { %1441 = vmatprep.subr.bf16.mxu1 %v11056_v55  ;;  %v12443_v54 = vld [vmem:[%s12209_s28 + $0xa8] ss:$20 sps:$4 sm:$0x3f]   ;;  %v11147_v55 = vld [vmem:[%s16919_s5 + $0x258] ss:$20 sps:$4 sm:$0xff]  }
  0x41   : > { %1359 = vmatpush2.bf16.msra.mxu0 %v11058_v56  ;;  %v11155_v56 = vld [vmem:[%s16919_s5 + $0x234] ss:$20 sps:$4 sm:$0xff]  }
  0x42   : > { %1442 = vmatpush2.bf16.msra.mxu1 %v11059_v57  ;;  %1360 = vmatprep.subr.bf16.mxu0 %v11060_v58  ;;  %v11158_v57 = vld [vmem:[%s16919_s5 + $0x39c] ss:$20 sps:$4 sm:$0xff]  }
  0x43   : > { %1443 = vmatprep.subr.bf16.mxu1 %v11062_v59  ;;  %v11153_v58 = vld [vmem:[%s16919_s5 + $0x230] ss:$20 sps:$4 sm:$0xff]   ;;  %v16923_v59 = vmov 0  }
  0x45   : > { %1361 = vmatpush2.bf16.msra.mxu0 %v11064_v60  ;;  %v11162_v60 = vld [vmem:[%s16919_s5 + $0x20c] ss:$20 sps:$4 sm:$0xff]  }
  0x46   : > { %1444 = vmatpush2.bf16.msra.mxu1 %v11065_v61  ;;  %1362 = vmatprep.subr.bf16.mxu0 %v11066_v62  ;;  %v11156_v61 = vld [vmem:[%s16919_s5 + $0x398] ss:$20 sps:$4 sm:$0xff]   ;;  %v12468_v62 = vld [vmem:[%s12209_s28 + $0x10] ss:$20 sps:$4 sm:$0xff]  }
  0x47   : > { %1445 = vmatprep.subr.bf16.mxu1 %v11068_v63  ;;  %v11160_v63 = vld [vmem:[%s16919_s5 + $0x208] ss:$20 sps:$4 sm:$0xff]  }
  0x49   : > { %1363 = vmatpush2.bf16.msra.mxu0 %v11070_v0  ;;  %v11165_v0 = vld [vmem:[%s16919_s5 + $0x374] ss:$20 sps:$4 sm:$0xff]  }
  0x4a   : > { %1446 = vmatpush2.bf16.msra.mxu1 %v11071_v1  ;;  %1498 = vmatprep.subr.bf16.mxu0 %v11080_v2  ;;  %v11168_v1 = vld [vmem:[%s16919_s5 + $0x1e4] ss:$20 sps:$4 sm:$0xff]   ;;  %v11166_v2 = vld [vmem:[%s16919_s5 + $0x1e0] ss:$20 sps:$4 sm:$0xff]  }
  0x4b   : > { %2621 = vmatprep.subr.bf16.mxu1 %v11083_v4  ;;  %v11171_v4 = vld [vmem:[%s16919_s5 + $0x34c] ss:$20 sps:$4 sm:$0xff]  }
  0x4c   : > { %1365 = vmatmul.mubr.bf16.vlgmr.msra.gmra.mxu0 %v12280_v3 }
  0x4d   : > { %1448 = vmatmul.mubr.bf16.vlgmr.msra.gmra.mxu1 %v12286_v5  ;;  %1499 = vmatpush1.bf16.msra.mxu0 %v11078_v6  ;;  %v11175_v6 = vld [vmem:[%s16919_s5 + $0x1bc] ss:$20 sps:$4 sm:$0xff]  }
  0x4e   : > { %2622 = vmatpush1.bf16.msra.mxu1 %v11081_v7  ;;  %1500 = vmatprep.subr.bf16.mxu0 %v11089_v9  ;;  %v11169_v7 = vld [vmem:[%s16919_s5 + $0x348] ss:$20 sps:$4 sm:$0xff]   ;;  %v11173_v9 = vld [vmem:[%s16919_s5 + $0x1b8] ss:$20 sps:$4 sm:$0xff]  }
  0x4f   : > { %2623 = vmatprep.subr.bf16.mxu1 %v11086_v8  ;;  %1374 = vmatprep.mubr.bf16.mxu0 %v12301_v10  ;;  %v12497_v8 = vld [vmem:[%s12209_s28 + $0x38] ss:$20 sps:$4 sm:$0xff]  }
  0x50   : > { %1457 = vmatprep.mubr.bf16.mxu1 %v12304_v11 }
  0x51   : > { %1501 = vmatpush1.bf16.msra.mxu0 %v11087_v13  ;;  %v11181_v13 = vld [vmem:[%s16919_s5 + $0x194] ss:$20 sps:$4 sm:$0xff]  }
  0x52   : > { %2624 = vmatpush1.bf16.msra.mxu1 %v11084_v12  ;;  %1502 = vmatprep.subr.bf16.mxu0 %v11101_v16  ;;  %v11178_v12 = vld [vmem:[%s16919_s5 + $0x324] ss:$20 sps:$4 sm:$0xff]  }
  0x53   : > { %2625 = vmatprep.subr.bf16.mxu1 %v11098_v14  ;;  %v11176_v14 = vld [vmem:[%s16919_s5 + $0x320] ss:$20 sps:$4 sm:$0xff]   ;;  %v11179_v16 = vld [vmem:[%s16919_s5 + $0x190] ss:$20 sps:$4 sm:$0xff]  }
  0x54   : > { %1375 = vmatmul.mubr.bf16.gmra.mxu0 %v12318_v15 }
  0x55   : > { %1458 = vmatmul.mubr.bf16.gmra.mxu1 %v12326_v17  ;;  %1503 = vmatpush1.bf16.msra.mxu0 %v11099_v19  ;;  %v11188_v19 = vld [vmem:[%s16919_s5 + $0x16c] ss:$20 sps:$4 sm:$0xff]  }
  0x56   : > { %2626 = vmatpush1.bf16.msra.mxu1 %v11096_v18  ;;  %1384 = vmatprep.mubr.bf16.mxu0 %v12338_v21  ;;  %v11184_v18 = vld [vmem:[%s16919_s5 + $0x2fc] ss:$20 sps:$4 sm:$0xff]  }
  0x57   : > { %2627 = vmatprep.subr.bf16.mxu1 %v11104_v20  ;;  %1467 = vmatprep.mubr.bf16.mxu1 %v12341_v22  ;;  %v11182_v20 = vld [vmem:[%s16919_s5 + $0x2f8] ss:$20 sps:$4 sm:$0xff]  }
  0x58   : > { %1504 = vmatprep.subr.bf16.mxu0 %v11111_v23  ;;  %v12526_v23 = vld [vmem:[%s12209_s28 + $0x60] ss:$20 sps:$4 sm:$0xff]  }
  0x59   : > { %1505 = vmatpush1.bf16.msra.mxu0 %v11109_v25  ;;  %v11191_v25 = vld [vmem:[%s16919_s5 + $0x2d4] ss:$20 sps:$4 sm:$0xff]  }
  0x5a   : > { %2628 = vmatpush1.bf16.msra.mxu1 %v11102_v24  ;;  %1506 = vmatprep.subr.bf16.mxu0 %v11119_v28  ;;  %v11186_v24 = vld [vmem:[%s16919_s5 + $0x168] ss:$20 sps:$4 sm:$0xff]   ;;  %v11189_v28 = vld [vmem:[%s16919_s5 + $0x2d0] ss:$20 sps:$4 sm:$0xff]  }
  0x5b   : > { %2629 = vmatprep.subr.bf16.mxu1 %v11116_v27  ;;  %v11194_v27 = vld [vmem:[%s16919_s5 + $0x144] ss:$20 sps:$4 sm:$0xff]  }
  0x5c   : > { %1385 = vmatmul.mubr.bf16.gmra.mxu0 %v12356_v26 }
  0x5d   : > { %1468 = vmatmul.mubr.bf16.gmra.mxu1 %v12366_v29  ;;  %1507 = vmatpush1.bf16.msra.mxu0 %v11117_v31  ;;  %v11197_v31 = vld [vmem:[%s16919_s5 + $0x2ac] ss:$20 sps:$4 sm:$0xff]  }
  0x5e   : > { %2630 = vmatpush1.bf16.msra.mxu1 %v11114_v30  ;;  %1394 = vmatprep.mubr.bf16.mxu0 %v12378_v33  ;;  %v11192_v30 = vld [vmem:[%s16919_s5 + $0x140] ss:$20 sps:$4 sm:$0xff]  }
  0x5f   : > { %2631 = vmatprep.subr.bf16.mxu1 %v11122_v32  ;;  %1477 = vmatprep.mubr.bf16.mxu1 %v12381_v34  ;;  %v11207_v32 = vld [vmem:[%s16919_s5 + $0x61c] ss:$20 sps:$4 sm:$0xff]  }
  0x60   : > { %1508 = vmatprep.subr.bf16.mxu0 %v11134_v35  ;;  %v12552_v35 = vld [vmem:[%s12209_s28 + $0x88] ss:$20 sps:$4 sm:$0xff]  }
  0x61   : > { %1509 = vmatpush1.bf16.msra.mxu0 %v11132_v38  ;;  %v11205_v38 = vld [vmem:[%s16919_s5 + $0x618] ss:$20 sps:$4 sm:$0xff]  }
  0x62   : > { %2632 = vmatpush1.bf16.msra.mxu1 %v11120_v36  ;;  %1510 = vmatprep.subr.bf16.mxu0 %v11140_v39  ;;  %v11195_v36 = vld [vmem:[%s16919_s5 + $0x2a8] ss:$20 sps:$4 sm:$0xff]  }
  0x63   : > { %2633 = vmatprep.subr.bf16.mxu1 %v11131_v37  ;;  %v11201_v37 = vld [vmem:[%s16919_s5 + $0x284] ss:$20 sps:$4 sm:$0xff]   ;;  %v11214_v39 = vld [vmem:[%s16919_s5 + $0x5f4] ss:$20 sps:$4 sm:$0xff]  }
  0x64   : > { %1395 = vmatmul.mubr.bf16.gmra.mxu0 %v12403_v40 }
  0x65   : > { %1478 = vmatmul.mubr.bf16.gmra.mxu1 %v12406_v41  ;;  %1404 = vmatprep.mubr.bf16.mxu0 %v12412_v43 }
  0x66   : > { %2634 = vmatpush1.bf16.msra.mxu1 %v11129_v42  ;;  %1487 = vmatprep.mubr.bf16.mxu1 %v12418_v45  ;;  %v11199_v42 = vld [vmem:[%s16919_s5 + $0x280] ss:$20 sps:$4 sm:$0xff]  }
  0x67   : > { %2635 = vmatprep.subr.bf16.mxu1 %v11137_v44  ;;  %1511 = vmatpush1.bf16.msra.mxu0 %v11138_v46  ;;  %v11204_v44 = vld [vmem:[%s16919_s5 + $0x4dc] ss:$20 sps:$4 sm:$0xff]   ;;  %v11202_v46 = vld [vmem:[%s16919_s5 + $0x4d8] ss:$20 sps:$4 sm:$0xff]  }
  0x68   : > { %1512 = vmatprep.subr.bf16.mxu0 %v11152_v47  ;;  %v12583_v47 = vld [vmem:[%s12209_s28 + $0xb0] ss:$20 sps:$4 sm:$0x3f]  }
  0x6a   : > { %2636 = vmatpush1.bf16.msra.mxu1 %v11135_v49  ;;  %v11220_v49 = vld [vmem:[%s16919_s5 + $0x5cc] ss:$20 sps:$4 sm:$0xff]  }
  0x6b   : > { %2637 = vmatprep.subr.bf16.mxu1 %v11149_v52  ;;  %1513 = vmatpush1.bf16.msra.mxu0 %v11150_v53  ;;  %v11218_v52 = vld [vmem:[%s16919_s5 + $0x5c8] ss:$20 sps:$4 sm:$0xff]   ;;  %v11226_v53 = vld [vmem:[%s16919_s5 + $0x5a4] ss:$20 sps:$4 sm:$0xff]  }
  0x6c   : > { %1405 = vmatmul.mubr.bf16.gmra.mxu0 %v12434_v51  ;;  %2704 = vmatprep.subr.bf16.mxu0 %v11158_v57  ;;  %v11232_v57 = vld [vmem:[%s16919_s5 + $0x57c] ss:$20 sps:$4 sm:$0xff]  }
  0x6d   : > { %1488 = vmatmul.mubr.bf16.gmra.mxu1 %v12443_v54  ;;  %1530 = vmatprep.mubr.bf16.mxu0 %v16923_v59 }
  0x6e   : > { %2638 = vmatpush2.bf16.msra.mxu1 %v11147_v55  ;;  %2653 = vmatprep.mubr.bf16.mxu1 %v12221_v48  ;;  %v11163_v48 = vld [vmem:[%s16919_s5 + $0x370] ss:$20 sps:$4 sm:$0xff]  }
  0x6f   : > { %2639 = vmatprep.subr.bf16.mxu1 %v11155_v56  ;;  %v11209_v55 = vld [vmem:[%s16919_s5 + $0x4b0] ss:$20 sps:$4 sm:$0xff]   ;;  %v11217_v56 = vld [vmem:[%s16919_s5 + $0x48c] ss:$20 sps:$4 sm:$0xff]  }
  0x72   : > { %2640 = vmatpush2.bf16.msra.mxu1 %v11153_v58  ;;  %v11223_v58 = vld [vmem:[%s16919_s5 + $0x464] ss:$20 sps:$4 sm:$0xff]  }
  0x73   : > { %2641 = vmatprep.subr.bf16.mxu1 %v11162_v60  ;;  %v11238_v60 = vld [vmem:[%s16919_s5 + $0x554] ss:$20 sps:$4 sm:$0xff]  }
  0x74   : > { %1531 = vmatmul.mubr.bf16.vlgmr.msra.gmra.mxu0 %v12468_v62 }
  0x75   : > { %2705 = vmatpush1.bf16.msra.mxu0 %v11156_v61  ;;  %1540 = vmatprep.mubr.bf16.mxu0 %v16923_v59  ;;  %v11221_v61 = vld [vmem:[%s16919_s5 + $0x460] ss:$20 sps:$4 sm:$0xff]  }
  0x76   : > { %2642 = vmatpush2.bf16.msra.mxu1 %v11160_v63  ;;  %2706 = vmatprep.subr.bf16.mxu0 %v11165_v0  ;;  %v11229_v63 = vld [vmem:[%s16919_s5 + $0x43c] ss:$20 sps:$4 sm:$0xff]   ;;  %v11244_v0 = vld [vmem:[%s16919_s5 + $0x52c] ss:$20 sps:$4 sm:$0xff]  }
  0x77   : > { %2643 = vmatprep.subr.bf16.mxu1 %v11168_v1  ;;  %v11235_v1 = vld [vmem:[%s16919_s5 + $0x414] ss:$20 sps:$4 sm:$0xff]  }
  0x79   : > { %2707 = vmatpush1.bf16.msra.mxu0 %v11163_v48  ;;  %v11242_v48 = vld [vmem:[%s16919_s5 + $0x528] ss:$20 sps:$4 sm:$0xff]  }
  0x7a   : > { %2644 = vmatpush2.bf16.msra.mxu1 %v11166_v2  ;;  %2708 = vmatprep.subr.bf16.mxu0 %v11171_v4  ;;  %v11250_v2 = vld [vmem:[%s16919_s5 + $0x504] ss:$20 sps:$4 sm:$0xff]  }
  0x7b   : > { %2645 = vmatprep.subr.bf16.mxu1 %v11175_v6  ;;  %v11233_v4 = vld [vmem:[%s16919_s5 + $0x410] ss:$20 sps:$4 sm:$0xff]   ;;  %v11241_v6 = vld [vmem:[%s16919_s5 + $0x3ec] ss:$20 sps:$4 sm:$0xff]  }
  0x7c   : > { %1541 = vmatmul.mubr.bf16.gmra.mxu0 %v12497_v8 }
  0x7d   : > { %2709 = vmatpush1.bf16.msra.mxu0 %v11169_v7  ;;  %1550 = vmatprep.mubr.bf16.mxu0 %v16923_v59  ;;  %v11256_v7 = vld [vmem:[%s16919_s5 + $0x3a4] ss:$20 sps:$4 sm:$0xff]  }
  0x7e   : > { %2646 = vmatpush2.bf16.msra.mxu1 %v11173_v9  ;;  %2710 = vmatprep.subr.bf16.mxu0 %v11178_v12  ;;  %v11247_v9 = vld [vmem:[%s16919_s5 + $0x3c4] ss:$20 sps:$4 sm:$0xff]   ;;  %v11245_v12 = vld [vmem:[%s16919_s5 + $0x3c0] ss:$20 sps:$4 sm:$0xff]  }
  0x7f   : > { %2647 = vmatprep.subr.bf16.mxu1 %v11181_v13  ;;  %v11253_v13 = vld [vmem:[%s16919_s5 + $0x124] ss:$20 sps:$4 sm:$0xff]  }
  0x81   : > { %2711 = vmatpush1.bf16.msra.mxu0 %v11176_v14  ;;  %v11251_v14 = vld [vmem:[%s16919_s5 + $0x120] ss:$20 sps:$4 sm:$0xff]  }
  0x82   : > { %2648 = vmatpush2.bf16.msra.mxu1 %v11179_v16  ;;  %2712 = vmatprep.subr.bf16.mxu0 %v11184_v18  ;;  %v11259_v16 = vld [vmem:[%s16919_s5 + $0xfc] ss:$20 sps:$4 sm:$0xff]  }
  0x83   : > { %2649 = vmatprep.subr.bf16.mxu1 %v11188_v19  ;;  %v11262_v18 = vld [vmem:[%s16919_s5 + $0x37c] ss:$20 sps:$4 sm:$0xff]   ;;  %v11257_v19 = vld [vmem:[%s16919_s5 + $0xf8] ss:$20 sps:$4 sm:$0xff]  }
  0x84   : > { %1551 = vmatmul.mubr.bf16.gmra.mxu0 %v12526_v23 }
  0x85   : > { %2713 = vmatpush1.bf16.msra.mxu0 %v11182_v20  ;;  %1560 = vmatprep.mubr.bf16.mxu0 %v16923_v59  ;;  %v11260_v20 = vld [vmem:[%s16919_s5 + $0x378] ss:$20 sps:$4 sm:$0xff]  }
  0x86   : > { %2650 = vmatpush2.bf16.msra.mxu1 %v11186_v24  ;;  %2714 = vmatprep.subr.bf16.mxu0 %v11191_v25  ;;  %v11265_v24 = vld [vmem:[%s16919_s5 + $0xd4] ss:$20 sps:$4 sm:$0xff]   ;;  %v11266_v25 = vld [vmem:[%s16919_s5 + $0x350] ss:$20 sps:$4 sm:$0xff]  }
  0x87   : > { %2651 = vmatprep.subr.bf16.mxu1 %v11194_v27  ;;  %v11271_v27 = vld [vmem:[%s16919_s5 + $0xac] ss:$20 sps:$4 sm:$0xff]  }
  0x89   : > { %2715 = vmatpush1.bf16.msra.mxu0 %v11189_v28  ;;  %v11269_v28 = vld [vmem:[%s16919_s5 + $0xa8] ss:$20 sps:$4 sm:$0xff]  }
  0x8a   : > { %2652 = vmatpush2.bf16.msra.mxu1 %v11192_v30  ;;  %2716 = vmatprep.subr.bf16.mxu0 %v11197_v31  ;;  %v11272_v30 = vld [vmem:[%s16919_s5 + $0x328] ss:$20 sps:$4 sm:$0xff]   ;;  %v11277_v31 = vld [vmem:[%s16919_s5 + $0x84] ss:$20 sps:$4 sm:$0xff]  }
  0x8b   : > { %2787 = vmatprep.subr.bf16.mxu1 %v11207_v32  ;;  %v11278_v32 = vld [vmem:[%s16919_s5 + $0x300] ss:$20 sps:$4 sm:$0xff]  }
  0x8c   : > { %1561 = vmatmul.mubr.bf16.gmra.mxu0 %v12552_v35 }
  0x8d   : > { %2654 = vmatmul.mubr.bf16.vlgmr.msra.gmra.mxu1 %v12280_v3  ;;  %2717 = vmatpush1.bf16.msra.mxu0 %v11195_v36  ;;  %v11212_v3 = vld [vmem:[%s16919_s5 + $0x5f0] ss:$20 sps:$4 sm:$0xff]  }
  0x8e   : > { %1570 = vmatprep.mubr.bf16.mxu0 %v16923_v59  ;;  %2718 = vmatprep.subr.bf16.mxu0 %v11201_v37  ;;  %v11283_v36 = vld [vmem:[%s16919_s5 + $0x5c] ss:$20 sps:$4 sm:$0xff]   ;;  %v11281_v37 = vld [vmem:[%s16919_s5 + $0x58] ss:$20 sps:$4 sm:$0xff]  }
  0x8f   : > { %2663 = vmatprep.mubr.bf16.mxu1 %v12301_v10  ;;  %2788 = vmatpush1.bf16.msra.mxu1 %v11205_v38  ;;  %v11211_v10 = vld [vmem:[%s16919_s5 + $0x4b4] ss:$20 sps:$4 sm:$0xff]   ;;  %v11284_v38 = vld [vmem:[%s16919_s5 + $0x2d8] ss:$20 sps:$4 sm:$0xff]  }
  0x90   : > { %2789 = vmatprep.subr.bf16.mxu1 %v11214_v39  ;;  %v11289_v39 = vld [vmem:[%s16919_s5 + $0x34] ss:$20 sps:$4 sm:$0xff]  }
  0x91   : > { %2719 = vmatpush1.bf16.msra.mxu0 %v11199_v42  ;;  %v11292_v42 = vld [vmem:[%s16919_s5 + $0x2b4] ss:$20 sps:$4 sm:$0xff]  }
  0x92   : > { %2720 = vmatprep.subr.bf16.mxu0 %v11204_v44  ;;  %v11295_v44 = vld [vmem:[%s16919_s5 + $0xc] ss:$20 sps:$4 sm:$0xff]  }
  0x93   : > { %2790 = vmatpush1.bf16.msra.mxu1 %v11212_v3  ;;  %v11293_v3 = vld [vmem:[%s16919_s5 + $0x8] ss:$20 sps:$4 sm:$0xff]  }
  0x94   : > { %1571 = vmatmul.mubr.bf16.gmra.mxu0 %v12583_v47  ;;  %2791 = vmatprep.subr.bf16.mxu1 %v11220_v49  ;;  %v11304_v49 = vld [vmem:[%s16919_s5 + $0x4e4] ss:$20 sps:$4 sm:$0xff]  }
  0x95   : > { %2664 = vmatmul.mubr.bf16.gmra.mxu1 %v12318_v15  ;;  %2721 = vmatpush2.bf16.msra.mxu0 %v11202_v46  ;;  %v11224_v15 = vld [vmem:[%s16919_s5 + $0x5a0] ss:$20 sps:$4 sm:$0xff]   ;;  %v11296_v46 = vld [vmem:[%s16919_s5 + $0x288] ss:$20 sps:$4 sm:$0xff]  }
  0x96   : > { %2673 = vmatprep.mubr.bf16.mxu1 %v12338_v21  ;;  %2722 = vmatprep.subr.bf16.mxu0 %v11211_v10  ;;  %v11215_v21 = vld [vmem:[%s16919_s5 + $0x488] ss:$20 sps:$4 sm:$0xff]   ;;  %v11301_v10 = vld [vmem:[%s16919_s5 + $0x264] ss:$20 sps:$4 sm:$0xff]  }
  0x97   : > { %2792 = vmatpush1.bf16.msra.mxu1 %v11218_v52  ;;  %2736 = vmatprep.mubr.bf16.mxu0 %v12227_v50  ;;  %v11230_v50 = vld [vmem:[%s16919_s5 + $0x578] ss:$20 sps:$4 sm:$0xff]   ;;  %v11307_v52 = vld [vmem:[%s16919_s5 + $0x23c] ss:$20 sps:$4 sm:$0xff]  }
  0x98   : > { %2793 = vmatprep.subr.bf16.mxu1 %v11226_v53  ;;  %v11305_v53 = vld [vmem:[%s16919_s5 + $0x238] ss:$20 sps:$4 sm:$0xff]  }
  0x99   : > { %2723 = vmatpush2.bf16.msra.mxu0 %v11209_v55  ;;  %v11308_v55 = vld [vmem:[%s16919_s5 + $0x4b8] ss:$20 sps:$4 sm:$0xff]  }
  0x9a   : > { %2724 = vmatprep.subr.bf16.mxu0 %v11217_v56  ;;  %v11313_v56 = vld [vmem:[%s16919_s5 + $0x214] ss:$20 sps:$4 sm:$0xff]  }
  0x9b   : > { %2794 = vmatpush1.bf16.msra.mxu1 %v11224_v15  ;;  %v11316_v15 = vld [vmem:[%s16919_s5 + $0x494] ss:$20 sps:$4 sm:$0xff]  }
  0x9c   : > { %2795 = vmatprep.subr.bf16.mxu1 %v11232_v57  ;;  %v12826_v57 = vld [vmem:[%s12209_s28 + $0xc] ss:$20 sps:$4 sm:$0xff]  }
  0x9d   : > { %2674 = vmatmul.mubr.bf16.gmra.mxu1 %v12356_v26  ;;  %2725 = vmatpush2.bf16.msra.mxu0 %v11215_v21  ;;  %v11236_v26 = vld [vmem:[%s16919_s5 + $0x550] ss:$20 sps:$4 sm:$0xff]  }
  0x9e   : > { %2683 = vmatprep.mubr.bf16.mxu1 %v12378_v33  ;;  %2726 = vmatprep.subr.bf16.mxu0 %v11223_v58  ;;  %v11227_v33 = vld [vmem:[%s16919_s5 + $0x438] ss:$20 sps:$4 sm:$0xff]   ;;  %v11314_v21 = vld [vmem:[%s16919_s5 + $0x490] ss:$20 sps:$4 sm:$0xff]  }
  0x9f   : > { %2796 = vmatpush1.bf16.msra.mxu1 %v11230_v50  ;;  %v11319_v58 = vld [vmem:[%s16919_s5 + $0x1ec] ss:$20 sps:$4 sm:$0xff]  }
  0xa0   : > { %2797 = vmatprep.subr.bf16.mxu1 %v11238_v60  ;;  %v11322_v50 = vld [vmem:[%s16919_s5 + $0x46c] ss:$20 sps:$4 sm:$0xff]   ;;  %v11317_v60 = vld [vmem:[%s16919_s5 + $0x1e8] ss:$20 sps:$4 sm:$0xff]  }
  0xa1   : > { %2727 = vmatpush2.bf16.msra.mxu0 %v11221_v61  ;;  %v11320_v61 = vld [vmem:[%s16919_s5 + $0x468] ss:$20 sps:$4 sm:$0xff]  }
  0xa2   : > { %2728 = vmatprep.subr.bf16.mxu0 %v11229_v63  ;;  %v11325_v63 = vld [vmem:[%s16919_s5 + $0x1c4] ss:$20 sps:$4 sm:$0xff]  }
  0xa3   : > { %2798 = vmatpush1.bf16.msra.mxu1 %v11236_v26  ;;  %v11328_v26 = vld [vmem:[%s16919_s5 + $0x444] ss:$20 sps:$4 sm:$0xff]  }
  0xa4   : > { %2799 = vmatprep.subr.bf16.mxu1 %v11244_v0  ;;  %v11323_v0 = vld [vmem:[%s16919_s5 + $0x1c0] ss:$20 sps:$4 sm:$0xff]  }
  0xa5   : > { %2684 = vmatmul.mubr.bf16.gmra.mxu1 %v12403_v40  ;;  %2729 = vmatpush2.bf16.msra.mxu0 %v11227_v33  ;;  %v11248_v40 = vld [vmem:[%s16919_s5 + $0x500] ss:$20 sps:$4 sm:$0xff]  }
  0xa6   : > { %2693 = vmatprep.mubr.bf16.mxu1 %v12412_v43  ;;  %2730 = vmatprep.subr.bf16.mxu0 %v11235_v1  ;;  %v11239_v43 = vld [vmem:[%s16919_s5 + $0x3e8] ss:$20 sps:$4 sm:$0xff]   ;;  %v11326_v33 = vld [vmem:[%s16919_s5 + $0x440] ss:$20 sps:$4 sm:$0xff]  }
  0xa7   : > { %2800 = vmatpush1.bf16.msra.mxu1 %v11242_v48  ;;  %v11331_v1 = vld [vmem:[%s16919_s5 + $0x19c] ss:$20 sps:$4 sm:$0xff]  }
  0xa8   : > { %2801 = vmatprep.subr.bf16.mxu1 %v11250_v2  ;;  %v11334_v48 = vld [vmem:[%s16919_s5 + $0x41c] ss:$20 sps:$4 sm:$0xff]   ;;  %v11329_v2 = vld [vmem:[%s16919_s5 + $0x198] ss:$20 sps:$4 sm:$0xff]  }
  0xa9   : > { %2731 = vmatpush2.bf16.msra.mxu0 %v11233_v4  ;;  %v11332_v4 = vld [vmem:[%s16919_s5 + $0x418] ss:$20 sps:$4 sm:$0xff]  }
  0xaa   : > { %2732 = vmatprep.subr.bf16.mxu0 %v11241_v6  ;;  %v11337_v6 = vld [vmem:[%s16919_s5 + $0x174] ss:$20 sps:$4 sm:$0xff]  }
  0xab   : > { %2802 = vmatpush1.bf16.msra.mxu1 %v11248_v40  ;;  %v11340_v40 = vld [vmem:[%s16919_s5 + $0x3f4] ss:$20 sps:$4 sm:$0xff]  }
  0xac   : > { %2953 = vmatprep.subr.bf16.mxu1 %v11256_v7  ;;  %v11335_v7 = vld [vmem:[%s16919_s5 + $0x170] ss:$20 sps:$4 sm:$0xff]  }
  0xad   : > { %2694 = vmatmul.mubr.bf16.gmra.mxu1 %v12434_v51  ;;  %2733 = vmatpush2.bf16.msra.mxu0 %v11239_v43  ;;  %v11254_v51 = vld [vmem:[%s16919_s5 + $0x3a0] ss:$20 sps:$4 sm:$0xff]   ;;  %v11338_v43 = vld [vmem:[%s16919_s5 + $0x3f0] ss:$20 sps:$4 sm:$0xff]  }
  0xae   : > { %2819 = vmatprep.mubr.bf16.mxu1 %v16923_v59  ;;  %2734 = vmatprep.subr.bf16.mxu0 %v11247_v9  ;;  %v11343_v9 = vld [vmem:[%s16919_s5 + $0x14c] ss:$20 sps:$4 sm:$0xff]  }
  0xb1   : > { %2735 = vmatpush2.bf16.msra.mxu0 %v11245_v12  ;;  %v11346_v12 = vld [vmem:[%s16919_s5 + $0x3cc] ss:$20 sps:$4 sm:$0xff]  }
  0xb2   : > { %2870 = vmatprep.subr.bf16.mxu0 %v11253_v13  ;;  %v11341_v13 = vld [vmem:[%s16919_s5 + $0x148] ss:$20 sps:$4 sm:$0xff]  }
  0xb4   : > { %2737 = vmatmul.mubr.bf16.vlgmr.msra.gmra.mxu0 %v12286_v5  ;;  %v11268_v5 = vld [vmem:[%s16919_s5 + $0x354] ss:$20 sps:$4 sm:$0xff]  }
  0xb5   : > { %2820 = vmatmul.mubr.bf16.vlgmr.msra.gmra.mxu1 %v12468_v62  ;;  %2871 = vmatpush1.bf16.msra.mxu0 %v11251_v14  ;;  %v11263_v62 = vld [vmem:[%s16919_s5 + $0xd0] ss:$20 sps:$4 sm:$0xff]   ;;  %v11344_v14 = vld [vmem:[%s16919_s5 + $0x3c8] ss:$20 sps:$4 sm:$0xff]  }
  0xb6   : > { %2954 = vmatpush1.bf16.msra.mxu1 %v11254_v51  ;;  %2872 = vmatprep.subr.bf16.mxu0 %v11259_v16  ;;  %v11349_v51 = vld [vmem:[%s16919_s5 + $0x624] ss:$20 sps:$4 sm:$0xff]   ;;  %v11353_v16 = vld [vmem:[%s16919_s5 + $0x268] ss:$20 sps:$4 sm:$0xff]  }
  0xb7   : > { %2955 = vmatprep.subr.bf16.mxu1 %v11262_v18  ;;  %2746 = vmatprep.mubr.bf16.mxu0 %v12304_v11  ;;  %v11274_v11 = vld [vmem:[%s16919_s5 + $0x32c] ss:$20 sps:$4 sm:$0xff]  }
  0xb8   : > { %2829 = vmatprep.mubr.bf16.mxu1 %v16923_v59  ;;  %v11347_v18 = vld [vmem:[%s16919_s5 + $0x620] ss:$20 sps:$4 sm:$0xff]  }
  0xb9   : > { %2873 = vmatpush1.bf16.msra.mxu0 %v11257_v19  ;;  %v11352_v19 = vld [vmem:[%s16919_s5 + $0x5fc] ss:$20 sps:$4 sm:$0xff]  }
  0xba   : > { %2956 = vmatpush1.bf16.msra.mxu1 %v11260_v20  ;;  %2874 = vmatprep.subr.bf16.mxu0 %v11265_v24  ;;  %v11354_v20 = vld [vmem:[%s16919_s5 + $0x128] ss:$20 sps:$4 sm:$0xff]   ;;  %v12915_v24 = vld [vmem:[%s12209_s28] ss:$20 sps:$4 sm:$0xff]  }
  0xbb   : > { %2957 = vmatprep.subr.bf16.mxu1 %v11268_v5  ;;  %v12919_v5 = vld [vmem:[%s12209_s28 + $0x8] ss:$20 sps:$4 sm:$0xff]  }
  0xbc   : > { %2747 = vmatmul.mubr.bf16.gmra.mxu0 %v12326_v17  ;;  %v11280_v17 = vld [vmem:[%s16919_s5 + $0x304] ss:$20 sps:$4 sm:$0xff]  }
  0xbd   : > { %2830 = vmatmul.mubr.bf16.gmra.mxu1 %v12497_v8  ;;  %2875 = vmatpush1.bf16.msra.mxu0 %v11263_v62  ;;  %v11275_v8 = vld [vmem:[%s16919_s5 + $0x80] ss:$20 sps:$4 sm:$0xff]  }
  0xbe   : > { %2958 = vmatpush1.bf16.msra.mxu1 %v11266_v25  ;;  %2876 = vmatprep.subr.bf16.mxu0 %v11271_v27  ;;  %v11358_v62 = vld [vmem:[%s16919_s5 + $0x240] ss:$20 sps:$4 sm:$0xff]   ;;  %v11350_v25 = vld [vmem:[%s16919_s5 + $0x5f8] ss:$20 sps:$4 sm:$0xff]  }
  0xbf   : > { %2959 = vmatprep.subr.bf16.mxu1 %v11274_v11  ;;  %2756 = vmatprep.mubr.bf16.mxu0 %v12341_v22  ;;  %v11286_v22 = vld [vmem:[%s16919_s5 + $0x2dc] ss:$20 sps:$4 sm:$0xff]   ;;  %v12929_v27 = vld [vmem:[%s12209_s28 + $0x2c] ss:$20 sps:$4 sm:$0xff]   ;;  %v12933_v11 = vld [vmem:[%s12209_s28 + $0x34] ss:$20 sps:$4 sm:$0xff]  }
  0xc0   : > { %2839 = vmatprep.mubr.bf16.mxu1 %v16923_v59 }
  0xc1   : > { %2877 = vmatpush1.bf16.msra.mxu0 %v11269_v28  ;;  %v11357_v28 = vld [vmem:[%s16919_s5 + $0x5d4] ss:$20 sps:$4 sm:$0xff]  }
  0xc2   : > { %2960 = vmatpush1.bf16.msra.mxu1 %v11272_v30  ;;  %2878 = vmatprep.subr.bf16.mxu0 %v11277_v31  ;;  %v11359_v30 = vld [vmem:[%s16919_s5 + $0x100] ss:$20 sps:$4 sm:$0xff]   ;;  %v11355_v31 = vld [vmem:[%s16919_s5 + $0x5d0] ss:$20 sps:$4 sm:$0xff]  }
  0xc3   : > { %2961 = vmatprep.subr.bf16.mxu1 %v11280_v17  ;;  %v11362_v17 = vld [vmem:[%s16919_s5 + $0x5ac] ss:$20 sps:$4 sm:$0xff]  }
  0xc4   : > { %2757 = vmatmul.mubr.bf16.gmra.mxu0 %v12366_v29  ;;  %v11287_v29 = vld [vmem:[%s16919_s5 + $0x30] ss:$20 sps:$4 sm:$0xff]  }
  0xc5   : > { %2840 = vmatmul.mubr.bf16.gmra.mxu1 %v12526_v23  ;;  %2879 = vmatpush1.bf16.msra.mxu0 %v11275_v8  ;;  %v11290_v23 = vld [vmem:[%s16919_s5 + $0x2b0] ss:$20 sps:$4 sm:$0xff]   ;;  %v11360_v8 = vld [vmem:[%s16919_s5 + $0x5a8] ss:$20 sps:$4 sm:$0xff]  }
  0xc6   : > { %2962 = vmatpush1.bf16.msra.mxu1 %v11278_v32  ;;  %2880 = vmatprep.subr.bf16.mxu0 %v11283_v36  ;;  %v11363_v32 = vld [vmem:[%s16919_s5 + $0x218] ss:$20 sps:$4 sm:$0xff]   ;;  %v12955_v36 = vld [vmem:[%s12209_s28 + $0x28] ss:$20 sps:$4 sm:$0xff]  }
  0xc7   : > { %2963 = vmatprep.subr.bf16.mxu1 %v11286_v22  ;;  %2766 = vmatprep.mubr.bf16.mxu0 %v12381_v34  ;;  %v11298_v34 = vld [vmem:[%s16919_s5 + $0x28c] ss:$20 sps:$4 sm:$0xff]   ;;  %v12959_v22 = vld [vmem:[%s12209_s28 + $0x30] ss:$20 sps:$4 sm:$0xff]  }
  0xc8   : > { %2849 = vmatprep.mubr.bf16.mxu1 %v16923_v59 }
  0xc9   : > { %2881 = vmatpush1.bf16.msra.mxu0 %v11281_v37  ;;  %v11364_v37 = vld [vmem:[%s16919_s5 + $0xd8] ss:$20 sps:$4 sm:$0xff]  }
  0xca   : > { %2964 = vmatpush1.bf16.msra.mxu1 %v11284_v38  ;;  %2882 = vmatprep.subr.bf16.mxu0 %v11289_v39  ;;  %v12966_v38 = vld [vmem:[%s12209_s28 + $0x54] ss:$20 sps:$4 sm:$0xff]   ;;  %v11368_v39 = vld [vmem:[%s16919_s5 + $0x1f0] ss:$20 sps:$4 sm:$0xff]  }
  0xcb   : > { %2965 = vmatprep.subr.bf16.mxu1 %v11292_v42  ;;  %v12973_v42 = vld [vmem:[%s12209_s28 + $0x5c] ss:$20 sps:$4 sm:$0xff]  }
  0xcc   : > { %2767 = vmatmul.mubr.bf16.gmra.mxu0 %v12406_v41  ;;  %v11299_v41 = vld [vmem:[%s16919_s5 + $0x260] ss:$20 sps:$4 sm:$0xff]  }
  0xcd   : > { %2850 = vmatmul.mubr.bf16.gmra.mxu1 %v12552_v35  ;;  %2883 = vmatpush1.bf16.msra.mxu0 %v11287_v29  ;;  %v11302_v35 = vld [vmem:[%s16919_s5 + $0x4e0] ss:$20 sps:$4 sm:$0xff]   ;;  %v11367_v29 = vld [vmem:[%s16919_s5 + $0x584] ss:$20 sps:$4 sm:$0xff]  }
  0xce   : > { %2966 = vmatpush1.bf16.msra.mxu1 %v11290_v23  ;;  %2884 = vmatprep.subr.bf16.mxu0 %v11295_v44  ;;  %v11365_v23 = vld [vmem:[%s16919_s5 + $0x580] ss:$20 sps:$4 sm:$0xff]   ;;  %v11369_v44 = vld [vmem:[%s16919_s5 + $0xb0] ss:$20 sps:$4 sm:$0xff]  }
  0xcf   : > { %2967 = vmatprep.subr.bf16.mxu1 %v11298_v34  ;;  %2776 = vmatprep.mubr.bf16.mxu0 %v12418_v45  ;;  %v11310_v45 = vld [vmem:[%s16919_s5 + $0x4bc] ss:$20 sps:$4 sm:$0xff]  }
  0xd0   : > { %2859 = vmatprep.mubr.bf16.mxu1 %v16923_v59  ;;  %v11370_v34 = vld [vmem:[%s16919_s5 + $0x1c8] ss:$20 sps:$4 sm:$0xff]  }
  0xd1   : > { %2885 = vmatpush1.bf16.msra.mxu0 %v11293_v3  ;;  %v11373_v3 = vld [vmem:[%s16919_s5 + $0x55c] ss:$20 sps:$4 sm:$0xff]  }
  0xd2   : > { %2968 = vmatpush1.bf16.msra.mxu1 %v11296_v46  ;;  %2886 = vmatprep.subr.bf16.mxu0 %v11301_v10  ;;  %v12992_v46 = vld [vmem:[%s12209_s28 + $0x50] ss:$20 sps:$4 sm:$0xff]   ;;  %v12996_v10 = vld [vmem:[%s12209_s28 + $0x58] ss:$20 sps:$4 sm:$0xff]  }
  0xd3   : > { %2969 = vmatprep.subr.bf16.mxu1 %v11304_v49  ;;  %v11371_v49 = vld [vmem:[%s16919_s5 + $0x558] ss:$20 sps:$4 sm:$0xff]  }
  0xd4   : > { %2777 = vmatmul.mubr.bf16.gmra.mxu0 %v12443_v54  ;;  %v11311_v54 = vld [vmem:[%s16919_s5 + $0x210] ss:$20 sps:$4 sm:$0xff]  }
  0xd5   : > { %2860 = vmatmul.mubr.bf16.gmra.mxu1 %v12583_v47  ;;  %2887 = vmatpush2.bf16.msra.mxu0 %v11299_v41  ;;  %v12822_v47 = vld [vmem:[%s12209_s28 + $0x4] ss:$20 sps:$4 sm:$0xff]   ;;  %v11374_v41 = vld [vmem:[%s16919_s5 + $0x88] ss:$20 sps:$4 sm:$0xff]  }
  0xd6   : > { %2970 = vmatpush2.bf16.msra.mxu1 %v11302_v35  ;;  %2888 = vmatprep.subr.bf16.mxu0 %v11307_v52  ;;  %v11375_v35 = vld [vmem:[%s16919_s5 + $0x1a0] ss:$20 sps:$4 sm:$0xff]   ;;  %v13009_v52 = vld [vmem:[%s12209_s28 + $0x7c] ss:$20 sps:$4 sm:$0xff]  }
  0xd7   : > { %2971 = vmatprep.subr.bf16.mxu1 %v11310_v45  ;;  %2902 = vmatprep.mubr.bf16.mxu0 %v12822_v47  ;;  %v13013_v45 = vld [vmem:[%s12209_s28 + $0x84] ss:$20 sps:$4 sm:$0xff]  }
  0xd8   : > { %2985 = vmatprep.mubr.bf16.mxu1 %v12826_v57 }
  0xd9   : > { %2889 = vmatpush2.bf16.msra.mxu0 %v11305_v53  ;;  %v11379_v53 = vld [vmem:[%s16919_s5 + $0x534] ss:$20 sps:$4 sm:$0xff]  }
  0xda   : > { %2972 = vmatpush2.bf16.msra.mxu1 %v11308_v55  ;;  %2890 = vmatprep.subr.bf16.mxu0 %v11313_v56  ;;  %v11376_v55 = vld [vmem:[%s16919_s5 + $0x60] ss:$20 sps:$4 sm:$0xff]   ;;  %v11377_v56 = vld [vmem:[%s16919_s5 + $0x530] ss:$20 sps:$4 sm:$0xff]  }
  0xdb   : > { %2973 = vmatprep.subr.bf16.mxu1 %v11316_v15  ;;  %v11380_v15 = vld [vmem:[%s16919_s5 + $0x178] ss:$20 sps:$4 sm:$0xff]  }
  0xdd   : > { %2891 = vmatpush2.bf16.msra.mxu0 %v11311_v54  ;;  %v11384_v54 = vld [vmem:[%s16919_s5 + $0x50c] ss:$20 sps:$4 sm:$0xff]  }
  0xde   : > { %2974 = vmatpush2.bf16.msra.mxu1 %v11314_v21  ;;  %2892 = vmatprep.subr.bf16.mxu0 %v11319_v58  ;;  %v13032_v21 = vld [vmem:[%s12209_s28 + $0x78] ss:$20 sps:$4 sm:$0xff]   ;;  %v13036_v58 = vld [vmem:[%s12209_s28 + $0x80] ss:$20 sps:$4 sm:$0xff]  }
  0xdf   : > { %2975 = vmatprep.subr.bf16.mxu1 %v11322_v50 }
  0xe1   : > { %2893 = vmatpush2.bf16.msra.mxu0 %v11317_v60 }
  0xe2   : > { %2976 = vmatpush2.bf16.msra.mxu1 %v11320_v61  ;;  %2894 = vmatprep.subr.bf16.mxu0 %v11325_v63  ;;  %v13042_v63 = vld [vmem:[%s12209_s28 + $0xa4] ss:$20 sps:$4 sm:$0x3f]  }
  0xe3   : > { %2977 = vmatprep.subr.bf16.mxu1 %v11328_v26  ;;  %v11381_v26 = vld [vmem:[%s16919_s5 + $0x38] ss:$20 sps:$4 sm:$0xff]  }
  0xe5   : > { %2895 = vmatpush2.bf16.msra.mxu0 %v11323_v0  ;;  %v11382_v0 = vld [vmem:[%s16919_s5 + $0x508] ss:$20 sps:$4 sm:$0xff]  }
  0xe6   : > { %2978 = vmatpush2.bf16.msra.mxu1 %v11326_v33  ;;  %2896 = vmatprep.subr.bf16.mxu0 %v11331_v1 }
  0xe7   : > { %2979 = vmatprep.subr.bf16.mxu1 %v11334_v48  ;;  %v13052_v48 = vld [vmem:[%s12209_s28 + $0xac] ss:$20 sps:$4 sm:$0x3f]  }
  0xe9   : > { %2897 = vmatpush2.bf16.msra.mxu0 %v11329_v2  ;;  %v11385_v2 = vld [vmem:[%s16919_s5 + $0x150] ss:$20 sps:$4 sm:$0xff]  }
  0xea   : > { %2980 = vmatpush2.bf16.msra.mxu1 %v11332_v4  ;;  %2898 = vmatprep.subr.bf16.mxu0 %v11337_v6  ;;  %v11387_v6 = vld [vmem:[%s16919_s5 + $0x4e8] ss:$20 sps:$4 sm:$0xff]  }
  0xeb   : > { %2981 = vmatprep.subr.bf16.mxu1 %v11340_v40 }
  0xed   : > { %2899 = vmatpush2.bf16.msra.mxu0 %v11335_v7 }
  0xee   : > { %2982 = vmatpush2.bf16.msra.mxu1 %v11338_v43  ;;  %2900 = vmatprep.subr.bf16.mxu0 %v11343_v9  ;;  %v11386_v9 = vld [vmem:[%s16919_s5 + $0x10] ss:$20 sps:$4 sm:$0xff]  }
  0xef   : > { %2983 = vmatprep.subr.bf16.mxu1 %v11346_v12 }
  0xf1   : > { %2901 = vmatpush2.bf16.msra.mxu0 %v11341_v13 }
  0xf2   : > { %2984 = vmatpush2.bf16.msra.mxu1 %v11344_v14  ;;  %3036 = vmatprep.subr.bf16.mxu0 %v11349_v51  ;;  %v13073_v14 = vld [vmem:[%s12209_s28 + $0xa0] ss:$20 sps:$4 sm:$0x3f]   ;;  %v13077_v51 = vld [vmem:[%s12209_s28 + $0xa8] ss:$20 sps:$4 sm:$0x3f]  }
  0xf3   : > { %10293 = vmatprep.subr.bf16.mxu1 %v11353_v16 }
  0xf4   : > { %2903 = vmatmul.mubr.bf16.vlgmr.msra.gmra.mxu0 %v12915_v24 }
  0xf5   : > { %2986 = vmatmul.mubr.bf16.vlgmr.msra.gmra.mxu1 %v12919_v5  ;;  %3037 = vmatpush1.bf16.msra.mxu0 %v11347_v18 }
  0xf6   : > { %2912 = vmatprep.mubr.bf16.mxu0 %v12929_v27  ;;  %3038 = vmatprep.subr.bf16.mxu0 %v11352_v19 }
  0xf7   : > { %2995 = vmatprep.mubr.bf16.mxu1 %v12933_v11  ;;  %10294 = vmatpush3.bf16.msra.mxu1 %v11354_v20 }
  0xf8   : > { %10295 = vmatprep.subr.bf16.mxu1 %v11358_v62 }
  0xf9   : > { %3039 = vmatpush1.bf16.msra.mxu0 %v11350_v25  ;;  %v16921_v25 = vmov 0.0  }
  0xfa   : > { %3040 = vmatprep.subr.bf16.mxu0 %v11357_v28 }
  0xfb   : > { %10296 = vmatpush3.bf16.msra.mxu1 %v11359_v30 }
  0xfc   : > { %2913 = vmatmul.mubr.bf16.gmra.mxu0 %v12955_v36  ;;  %10297 = vmatprep.subr.bf16.mxu1 %v11363_v32 }
  0xfd   : > { %2996 = vmatmul.mubr.bf16.gmra.mxu1 %v12959_v22  ;;  %3041 = vmatpush1.bf16.msra.mxu0 %v11355_v31 }
  0xfe   : > { %2922 = vmatprep.mubr.bf16.mxu0 %v12966_v38  ;;  %3005 = vmatprep.mubr.bf16.mxu1 %v12973_v42 }
  0xff   : > { %3042 = vmatprep.subr.bf16.mxu0 %v11362_v17  ;;  %10298 = vmatpush3.bf16.msra.mxu1 %v11364_v37 }
 0x100   : > { %10299 = vmatprep.subr.bf16.mxu1 %v11368_v39  ;;  %v11390_v39 = vld [vmem:[%s16919_s5 + $0x380] ss:$20 sps:$4 sm:$0xff]  }
 0x101   : > { %3043 = vmatpush1.bf16.msra.mxu0 %v11360_v8  ;;  %v11388_v8 = vld [vmem:[%s16919_s5 + $0x3a8] ss:$20 sps:$4 sm:$0xff]  }
 0x102   : > { %3044 = vmatprep.subr.bf16.mxu0 %v11367_v29  ;;  %v11391_v29 = vld [vmem:[%s16919_s5 + $0x628] ss:$20 sps:$4 sm:$0xff]  }
 0x103   : > { %10300 = vmatpush3.bf16.msra.mxu1 %v11369_v44 }
 0x104   : > { %2923 = vmatmul.mubr.bf16.gmra.mxu0 %v12992_v46  ;;  %10301 = vmatprep.subr.bf16.mxu1 %v11370_v34 }
 0x105   : > { %3006 = vmatmul.mubr.bf16.gmra.mxu1 %v12996_v10  ;;  %3045 = vmatpush1.bf16.msra.mxu0 %v11365_v23  ;;  %v13106_v23 = vld [vmem:[%s12209_s28 + $0x10] ss:$20 sps:$4 sm:$0xff]  }
 0x106   : > { %2932 = vmatprep.mubr.bf16.mxu0 %v13009_v52  ;;  %3015 = vmatprep.mubr.bf16.mxu1 %v13013_v45 }
 0x107   : > { %3046 = vmatprep.subr.bf16.mxu0 %v11373_v3  ;;  %10302 = vmatpush3.bf16.msra.mxu1 %v11374_v41  ;;  %v11392_v3 = vld [vmem:[%s16919_s5 + $0x498] ss:$20 sps:$4 sm:$0xff]   ;;  %v11394_v41 = vld [vmem:[%s16919_s5 + $0x600] ss:$20 sps:$4 sm:$0xff]  }
 0x108   : > { %10303 = vmatprep.subr.bf16.mxu1 %v11375_v35 }
 0x109   : > { %3047 = vmatpush1.bf16.msra.mxu0 %v11371_v49 }
 0x10a   : > { %3048 = vmatprep.subr.bf16.mxu0 %v11379_v53 }
 0x10b   : > { %10304 = vmatpush3.bf16.msra.mxu1 %v11376_v55 }
 0x10c   : > { %2933 = vmatmul.mubr.bf16.gmra.mxu0 %v13032_v21  ;;  %v1366_v50 = vpop.f32.mrf.mxu0  ;;  %10305 = vmatprep.subr.bf16.mxu1 %v11380_v15 }
 0x10d   : > { %3016 = vmatmul.mubr.bf16.gmra.mxu1 %v13036_v58  ;;  %v1449_v60 = vpop.f32.mrf.mxu1  ;;  %2942 = vmatprep.mubr.bf16.mxu0 %v13042_v63 }
 0x10e   : > { %v13039_v61 = vadd.f32 %v1449_v60, %v1366_v50  ;;  %v1368_v33 = vpop.f32.mrf.mxu0  ;;  %3025 = vmatprep.mubr.bf16.mxu1 %v13052_v48  ;;  %3049 = vmatpush1.bf16.msra.mxu0 %v11377_v56 }
 0x10f   : > { %v1451_v1 = vpop.f32.mrf.mxu1  ;;  %3050 = vmatprep.subr.bf16.mxu0 %v11384_v54  ;;  %10306 = vmatpush3.bf16.msra.mxu1 %v11381_v26  ;;  %v11393_v54 = vld [vmem:[%s16919_s5 + $0x358] ss:$20 sps:$4 sm:$0xff]  }
 0x110   : > { %v13058_v4 = vadd.f32 %v1451_v1, %v1368_v33  ;;  %v1370_v40 = vpop.f32.mrf.mxu0  ;;  %10307 = vmatprep.subr.bf16.mxu1 %v11385_v2  ;;  %v13136_v26 = vld [vmem:[%s12209_s28 + $0x38] ss:$20 sps:$4 sm:$0xff]  }
 0x111   : > { %v1453_v7 = vpop.f32.mrf.mxu1  ;;  %v11397_v1 = vld [vmem:[%s16919_s5 + $0x5d8] ss:$20 sps:$4 sm:$0xff]  }
 0x112   : > { %v13063_v43 = vadd.f32 %v1453_v7, %v1370_v40  ;;  %v13068_v12 = vpop.f32.mrf.mxu0  ;;  %3051 = vmatpush1.bf16.msra.mxu0 %v11382_v0  ;;  %v11398_v40 = vld [vmem:[%s16919_s5 + $0x448] ss:$20 sps:$4 sm:$0xff]  }
 0x113   : > { %v13070_v13 = vpop.f32.mrf.mxu1  ;;  %10339 = vmatprep.subr.bf16.mxu0 %v11387_v6  ;;  %10308 = vmatpush3.bf16.msra.mxu1 %v11386_v9  ;;  %v11396_v6 = vld [vmem:[%s16919_s5 + $0x330] ss:$20 sps:$4 sm:$0xff]  }
 0x114   : > { %2943 = vmatmul.mubr.bf16.gmra.mxu0 %v13073_v14  ;;  %v1376_v16 = vpop.f32.mrf.mxu0  ;;  %10732 = vmatprep.subr.bf16.mxu1 %v16921_v25 }
 0x115   : > { %3026 = vmatmul.mubr.bf16.gmra.mxu1 %v13077_v51  ;;  %v1459_v18 = vpop.f32.mrf.mxu1  ;;  %3068 = vmatprep.mubr.bf16.mxu0 %v16923_v59 }
 0x116   : > { %v13080_v19 = vadd.f32 %v1459_v18, %v1376_v16  ;;  %v1378_v20 = vpop.f32.mrf.mxu0  ;;  %3151 = vmatprep.mubr.bf16.mxu1 %v12822_v47  ;;  %v11389_v47 = vld [vmem:[%s16919_s5 + $0x4c0] ss:$20 sps:$4 sm:$0xff]   ;;  %v11399_v16 = vld [vmem:[%s16919_s5 + $0x308] ss:$20 sps:$4 sm:$0xff]   ;;  %v11400_v18 = vld [vmem:[%s16919_s5 + $0x5b0] ss:$20 sps:$4 sm:$0xff]  }
 0x117   : > { %v1461_v62 = vpop.f32.mrf.mxu1 }
 0x118   : > { %v13085_v28 = vadd.f32 %v1461_v62, %v1378_v20  ;;  %v1380_v30 = vpop.f32.mrf.mxu0 }
 0x119   : > { %v1463_v31 = vpop.f32.mrf.mxu1 }
 0x11a   : > { %v13087_v17 = vadd.f32 %v1463_v31, %v1380_v30  ;;  %v13092_v32 = vpop.f32.mrf.mxu0 }
 0x11b   : > { %v13094_v37 = vpop.f32.mrf.mxu1 }
 0x11c   : > { %3069 = vmatmul.mubr.bf16.vlgmr.msra.gmra.mxu0 %v13106_v23  ;;  %v1386_v44 = vpop.f32.mrf.mxu0 }
 0x11d   : > { %3152 = vmatmul.mubr.bf16.vlgmr.msra.gmra.mxu1 %v12915_v24  ;;  %v1469_v34 = vpop.f32.mrf.mxu1  ;;  %10340 = vmatpush3.bf16.msra.mxu0 %v11388_v8  ;;  %v11401_v8 = vld [vmem:[%s16919_s5 + $0x420] ss:$20 sps:$4 sm:$0xff]  }
 0x11e   : > { %v13113_v49 = vadd.f32 %v1469_v34, %v1386_v44  ;;  %3078 = vmatprep.mubr.bf16.mxu0 %v16923_v59  ;;  %v1388_v35 = vpop.f32.mrf.mxu0  ;;  %10341 = vmatprep.subr.bf16.mxu0 %v11389_v47  ;;  %v13173_v47 = vld [vmem:[%s12209_s28 + $0x60] ss:$20 sps:$4 sm:$0xff]   ;;  %v11402_v34 = vld [vmem:[%s16919_s5 + $0x588] ss:$20 sps:$4 sm:$0xff]  }
 0x11f   : > { %v1471_v53 = vpop.f32.mrf.mxu1  ;;  %3159 = vmatprep.mubr.bf16.mxu1 %v12929_v27  ;;  %10733 = vmatpush3.bf16.msra.mxu1 %v11391_v29  ;;  %v11395_v27 = vld [vmem:[%s16919_s5 + $0x470] ss:$20 sps:$4 sm:$0xff]  }
 0x120   : > { %v13120_v24 = vadd.f32 %v1471_v53, %v1388_v35  ;;  %v1390_v55 = vpop.f32.mrf.mxu0  ;;  %10734 = vmatprep.subr.bf16.mxu1 %v16921_v25 }
 0x121   : > { %v1473_v56 = vpop.f32.mrf.mxu1  ;;  %10342 = vmatpush3.bf16.msra.mxu0 %v11390_v39 }
 0x122   : > { %v13123_v15 = vadd.f32 %v1473_v56, %v1390_v55  ;;  %v13128_v50 = vpop.f32.mrf.mxu0  ;;  %10343 = vmatprep.subr.bf16.mxu0 %v11392_v3  ;;  %v11403_v3 = vld [vmem:[%s16919_s5 + $0x2e0] ss:$20 sps:$4 sm:$0xff]  }
 0x123   : > { %v13130_v60 = vpop.f32.mrf.mxu1  ;;  %10735 = vmatpush3.bf16.msra.mxu1 %v11394_v41 }
 0x124   : > { %3079 = vmatmul.mubr.bf16.gmra.mxu0 %v13136_v26  ;;  %v1396_v0 = vpop.f32.mrf.mxu0  ;;  %10736 = vmatprep.subr.bf16.mxu1 %v16921_v25 }
 0x125   : > { %3160 = vmatmul.mubr.bf16.gmra.mxu1 %v12955_v36  ;;  %v1479_v33 = vpop.f32.mrf.mxu1  ;;  %10344 = vmatpush3.bf16.msra.mxu0 %v11393_v54 }
 0x126   : > { %v13143_v2 = vadd.f32 %v1479_v33, %v1396_v0  ;;  %3088 = vmatprep.mubr.bf16.mxu0 %v16923_v59  ;;  %v1398_v36 = vpop.f32.mrf.mxu0  ;;  %3167 = vmatprep.mubr.bf16.mxu1 %v12966_v38  ;;  %v11406_v0 = vld [vmem:[%s16919_s5 + $0x2b8] ss:$20 sps:$4 sm:$0xff]   ;;  %v11408_v33 = vld [vmem:[%s16919_s5 + $0x3d0] ss:$20 sps:$4 sm:$0xff]  }
 0x127   : > { %v1481_v7 = vpop.f32.mrf.mxu1  ;;  %10345 = vmatprep.subr.bf16.mxu0 %v11395_v27  ;;  %10737 = vmatpush3.bf16.msra.mxu1 %v11397_v1  ;;  %v13208_v1 = vld [vmem:[%s12209_s28 + $0x88] ss:$20 sps:$4 sm:$0xff]  }
 0x128   : > { %v13153_v9 = vadd.f32 %v1481_v7, %v1398_v36  ;;  %v1400_v20 = vpop.f32.mrf.mxu0  ;;  %10738 = vmatprep.subr.bf16.mxu1 %v16921_v25  ;;  %v11407_v36 = vld [vmem:[%s16919_s5 + $0x538] ss:$20 sps:$4 sm:$0xff]  }
 0x129   : > { %v1483_v62 = vpop.f32.mrf.mxu1  ;;  %10346 = vmatpush3.bf16.msra.mxu0 %v11396_v6 }
 0x12a   : > { %v13162_v30 = vadd.f32 %v1483_v62, %v1400_v20  ;;  %v13165_v38 = vpop.f32.mrf.mxu0  ;;  %10347 = vmatprep.subr.bf16.mxu0 %v11398_v40  ;;  %v11410_v20 = vld [vmem:[%s16919_s5 + $0x510] ss:$20 sps:$4 sm:$0xff]   ;;  %v11415_v62 = vld [vmem:[%s12864_s10 + $0xf8] sm:$0xff]  }
 0x12b   : > { %v13167_v31 = vpop.f32.mrf.mxu1  ;;  %10739 = vmatpush3.bf16.msra.mxu1 %v11400_v18 }
 0x12c   : > { %17094 = vst [vmem:[#allocation2_spill] sm:$0xff] %v13167_v31  ;;  %3089 = vmatmul.mubr.bf16.gmra.mxu0 %v13173_v47  ;;  %v1406_v39 = vpop.f32.mrf.mxu0  ;;  %10740 = vmatprep.subr.bf16.mxu1 %v16921_v25  ;;  %v12005_v31 = vld [vmem:[%s16919_s5 + $0x560] ss:$20 sps:$4 sm:$0xff]  }
 0x12d   : > { %3168 = vmatmul.mubr.bf16.gmra.mxu1 %v12992_v46  ;;  %v1489_v29 = vpop.f32.mrf.mxu1  ;;  %10348 = vmatpush3.bf16.msra.mxu0 %v11399_v16  ;;  %v11405_v46 = vld [vmem:[%s16919_s5 + $0x3f8] ss:$20 sps:$4 sm:$0xff]  }
 0x12e   : > { %v13177_v44 = vadd.f32 %v1489_v29, %v1406_v39  ;;  %v1408_v41 = vpop.f32.mrf.mxu0  ;;  %3098 = vmatprep.mubr.bf16.mxu0 %v16923_v59  ;;  %3175 = vmatprep.mubr.bf16.mxu1 %v13009_v52  ;;  %v11404_v52 = vld [vmem:[%s16919_s5 + $0x560] ss:$20 sps:$4 sm:$0xff]   ;;  %v11411_v16 = vld [vmem:[%s12864_s10 + $0x78] sm:$0xff]   ;;  %v13247_v39 = vld [vmem:[%s12209_s28 + $0xb0] ss:$20 sps:$4 sm:$0x3f]  }
 0x12f   : > { %v1491_v35 = vpop.f32.mrf.mxu1  ;;  %10349 = vmatprep.subr.bf16.mxu0 %v11401_v8  ;;  %10741 = vmatpush3.bf16.msra.mxu1 %v11402_v34  ;;  %v11808_v8 = vld [vmem:[%s16919_s5 + $0xcc] ss:$20 sps:$4 sm:$0xff]  }
 0x130   : > { %v13190_v53 = vadd.f32 %v1491_v35, %v1408_v41  ;;  %v1410_v55 = vpop.f32.mrf.mxu0  ;;  %10742 = vmatprep.subr.bf16.mxu1 %v16921_v25 }
 0x131   : > { %v1493_v56 = vpop.f32.mrf.mxu1  ;;  %10350 = vmatpush3.bf16.msra.mxu0 %v11403_v3 }
 0x132   : > { %v13193_v54 = vadd.f32 %v1493_v56, %v1410_v55  ;;  %v13198_v27 = vpop.f32.mrf.mxu0  ;;  %10351 = vmatprep.subr.bf16.mxu0 %v11405_v46  ;;  %v11416_v55 = vld [vmem:[%s12864_s10 + $0xb8] sm:$0xff]   ;;  %v11419_v56 = vld [vmem:[%s12864_s10 + $0xf0] sm:$0xff]  }
 0x133   : > { %17095 = vst [vmem:[#allocation3_spill] sm:$0xff] %v13198_v27  ;;  %10743 = vmatpush3.bf16.msra.mxu1 %v11404_v52  ;;  %v11414_v52 = vld [vmem:[%s12864_s10 + $0x30] sm:$0xff]  }
 0x134   : > { %3099 = vmatmul.mubr.bf16.gmra.mxu0 %v13208_v1  ;;  %v1532_v6 = vpop.f32.mrf.mxu0  ;;  %10744 = vmatprep.subr.bf16.mxu1 %v16921_v25 }
 0x135   : > { %3176 = vmatmul.mubr.bf16.gmra.mxu1 %v13032_v21  ;;  %v13213_v40 = vadd.f32 %v1532_v6, %v13039_v61  ;;  %3108 = vmatprep.mubr.bf16.mxu0 %v16923_v59  ;;  %v11409_v21 = vld [vmem:[%s16919_s5 + $0x290] ss:$20 sps:$4 sm:$0xff]  }
 0x136   : > { %v1534_v7 = vpop.f32.mrf.mxu0  ;;  %3183 = vmatprep.mubr.bf16.mxu1 %v13042_v63  ;;  %10352 = vmatpush3.bf16.msra.mxu0 %v11406_v0 }
 0x137   : > { %v13225_v61 = vadd.f32 %v1534_v7, %v13058_v4  ;;  %10353 = vmatprep.subr.bf16.mxu0 %v11408_v33  ;;  %10745 = vmatpush3.bf16.msra.mxu1 %v11407_v36  ;;  %v11420_v33 = vld [vmem:[%s12864_s10 + $0xb0] sm:$0xff]   ;;  %v13289_v36 = vpop.f32.mrf.mxu1 }
 0x138   : > { %v1536_v18 = vpop.f32.mrf.mxu0  ;;  %10746 = vmatprep.subr.bf16.mxu1 %v16921_v25  ;;  %17101 = vst [vmem:[#allocation9_spill] sm:$0xff] %v13289_v36  ;;  %v1456_v36 = vadd.f32 %v13070_v13, %v13068_v12 }
 0x139   : > { %v13235_v63 = vadd.f32 %v1536_v18, %v13063_v43 }
 0x13a   : > { %v13240_v4 = vpop.f32.mrf.mxu0  ;;  %10354 = vmatpush3.bf16.msra.mxu0 %v11409_v21  ;;  %v11421_v21 = vld [vmem:[%s12864_s10 + $0x60] sm:$0xff]  }
 0x13b   : > { %10398 = vmatprep.subr.bf16.mxu0 %v11411_v16  ;;  %10747 = vmatpush3.bf16.msra.mxu1 %v11410_v20  ;;  %v11423_v16 = vld [vmem:[%s12864_s10 + $0xe8] sm:$0xff]  }
 0x13c   : > { %3109 = vmatmul.mubr.bf16.gmra.mxu0 %v13247_v39  ;;  %v1542_v43 = vpop.f32.mrf.mxu0  ;;  %10474 = vmatprep.subr.bf16.mxu1 %v11415_v62  ;;  %v11424_v20 = vld [vmem:[%s12864_s10 + $0xa8] sm:$0xff]  }
 0x13d   : > { %3184 = vmatmul.mubr.bf16.gmra.mxu1 %v13073_v14  ;;  %v13252_v29 = vadd.f32 %v1542_v43, %v13080_v19  ;;  %3224 = vmatprep.mubr.bf16.mxu0 %v12826_v57  ;;  %v11412_v19 = vld [vmem:[%s12864_s10 + $0x38] sm:$0xff]   ;;  %v11413_v57 = vld [vmem:[%s12864_s10 + $0x70] sm:$0xff]   ;;  %v11422_v43 = vld [vmem:[%s12864_s10 + $0x20] sm:$0xff]  }
 0x13e   : > { %v1544_v34 = vpop.f32.mrf.mxu0  ;;  %10748 = vmatprep.mubr.msk.bf16.mxu1 %vm12018_vm0, %v16921_v25 }
 0x13f   : > { %17096 = vst [vmem:[#allocation4_spill] sm:$0xff] %v13252_v29  ;;  %v13258_v3 = vadd.f32 %v1544_v34, %v13085_v28  ;;  %v11426_v34 = vld [vmem:[%s12864_s10 + $0xe0] sm:$0xff]  }
 0x140   : > { %v1546_v14 = vpop.f32.mrf.mxu0 }
 0x141   : > { %v13261_v41 = vadd.f32 %v1546_v14, %v13087_v17 }
 0x142   : > { %v13264_v35 = vpop.f32.mrf.mxu0 }
 0x143   : > { %17097 = vst [vmem:[#allocation5_spill] sm:$0xff] %v13261_v41 }
 0x144   : > { %3225 = vmatmul.mubr.bf16.vlgmr.msra.gmra.mxu0 %v12919_v5  ;;  %v1552_v28 = vpop.f32.mrf.mxu0  ;;  %v11417_v5 = vld [vmem:[%s12864_s10 + $0x68] sm:$0xff]  }
 0x145   : > { %10749 = vmatmul.mubr.bf16.vlgmr.msra.gmra.mxu1 %v13106_v23  ;;  %v13274_v17 = vadd.f32 %v1552_v28, %v13113_v49  ;;  %10399 = vmatpush3.bf16.msra.mxu0 %v11412_v19  ;;  %v11428_v28 = vld [vmem:[%s12864_s10 + $0xa0] sm:$0xff]  }
 0x146   : > { %3232 = vmatprep.mubr.bf16.mxu0 %v12933_v11  ;;  %v1554_v0 = vpop.f32.mrf.mxu0  ;;  %10400 = vmatprep.subr.bf16.mxu0 %v11413_v57  ;;  %v11418_v11 = vld [vmem:[%s12864_s10 + $0x28] sm:$0xff]  }
 0x147   : > { %17098 = vst [vmem:[#allocation6_spill] sm:$0xff] %v13274_v17  ;;  %10752 = vmatprep.mubr.msk.bf16.mxu1 %vm12018_vm0, %v16921_v25  ;;  %v13282_v23 = vadd.f32 %v1554_v0, %v13120_v24  ;;  %10475 = vmatpush3.bf16.msra.mxu1 %v11416_v55  ;;  %v11427_v55 = vld [vmem:[%s12864_s10 + $0x18] sm:$0xff]  }
 0x148   : > { %v1556_v6 = vpop.f32.mrf.mxu0  ;;  %10476 = vmatprep.subr.bf16.mxu1 %v11419_v56  ;;  %v11429_v0 = vld [vmem:[%s12864_s10 + $0xd8] sm:$0xff]  }
 0x149   : > { %17099 = vst [vmem:[#allocation7_spill] sm:$0xff] %v13282_v23  ;;  %v13286_v49 = vadd.f32 %v1556_v6, %v13123_v15  ;;  %10401 = vmatpush3.bf16.msra.mxu0 %v11414_v52 }
 0x14a   : > { %v13291_v7 = vpop.f32.mrf.mxu0  ;;  %10402 = vmatprep.subr.bf16.mxu0 %v11417_v5  ;;  %v11430_v5 = vld [vmem:[%s12864_s10 + $0x50] sm:$0xff]  }
 0x14b   : > { %17100 = vst [vmem:[#allocation8_spill] sm:$0xff] %v13286_v49  ;;  %10477 = vmatpush3.bf16.msra.mxu1 %v11420_v33 }
 0x14c   : > { %3233 = vmatmul.mubr.bf16.gmra.mxu0 %v12959_v22  ;;  %v1562_v15 = vpop.f32.mrf.mxu0  ;;  %v11425_v22 = vld [vmem:[%s12864_s10 + $0x58] sm:$0xff]   ;;  %10478 = vmatprep.subr.bf16.mxu1 %v11423_v16 }
 0x14d   : > { %10753 = vmatmul.mubr.bf16.gmra.mxu1 %v13136_v26  ;;  %v13299_v18 = vpop.f32.mrf.mxu1  ;;  %v13303_v62 = vadd.f32 %v1562_v15, %v13143_v2  ;;  %10403 = vmatpush3.bf16.msra.mxu0 %v11418_v11  ;;  %v11431_v11 = vld [vmem:[%s12864_s10 + $0x98] sm:$0xff]  }
 0x14e   : > { %3240 = vmatprep.mubr.bf16.mxu0 %v12973_v42  ;;  %v1564_v14 = vpop.f32.mrf.mxu0  ;;  %10756 = vmatprep.mubr.msk.bf16.mxu1 %vm12018_vm0, %v16921_v25 }
 0x14f   : > { %17102 = vst [vmem:[#allocation10_spill] sm:$0xff] %v13303_v62  ;;  %v13308_v19 = vpop.f32.mrf.mxu1  ;;  %10404 = vmatprep.subr.bf16.mxu0 %v11421_v21  ;;  %v13314_v26 = vadd.f32 %v1564_v14, %v13153_v9  ;;  %10479 = vmatpush3.bf16.msra.mxu1 %v11424_v20  ;;  %v11432_v21 = vld [vmem:[%s12864_s10 + $0x10] sm:$0xff]  }
 0x150   : > { %v1566_v2 = vpop.f32.mrf.mxu0  ;;  %10480 = vmatprep.subr.bf16.mxu1 %v11426_v34 }
 0x151   : > { %17103 = vst [vmem:[#allocation11_spill] sm:$0xff] %v13314_v26  ;;  %v13316_v42 = vpop.f32.mrf.mxu1  ;;  %v13319_v57 = vadd.f32 %v1566_v2, %v13162_v30  ;;  %10405 = vmatpush3.bf16.msra.mxu0 %v11422_v43  ;;  %v11437_v2 = vld [vmem:[%s12864_s10 + $0xc8] sm:$0xff]  }
 0x152   : > { %v13323_v56 = vpop.f32.mrf.mxu0  ;;  %10406 = vmatprep.subr.bf16.mxu0 %v11425_v22 }
 0x153   : > { %17104 = vst [vmem:[#allocation12_spill] sm:$0xff] %v13319_v57  ;;  %17105 = vst [vmem:[#allocation13_spill] sm:$0xff] %v13323_v56  ;;  %v13325_v52 = vpop.f32.mrf.mxu1  ;;  %10481 = vmatpush3.bf16.msra.mxu1 %v11428_v28  ;;  %v11438_v28 = vld [vmem:[%s12864_s10 + $0x88] sm:$0xff]  }
 0x154   : > { %3241 = vmatmul.mubr.bf16.gmra.mxu0 %v12996_v10  ;;  %v1572_v30 = vpop.f32.mrf.mxu0  ;;  %v11433_v10 = vld [vmem:[%s12864_s10 + $0xd0] sm:$0xff]   ;;  %10482 = vmatprep.subr.bf16.mxu1 %v11429_v0 }
 0x155   : > { %10757 = vmatmul.mubr.bf16.gmra.mxu1 %v13173_v47  ;;  %v13333_v33 = vpop.f32.mrf.mxu1  ;;  %v13336_v6 = vadd.f32 %v1572_v30, %v13177_v44  ;;  %10407 = vmatpush3.bf16.msra.mxu0 %v11427_v55  ;;  %v11435_v47 = vld [vmem:[%s12864_s10 + $0x48] sm:$0xff]   ;;  %v11439_v55 = vld [vmem:[%s12864_s10 + $0x40] sm:$0xff]  }
 0x156   : > { %v1574_v16 = vpop.f32.mrf.mxu0  ;;  %3248 = vmatprep.mubr.bf16.mxu0 %v13013_v45  ;;  %10760 = vmatprep.mubr.msk.bf16.mxu1 %vm12018_vm0, %v16921_v25  ;;  %v11434_v45 = vld [vmem:[%s12864_s10 + $0x90] sm:$0xff]   ;;  %v11441_v30 = vld [vmem:[%s12864_s10 + $0xc0] sm:$0xff]  }
 0x157   : > { %17106 = vst [vmem:[#allocation14_spill] sm:$0xff] %v13336_v6  ;;  %v13340_v15 = vpop.f32.mrf.mxu1  ;;  %v13348_v44 = vadd.f32 %v1574_v16, %v13190_v53  ;;  %10408 = vmatprep.subr.bf16.mxu0 %v11430_v5  ;;  %10483 = vmatpush3.bf16.msra.mxu1 %v11431_v11  ;;  %v11436_v53 = vld [vmem:[%s12864_s10 + $0x8] sm:$0xff]   ;;  %v11440_v5 = vld [vmem:[%s12864_s10] sm:$0xff]  }
 0x158   : > { %v1576_v20 = vpop.f32.mrf.mxu0  ;;  %10484 = vmatprep.subr.bf16.mxu1 %v11433_v10  ;;  %v11448_v16 = vld [vmem:[%s16918_s4 + $0xc] ss:$20 sps:$4 sm:$0xff]  }
 0x159   : > { %17107 = vst [vmem:[#allocation15_spill] sm:$0xff] %v13348_v44  ;;  %v13350_v43 = vpop.f32.mrf.mxu1  ;;  %v13353_v34 = vadd.f32 %v1576_v20, %v13193_v54  ;;  %10409 = vmatpush3.bf16.msra.mxu0 %v11432_v21  ;;  %v11804_v20 = vld [vmem:[%s16919_s5 + $0x11c] ss:$20 sps:$4 sm:$0xff]  }
 0x15a   : > { %10410 = vmatprep.subr.bf16.mxu0 %v11435_v47 }
 0x15b   : > { %17108 = vst [vmem:[#allocation16_spill] sm:$0xff] %v13353_v34  ;;  %v13356_v14 = vpop.f32.mrf.mxu1  ;;  %10485 = vmatpush3.bf16.msra.mxu1 %v11434_v45 }
 0x15c   : > { %3249 = vmatmul.mubr.bf16.gmra.mxu0 %v13036_v58  ;;  %10486 = vmatprep.subr.bf16.mxu1 %v11437_v2  ;;  %v11449_v58 = vld [vmem:[%s12864_s10 + $0x138] sm:$0xff]  }
 0x15d   : > { %10761 = vmatmul.mubr.bf16.gmra.mxu1 %v13208_v1  ;;  %v13365_v54 = vpop.f32.mrf.mxu1  ;;  %3256 = vmatprep.mubr.bf16.mxu0 %v13052_v48  ;;  %v11442_v1 = vld [vmem:[%s12864_s10 + $0x80] sm:$0xff]  }
 0x15e   : > { %10764 = vmatprep.mubr.msk.bf16.mxu1 %vm12018_vm0, %v16921_v25  ;;  %10411 = vmatpush3.bf16.msra.mxu0 %v11436_v53  ;;  %v11445_v48 = vld [vmem:[%s16918_s4 + $0x4] ss:$20 sps:$4 sm:$0xff]   ;;  %v11452_v53 = vld [vmem:[%s16918_s4 + $0x2c] ss:$20 sps:$4 sm:$0xff]  }
 0x15f   : > { %v13369_v0 = vpop.f32.mrf.mxu1  ;;  %10412 = vmatprep.subr.bf16.mxu0 %v11439_v55  ;;  %10487 = vmatpush3.bf16.msra.mxu1 %v11438_v28  ;;  %v11455_v55 = vld [vmem:[%s16918_s4 + $0x34] ss:$20 sps:$4 sm:$0xff]   ;;  %v11807_v25 = vld [vmem:[%s16919_s5 + $0xf0] ss:$20 sps:$4 sm:$0xff]  }
 0x160   : > { %10488 = vmatprep.subr.bf16.mxu1 %v11441_v30  ;;  %v11456_v28 = vld [vmem:[%s12864_s10 + $0x130] sm:$0xff]  }
 0x161   : > { %v13376_v11 = vpop.f32.mrf.mxu1 }
 0x162   : > { %10413 = vmatpush3.bf16.msra.mxu0 %v11440_v5 }
 0x163   : > { %v13382_v21 = vpop.f32.mrf.mxu1  ;;  %10768 = vmatprep.subr.bf16.mxu0 %v11449_v58  ;;  %10489 = vmatpush3.bf16.msra.mxu1 %v11442_v1  ;;  %v11463_v1 = vld [vmem:[%s12864_s10 + $0x128] sm:$0xff]  }
 0x164   : > { %3257 = vmatmul.mubr.bf16.gmra.mxu0 %v13077_v51  ;;  %4273 = vmatprep.subr.bf16.mxu1 %v11804_v20  ;;  %v11443_v51 = vld [vmem:[%s16918_s4] ss:$20 sps:$4 sm:$0xff]   ;;  %v11450_v20 = vld [vmem:[%s16918_s4 + $0x28] ss:$20 sps:$4 sm:$0xff]  }
 0x165   : > { %10765 = vmatmul.mubr.bf16.gmra.mxu1 %v13247_v39  ;;  %v13389_v10 = vpop.f32.mrf.mxu1  ;;  %3870 = vmatprep.mubr.bf16.mxu0 %v11445_v48  ;;  %v11446_v39 = vld [vmem:[%s16918_s4 + $0x8] ss:$20 sps:$4 sm:$0xff]   ;;  %v11805_v48 = vld [vmem:[%s16919_s5 + $0x118] ss:$20 sps:$4 sm:$0xff]  }
 0x166   : > { %3983 = vmatprep.mubr.bf16.mxu1 %v11448_v16 }
 0x167   : > { %v13391_v47 = vpop.f32.mrf.mxu1 }
 0x169   : > { %v13396_v45 = vpop.f32.mrf.mxu1 }
 0x16b   : > { %v13407_v2 = vpop.f32.mrf.mxu1 }
 0x16c   : > { %3871 = vmatmul.mubr.bf16.vlgmr.msra.gmra.mxu0 %v11443_v51  ;;  %v11806_v51 = vld [vmem:[%s16919_s5 + $0xf4] ss:$20 sps:$4 sm:$0xff]  }
 0x16d   : > { %3984 = vmatmul.mubr.bf16.vlgmr.msra.gmra.mxu1 %v11446_v39  ;;  %v13413_v5 = vpop.f32.mrf.mxu1  ;;  %10769 = vmatpush3.bf16.msra.mxu0 %v11449_v58  ;;  %v11453_v58 = vld [vmem:[%s16918_s4 + $0x30] ss:$20 sps:$4 sm:$0xff]   ;;  %v11459_v39 = vld [vmem:[%s16918_s4 + $0x54] ss:$20 sps:$4 sm:$0xff]  }
 0x16e   : > { %3878 = vmatprep.mubr.bf16.mxu0 %v11452_v53  ;;  %3991 = vmatprep.mubr.bf16.mxu1 %v11455_v55  ;;  %v11462_v53 = vld [vmem:[%s16918_s4 + $0x5c] ss:$20 sps:$4 sm:$0xff]   ;;  %v13438_v55 = vpop.f32.mrf.mxu0 }
 0x16f   : > { %v13415_v30 = vpop.f32.mrf.mxu1  ;;  %10770 = vmatprep.subr.bf16.mxu0 %v11456_v28  ;;  %4274 = vmatpush1.bf16.msra.mxu1 %v11805_v48  ;;  %17109 = vst [vmem:[#allocation17_spill] sm:$0xff] %v13438_v55 }
 0x170   : > { %4275 = vmatprep.subr.bf16.mxu1 %v11806_v51  ;;  %v11470_v51 = vld [vmem:[%s12864_s10 + $0x120] sm:$0xff]  }
 0x171   : > { %v13421_v16 = vpop.f32.mrf.mxu1  ;;  %10771 = vmatpush3.bf16.msra.mxu0 %v11456_v28 }
 0x172   : > { %10772 = vmatprep.subr.bf16.mxu0 %v11463_v1 }
 0x173   : > { %v13440_v48 = vpop.f32.mrf.mxu1  ;;  %4276 = vmatpush1.bf16.msra.mxu1 %v11807_v25 }
 0x174   : > { %v2738_v28 = vpop.f32.mrf.mxu0  ;;  %3879 = vmatmul.mubr.bf16.gmra.mxu0 %v11450_v20  ;;  %4277 = vmatprep.subr.bf16.mxu1 %v11808_v8  ;;  %v11809_v20 = vld [vmem:[%s16919_s5 + $0xc8] ss:$20 sps:$4 sm:$0xff]   ;;  %v11460_v8 = vld [vmem:[%s16918_s4 + $0x58] ss:$20 sps:$4 sm:$0xff]  }
 0x175   : > { %3992 = vmatmul.mubr.bf16.gmra.mxu1 %v11453_v58  ;;  %v2821_v22 = vpop.f32.mrf.mxu1  ;;  %v2739_v9 = vadd.f32 %v2738_v28, %v13299_v18  ;;  %3886 = vmatprep.mubr.bf16.mxu0 %v11459_v39  ;;  %v11483_v18 = vld [vmem:[%s12864_s10 + $0x118] sm:$0xff]  }
 0x176   : > { %3999 = vmatprep.mubr.bf16.mxu1 %v11462_v53  ;;  %v2740_v24 = vpop.f32.mrf.mxu0  ;;  %10773 = vmatpush3.bf16.msra.mxu0 %v11463_v1  ;;  %v11457_v1 = vld [vmem:[%s16918_s4 + $0x50] ss:$20 sps:$4 sm:$0xff]  }
 0x177   : > { %v2823_v46 = vpop.f32.mrf.mxu1  ;;  %v2741_v25 = vadd.f32 %v2740_v24, %v13308_v19  ;;  %v13451_v59 = vadd.f32 %v2821_v22, %v2739_v9  ;;  %4278 = vmatpush1.bf16.msra.mxu1 %v11809_v20  ;;  %10774 = vmatprep.subr.bf16.mxu0 %v11470_v51  ;;  %v11810_v24 = vld [vmem:[%s16919_s5 + $0xa4] ss:$20 sps:$4 sm:$0xff]   ;;  %v11466_v22 = vld [vmem:[%s16918_s4 + $0x7c] ss:$20 sps:$4 sm:$0xff]  }
 0x178   : > { %v2742_v58 = vpop.f32.mrf.mxu0  ;;  %4279 = vmatprep.subr.bf16.mxu1 %v11810_v24  ;;  %v11469_v20 = vld [vmem:[%s16918_s4 + $0x84] ss:$20 sps:$4 sm:$0xff]  }
 0x179   : > { %17110 = vst [vmem:[#allocation18_spill] sm:$0xff] %v13451_v59  ;;  %v2825_v39 = vpop.f32.mrf.mxu1  ;;  %v2743_v19 = vadd.f32 %v2742_v58, %v13316_v42  ;;  %v13467_v9 = vadd.f32 %v2823_v46, %v2741_v25  ;;  %v11811_v46 = vld [vmem:[%s16919_s5 + $0xa0] ss:$20 sps:$4 sm:$0xff]  }
 0x17a   : > { %v2744_v53 = vpop.f32.mrf.mxu0  ;;  %10775 = vmatpush3.bf16.msra.mxu0 %v11470_v51  ;;  %v11490_v58 = vld [vmem:[%s12864_s10 + $0x110] sm:$0xff]  }
 0x17b   : > { %17111 = vst [vmem:[#allocation19_spill] sm:$0xff] %v13467_v9  ;;  %v2827_v28 = vpop.f32.mrf.mxu1  ;;  %v2745_v59 = vadd.f32 %v2744_v53, %v13325_v52  ;;  %v13476_v6 = vadd.f32 %v2825_v39, %v2743_v19  ;;  %4280 = vmatpush1.bf16.msra.mxu1 %v11811_v46  ;;  %10776 = vmatprep.subr.bf16.mxu0 %v11483_v18  ;;  %v11812_v39 = vld [vmem:[%s16919_s5 + $0x7c] ss:$20 sps:$4 sm:$0xff]  }
 0x17c   : > { %v2748_v42 = vpop.f32.mrf.mxu0  ;;  %3887 = vmatmul.mubr.bf16.gmra.mxu0 %v11457_v1  ;;  %4281 = vmatprep.subr.bf16.mxu1 %v11812_v39  ;;  %v11813_v1 = vld [vmem:[%s16919_s5 + $0x78] ss:$20 sps:$4 sm:$0xff]  }
 0x17d   : > { %17112 = vst [vmem:[#allocation20_spill] sm:$0xff] %v13476_v6  ;;  %4000 = vmatmul.mubr.bf16.gmra.mxu1 %v11460_v8  ;;  %v2831_v25 = vpop.f32.mrf.mxu1  ;;  %v2749_v24 = vadd.f32 %v2748_v42, %v13333_v33  ;;  %v13483_v9 = vadd.f32 %v2827_v28, %v2745_v59  ;;  %3894 = vmatprep.mubr.bf16.mxu0 %v11466_v22  ;;  %v11464_v8 = vld [vmem:[%s16918_s4 + $0x78] ss:$20 sps:$4 sm:$0xff]   ;;  %v11467_v22 = vld [vmem:[%s16918_s4 + $0x80] ss:$20 sps:$4 sm:$0xff]  }
 0x17e   : > { %v2750_v51 = vpop.f32.mrf.mxu0  ;;  %4007 = vmatprep.mubr.bf16.mxu1 %v11469_v20  ;;  %10777 = vmatpush3.bf16.msra.mxu0 %v11483_v18  ;;  %v11473_v20 = vld [vmem:[%s16918_s4 + $0xa4] ss:$20 sps:$4 sm:$0xff]   ;;  %v11529_v6 = vld [vmem:[%s16918_s4 + $0x128] ss:$20 sps:$4 sm:$0xff]  }
 0x17f   : > { %17113 = vst [vmem:[#allocation21_spill] sm:$0xff] %v13483_v9  ;;  %v2833_v52 = vpop.f32.mrf.mxu1  ;;  %v2751_v19 = vadd.f32 %v2750_v51, %v13340_v15  ;;  %v13489_v53 = vadd.f32 %v2831_v25, %v2749_v24  ;;  %4282 = vmatpush1.bf16.msra.mxu1 %v11813_v1  ;;  %v11814_v15 = vld [vmem:[%s16919_s5 + $0x54] ss:$20 sps:$4 sm:$0xff]   ;;  %10778 = vmatprep.subr.bf16.mxu0 %v11490_v58  ;;  %v11476_v25 = vld [vmem:[%s16918_s4 + $0xac] ss:$20 sps:$4 sm:$0xff]  }
 0x180   : > { %v2752_v59 = vpop.f32.mrf.mxu0  ;;  %4283 = vmatprep.subr.bf16.mxu1 %v11814_v15  ;;  %v11504_v15 = vld [vmem:[%s12864_s10 + $0x100] sm:$0xff]   ;;  %v11531_v9 = vld [vmem:[%s16918_s4 + $0x178] ss:$20 sps:$4 sm:$0xff]  }
 0x181   : > { %17114 = vst [vmem:[#allocation22_spill] sm:$0xff] %v13489_v53  ;;  %v2835_v33 = vpop.f32.mrf.mxu1  ;;  %v2753_v28 = vadd.f32 %v2752_v59, %v13350_v43  ;;  %v13504_v18 = vadd.f32 %v2833_v52, %v2751_v19  ;;  %v11815_v43 = vld [vmem:[%s16919_s5 + $0x50] ss:$20 sps:$4 sm:$0xff]   ;;  %v11497_v52 = vld [vmem:[%s12864_s10 + $0x108] sm:$0xff]  }
 0x182   : > { %v2754_v46 = vpop.f32.mrf.mxu0  ;;  %10779 = vmatpush3.bf16.msra.mxu0 %v11490_v58 }
 0x183   : > { %17115 = vst [vmem:[#allocation23_spill] sm:$0xff] %v13504_v18  ;;  %v2837_v42 = vpop.f32.mrf.mxu1  ;;  %v2755_v24 = vadd.f32 %v2754_v46, %v13356_v14  ;;  %v13513_v51 = vadd.f32 %v2835_v33, %v2753_v28  ;;  %4284 = vmatpush1.bf16.msra.mxu1 %v11815_v43  ;;  %v11816_v28 = vld [vmem:[%s16919_s5 + $0x2c] ss:$20 sps:$4 sm:$0xff]   ;;  %10780 = vmatprep.subr.bf16.mxu0 %v11497_v52 }
 0x184   : > { %v2758_v39 = vpop.f32.mrf.mxu0  ;;  %3895 = vmatmul.mubr.bf16.gmra.mxu0 %v11464_v8  ;;  %4285 = vmatprep.subr.bf16.mxu1 %v11816_v28  ;;  %v11479_v43 = vld [vmem:[%s16918_s4 + $0xcc] ss:$20 sps:$4 sm:$0xff]  }
 0x185   : > { %17116 = vst [vmem:[#allocation24_spill] sm:$0xff] %v13513_v51  ;;  %4008 = vmatmul.mubr.bf16.gmra.mxu1 %v11467_v22  ;;  %v2841_v19 = vpop.f32.mrf.mxu1  ;;  %v2759_v1 = vadd.f32 %v2758_v39, %v13365_v54  ;;  %v13520_v59 = vadd.f32 %v2837_v42, %v2755_v24  ;;  %3902 = vmatprep.mubr.bf16.mxu0 %v11473_v20  ;;  %v11817_v54 = vld [vmem:[%s16919_s5 + $0x28] ss:$20 sps:$4 sm:$0xff]   ;;  %v11471_v20 = vld [vmem:[%s16918_s4 + $0xa0] ss:$20 sps:$4 sm:$0xff]  }
 0x186   : > { %v2760_v14 = vpop.f32.mrf.mxu0  ;;  %4015 = vmatprep.mubr.bf16.mxu1 %v11476_v25  ;;  %v11474_v42 = vld [vmem:[%s16918_s4 + $0xa8] ss:$20 sps:$4 sm:$0xff]   ;;  %10781 = vmatpush3.bf16.msra.mxu0 %v11497_v52 }
 0x187   : > { %17117 = vst [vmem:[#allocation25_spill] sm:$0xff] %v13520_v59  ;;  %v2843_v33 = vpop.f32.mrf.mxu1  ;;  %v2761_v58 = vadd.f32 %v2760_v14, %v13369_v0  ;;  %v13527_v46 = vadd.f32 %v2841_v19, %v2759_v1  ;;  %4286 = vmatpush1.bf16.msra.mxu1 %v11817_v54  ;;  %v11818_v0 = vld [vmem:[%s16919_s5 + $0x4] ss:$20 sps:$4 sm:$0xff]   ;;  %10782 = vmatprep.subr.bf16.mxu0 %v11504_v15  ;;  %v11482_v1 = vld [vmem:[%s16918_s4 + $0xd4] ss:$20 sps:$4 sm:$0xff]  }
 0x188   : > { %v2762_v8 = vpop.f32.mrf.mxu0  ;;  %4287 = vmatprep.subr.bf16.mxu1 %v11818_v0  ;;  %v11868_v51 = vld [vmem:[%s16919_s5 + $0x4dc] ss:$20 sps:$4 sm:$0xff]  }
 0x189   : > { %17118 = vst [vmem:[#allocation26_spill] sm:$0xff] %v13527_v46  ;;  %v2845_v22 = vpop.f32.mrf.mxu1  ;;  %v2763_v25 = vadd.f32 %v2762_v8, %v13376_v11  ;;  %v13542_v24 = vadd.f32 %v2843_v33, %v2761_v58  ;;  %v11819_v11 = vld [vmem:[%s16919_s5] ss:$20 sps:$4 sm:$0xff]  }
 0x18a   : > { %v2764_v39 = vpop.f32.mrf.mxu0  ;;  %10783 = vmatpush3.bf16.msra.mxu0 %v11504_v15 }
 0x18b   : > { %17119 = vst [vmem:[#allocation27_spill] sm:$0xff] %v13542_v24  ;;  %v2847_v19 = vpop.f32.mrf.mxu1  ;;  %v2765_v14 = vadd.f32 %v2764_v39, %v13382_v21  ;;  %v13551_v28 = vadd.f32 %v2845_v22, %v2763_v25  ;;  %4288 = vmatpush1.bf16.msra.mxu1 %v11819_v11  ;;  %v11820_v21 = vld [vmem:[%s16919_s5 + $0x25c] ss:$20 sps:$4 sm:$0xff]  }
 0x18c   : > { %v2768_v52 = vpop.f32.mrf.mxu0  ;;  %3903 = vmatmul.mubr.bf16.gmra.mxu0 %v11471_v20  ;;  %4289 = vmatprep.subr.bf16.mxu1 %v11820_v21  ;;  %v11821_v20 = vld [vmem:[%s16919_s5 + $0x258] ss:$20 sps:$4 sm:$0xff]   ;;  %v11480_v39 = vld [vmem:[%s16918_s4 + $0xd0] ss:$20 sps:$4 sm:$0xff]  }
 0x18d   : > { %17120 = vst [vmem:[#allocation28_spill] sm:$0xff] %v13551_v28  ;;  %4016 = vmatmul.mubr.bf16.gmra.mxu1 %v11474_v42  ;;  %v2851_v33 = vpop.f32.mrf.mxu1  ;;  %v2769_v58 = vadd.f32 %v2768_v52, %v13389_v10  ;;  %v13557_v54 = vadd.f32 %v2847_v19, %v2765_v14  ;;  %3910 = vmatprep.mubr.bf16.mxu0 %v11479_v43  ;;  %v11477_v43 = vld [vmem:[%s16918_s4 + $0xc8] ss:$20 sps:$4 sm:$0xff]   ;;  %v11525_v28 = vld [vmem:[%s16918_s4 + $0xd8] ss:$20 sps:$4 sm:$0xff]  }
 0x18e   : > { %v2770_v8 = vpop.f32.mrf.mxu0  ;;  %4023 = vmatprep.mubr.bf16.mxu1 %v11482_v1  ;;  %v11823_v19 = vld [vmem:[%s16919_s5 + $0x39c] ss:$20 sps:$4 sm:$0xff]   ;;  %v11486_v14 = vld [vmem:[%s16918_s4 + $0xf4] ss:$20 sps:$4 sm:$0xff]  }
 0x18f   : > { %17121 = vst [vmem:[#allocation29_spill] sm:$0xff] %v13557_v54  ;;  %v2853_v0 = vpop.f32.mrf.mxu1  ;;  %v2771_v22 = vadd.f32 %v2770_v8, %v13391_v47  ;;  %v13563_v25 = vadd.f32 %v2851_v33, %v2769_v58  ;;  %4290 = vmatpush2.bf16.msra.mxu1 %v11821_v20  ;;  %v11822_v47 = vld [vmem:[%s16919_s5 + $0x234] ss:$20 sps:$4 sm:$0xff]   ;;  %4344 = vmatprep.subr.bf16.mxu0 %v11823_v19  ;;  %v11489_v33 = vld [vmem:[%s16918_s4 + $0xfc] ss:$20 sps:$4 sm:$0xff]  }
 0x190   : > { %v2772_v10 = vpop.f32.mrf.mxu0  ;;  %4291 = vmatprep.subr.bf16.mxu1 %v11822_v47  ;;  %v339_v54 = vld [vmem:[%s13232_s29 + $0x78] sm:$0x11] }
 0x191   : > { %17122 = vst [vmem:[#allocation30_spill] sm:$0xff] %v13563_v25  ;;  %v2855_v42 = vpop.f32.mrf.mxu1  ;;  %v2773_v15 = vadd.f32 %v2772_v10, %v13396_v45  ;;  %v13581_v1 = vadd.f32 %v2853_v0, %v2771_v22  ;;  %v11824_v45 = vld [vmem:[%s16919_s5 + $0x230] ss:$20 sps:$4 sm:$0xff]   ;;  %v13807_v46 = vcombine.high %v339_v54, %v339_v54 }
 0x192   : > { %v2774_v11 = vpop.f32.mrf.mxu0  ;;  %v11852_v24 = vld [vmem:[%s16919_s5 + $0x2fc] ss:$20 sps:$4 sm:$0xff]  }
 0x193   : > { %17123 = vst [vmem:[#allocation31_spill] sm:$0xff] %v13581_v1  ;;  %v2857_v52 = vpop.f32.mrf.mxu1  ;;  %v2775_v58 = vadd.f32 %v2774_v11, %v13407_v2  ;;  %v13590_v8 = vadd.f32 %v2855_v42, %v2773_v15  ;;  %4292 = vmatpush2.bf16.msra.mxu1 %v11824_v45  ;;  %v11825_v2 = vld [vmem:[%s16919_s5 + $0x20c] ss:$20 sps:$4 sm:$0xff]   ;;  %v11484_v15 = vld [vmem:[%s16918_s4 + $0xf0] ss:$20 sps:$4 sm:$0xff]  }
 0x194   : > { %v2778_v0 = vpop.f32.mrf.mxu0  ;;  %3911 = vmatmul.mubr.bf16.gmra.mxu0 %v11477_v43  ;;  %4293 = vmatprep.subr.bf16.mxu1 %v11825_v2  ;;  %v11826_v43 = vld [vmem:[%s16919_s5 + $0x208] ss:$20 sps:$4 sm:$0xff]   ;;  %v11491_v2 = vld [vmem:[%s16918_s4 + $0x118] ss:$20 sps:$4 sm:$0xff]  }
 0x195   : > { %17124 = vst [vmem:[#allocation32_spill] sm:$0xff] %v13590_v8  ;;  %4024 = vmatmul.mubr.bf16.gmra.mxu1 %v11480_v39  ;;  %v2861_v21 = vpop.f32.mrf.mxu1  ;;  %v2779_v22 = vadd.f32 %v2778_v0, %v13413_v5  ;;  %v13596_v20 = vadd.f32 %v2857_v52, %v2775_v58  ;;  %3918 = vmatprep.mubr.bf16.mxu0 %v11486_v14  ;;  %v11487_v14 = vld [vmem:[%s16918_s4 + $0xf8] ss:$20 sps:$4 sm:$0xff]   ;;  %v13761_v8 = vld [vmem:[%s13232_s29 + $0x54] ss:$20 sps:$4 sm:$0xff]  }
 0x196   : > { %v2780_v10 = vpop.f32.mrf.mxu0  ;;  %4031 = vmatprep.mubr.bf16.mxu1 %v11489_v33  ;;  %v11493_v33 = vld [vmem:[%s16918_s4 + $0x11c] ss:$20 sps:$4 sm:$0xff]   ;;  %v11496_v58 = vld [vmem:[%s16918_s4 + $0x124] ss:$20 sps:$4 sm:$0xff]  }
 0x197   : > { %17125 = vst [vmem:[#allocation33_spill] sm:$0xff] %v13596_v20  ;;  %v2863_v47 = vpop.f32.mrf.mxu1  ;;  %v2781_v42 = vadd.f32 %v2780_v10, %v13415_v30  ;;  %v13602_v19 = vadd.f32 %v2861_v21, %v2779_v22  ;;  %4294 = vmatpush2.bf16.msra.mxu1 %v11826_v43  ;;  %v11827_v30 = vld [vmem:[%s16919_s5 + $0x1e4] ss:$20 sps:$4 sm:$0xff]   ;;  %v11831_v43 = vld [vmem:[%s16919_s5 + $0x194] ss:$20 sps:$4 sm:$0xff]  }
 0x198   : > { %v2782_v5 = vpop.f32.mrf.mxu0  ;;  %4295 = vmatprep.subr.bf16.mxu1 %v11827_v30  ;;  %v11834_v30 = vld [vmem:[%s16919_s5 + $0x168] ss:$20 sps:$4 sm:$0xff]  }
 0x199   : > { %17126 = vst [vmem:[#allocation34_spill] sm:$0xff] %v13602_v19  ;;  %v2865_v39 = vpop.f32.mrf.mxu1  ;;  %v2783_v11 = vadd.f32 %v2782_v5, %v13421_v16  ;;  %v13617_v52 = vadd.f32 %v2863_v47, %v2781_v42  ;;  %v11828_v16 = vld [vmem:[%s16919_s5 + $0x1e0] ss:$20 sps:$4 sm:$0xff]   ;;  %v11829_v47 = vld [vmem:[%s16919_s5 + $0x1bc] ss:$20 sps:$4 sm:$0xff]  }
 0x19a   : > { %v2784_v45 = vpop.f32.mrf.mxu0  ;;  %v11494_v42 = vld [vmem:[%s16918_s4 + $0x120] ss:$20 sps:$4 sm:$0xff]   ;;  %v11500_v5 = vld [vmem:[%s16918_s4 + $0x144] ss:$20 sps:$4 sm:$0xff]  }
 0x19b   : > { %17127 = vst [vmem:[#allocation35_spill] sm:$0xff] %v13617_v52  ;;  %v2867_v0 = vpop.f32.mrf.mxu1  ;;  %v2785_v21 = vadd.f32 %v2784_v45, %v13440_v48  ;;  %v13626_v22 = vadd.f32 %v2865_v39, %v2783_v11  ;;  %4296 = vmatpush2.bf16.msra.mxu1 %v11828_v16  ;;  %v11830_v48 = vld [vmem:[%s16919_s5 + $0x1b8] ss:$20 sps:$4 sm:$0xff]   ;;  %v11498_v11 = vld [vmem:[%s16918_s4 + $0x140] ss:$20 sps:$4 sm:$0xff]  }
 0x19c   : > { %3919 = vmatmul.mubr.bf16.gmra.mxu0 %v11484_v15  ;;  %4297 = vmatprep.subr.bf16.mxu1 %v11829_v47  ;;  %v11503_v39 = vld [vmem:[%s16918_s4 + $0x14c] ss:$20 sps:$4 sm:$0xff]   ;;  %v11832_v15 = vld [vmem:[%s16919_s5 + $0x190] ss:$20 sps:$4 sm:$0xff]   ;;  %v11505_v47 = vld [vmem:[%s16918_s4 + $0x168] ss:$20 sps:$4 sm:$0xff]  }
 0x19d   : > { %17128 = vst [vmem:[#allocation36_spill] sm:$0xff] %v13626_v22  ;;  %4032 = vmatmul.mubr.bf16.gmra.mxu1 %v11487_v14  ;;  %v13631_v10 = vadd.f32 %v2867_v0, %v2785_v21  ;;  %3926 = vmatprep.mubr.bf16.mxu0 %v11493_v33  ;;  %v11833_v14 = vld [vmem:[%s16919_s5 + $0x16c] ss:$20 sps:$4 sm:$0xff]   ;;  %v11501_v33 = vld [vmem:[%s16918_s4 + $0x148] ss:$20 sps:$4 sm:$0xff]  }
 0x19e   : > { %4039 = vmatprep.mubr.bf16.mxu1 %v11496_v58  ;;  %v11835_v58 = vld [vmem:[%s16919_s5 + $0x144] ss:$20 sps:$4 sm:$0xff]   ;;  %v11507_v45 = vld [vmem:[%s16918_s4 + $0x16c] ss:$20 sps:$4 sm:$0xff]   ;;  %v11510_v0 = vld [vmem:[%s16918_s4 + $0x174] ss:$20 sps:$4 sm:$0xff]  }
 0x19f   : > { %17129 = vst [vmem:[#allocation37_spill] sm:$0xff] %v13631_v10  ;;  %4298 = vmatpush2.bf16.msra.mxu1 %v11830_v48  ;;  %v11836_v21 = vld [vmem:[%s16919_s5 + $0x140] ss:$20 sps:$4 sm:$0xff]   ;;  %v11837_v16 = vld [vmem:[%s16919_s5 + $0x61c] ss:$20 sps:$4 sm:$0xff]  }
 0x1a0   : > { %4299 = vmatprep.subr.bf16.mxu1 %v11831_v43  ;;  %v11508_v48 = vld [vmem:[%s16918_s4 + $0x170] ss:$20 sps:$4 sm:$0xff]   ;;  %v11520_v52 = vld [vmem:[%s16918_s4 + $0x88] ss:$20 sps:$4 sm:$0xff]   ;;  %v11844_v19 = vld [vmem:[%s16919_s5 + $0x34c] ss:$20 sps:$4 sm:$0xff]  }
 0x1a3   : > { %4300 = vmatpush2.bf16.msra.mxu1 %v11832_v15 }
 0x1a4   : > { %3927 = vmatmul.mubr.bf16.gmra.mxu0 %v11491_v2  ;;  %4301 = vmatprep.subr.bf16.mxu1 %v11833_v14  ;;  %v11511_v2 = vld [vmem:[%s16918_s4 + $0x10] ss:$20 sps:$4 sm:$0xff]  }
 0x1a5   : > { %4040 = vmatmul.mubr.bf16.gmra.mxu1 %v11494_v42  ;;  %3934 = vmatprep.mubr.bf16.mxu0 %v11500_v5  ;;  %v13694_v42 = vld [vmem:[%s13232_s29 + $0x4] ss:$20 sps:$4 sm:$0xff]  }
 0x1a6   : > { %4047 = vmatprep.mubr.bf16.mxu1 %v11503_v39 }
 0x1a7   : > { %4302 = vmatpush2.bf16.msra.mxu1 %v11834_v30 }
 0x1a8   : > { %4303 = vmatprep.subr.bf16.mxu1 %v11835_v58  ;;  %v13702_v58 = vld [vmem:[%s13232_s29] ss:$20 sps:$4 sm:$0xff]  }
 0x1ab   : > { %4304 = vmatpush2.bf16.msra.mxu1 %v11836_v21 }
 0x1ac   : > { %3935 = vmatmul.mubr.bf16.gmra.mxu0 %v11498_v11  ;;  %4415 = vmatprep.subr.bf16.mxu1 %v11837_v16 }
 0x1ad   : > { %4048 = vmatmul.mubr.bf16.gmra.mxu1 %v11501_v33  ;;  %3942 = vmatprep.mubr.bf16.mxu0 %v11507_v45  ;;  %v11515_v45 = vld [vmem:[%s16918_s4 + $0x38] ss:$20 sps:$4 sm:$0xff]  }
 0x1ae   : > { %4055 = vmatprep.mubr.bf16.mxu1 %v11510_v0 }
 0x1b4   : > { %v2904_v43 = vpop.f32.mrf.mxu0  ;;  %3943 = vmatmul.mubr.bf16.gmra.mxu0 %v11505_v47 }
 0x1b5   : > { %v2987_v5 = vpop.f32.mrf.mxu1  ;;  %4056 = vmatmul.mubr.bf16.gmra.mxu1 %v11508_v48  ;;  %10784 = vmatprep.mubr.bf16.mxu0 %v11511_v2  ;;  %v11516_v48 = vld [vmem:[%s16918_s4 + $0x60] ss:$20 sps:$4 sm:$0xff]  }
 0x1b6   : > { %v13696_v39 = vadd.f32 %v2987_v5, %v2904_v43  ;;  %4305 = vmatprep.mubr.bf16.mxu1 %v13694_v42  ;;  %v2906_v15 = vpop.f32.mrf.mxu0  ;;  %v13715_v2 = vld [vmem:[%s13232_s29 + $0x2c] ss:$20 sps:$4 sm:$0xff]  }
 0x1b7   : > { %v2989_v14 = vpop.f32.mrf.mxu1 }
 0x1b8   : > { %v13699_v30 = vadd.f32 %v2989_v14, %v2906_v15  ;;  %v2908_v11 = vpop.f32.mrf.mxu0  ;;  %v11838_v14 = vld [vmem:[%s16919_s5 + $0x398] ss:$20 sps:$4 sm:$0xff]  }
 0x1b9   : > { %v2991_v33 = vpop.f32.mrf.mxu1 }
 0x1ba   : > { %v13707_v0 = vadd.f32 %v2991_v33, %v2908_v11  ;;  %v2910_v21 = vpop.f32.mrf.mxu0  ;;  %v11839_v11 = vld [vmem:[%s16919_s5 + $0x618] ss:$20 sps:$4 sm:$0xff]  }
 0x1bb   : > { %v2993_v16 = vpop.f32.mrf.mxu1 }
 0x1bc   : > { %v13709_v47 = vadd.f32 %v2993_v16, %v2910_v21  ;;  %v2914_v43 = vpop.f32.mrf.mxu0  ;;  %10785 = vmatmul.mubr.bf16.vlgmr.msra.gmra.mxu0 %v11515_v45  ;;  %v11840_v45 = vld [vmem:[%s16919_s5 + $0x374] ss:$20 sps:$4 sm:$0xff]  }
 0x1bd   : > { %v2997_v5 = vpop.f32.mrf.mxu1  ;;  %4306 = vmatmul.mubr.bf16.vlgmr.msra.gmra.mxu1 %v13702_v58  ;;  %4345 = vmatpush1.bf16.msra.mxu0 %v11838_v14  ;;  %v11841_v16 = vld [vmem:[%s16919_s5 + $0x5f4] ss:$20 sps:$4 sm:$0xff]  }
 0x1be   : > { %v13718_v15 = vadd.f32 %v2997_v5, %v2914_v43  ;;  %4416 = vmatpush1.bf16.msra.mxu1 %v11839_v11  ;;  %v2916_v33 = vpop.f32.mrf.mxu0  ;;  %4346 = vmatprep.subr.bf16.mxu0 %v11840_v45  ;;  %v13736_v11 = vld [vmem:[%s13232_s29 + $0x28] ss:$20 sps:$4 sm:$0xff]  }
 0x1bf   : > { %v2999_v21 = vpop.f32.mrf.mxu1  ;;  %4417 = vmatprep.subr.bf16.mxu1 %v11841_v16  ;;  %10788 = vmatprep.mubr.bf16.mxu0 %v11516_v48  ;;  %v11842_v16 = vld [vmem:[%s16919_s5 + $0x370] ss:$20 sps:$4 sm:$0xff]  }
 0x1c0   : > { %v13732_v43 = vadd.f32 %v2999_v21, %v2916_v33  ;;  %4315 = vmatprep.mubr.bf16.mxu1 %v13715_v2  ;;  %v2918_v5 = vpop.f32.mrf.mxu0  ;;  %v11843_v48 = vld [vmem:[%s16919_s5 + $0x5f0] ss:$20 sps:$4 sm:$0xff]  }
 0x1c1   : > { %v3001_v14 = vpop.f32.mrf.mxu1  ;;  %4347 = vmatpush1.bf16.msra.mxu0 %v11842_v16  ;;  %v11521_v16 = vld [vmem:[%s16918_s4 + $0xb0] ss:$20 sps:$4 sm:$0xff]  }
 0x1c2   : > { %v13741_v45 = vadd.f32 %v3001_v14, %v2918_v5  ;;  %4418 = vmatpush1.bf16.msra.mxu1 %v11843_v48  ;;  %v2920_v33 = vpop.f32.mrf.mxu0  ;;  %4348 = vmatprep.subr.bf16.mxu0 %v11844_v19  ;;  %v11845_v5 = vld [vmem:[%s16919_s5 + $0x5cc] ss:$20 sps:$4 sm:$0xff]   ;;  %v11846_v19 = vld [vmem:[%s16919_s5 + $0x348] ss:$20 sps:$4 sm:$0xff]  }
 0x1c3   : > { %v3003_v21 = vpop.f32.mrf.mxu1  ;;  %4419 = vmatprep.subr.bf16.mxu1 %v11845_v5 }
 0x1c4   : > { %v13755_v14 = vadd.f32 %v3003_v21, %v2920_v33  ;;  %v2924_v48 = vpop.f32.mrf.mxu0  ;;  %10789 = vmatmul.mubr.bf16.gmra.mxu0 %v11520_v52  ;;  %v11847_v33 = vld [vmem:[%s16919_s5 + $0x5c8] ss:$20 sps:$4 sm:$0xff]   ;;  %v11848_v52 = vld [vmem:[%s16919_s5 + $0x324] ss:$20 sps:$4 sm:$0xff]  }
 0x1c5   : > { %v3007_v20 = vpop.f32.mrf.mxu1  ;;  %4316 = vmatmul.mubr.bf16.gmra.mxu1 %v13736_v11  ;;  %4349 = vmatpush1.bf16.msra.mxu0 %v11846_v19 }
 0x1c6   : > { %17130 = vst [vmem:[#allocation38_spill] sm:$0xff] %v13755_v14  ;;  %v13764_v22 = vadd.f32 %v3007_v20, %v2924_v48  ;;  %4420 = vmatpush1.bf16.msra.mxu1 %v11847_v33  ;;  %v2926_v21 = vpop.f32.mrf.mxu0  ;;  %4350 = vmatprep.subr.bf16.mxu0 %v11848_v52  ;;  %v11849_v20 = vld [vmem:[%s16919_s5 + $0x5a4] ss:$20 sps:$4 sm:$0xff]  }
 0x1c7   : > { %v3009_v5 = vpop.f32.mrf.mxu1  ;;  %4421 = vmatprep.subr.bf16.mxu1 %v11849_v20  ;;  %10792 = vmatprep.mubr.bf16.mxu0 %v11521_v16  ;;  %v13782_v33 = vld [vmem:[%s13232_s29 + $0x50] ss:$20 sps:$4 sm:$0xff]   ;;  %v11850_v20 = vld [vmem:[%s16919_s5 + $0x320] ss:$20 sps:$4 sm:$0xff]  }
 0x1c8   : > { %v13778_v48 = vadd.f32 %v3009_v5, %v2926_v21  ;;  %4325 = vmatprep.mubr.bf16.mxu1 %v13761_v8  ;;  %v2928_v19 = vpop.f32.mrf.mxu0  ;;  %v11851_v16 = vld [vmem:[%s16919_s5 + $0x5a0] ss:$20 sps:$4 sm:$0xff]   ;;  %v13873_v14 = vld [vmem:[%s13232_s29 + $0x10] ss:$20 sps:$4 sm:$0xff]  }
 0x1c9   : > { %v3011_v10 = vpop.f32.mrf.mxu1  ;;  %4351 = vmatpush1.bf16.msra.mxu0 %v11850_v20  ;;  %v11526_v20 = vld [vmem:[%s16918_s4 + $0x100] ss:$20 sps:$4 sm:$0xff]  }
 0x1ca   : > { %v13788_v52 = vadd.f32 %v3011_v10, %v2928_v19  ;;  %4422 = vmatpush1.bf16.msra.mxu1 %v11851_v16  ;;  %v2930_v21 = vpop.f32.mrf.mxu0  ;;  %4352 = vmatprep.subr.bf16.mxu0 %v11852_v24  ;;  %v11853_v10 = vld [vmem:[%s16919_s5 + $0x57c] ss:$20 sps:$4 sm:$0xff]   ;;  %v11854_v24 = vld [vmem:[%s16919_s5 + $0x2f8] ss:$20 sps:$4 sm:$0xff]  }
 0x1cb   : > { %v3013_v5 = vpop.f32.mrf.mxu1  ;;  %4423 = vmatprep.subr.bf16.mxu1 %v11853_v10 }
 0x1cc   : > { %v13802_v19 = vadd.f32 %v3013_v5, %v2930_v21  ;;  %v2934_v16 = vpop.f32.mrf.mxu0  ;;  %10793 = vmatmul.mubr.bf16.gmra.mxu0 %v11525_v28  ;;  %v11855_v21 = vld [vmem:[%s16919_s5 + $0x578] ss:$20 sps:$4 sm:$0xff]   ;;  %v11856_v28 = vld [vmem:[%s16919_s5 + $0x2d4] ss:$20 sps:$4 sm:$0xff]  }
 0x1cd   : > { %v3017_v1 = vpop.f32.mrf.mxu1  ;;  %4326 = vmatmul.mubr.bf16.gmra.mxu1 %v13782_v33  ;;  %4353 = vmatpush1.bf16.msra.mxu0 %v11854_v24 }
 0x1ce   : > { %17131 = vst [vmem:[#allocation39_spill] sm:$0xff] %v13802_v19  ;;  %v13810_v25 = vadd.f32 %v3017_v1, %v2934_v16  ;;  %4424 = vmatpush1.bf16.msra.mxu1 %v11855_v21  ;;  %v2936_v5 = vpop.f32.mrf.mxu0  ;;  %4354 = vmatprep.subr.bf16.mxu0 %v11856_v28  ;;  %v11857_v1 = vld [vmem:[%s16919_s5 + $0x554] ss:$20 sps:$4 sm:$0xff]   ;;  %v13827_v21 = vcombine.low %v339_v54, %v339_v54  ;;  %v11858_v28 = vld [vmem:[%s16919_s5 + $0x2d0] ss:$20 sps:$4 sm:$0xff]  }
 0x1cf   : > { %v3019_v10 = vpop.f32.mrf.mxu1  ;;  %4425 = vmatprep.subr.bf16.mxu1 %v11857_v1  ;;  %10796 = vmatprep.mubr.bf16.mxu0 %v11526_v20  ;;  %v11859_v20 = vld [vmem:[%s16919_s5 + $0x550] ss:$20 sps:$4 sm:$0xff]   ;;  %v11860_v54 = vld [vmem:[%s16919_s5 + $0x2ac] ss:$20 sps:$4 sm:$0xff]  }
 0x1d0   : > { %v13824_v16 = vadd.f32 %v3019_v10, %v2936_v5  ;;  %4335 = vmatprep.mubr.bf16.mxu1 %v13807_v46  ;;  %v2938_v24 = vpop.f32.mrf.mxu0 }
 0x1d1   : > { %v3021_v19 = vpop.f32.mrf.mxu1  ;;  %4355 = vmatpush1.bf16.msra.mxu0 %v11858_v28 }
 0x1d2   : > { %v13832_v18 = vadd.f32 %v3021_v19, %v2938_v24  ;;  %4426 = vmatpush1.bf16.msra.mxu1 %v11859_v20  ;;  %v2940_v5 = vpop.f32.mrf.mxu0  ;;  %4356 = vmatprep.subr.bf16.mxu0 %v11860_v54  ;;  %v11861_v19 = vld [vmem:[%s16919_s5 + $0x52c] ss:$20 sps:$4 sm:$0xff]   ;;  %v11530_v24 = vld [vmem:[%s16918_s4 + $0x150] ss:$20 sps:$4 sm:$0xff]   ;;  %v11862_v54 = vld [vmem:[%s16919_s5 + $0x2a8] ss:$20 sps:$4 sm:$0xff]  }
 0x1d3   : > { %v3023_v10 = vpop.f32.mrf.mxu1  ;;  %4427 = vmatprep.subr.bf16.mxu1 %v11861_v19 }
 0x1d4   : > { %v13846_v1 = vadd.f32 %v3023_v10, %v2940_v5  ;;  %v2944_v28 = vpop.f32.mrf.mxu0  ;;  %10797 = vmatmul.mubr.bf16.gmra.mxu0 %v11529_v6  ;;  %v11863_v5 = vld [vmem:[%s16919_s5 + $0x528] ss:$20 sps:$4 sm:$0xff]   ;;  %v11864_v6 = vld [vmem:[%s16919_s5 + $0x284] ss:$20 sps:$4 sm:$0xff]  }
 0x1d5   : > { %v3027_v20 = vpop.f32.mrf.mxu1  ;;  %4336 = vmatmul.mubr.bf16.gmra.mxu1 %v13827_v21  ;;  %4357 = vmatpush1.bf16.msra.mxu0 %v11862_v54  ;;  %v17133_v54 = vmov 0  }
 0x1d6   : > { %17132 = vst [vmem:[#allocation40_spill] sm:$0xff] %v13846_v1  ;;  %v13852_v53 = vadd.f32 %v3027_v20, %v2944_v28  ;;  %4428 = vmatpush1.bf16.msra.mxu1 %v11863_v5  ;;  %v2946_v10 = vpop.f32.mrf.mxu0  ;;  %4358 = vmatprep.subr.bf16.mxu0 %v11864_v6  ;;  %v11865_v28 = vld [vmem:[%s16919_s5 + $0x504] ss:$20 sps:$4 sm:$0xff]  }
 0x1d7   : > { %v3029_v19 = vpop.f32.mrf.mxu1  ;;  %4429 = vmatprep.subr.bf16.mxu1 %v11865_v28  ;;  %10800 = vmatprep.mubr.bf16.mxu0 %v11530_v24  ;;  %v11866_v28 = vld [vmem:[%s16919_s5 + $0x280] ss:$20 sps:$4 sm:$0xff]  }
 0x1d8   : > { %v13866_v20 = vadd.f32 %v3029_v19, %v2946_v10  ;;  %4447 = vmatprep.mubr.bf16.mxu1 %v17133_v54  ;;  %v2948_v1 = vpop.f32.mrf.mxu0  ;;  %v11867_v24 = vld [vmem:[%s16919_s5 + $0x500] ss:$20 sps:$4 sm:$0xff]  }
 0x1d9   : > { %v3031_v5 = vpop.f32.mrf.mxu1  ;;  %4359 = vmatpush1.bf16.msra.mxu0 %v11866_v28  ;;  %v13892_v28 = vld [vmem:[%s13232_s29 + $0xc] ss:$20 sps:$4 sm:$0xff]  }
 0x1da   : > { %v13875_v6 = vadd.f32 %v3031_v5, %v2948_v1  ;;  %4430 = vmatpush1.bf16.msra.mxu1 %v11867_v24  ;;  %v2950_v10 = vpop.f32.mrf.mxu0  ;;  %4360 = vmatprep.subr.bf16.mxu0 %v11868_v51  ;;  %v11869_v1 = vld [vmem:[%s16919_s5 + $0x124] ss:$20 sps:$4 sm:$0xff]  }
 0x1db   : > { %v3033_v19 = vpop.f32.mrf.mxu1  ;;  %4486 = vmatprep.subr.bf16.mxu1 %v11869_v1  ;;  %v11870_v51 = vld [vmem:[%s16919_s5 + $0x4d8] ss:$20 sps:$4 sm:$0xff]  }
 0x1dc   : > { %v13889_v5 = vadd.f32 %v3033_v19, %v2950_v10  ;;  %v3070_v59 = vpop.f32.mrf.mxu0  ;;  %10801 = vmatmul.mubr.bf16.gmra.mxu0 %v11531_v9  ;;  %v11871_v10 = vld [vmem:[%s16919_s5 + $0x120] ss:$20 sps:$4 sm:$0xff]  }
 0x1dd   : > { %v10309_v34 = vpop.f32.mrf.mxu1  ;;  %4448 = vmatmul.mubr.bf16.vlgmr.msra.gmra.mxu1 %v13873_v14  ;;  %v13896_v24 = vadd.f32 %v3070_v59, %v13696_v39  ;;  %4361 = vmatpush2.bf16.msra.mxu0 %v11870_v51  ;;  %v11872_v9 = vld [vmem:[%s16919_s5 + $0x4b4] ss:$20 sps:$4 sm:$0xff]   ;;  %v11873_v59 = vld [vmem:[%s16919_s5 + $0xfc] ss:$20 sps:$4 sm:$0xff]  }
 0x1de   : > { %17134 = vst [vmem:[#allocation41_spill] sm:$0xff] %v13889_v5  ;;  %4487 = vmatpush1.bf16.msra.mxu1 %v11871_v10  ;;  %v3072_v19 = vpop.f32.mrf.mxu0  ;;  %4362 = vmatprep.subr.bf16.mxu0 %v11872_v9 }
 0x1df   : > { %17135 = vst [vmem:[#allocation42_spill] sm:$0xff] %v13896_v24  ;;  %v10310_v1 = vpop.f32.mrf.mxu1  ;;  %4488 = vmatprep.subr.bf16.mxu1 %v11873_v59  ;;  %v13911_v39 = vadd.f32 %v3072_v19, %v13699_v30  ;;  %4376 = vmatprep.mubr.bf16.mxu0 %v13892_v28  ;;  %v13918_v24 = vld [vmem:[%s13232_s29 + $0x38] ss:$20 sps:$4 sm:$0xff]   ;;  %v11874_v59 = vld [vmem:[%s16919_s5 + $0x4b0] ss:$20 sps:$4 sm:$0xff]  }
 0x1e0   : > { %v13913_v51 = vadd.f32 %v10310_v1, %v10309_v34  ;;  %4457 = vmatprep.mubr.bf16.mxu1 %v17133_v54  ;;  %v3074_v10 = vpop.f32.mrf.mxu0  ;;  %v11875_v34 = vld [vmem:[%s16919_s5 + $0xf8] ss:$20 sps:$4 sm:$0xff]  }
 0x1e1   : > { %17136 = vst [vmem:[#allocation43_spill] sm:$0xff] %v13911_v39  ;;  %v10312_v5 = vpop.f32.mrf.mxu1  ;;  %v13921_v9 = vadd.f32 %v3074_v10, %v13707_v0  ;;  %4363 = vmatpush2.bf16.msra.mxu0 %v11874_v59  ;;  %v11876_v1 = vld [vmem:[%s16919_s5 + $0x48c] ss:$20 sps:$4 sm:$0xff]   ;;  %v11877_v0 = vld [vmem:[%s16919_s5 + $0xd4] ss:$20 sps:$4 sm:$0xff]  }
 0x1e2   : > { %4489 = vmatpush1.bf16.msra.mxu1 %v11875_v34  ;;  %v3076_v30 = vpop.f32.mrf.mxu0  ;;  %4364 = vmatprep.subr.bf16.mxu0 %v11876_v1  ;;  %v11878_v1 = vld [vmem:[%s16919_s5 + $0x488] ss:$20 sps:$4 sm:$0xff]  }
 0x1e3   : > { %17137 = vst [vmem:[#allocation44_spill] sm:$0xff] %v13921_v9  ;;  %v10313_v19 = vpop.f32.mrf.mxu1  ;;  %4490 = vmatprep.subr.bf16.mxu1 %v11877_v0  ;;  %v13936_v10 = vadd.f32 %v3076_v30, %v13709_v47  ;;  %v11879_v47 = vld [vmem:[%s16919_s5 + $0xd0] ss:$20 sps:$4 sm:$0xff]  }
 0x1e4   : > { %v13938_v59 = vadd.f32 %v10313_v19, %v10312_v5  ;;  %v3080_v39 = vpop.f32.mrf.mxu0  ;;  %v11880_v19 = vld [vmem:[%s16919_s5 + $0x464] ss:$20 sps:$4 sm:$0xff]  }
 0x1e5   : > { %17138 = vst [vmem:[#allocation45_spill] sm:$0xff] %v13936_v10  ;;  %v10315_v9 = vpop.f32.mrf.mxu1  ;;  %4458 = vmatmul.mubr.bf16.gmra.mxu1 %v13918_v24  ;;  %v13942_v34 = vadd.f32 %v3080_v39, %v13718_v15  ;;  %4365 = vmatpush2.bf16.msra.mxu0 %v11878_v1  ;;  %v11881_v15 = vld [vmem:[%s16919_s5 + $0xac] ss:$20 sps:$4 sm:$0xff]  }
 0x1e6   : > { %4491 = vmatpush1.bf16.msra.mxu1 %v11879_v47  ;;  %v3082_v5 = vpop.f32.mrf.mxu0  ;;  %4366 = vmatprep.subr.bf16.mxu0 %v11880_v19  ;;  %v13963_v10 = vld [vmem:[%s13232_s29 + $0x60] ss:$20 sps:$4 sm:$0xff]  }
 0x1e7   : > { %17139 = vst [vmem:[#allocation46_spill] sm:$0xff] %v13942_v34  ;;  %v10316_v30 = vpop.f32.mrf.mxu1  ;;  %4492 = vmatprep.subr.bf16.mxu1 %v11881_v15  ;;  %v13957_v39 = vadd.f32 %v3082_v5, %v13732_v43  ;;  %4467 = vmatprep.mubr.bf16.mxu1 %v17133_v54  ;;  %v11882_v19 = vld [vmem:[%s16919_s5 + $0x460] ss:$20 sps:$4 sm:$0xff]   ;;  %v11883_v43 = vld [vmem:[%s16919_s5 + $0xa8] ss:$20 sps:$4 sm:$0xff]  }
 0x1e8   : > { %v13959_v0 = vadd.f32 %v10316_v30, %v10315_v9  ;;  %v3084_v1 = vpop.f32.mrf.mxu0  ;;  %v11884_v30 = vld [vmem:[%s16919_s5 + $0x43c] ss:$20 sps:$4 sm:$0xff]  }
 0x1e9   : > { %17140 = vst [vmem:[#allocation47_spill] sm:$0xff] %v13957_v39  ;;  %v10318_v47 = vpop.f32.mrf.mxu1  ;;  %v13966_v34 = vadd.f32 %v3084_v1, %v13741_v45  ;;  %4367 = vmatpush2.bf16.msra.mxu0 %v11882_v19  ;;  %v11885_v45 = vld [vmem:[%s16919_s5 + $0x84] ss:$20 sps:$4 sm:$0xff]  }
 0x1ea   : > { %4493 = vmatpush1.bf16.msra.mxu1 %v11883_v43  ;;  %v13974_v9 = vpop.f32.mrf.mxu0  ;;  %4368 = vmatprep.subr.bf16.mxu0 %v11884_v30  ;;  %v11886_v39 = vld [vmem:[%s16919_s5 + $0x438] ss:$20 sps:$4 sm:$0xff]   ;;  %v11887_v30 = vld [vmem:[%s16919_s5 + $0x80] ss:$20 sps:$4 sm:$0xff]  }
 0x1eb   : > { %17141 = vst [vmem:[#allocation48_spill] sm:$0xff] %v13966_v34  ;;  %17142 = vst [vmem:[#allocation49_spill] sm:$0xff] %v13974_v9  ;;  %v10319_v5 = vpop.f32.mrf.mxu1  ;;  %4494 = vmatprep.subr.bf16.mxu1 %v11885_v45  ;;  %v11888_v45 = vld [vmem:[%s16919_s5 + $0x414] ss:$20 sps:$4 sm:$0xff]  }
 0x1ec   : > { %v13982_v15 = vadd.f32 %v10319_v5, %v10318_v47  ;;  %v3090_v1 = vpop.f32.mrf.mxu0  ;;  %v14007_v9 = vld [vmem:[%s13232_s29 + $0x88] ss:$0 sps:$4 sm:$0x11]  }
 0x1ed   : > { %v10321_v19 = vpop.f32.mrf.mxu1  ;;  %4468 = vmatmul.mubr.bf16.gmra.mxu1 %v13963_v10  ;;  %v13986_v43 = vadd.f32 %v3090_v1, %v13764_v22  ;;  %4369 = vmatpush2.bf16.msra.mxu0 %v11886_v39  ;;  %v11889_v22 = vld [vmem:[%s16919_s5 + $0x5c] ss:$20 sps:$4 sm:$0xff]  }
 0x1ee   : > { %4495 = vmatpush1.bf16.msra.mxu1 %v11887_v30  ;;  %v3092_v47 = vpop.f32.mrf.mxu0  ;;  %4370 = vmatprep.subr.bf16.mxu0 %v11888_v45  ;;  %v11890_v45 = vld [vmem:[%s16919_s5 + $0x410] ss:$20 sps:$4 sm:$0xff]  }
 0x1ef   : > { %17143 = vst [vmem:[#allocation50_spill] sm:$0xff] %v13986_v43  ;;  %v10322_v5 = vpop.f32.mrf.mxu1  ;;  %4496 = vmatprep.subr.bf16.mxu1 %v11889_v22  ;;  %v14001_v1 = vadd.f32 %v3092_v47, %v13778_v48  ;;  %4477 = vmatprep.mubr.bf16.mxu1 %v17133_v54  ;;  %v11891_v48 = vld [vmem:[%s16919_s5 + $0x58] ss:$20 sps:$4 sm:$0xff]  }
 0x1f0   : > { %v14003_v39 = vadd.f32 %v10322_v5, %v10321_v19  ;;  %v3094_v30 = vpop.f32.mrf.mxu0  ;;  %v11892_v5 = vld [vmem:[%s16919_s5 + $0x3ec] ss:$20 sps:$4 sm:$0xff]  }
 0x1f1   : > { %17144 = vst [vmem:[#allocation51_spill] sm:$0xff] %v14001_v1  ;;  %v10324_v43 = vpop.f32.mrf.mxu1  ;;  %v14010_v34 = vadd.f32 %v3094_v30, %v13788_v52  ;;  %4371 = vmatpush2.bf16.msra.mxu0 %v11890_v45  ;;  %v11893_v52 = vld [vmem:[%s16919_s5 + $0x34] ss:$20 sps:$4 sm:$0xff]  }
 0x1f2   : > { %4497 = vmatpush1.bf16.msra.mxu1 %v11891_v48  ;;  %v14018_v19 = vpop.f32.mrf.mxu0  ;;  %4372 = vmatprep.subr.bf16.mxu0 %v11892_v5  ;;  %v11894_v1 = vld [vmem:[%s16919_s5 + $0x3e8] ss:$20 sps:$4 sm:$0xff]   ;;  %v11895_v5 = vld [vmem:[%s16919_s5 + $0x30] ss:$20 sps:$4 sm:$0xff]  }
 0x1f3   : > { %17145 = vst [vmem:[#allocation52_spill] sm:$0xff] %v14010_v34  ;;  %17146 = vst [vmem:[#allocation53_spill] sm:$0xff] %v14018_v19  ;;  %v10325_v47 = vpop.f32.mrf.mxu1  ;;  %4498 = vmatprep.subr.bf16.mxu1 %v11893_v52  ;;  %v11896_v52 = vld [vmem:[%s16919_s5 + $0x3c4] ss:$20 sps:$4 sm:$0xff]   ;;  %v14051_v34 = vld [vmem:[%s13232_s29 + $0x8] ss:$20 sps:$4 sm:$0xff]  }
 0x1f4   : > { %v14026_v22 = vadd.f32 %v10325_v47, %v10324_v43  ;;  %v3100_v30 = vpop.f32.mrf.mxu0 }
 0x1f5   : > { %v10327_v45 = vpop.f32.mrf.mxu1  ;;  %4478 = vmatmul.mubr.bf16.gmra.mxu1 %v14007_v9  ;;  %v14030_v48 = vadd.f32 %v3100_v30, %v13810_v25  ;;  %4373 = vmatpush2.bf16.msra.mxu0 %v11894_v1  ;;  %v11897_v25 = vld [vmem:[%s16919_s5 + $0xc] ss:$20 sps:$4 sm:$0xff]  }
 0x1f6   : > { %4499 = vmatpush1.bf16.msra.mxu1 %v11895_v5  ;;  %v3102_v43 = vpop.f32.mrf.mxu0  ;;  %4374 = vmatprep.subr.bf16.mxu0 %v11896_v52  ;;  %v11898_v52 = vld [vmem:[%s16919_s5 + $0x3c0] ss:$20 sps:$4 sm:$0xff]  }
 0x1f7   : > { %17147 = vst [vmem:[#allocation54_spill] sm:$0xff] %v14030_v48  ;;  %v10328_v47 = vpop.f32.mrf.mxu1  ;;  %4500 = vmatprep.subr.bf16.mxu1 %v11897_v25  ;;  %v14045_v1 = vadd.f32 %v3102_v43, %v13824_v16  ;;  %4518 = vmatprep.mubr.bf16.mxu1 %v13694_v42  ;;  %v11899_v16 = vld [vmem:[%s16919_s5 + $0x8] ss:$20 sps:$4 sm:$0xff]  }
 0x1f8   : > { %v14047_v30 = vadd.f32 %v10328_v47, %v10327_v45  ;;  %v3104_v5 = vpop.f32.mrf.mxu0  ;;  %v14063_v45 = vld [vmem:[%s13232_s29 + $0x34] ss:$20 sps:$4 sm:$0xff]   ;;  %v11901_v47 = vld [vmem:[%s16919_s5 + $0x3a4] ss:$20 sps:$4 sm:$0xff]  }
 0x1f9   : > { %17148 = vst [vmem:[#allocation55_spill] sm:$0xff] %v14045_v1  ;;  %v10330_v19 = vpop.f32.mrf.mxu1  ;;  %v14054_v48 = vadd.f32 %v3104_v5, %v13832_v18  ;;  %4375 = vmatpush2.bf16.msra.mxu0 %v11898_v52  ;;  %v11900_v18 = vld [vmem:[%s16919_s5 + $0x264] ss:$20 sps:$4 sm:$0xff]  }
 0x1fa   : > { %4501 = vmatpush1.bf16.msra.mxu1 %v11899_v16  ;;  %v14065_v42 = vpop.f32.mrf.mxu0  ;;  %4557 = vmatprep.subr.bf16.mxu0 %v11901_v47  ;;  %v14098_v1 = vld [vmem:[%s13232_s29 + $0x30] ss:$20 sps:$4 sm:$0xff]  }
 0x1fb   : > { %17149 = vst [vmem:[#allocation56_spill] sm:$0xff] %v14054_v48  ;;  %17150 = vst [vmem:[#allocation57_spill] sm:$0xff] %v14065_v42  ;;  %v10331_v43 = vpop.f32.mrf.mxu1  ;;  %4502 = vmatprep.subr.bf16.mxu1 %v11900_v18  ;;  %v11902_v42 = vld [vmem:[%s16919_s5 + $0x260] ss:$20 sps:$4 sm:$0xff]  }
 0x1fc   : > { %v14073_v25 = vadd.f32 %v10331_v43, %v10330_v19  ;;  %4377 = vmatmul.mubr.bf16.vlgmr.msra.gmra.mxu0 %v14051_v34  ;;  %v3110_v5 = vpop.f32.mrf.mxu0  ;;  %v11903_v19 = vld [vmem:[%s16919_s5 + $0x23c] ss:$20 sps:$4 sm:$0xff]  }
 0x1fd   : > { %v10333_v52 = vpop.f32.mrf.mxu1  ;;  %v14077_v16 = vadd.f32 %v3110_v5, %v13852_v53  ;;  %4386 = vmatprep.mubr.bf16.mxu0 %v14063_v45  ;;  %v11904_v53 = vld [vmem:[%s16919_s5 + $0x3a0] ss:$20 sps:$4 sm:$0xff]  }
 0x1fe   : > { %4503 = vmatpush2.bf16.msra.mxu1 %v11902_v42  ;;  %v3112_v18 = vpop.f32.mrf.mxu0  ;;  %4558 = vmatpush1.bf16.msra.mxu0 %v11904_v53  ;;  %v11905_v42 = vld [vmem:[%s16919_s5 + $0x37c] ss:$20 sps:$4 sm:$0xff]   ;;  %v11906_v53 = vld [vmem:[%s16919_s5 + $0x238] ss:$20 sps:$4 sm:$0xff]  }
 0x1ff   : > { %17151 = vst [vmem:[#allocation58_spill] sm:$0xff] %v14077_v16  ;;  %v10334_v47 = vpop.f32.mrf.mxu1  ;;  %4504 = vmatprep.subr.bf16.mxu1 %v11903_v19  ;;  %v14090_v43 = vadd.f32 %v3112_v18, %v13866_v20  ;;  %4559 = vmatprep.subr.bf16.mxu0 %v11905_v42  ;;  %v14107_v20 = vld [vmem:[%s13232_s29 + $0x5c] ss:$20 sps:$4 sm:$0xff]   ;;  %v11909_v42 = vld [vmem:[%s16919_s5 + $0x354] ss:$20 sps:$4 sm:$0xff]  }
 0x200   : > { %v14092_v5 = vadd.f32 %v10334_v47, %v10333_v52  ;;  %v3114_v16 = vpop.f32.mrf.mxu0  ;;  %v11907_v47 = vld [vmem:[%s16919_s5 + $0x214] ss:$20 sps:$4 sm:$0xff]  }
 0x201   : > { %17152 = vst [vmem:[#allocation59_spill] sm:$0xff] %v14090_v43  ;;  %v10336_v48 = vpop.f32.mrf.mxu1  ;;  %v14101_v19 = vadd.f32 %v3114_v16, %v13875_v6  ;;  %v11908_v6 = vld [vmem:[%s16919_s5 + $0x378] ss:$20 sps:$4 sm:$0xff]  }
 0x202   : > { %4505 = vmatpush2.bf16.msra.mxu1 %v11906_v53  ;;  %v14109_v52 = vpop.f32.mrf.mxu0  ;;  %4560 = vmatpush1.bf16.msra.mxu0 %v11908_v6 }
 0x203   : > { %17153 = vst [vmem:[#allocation60_spill] sm:$0xff] %v14101_v19  ;;  %17154 = vst [vmem:[#allocation61_spill] sm:$0xff] %v14109_v52  ;;  %v10337_v18 = vpop.f32.mrf.mxu1  ;;  %4506 = vmatprep.subr.bf16.mxu1 %v11907_v47  ;;  %4561 = vmatprep.subr.bf16.mxu0 %v11909_v42  ;;  %v11910_v47 = vld [vmem:[%s16919_s5 + $0x210] ss:$20 sps:$4 sm:$0xff]  }
 0x204   : > { %v14117_v16 = vadd.f32 %v10337_v18, %v10336_v48  ;;  %4387 = vmatmul.mubr.bf16.gmra.mxu0 %v14098_v1  ;;  %v10355_v53 = vpop.f32.mrf.mxu0  ;;  %v11911_v18 = vld [vmem:[%s16919_s5 + $0x1ec] ss:$20 sps:$4 sm:$0xff]   ;;  %v11912_v52 = vld [vmem:[%s16919_s5 + $0x350] ss:$20 sps:$4 sm:$0xff]  }
 0x205   : > { %v3299_v43 = vpop.f32.mrf.mxu1  ;;  %4396 = vmatprep.mubr.bf16.mxu0 %v14107_v20  ;;  %v340_v42 = vld [vmem:[%s13232_s29 + $0x80] sm:$0x11] }
 0x206   : > { %4507 = vmatpush2.bf16.msra.mxu1 %v11910_v47  ;;  %v10356_v6 = vpop.f32.mrf.mxu0  ;;  %4562 = vmatpush1.bf16.msra.mxu0 %v11912_v52  ;;  %v11913_v47 = vld [vmem:[%s16919_s5 + $0x32c] ss:$20 sps:$4 sm:$0xff]   ;;  %v14144_v55 = vcombine.high %v340_v42, %v340_v42 }
 0x207   : > { %v10750_v48 = vpop.f32.mrf.mxu1  ;;  %4508 = vmatprep.subr.bf16.mxu1 %v11911_v18  ;;  %v10357_v19 = vadd.f32 %v10356_v6, %v10355_v53  ;;  %4563 = vmatprep.subr.bf16.mxu0 %v11913_v47  ;;  %v11914_v18 = vld [vmem:[%s16919_s5 + $0x1e8] ss:$20 sps:$4 sm:$0xff]   ;;  %v11915_v6 = vld [vmem:[%s16919_s5 + $0x1c4] ss:$20 sps:$4 sm:$0xff]  }
 0x208   : > { %v10358_v62 = vpop.f32.mrf.mxu0  ;;  %v14138_v48 = vld [vmem:[%s13232_s29 + $0x58] ss:$20 sps:$4 sm:$0xff]   ;;  %v11916_v47 = vld [vmem:[%s16919_s5 + $0x328] ss:$20 sps:$4 sm:$0xff]  }
 0x209   : > { %v3302_v57 = vpop.f32.mrf.mxu1  ;;  %v3227_v44 = vadd.f32 %v10357_v19, %v13913_v51 }
 0x20a   : > { %4509 = vmatpush2.bf16.msra.mxu1 %v11914_v18  ;;  %v10359_v52 = vpop.f32.mrf.mxu0  ;;  %4564 = vmatpush1.bf16.msra.mxu0 %v11916_v47  ;;  %v11917_v18 = vld [vmem:[%s16919_s5 + $0x304] ss:$20 sps:$4 sm:$0xff]   ;;  %v11921_v47 = vld [vmem:[%s16919_s5 + $0x2dc] ss:$20 sps:$4 sm:$0xff]  }
 0x20b   : > { %v10751_v53 = vpop.f32.mrf.mxu1  ;;  %4510 = vmatprep.subr.bf16.mxu1 %v11915_v6  ;;  %v14152_v51 = vadd.f32 %v3299_v43, %v3227_v44  ;;  %v10360_v19 = vadd.f32 %v10359_v52, %v10358_v62  ;;  %4565 = vmatprep.subr.bf16.mxu0 %v11917_v18  ;;  %v11918_v6 = vld [vmem:[%s16919_s5 + $0x1c0] ss:$20 sps:$4 sm:$0xff]   ;;  %v11919_v43 = vld [vmem:[%s16919_s5 + $0x19c] ss:$20 sps:$4 sm:$0xff]  }
 0x20c   : > { %4397 = vmatmul.mubr.bf16.gmra.mxu0 %v14138_v48  ;;  %v10361_v53 = vpop.f32.mrf.mxu0  ;;  %v11920_v52 = vld [vmem:[%s16919_s5 + $0x300] ss:$20 sps:$4 sm:$0xff]  }
 0x20d   : > { %17155 = vst [vmem:[#allocation62_spill] sm:$0xff] %v14152_v51  ;;  %v3307_v17 = vpop.f32.mrf.mxu1  ;;  %v3230_v49 = vadd.f32 %v10360_v19, %v13938_v59  ;;  %4406 = vmatprep.mubr.bf16.mxu0 %v14144_v55 }
 0x20e   : > { %4511 = vmatpush2.bf16.msra.mxu1 %v11918_v6  ;;  %v10362_v44 = vpop.f32.mrf.mxu0  ;;  %4566 = vmatpush1.bf16.msra.mxu0 %v11920_v52 }
 0x20f   : > { %v10754_v62 = vpop.f32.mrf.mxu1  ;;  %4512 = vmatprep.subr.bf16.mxu1 %v11919_v43  ;;  %v10363_v59 = vadd.f32 %v10362_v44, %v10361_v53  ;;  %4567 = vmatprep.subr.bf16.mxu0 %v11921_v47  ;;  %v14172_v19 = vadd.f32 %v3302_v57, %v3230_v49  ;;  %v11922_v43 = vld [vmem:[%s16919_s5 + $0x198] ss:$20 sps:$4 sm:$0xff]   ;;  %v11923_v44 = vld [vmem:[%s16919_s5 + $0x174] ss:$20 sps:$4 sm:$0xff]  }
 0x210   : > { %v10364_v18 = vpop.f32.mrf.mxu0  ;;  %v14174_v62 = vcombine.low %v340_v42, %v340_v42  ;;  %v11924_v49 = vld [vmem:[%s16919_s5 + $0x2d8] ss:$20 sps:$4 sm:$0xff]   ;;  %v11925_v42 = vld [vmem:[%s16919_s5 + $0x2b4] ss:$20 sps:$4 sm:$0xff]  }
 0x211   : > { %17156 = vst [vmem:[#allocation63_spill] sm:$0xff] %v14172_v19  ;;  %v3310_v6 = vpop.f32.mrf.mxu1  ;;  %v3235_v51 = vadd.f32 %v10363_v59, %v13959_v0  ;;  %v12002_v19 = vld [vmem:[%s13232_s29 + $0x28] ss:$20 sps:$4 sm:$0xff]  }
 0x212   : > { %4513 = vmatpush2.bf16.msra.mxu1 %v11922_v43  ;;  %v10365_v52 = vpop.f32.mrf.mxu0  ;;  %4568 = vmatpush1.bf16.msra.mxu0 %v11924_v49 }
 0x213   : > { %v10755_v53 = vpop.f32.mrf.mxu1  ;;  %4514 = vmatprep.subr.bf16.mxu1 %v11923_v44  ;;  %v14186_v57 = vadd.f32 %v3307_v17, %v3235_v51  ;;  %v10366_v0 = vadd.f32 %v10365_v52, %v10364_v18  ;;  %4569 = vmatprep.subr.bf16.mxu0 %v11925_v42  ;;  %v11927_v18 = vld [vmem:[%s16919_s5 + $0x14c] ss:$20 sps:$4 sm:$0xff]   ;;  %v11928_v52 = vld [vmem:[%s16919_s5 + $0x2b0] ss:$20 sps:$4 sm:$0xff]  }
 0x214   : > { %4407 = vmatmul.mubr.bf16.gmra.mxu0 %v14174_v62  ;;  %v10367_v59 = vpop.f32.mrf.mxu0  ;;  %v11926_v53 = vld [vmem:[%s16919_s5 + $0x170] ss:$20 sps:$4 sm:$0xff]   ;;  %v11929_v44 = vld [vmem:[%s16919_s5 + $0x28c] ss:$20 sps:$4 sm:$0xff]  }
 0x215   : > { %17157 = vst [vmem:[#allocation64_spill] sm:$0xff] %v14186_v57  ;;  %v3315_v47 = vpop.f32.mrf.mxu1  ;;  %v3238_v43 = vadd.f32 %v10366_v0, %v13982_v15  ;;  %4589 = vmatprep.mubr.bf16.mxu0 %v13892_v28 }
 0x216   : > { %4515 = vmatpush2.bf16.msra.mxu1 %v11926_v53  ;;  %v10368_v17 = vpop.f32.mrf.mxu0  ;;  %4570 = vmatpush1.bf16.msra.mxu0 %v11928_v52 }
 0x217   : > { %v10758_v51 = vpop.f32.mrf.mxu1  ;;  %4516 = vmatprep.subr.bf16.mxu1 %v11927_v18  ;;  %v10369_v15 = vadd.f32 %v10368_v17, %v10367_v59  ;;  %4571 = vmatprep.subr.bf16.mxu0 %v11929_v44  ;;  %v14206_v49 = vadd.f32 %v3310_v6, %v3238_v43  ;;  %v11931_v59 = vld [vmem:[%s16919_s5 + $0x624] ss:$20 sps:$4 sm:$0xff]   ;;  %v11932_v6 = vld [vmem:[%s16919_s5 + $0x288] ss:$20 sps:$4 sm:$0xff]   ;;  %v11934_v44 = vld [vmem:[%s16919_s5 + $0x620] ss:$20 sps:$4 sm:$0xff]  }
 0x218   : > { %v10370_v0 = vpop.f32.mrf.mxu0  ;;  %v11930_v51 = vld [vmem:[%s16919_s5 + $0x148] ss:$20 sps:$4 sm:$0xff]   ;;  %v11933_v17 = vld [vmem:[%s16919_s5 + $0x4e4] ss:$20 sps:$4 sm:$0xff]  }
 0x219   : > { %17158 = vst [vmem:[#allocation65_spill] sm:$0xff] %v14206_v49  ;;  %v3318_v42 = vpop.f32.mrf.mxu1  ;;  %v3243_v53 = vadd.f32 %v10369_v15, %v14003_v39  ;;  %v12003_v49 = vld [vmem:[%s16919_s5 + $0x5b0] ss:$20 sps:$4 sm:$0xff]  }
 0x21a   : > { %4517 = vmatpush2.bf16.msra.mxu1 %v11930_v51  ;;  %v10371_v18 = vpop.f32.mrf.mxu0  ;;  %4572 = vmatpush1.bf16.msra.mxu0 %v11932_v6  ;;  %v11937_v51 = vld [vmem:[%s16919_s5 + $0x4bc] ss:$20 sps:$4 sm:$0xff]  }
 0x21b   : > { %v10759_v57 = vpop.f32.mrf.mxu1  ;;  %4628 = vmatprep.subr.bf16.mxu1 %v11931_v59  ;;  %v14218_v43 = vadd.f32 %v3315_v47, %v3243_v53  ;;  %v10372_v39 = vadd.f32 %v10371_v18, %v10370_v0  ;;  %4573 = vmatprep.subr.bf16.mxu0 %v11933_v17  ;;  %v11935_v53 = vld [vmem:[%s16919_s5 + $0x5fc] ss:$20 sps:$4 sm:$0xff]  }
 0x21c   : > { %v10373_v57 = vpop.f32.mrf.mxu0 }
 0x21d   : > { %17159 = vst [vmem:[#allocation66_spill] sm:$0xff] %v14218_v43  ;;  %4519 = vmatmul.mubr.bf16.vlgmr.msra.gmra.mxu1 %v13702_v58  ;;  %v3323_v52 = vpop.f32.mrf.mxu1  ;;  %v3246_v15 = vadd.f32 %v10372_v39, %v14026_v22  ;;  %v11936_v58 = vld [vmem:[%s16919_s5 + $0x4e0] ss:$20 sps:$4 sm:$0xff]   ;;  %v11938_v39 = vld [vmem:[%s16919_s5 + $0x5f8] ss:$20 sps:$4 sm:$0xff]  }
 0x21e   : > { %4629 = vmatpush1.bf16.msra.mxu1 %v11934_v44  ;;  %4528 = vmatprep.mubr.bf16.mxu1 %v13715_v2  ;;  %v10374_v47 = vpop.f32.mrf.mxu0 }
 0x21f   : > { %v10762_v0 = vpop.f32.mrf.mxu1  ;;  %4630 = vmatprep.subr.bf16.mxu1 %v11935_v53  ;;  %4574 = vmatpush2.bf16.msra.mxu0 %v11936_v58  ;;  %v10375_v22 = vadd.f32 %v10374_v47, %v10373_v57  ;;  %v14238_v18 = vadd.f32 %v3318_v42, %v3246_v15  ;;  %v11939_v57 = vld [vmem:[%s16919_s5 + $0x5d4] ss:$20 sps:$4 sm:$0xff]   ;;  %v11940_v42 = vld [vmem:[%s16919_s5 + $0x4b8] ss:$20 sps:$4 sm:$0xff]  }
 0x220   : > { %4575 = vmatprep.subr.bf16.mxu0 %v11937_v51  ;;  %v10376_v2 = vpop.f32.mrf.mxu0  ;;  %v11941_v47 = vld [vmem:[%s16919_s5 + $0x494] ss:$20 sps:$4 sm:$0xff]  }
 0x221   : > { %17160 = vst [vmem:[#allocation67_spill] sm:$0xff] %v14238_v18  ;;  %v3326_v59 = vpop.f32.mrf.mxu1  ;;  %v3251_v6 = vadd.f32 %v10375_v22, %v14047_v30  ;;  %v11942_v22 = vld [vmem:[%s16919_s5 + $0x5d0] ss:$20 sps:$4 sm:$0xff]   ;;  %v11992_v18 = vld [vmem:[%s16919_s5 + $0x38] ss:$20 sps:$4 sm:$0xff]  }
 0x222   : > { %4631 = vmatpush1.bf16.msra.mxu1 %v11938_v39  ;;  %v10377_v17 = vpop.f32.mrf.mxu0  ;;  %v11945_v39 = vld [vmem:[%s16919_s5 + $0x46c] ss:$20 sps:$4 sm:$0xff]  }
 0x223   : > { %v10763_v44 = vpop.f32.mrf.mxu1  ;;  %4632 = vmatprep.subr.bf16.mxu1 %v11939_v57  ;;  %4576 = vmatpush2.bf16.msra.mxu0 %v11940_v42  ;;  %v14250_v15 = vadd.f32 %v3323_v52, %v3251_v6  ;;  %v10378_v30 = vadd.f32 %v10377_v17, %v10376_v2  ;;  %v11943_v2 = vld [vmem:[%s16919_s5 + $0x5ac] ss:$20 sps:$4 sm:$0xff]   ;;  %v11946_v42 = vld [vmem:[%s16919_s5 + $0x5a8] ss:$20 sps:$4 sm:$0xff]  }
 0x224   : > { %4577 = vmatprep.subr.bf16.mxu0 %v11941_v47  ;;  %v10379_v0 = vpop.f32.mrf.mxu0 }
 0x225   : > { %17161 = vst [vmem:[#allocation68_spill] sm:$0xff] %v14250_v15  ;;  %4529 = vmatmul.mubr.bf16.gmra.mxu1 %v13736_v11  ;;  %v3331_v53 = vpop.f32.mrf.mxu1  ;;  %v3254_v58 = vadd.f32 %v10378_v30, %v14073_v25  ;;  %v11944_v11 = vld [vmem:[%s16919_s5 + $0x490] ss:$20 sps:$4 sm:$0xff]  }
 0x226   : > { %4633 = vmatpush1.bf16.msra.mxu1 %v11942_v22  ;;  %4538 = vmatprep.mubr.bf16.mxu1 %v13761_v8  ;;  %v10380_v52 = vpop.f32.mrf.mxu0  ;;  %v11949_v22 = vld [vmem:[%s16919_s5 + $0x444] ss:$20 sps:$4 sm:$0xff]  }
 0x227   : > { %v10766_v51 = vpop.f32.mrf.mxu1  ;;  %4634 = vmatprep.subr.bf16.mxu1 %v11943_v2  ;;  %4578 = vmatpush2.bf16.msra.mxu0 %v11944_v11  ;;  %v14267_v25 = vadd.f32 %v3326_v59, %v3254_v58  ;;  %v10381_v6 = vadd.f32 %v10380_v52, %v10379_v0  ;;  %v11947_v59 = vld [vmem:[%s16919_s5 + $0x584] ss:$20 sps:$4 sm:$0xff]   ;;  %v11948_v0 = vld [vmem:[%s16919_s5 + $0x468] ss:$20 sps:$4 sm:$0xff]   ;;  %v11950_v11 = vld [vmem:[%s16919_s5 + $0x580] ss:$20 sps:$4 sm:$0xff]  }
 0x228   : > { %4579 = vmatprep.subr.bf16.mxu0 %v11945_v39  ;;  %v10382_v17 = vpop.f32.mrf.mxu0  ;;  %v11951_v39 = vld [vmem:[%s16919_s5 + $0x55c] ss:$20 sps:$4 sm:$0xff]  }
 0x229   : > { %17162 = vst [vmem:[#allocation69_spill] sm:$0xff] %v14267_v25  ;;  %v3334_v44 = vpop.f32.mrf.mxu1  ;;  %v3259_v57 = vadd.f32 %v10381_v6, %v14092_v5 }
 0x22a   : > { %4635 = vmatpush1.bf16.msra.mxu1 %v11946_v42  ;;  %v10383_v30 = vpop.f32.mrf.mxu0 }
 0x22b   : > { %v10767_v47 = vpop.f32.mrf.mxu1  ;;  %4636 = vmatprep.subr.bf16.mxu1 %v11947_v59  ;;  %4580 = vmatpush2.bf16.msra.mxu0 %v11948_v0  ;;  %v14282_v58 = vadd.f32 %v3331_v53, %v3259_v57  ;;  %v10384_v5 = vadd.f32 %v10383_v30, %v10382_v17  ;;  %v11952_v17 = vld [vmem:[%s16919_s5 + $0x440] ss:$20 sps:$4 sm:$0xff]   ;;  %v11953_v30 = vld [vmem:[%s16919_s5 + $0x41c] ss:$20 sps:$4 sm:$0xff]  }
 0x22c   : > { %4581 = vmatprep.subr.bf16.mxu0 %v11949_v22  ;;  %v10414_v52 = vpop.f32.mrf.mxu0 }
 0x22d   : > { %17163 = vst [vmem:[#allocation70_spill] sm:$0xff] %v14282_v58  ;;  %4539 = vmatmul.mubr.bf16.gmra.mxu1 %v13782_v33  ;;  %v10490_v51 = vpop.f32.mrf.mxu1  ;;  %v3262_v2 = vadd.f32 %v10384_v5, %v14117_v16  ;;  %v11954_v5 = vld [vmem:[%s16919_s5 + $0x558] ss:$20 sps:$4 sm:$0xff]  }
 0x22e   : > { %4637 = vmatpush1.bf16.msra.mxu1 %v11950_v11  ;;  %4548 = vmatprep.mubr.bf16.mxu1 %v13807_v46  ;;  %v10415_v53 = vpop.f32.mrf.mxu0 }
 0x22f   : > { %v10491_v6 = vpop.f32.mrf.mxu1  ;;  %4638 = vmatprep.subr.bf16.mxu1 %v11951_v39  ;;  %4582 = vmatpush2.bf16.msra.mxu0 %v11952_v17  ;;  %v14299_v16 = vadd.f32 %v3334_v44, %v3262_v2  ;;  %v10416_v57 = vadd.f32 %v10415_v53, %v10414_v52  ;;  %v11955_v44 = vld [vmem:[%s16919_s5 + $0x534] ss:$20 sps:$4 sm:$0xff]   ;;  %v11956_v52 = vld [vmem:[%s16919_s5 + $0x418] ss:$20 sps:$4 sm:$0xff]   ;;  %v11958_v17 = vld [vmem:[%s16919_s5 + $0x530] ss:$20 sps:$4 sm:$0xff]  }
 0x230   : > { %v10492_v42 = vadd.f32 %v10491_v6, %v10490_v51  ;;  %4583 = vmatprep.subr.bf16.mxu0 %v11953_v30  ;;  %v10417_v47 = vpop.f32.mrf.mxu0  ;;  %v11957_v53 = vld [vmem:[%s16919_s5 + $0x3f4] ss:$20 sps:$4 sm:$0xff]  }
 0x231   : > { %17164 = vst [vmem:[#allocation71_spill] sm:$0xff] %v14299_v16  ;;  %v10493_v59 = vpop.f32.mrf.mxu1 }
 0x232   : > { %v14304_v0 = vadd.f32 %v10492_v42, %v10416_v57  ;;  %4639 = vmatpush1.bf16.msra.mxu1 %v11954_v5  ;;  %v10418_v22 = vpop.f32.mrf.mxu0 }
 0x233   : > { %v10494_v11 = vpop.f32.mrf.mxu1  ;;  %4640 = vmatprep.subr.bf16.mxu1 %v11955_v44  ;;  %4584 = vmatpush2.bf16.msra.mxu0 %v11956_v52  ;;  %v10419_v51 = vadd.f32 %v10418_v22, %v10417_v47  ;;  %v11959_v47 = vld [vmem:[%s16919_s5 + $0x50c] ss:$20 sps:$4 sm:$0xff]  }
 0x234   : > { %v10495_v2 = vadd.f32 %v10494_v11, %v10493_v59  ;;  %4585 = vmatprep.subr.bf16.mxu0 %v11957_v53  ;;  %v10420_v6 = vpop.f32.mrf.mxu0  ;;  %v11960_v59 = vld [vmem:[%s16919_s5 + $0x3f0] ss:$20 sps:$4 sm:$0xff]   ;;  %v11961_v11 = vld [vmem:[%s16919_s5 + $0x3cc] ss:$20 sps:$4 sm:$0xff]  }
 0x235   : > { %4549 = vmatmul.mubr.bf16.gmra.mxu1 %v13827_v21  ;;  %v10496_v39 = vpop.f32.mrf.mxu1 }
 0x236   : > { %4641 = vmatpush1.bf16.msra.mxu1 %v11958_v17  ;;  %4660 = vmatprep.mubr.bf16.mxu1 %v17133_v54  ;;  %v14323_v57 = vadd.f32 %v10495_v2, %v10419_v51  ;;  %v10421_v42 = vpop.f32.mrf.mxu0  ;;  %v11962_v51 = vld [vmem:[%s16919_s5 + $0x508] ss:$20 sps:$4 sm:$0xff]  }
 0x237   : > { %v10497_v30 = vpop.f32.mrf.mxu1  ;;  %4642 = vmatprep.subr.bf16.mxu1 %v11959_v47  ;;  %4586 = vmatpush2.bf16.msra.mxu0 %v11960_v59  ;;  %v10422_v5 = vadd.f32 %v10421_v42, %v10420_v6  ;;  %v11963_v6 = vld [vmem:[%s16919_s5 + $0x4e8] ss:$20 sps:$4 sm:$0xff]  }
 0x238   : > { %v10498_v22 = vadd.f32 %v10497_v30, %v10496_v39  ;;  %4587 = vmatprep.subr.bf16.mxu0 %v11961_v11  ;;  %v10423_v44 = vpop.f32.mrf.mxu0  ;;  %v11964_v39 = vld [vmem:[%s16919_s5 + $0x3c8] ss:$20 sps:$4 sm:$0xff]  }
 0x239   : > { %v10499_v52 = vpop.f32.mrf.mxu1  ;;  %v11965_v47 = vld [vmem:[%s16919_s5 + $0x268] ss:$20 sps:$4 sm:$0xff]  }
 0x23a   : > { %4643 = vmatpush1.bf16.msra.mxu1 %v11962_v51  ;;  %v14337_v2 = vadd.f32 %v10498_v22, %v10422_v5  ;;  %v10424_v53 = vpop.f32.mrf.mxu0  ;;  %v11966_v22 = vld [vmem:[%s16919_s5 + $0x3a8] ss:$20 sps:$4 sm:$0xff]   ;;  %v11967_v51 = vld [vmem:[%s16919_s5 + $0x4c0] ss:$20 sps:$4 sm:$0xff]  }
 0x23b   : > { %v10500_v17 = vpop.f32.mrf.mxu1  ;;  %10608 = vmatprep.subr.bf16.mxu1 %v11963_v6  ;;  %4588 = vmatpush2.bf16.msra.mxu0 %v11964_v39  ;;  %v10425_v42 = vadd.f32 %v10424_v53, %v10423_v44  ;;  %v11968_v6 = vld [vmem:[%s16919_s5 + $0x128] ss:$20 sps:$4 sm:$0xff]  }
 0x23c   : > { %v10501_v30 = vadd.f32 %v10500_v17, %v10499_v52  ;;  %10568 = vmatprep.subr.bf16.mxu0 %v11965_v47  ;;  %v10426_v59 = vpop.f32.mrf.mxu0 }
 0x23d   : > { %4661 = vmatmul.mubr.bf16.vlgmr.msra.gmra.mxu1 %v13873_v14  ;;  %v10502_v5 = vpop.f32.mrf.mxu1 }
 0x23e   : > { %10609 = vmatpush3.bf16.msra.mxu1 %v11966_v22  ;;  %4670 = vmatprep.mubr.bf16.mxu1 %v17133_v54  ;;  %v14353_v11 = vadd.f32 %v10501_v30, %v10425_v42  ;;  %v10427_v44 = vpop.f32.mrf.mxu0  ;;  %v11969_v30 = vld [vmem:[%s16919_s5 + $0x240] ss:$20 sps:$4 sm:$0xff]  }
 0x23f   : > { %v10503_v52 = vpop.f32.mrf.mxu1  ;;  %10610 = vmatprep.subr.bf16.mxu1 %v11967_v51  ;;  %4590 = vmatmul.mubr.bf16.vlgmr.msra.gmra.mxu0 %v14051_v34  ;;  %v10428_v53 = vadd.f32 %v10427_v44, %v10426_v59  ;;  %v11970_v59 = vld [vmem:[%s16919_s5 + $0x380] ss:$20 sps:$4 sm:$0xff]   ;;  %v11971_v44 = vld [vmem:[%s16919_s5 + $0x498] ss:$20 sps:$4 sm:$0xff]  }
 0x240   : > { %v10504_v17 = vadd.f32 %v10503_v52, %v10502_v5  ;;  %4599 = vmatprep.mubr.bf16.mxu0 %v14063_v45  ;;  %10569 = vmatpush3.bf16.msra.mxu0 %v11968_v6  ;;  %v10429_v39 = vpop.f32.mrf.mxu0  ;;  %v11972_v6 = vld [vmem:[%s16919_s5 + $0x100] ss:$20 sps:$4 sm:$0xff]  }
 0x241   : > { %v10505_v42 = vpop.f32.mrf.mxu1  ;;  %10570 = vmatprep.subr.bf16.mxu0 %v11969_v30  ;;  %v11973_v30 = vld [vmem:[%s16919_s5 + $0x218] ss:$20 sps:$4 sm:$0xff]  }
 0x242   : > { %v14366_v47 = vadd.f32 %v10504_v17, %v10428_v53  ;;  %10611 = vmatpush3.bf16.msra.mxu1 %v11970_v59  ;;  %v10430_v5 = vpop.f32.mrf.mxu0  ;;  %v11974_v59 = vld [vmem:[%s16919_s5 + $0x358] ss:$20 sps:$4 sm:$0xff]  }
 0x243   : > { %v10506_v22 = vpop.f32.mrf.mxu1  ;;  %10612 = vmatprep.subr.bf16.mxu1 %v11971_v44  ;;  %v10431_v52 = vadd.f32 %v10430_v5, %v10429_v39 }
 0x244   : > { %v10507_v51 = vadd.f32 %v10506_v22, %v10505_v42  ;;  %10571 = vmatpush3.bf16.msra.mxu0 %v11972_v6  ;;  %v10432_v53 = vpop.f32.mrf.mxu0  ;;  %v11975_v22 = vld [vmem:[%s16919_s5 + $0x470] ss:$20 sps:$4 sm:$0xff]  }
 0x245   : > { %4671 = vmatmul.mubr.bf16.gmra.mxu1 %v13918_v24  ;;  %v10508_v17 = vpop.f32.mrf.mxu1  ;;  %10572 = vmatprep.subr.bf16.mxu0 %v11973_v30  ;;  %v11976_v30 = vld [vmem:[%s16919_s5 + $0xd8] ss:$20 sps:$4 sm:$0xff]  }
 0x246   : > { %10613 = vmatpush3.bf16.msra.mxu1 %v11974_v59  ;;  %4680 = vmatprep.mubr.bf16.mxu1 %v17133_v54  ;;  %v14385_v39 = vadd.f32 %v10507_v51, %v10431_v52  ;;  %v10433_v42 = vpop.f32.mrf.mxu0  ;;  %v11977_v59 = vld [vmem:[%s16919_s5 + $0x1f0] ss:$20 sps:$4 sm:$0xff]  }
 0x247   : > { %v10509_v5 = vpop.f32.mrf.mxu1  ;;  %10614 = vmatprep.subr.bf16.mxu1 %v11975_v22  ;;  %4600 = vmatmul.mubr.bf16.gmra.mxu0 %v14098_v1  ;;  %v10434_v44 = vadd.f32 %v10433_v42, %v10432_v53  ;;  %v11978_v22 = vld [vmem:[%s16919_s5 + $0x330] ss:$20 sps:$4 sm:$0xff]  }
 0x248   : > { %v10510_v6 = vadd.f32 %v10509_v5, %v10508_v17  ;;  %4609 = vmatprep.mubr.bf16.mxu0 %v14107_v20  ;;  %10573 = vmatpush3.bf16.msra.mxu0 %v11976_v30  ;;  %v10435_v52 = vpop.f32.mrf.mxu0  ;;  %v11979_v5 = vld [vmem:[%s16919_s5 + $0x448] ss:$20 sps:$4 sm:$0xff]  }
 0x249   : > { %v10511_v51 = vpop.f32.mrf.mxu1  ;;  %10574 = vmatprep.subr.bf16.mxu0 %v11977_v59  ;;  %v11980_v59 = vld [vmem:[%s16919_s5 + $0xb0] ss:$20 sps:$4 sm:$0xff]  }
 0x24a   : > { %10615 = vmatpush3.bf16.msra.mxu1 %v11978_v22  ;;  %v14401_v53 = vadd.f32 %v10510_v6, %v10434_v44  ;;  %v10436_v17 = vpop.f32.mrf.mxu0  ;;  %v11981_v44 = vld [vmem:[%s16919_s5 + $0x1c8] ss:$20 sps:$4 sm:$0xff]  }
 0x24b   : > { %v10512_v42 = vpop.f32.mrf.mxu1  ;;  %10616 = vmatprep.subr.bf16.mxu1 %v11979_v5  ;;  %v10437_v30 = vadd.f32 %v10436_v17, %v10435_v52  ;;  %v11982_v6 = vld [vmem:[%s16919_s5 + $0x308] ss:$20 sps:$4 sm:$0xff]  }
 0x24c   : > { %v10513_v58 = vadd.f32 %v10512_v42, %v10511_v51  ;;  %10575 = vmatpush3.bf16.msra.mxu0 %v11980_v59  ;;  %v10438_v25 = vpop.f32.mrf.mxu0  ;;  %v11983_v42 = vld [vmem:[%s16919_s5 + $0x420] ss:$20 sps:$4 sm:$0xff]  }
 0x24d   : > { %4681 = vmatmul.mubr.bf16.gmra.mxu1 %v13963_v10  ;;  %v10514_v22 = vpop.f32.mrf.mxu1  ;;  %10576 = vmatprep.subr.bf16.mxu0 %v11981_v44  ;;  %v11984_v44 = vld [vmem:[%s16919_s5 + $0x88] ss:$20 sps:$4 sm:$0xff]  }
 0x24e   : > { %10617 = vmatpush3.bf16.msra.mxu1 %v11982_v6  ;;  %4690 = vmatprep.mubr.bf16.mxu1 %v17133_v54  ;;  %v14417_v52 = vadd.f32 %v10513_v58, %v10437_v30  ;;  %v10439_v51 = vpop.f32.mrf.mxu0  ;;  %v11985_v6 = vld [vmem:[%s16919_s5 + $0x1a0] ss:$20 sps:$4 sm:$0xff]  }
 0x24f   : > { %v10515_v17 = vpop.f32.mrf.mxu1  ;;  %10618 = vmatprep.subr.bf16.mxu1 %v11983_v42  ;;  %4610 = vmatmul.mubr.bf16.gmra.mxu0 %v14138_v48  ;;  %v10440_v5 = vadd.f32 %v10439_v51, %v10438_v25  ;;  %v11986_v25 = vld [vmem:[%s16919_s5 + $0x2e0] ss:$20 sps:$4 sm:$0xff]  }
 0x250   : > { %v10516_v59 = vadd.f32 %v10515_v17, %v10514_v22  ;;  %4619 = vmatprep.mubr.bf16.mxu0 %v14144_v55  ;;  %10577 = vmatpush3.bf16.msra.mxu0 %v11984_v44  ;;  %v10441_v58 = vpop.f32.mrf.mxu0  ;;  %v11987_v17 = vld [vmem:[%s16919_s5 + $0x3f8] ss:$20 sps:$4 sm:$0xff]  }
 0x251   : > { %v10517_v30 = vpop.f32.mrf.mxu1  ;;  %10578 = vmatprep.subr.bf16.mxu0 %v11985_v6  ;;  %v11988_v6 = vld [vmem:[%s16919_s5 + $0x60] ss:$20 sps:$4 sm:$0xff]  }
 0x252   : > { %v14430_v16 = vadd.f32 %v10516_v59, %v10440_v5  ;;  %10619 = vmatpush3.bf16.msra.mxu1 %v11986_v25  ;;  %v10442_v22 = vpop.f32.mrf.mxu0  ;;  %v11989_v25 = vld [vmem:[%s16919_s5 + $0x178] ss:$20 sps:$4 sm:$0xff]  }
 0x253   : > { %v10518_v51 = vpop.f32.mrf.mxu1  ;;  %10620 = vmatprep.subr.bf16.mxu1 %v11987_v17  ;;  %v10443_v42 = vadd.f32 %v10442_v22, %v10441_v58  ;;  %v11990_v58 = vld [vmem:[%s16919_s5 + $0x2b8] ss:$20 sps:$4 sm:$0xff]   ;;  %v11991_v17 = vld [vmem:[%s16919_s5 + $0x3d0] ss:$20 sps:$4 sm:$0xff]  }
 0x254   : > { %v10519_v44 = vadd.f32 %v10518_v51, %v10517_v30  ;;  %10579 = vmatpush3.bf16.msra.mxu0 %v11988_v6  ;;  %v10444_v5 = vpop.f32.mrf.mxu0 }
 0x255   : > { %4691 = vmatmul.mubr.bf16.gmra.mxu1 %v14007_v9  ;;  %v10520_v59 = vpop.f32.mrf.mxu1  ;;  %10580 = vmatprep.subr.bf16.mxu0 %v11989_v25 }
 0x256   : > { %10621 = vmatpush3.bf16.msra.mxu1 %v11990_v58  ;;  %4795 = vmatprep.mubr.bf16.mxu1 %v13892_v28  ;;  %v14449_v30 = vadd.f32 %v10519_v44, %v10443_v42  ;;  %v10445_v22 = vpop.f32.mrf.mxu0  ;;  %v11993_v58 = vld [vmem:[%s13232_s29 + $0x4] ss:$20 sps:$4 sm:$0xff]  }
 0x257   : > { %v10521_v51 = vpop.f32.mrf.mxu1  ;;  %10622 = vmatprep.subr.bf16.mxu1 %v11991_v17  ;;  %4620 = vmatmul.mubr.bf16.gmra.mxu0 %v14174_v62  ;;  %v10446_v6 = vadd.f32 %v10445_v22, %v10444_v5  ;;  %v11994_v44 = vld [vmem:[%s16919_s5 + $0x150] ss:$20 sps:$4 sm:$0xff]  }
 0x258   : > { %v10522_v25 = vadd.f32 %v10521_v51, %v10520_v59  ;;  %10581 = vmatpush3.bf16.msra.mxu0 %v11992_v18  ;;  %4731 = vmatprep.mubr.bf16.mxu0 %v11993_v58  ;;  %v10447_v28 = vpop.f32.mrf.mxu0  ;;  %v11995_v17 = vld [vmem:[%s16919_s5 + $0x290] ss:$20 sps:$4 sm:$0xff]  }
 0x259   : > { %v10523_v42 = vpop.f32.mrf.mxu1  ;;  %10582 = vmatprep.subr.bf16.mxu0 %v11994_v44  ;;  %v11996_v58 = vld [vmem:[%s16919_s5 + $0x10] ss:$20 sps:$4 sm:$0xff]  }
 0x25a   : > { %10623 = vmatpush3.bf16.msra.mxu1 %v11995_v17  ;;  %v14465_v5 = vadd.f32 %v10522_v25, %v10446_v6  ;;  %v10448_v59 = vpop.f32.mrf.mxu0  ;;  %v11997_v6 = vld [vmem:[%s16919_s5 + $0x628] ss:$20 sps:$4 sm:$0xff]  }
 0x25b   : > { %v10524_v22 = vpop.f32.mrf.mxu1  ;;  %4947 = vmatprep.subr.bf16.mxu1 %v17133_v54  ;;  %v10449_v18 = vadd.f32 %v10448_v59, %v10447_v28  ;;  %v11998_v59 = vld [vmem:[%s13232_s29] ss:$20 sps:$4 sm:$0xff]  }
 0x25c   : > { %v10525_v51 = vadd.f32 %v10524_v22, %v10523_v42  ;;  %10583 = vmatpush3.bf16.msra.mxu0 %v11996_v58  ;;  %v14472_v44 = vpop.f32.mrf.mxu0 }
 0x25d   : > { %4796 = vmatmul.mubr.bf16.vlgmr.msra.gmra.mxu1 %v14051_v34  ;;  %v14474_v17 = vpop.f32.mrf.mxu1  ;;  %10804 = vmatprep.subr.bf16.mxu0 %v11997_v6  ;;  %v11999_v34 = vld [vmem:[%s13232_s29 + $0x2c] ss:$20 sps:$4 sm:$0xff]  }
 0x25e   : > { %4803 = vmatprep.mubr.bf16.mxu1 %v14063_v45  ;;  %v14480_v25 = vadd.f32 %v10525_v51, %v10449_v18  ;;  %v14482_v28 = vpop.f32.mrf.mxu0  ;;  %v12000_v45 = vld [vmem:[%s16919_s5 + $0x600] ss:$20 sps:$4 sm:$0xff]  }
 0x25f   : > { %v14484_v42 = vpop.f32.mrf.mxu1  ;;  %4732 = vmatmul.mubr.bf16.vlgmr.msra.gmra.mxu0 %v11998_v59 }
 0x260   : > { %10805 = vmatpush3.bf16.msra.mxu0 %v11997_v6  ;;  %4739 = vmatprep.mubr.bf16.mxu0 %v11999_v34  ;;  %v14488_v22 = vpop.f32.mrf.mxu0  ;;  %v12001_v34 = vld [vmem:[%s16919_s5 + $0x5d8] ss:$20 sps:$4 sm:$0xff]  }
 0x261   : > { %v14490_v58 = vpop.f32.mrf.mxu1  ;;  %10806 = vmatprep.subr.bf16.mxu0 %v12000_v45 }
 0x262   : > { %v14495_v18 = vpop.f32.mrf.mxu0 }
 0x263   : > { %v14497_v51 = vpop.f32.mrf.mxu1 }
 0x264   : > { %10807 = vmatpush3.bf16.msra.mxu0 %v12000_v45  ;;  %v14500_v6 = vpop.f32.mrf.mxu0 }
 0x265   : > { %4804 = vmatmul.mubr.bf16.gmra.mxu1 %v14098_v1  ;;  %v14502_v59 = vpop.f32.mrf.mxu1  ;;  %10808 = vmatprep.subr.bf16.mxu0 %v12001_v34 }
 0x266   : > { %4811 = vmatprep.mubr.bf16.mxu1 %v14107_v20  ;;  %v14508_v43 = vpop.f32.mrf.mxu0 }
 0x267   : > { %v14510_v15 = vpop.f32.mrf.mxu1  ;;  %4740 = vmatmul.mubr.bf16.gmra.mxu0 %v12002_v19 }
 0x268   : > { %10809 = vmatpush3.bf16.msra.mxu0 %v12001_v34  ;;  %4747 = vmatprep.mubr.bf16.mxu0 %v13761_v8  ;;  %v14514_v1 = vpop.f32.mrf.mxu0  ;;  %v12004_v8 = vld [vmem:[%s16919_s5 + $0x588] ss:$20 sps:$4 sm:$0xff]  }
 0x269   : > { %v14516_v45 = vpop.f32.mrf.mxu1  ;;  %10810 = vmatprep.subr.bf16.mxu0 %v12003_v49 }
 0x26a   : > { %v14521_v26 = vpop.f32.mrf.mxu0 }
 0x26b   : > { %v14523_v20 = vpop.f32.mrf.mxu1 }
 0x26c   : > { %10811 = vmatpush3.bf16.msra.mxu0 %v12003_v49  ;;  %v10462_v19 = vpop.f32.mrf.mxu0  ;;  %v1539_v49 = vadd.f32 %v13240_v4, %v1456_v36 }
 0x26d   : > { %4812 = vmatmul.mubr.bf16.gmra.mxu1 %v14138_v48  ;;  %v10538_v34 = vpop.f32.mrf.mxu1  ;;  %10812 = vmatprep.subr.bf16.mxu0 %v12004_v8 }
 0x26e   : > { %4819 = vmatprep.mubr.bf16.mxu1 %v14144_v55  ;;  %v10463_v27 = vpop.f32.mrf.mxu0 }
 0x26f   : > { %v10539_v56 = vpop.f32.mrf.mxu1  ;;  %4748 = vmatmul.mubr.bf16.gmra.mxu0 %v13782_v33  ;;  %v10464_v29 = vadd.f32 %v10463_v27, %v10462_v19  ;;  %v4912_v33 = vpack.c.bf16 %v1539_v49, %v13225_v61 }
 0x270   : > { %v10540_v48 = vadd.f32 %v10539_v56, %v10538_v34  ;;  %10813 = vmatpush3.bf16.msra.mxu0 %v12004_v8  ;;  %4755 = vmatprep.mubr.bf16.mxu0 %v13807_v46  ;;  %v10465_v41 = vpop.f32.mrf.mxu0  ;;  %v12006_v46 = vld [vmem:[%s16919_s5 + $0x538] ss:$20 sps:$4 sm:$0xff]  }
 0x271   : > { %v10541_v23 = vpop.f32.mrf.mxu1  ;;  %10814 = vmatprep.subr.bf16.mxu0 %v12005_v31 }
 0x272   : > { %v14538_v12 = vadd.f32 %v10540_v48, %v10464_v29  ;;  %v10466_v13 = vpop.f32.mrf.mxu0 }
 0x273   : > { %v10542_v55 = vpop.f32.mrf.mxu1  ;;  %v10467_v4 = vadd.f32 %v10466_v13, %v10465_v41 }
 0x274   : > { %v10543_v27 = vadd.f32 %v10542_v55, %v10541_v23  ;;  %10815 = vmatpush3.bf16.msra.mxu0 %v12005_v31  ;;  %v10468_v36 = vpop.f32.mrf.mxu0 }
 0x275   : > { %4820 = vmatmul.mubr.bf16.gmra.mxu1 %v14174_v62  ;;  %v10544_v56 = vpop.f32.mrf.mxu1  ;;  %10816 = vmatprep.subr.bf16.mxu0 %v12006_v46  ;;  %v12007_v62 = vld [vmem:[%s16919_s5 + $0x510] ss:$20 sps:$4 sm:$0xff]  }
 0x276   : > { %10250 = vmatprep.mubr.msk.bf16.mxu1 %vm4931_vm1, %v4912_v33  ;;  %v14546_v29 = vadd.f32 %v10543_v27, %v10467_v4  ;;  %v10469_v19 = vpop.f32.mrf.mxu0 }
 0x277   : > { %v10545_v34 = vpop.f32.mrf.mxu1  ;;  %4756 = vmatmul.mubr.bf16.gmra.mxu0 %v13827_v21  ;;  %v10470_v61 = vadd.f32 %v10469_v19, %v10468_v36 }
 0x278   : > { %v10546_v41 = vadd.f32 %v10545_v34, %v10544_v56  ;;  %10817 = vmatpush3.bf16.msra.mxu0 %v12006_v46  ;;  %10820 = vmatprep.mubr.bf16.mxu0 %v13873_v14  ;;  %v14550_v31 = vpop.f32.mrf.mxu0 }
 0x279   : > { %v14552_v23 = vpop.f32.mrf.mxu1  ;;  %10818 = vmatprep.subr.bf16.mxu0 %v12007_v62 }
 0x27a   : > { %v14557_v8 = vadd.f32 %v10546_v41, %v10470_v61  ;;  %v14559_v49 = vpop.f32.mrf.mxu0 }
 0x27b   : > { %v14561_v48 = vpop.f32.mrf.mxu1 }
 0x27c   : > { %10819 = vmatpush3.bf16.msra.mxu0 %v12007_v62  ;;  %v10786_v21 = vpop.f32.mrf.mxu0 }
 0x27d   : > { %v14563_v13 = vpop.f32.mrf.mxu1  ;;  %v14572_v27 = vadd.f32 %v10786_v21, %v14337_v2 }
 0x27e   : > { %v4098_v14 = vpop.f32.mrf.mxu0 }
 0x27f   : > { %10821 = vmatmul.mubr.bf16.vlgmr.msra.gmra.mxu0 %v13918_v24  ;;  %v14566_v55 = vpop.f32.mrf.mxu1  ;;  %v14580_v19 = vadd.f32 %v4098_v14, %v14304_v0 }
 0x280   : > { %17165 = vst [vmem:[#allocation72_spill] sm:$0xff] %v14566_v55  ;;  %10824 = vmatprep.mubr.bf16.mxu0 %v13963_v10  ;;  %v10787_v33 = vpop.f32.mrf.mxu0 }
 0x281   : > { %v14569_v4 = vpop.f32.mrf.mxu1  ;;  %v14575_v36 = vadd.f32 %v10787_v33, %v14353_v11 }
 0x282   : > { %v4101_v56 = vpop.f32.mrf.mxu0 }
 0x283   : > { %v14577_v46 = vpop.f32.mrf.mxu1  ;;  %v14585_v10 = vadd.f32 %v4101_v56, %v14323_v57 }
 0x284   : > { %17166 = vst [vmem:[#allocation73_spill] sm:$0xff] %v14577_v46  ;;  %v10790_v34 = vpop.f32.mrf.mxu0 }
 0x285   : > { %v14587_v61 = vpop.f32.mrf.mxu1  ;;  %v14598_v21 = vadd.f32 %v10790_v34, %v14401_v53 }
 0x286   : > { %v4114_v11 = vpop.f32.mrf.mxu0 }
 0x287   : > { %v14591_v41 = vpop.f32.mrf.mxu1  ;;  %10825 = vmatmul.mubr.bf16.gmra.mxu0 %v14007_v9  ;;  %v14606_v56 = vadd.f32 %v4114_v11, %v14366_v47  ;;  %v10461_v9 = vadd.f32 %v14521_v26, %v14514_v1  ;;  %v10531_v26 = vadd.f32 %v14497_v51, %v14490_v58  ;;  %v10452_v1 = vadd.f32 %v14482_v28, %v14472_v44 }
 0x288   : > { %5550 = vmatprep.mubr.bf16.mxu0 %v17133_v54  ;;  %v10791_v0 = vpop.f32.mrf.mxu0 }
 0x289   : > { %v14595_v62 = vpop.f32.mrf.mxu1  ;;  %v14601_v57 = vadd.f32 %v10791_v0, %v14417_v52 }
 0x28a   : > { %v4117_v14 = vpop.f32.mrf.mxu0 }
 0x28b   : > { %v14603_v33 = vpop.f32.mrf.mxu1  ;;  %v14611_v2 = vadd.f32 %v4117_v14, %v14385_v39  ;;  %v10458_v39 = vadd.f32 %v14508_v43, %v14500_v6  ;;  %v10534_v14 = vadd.f32 %v14510_v15, %v14502_v59  ;;  %v10455_v43 = vadd.f32 %v14495_v18, %v14488_v22 }
 0x28c   : > { %v10794_v24 = vpop.f32.mrf.mxu0 }
 0x28d   : > { %v14613_v46 = vpop.f32.mrf.mxu1  ;;  %v4139_v47 = vadd.f32 %v10794_v24, %v14465_v5  ;;  %v4037_v22 = vadd.f32 %v10531_v26, %v10455_v43 }
 0x28e   : > { %17167 = vst [vmem:[#allocation74_spill] sm:$0xff] %v14613_v46  ;;  %v4130_v52 = vpop.f32.mrf.mxu0 }
 0x28f   : > { %v14617_v34 = vpop.f32.mrf.mxu1 }
 0x290   : > { %17168 = vst [vmem:[#allocation75_spill] sm:$0xff] %v14617_v34  ;;  %v10795_v0 = vpop.f32.mrf.mxu0  ;;  %v10537_v34 = vadd.f32 %v14523_v20, %v14516_v45 }
 0x291   : > { %v14619_v55 = vpop.f32.mrf.mxu1  ;;  %v4142_v11 = vadd.f32 %v10795_v0, %v14480_v25 }
 0x292   : > { %17169 = vst [vmem:[#allocation76_spill] sm:$0xff] %v14619_v55  ;;  %v4133_v53 = vpop.f32.mrf.mxu0  ;;  %v4131_v55 = vadd.f32 %v4130_v52, %v14430_v16  ;;  %v10528_v16 = vadd.f32 %v14484_v42, %v14474_v17  ;;  %v4045_v45 = vadd.f32 %v10537_v34, %v10461_v9 }
 0x293   : > { %v14629_v46 = vpop.f32.mrf.mxu1  ;;  %v4926_v5 = vpack.c.bf16 %v4142_v11, %v4139_v47  ;;  %v4134_v25 = vadd.f32 %v4133_v53, %v14449_v30  ;;  %v4042_v30 = vadd.f32 %v10534_v14, %v10458_v39 }
 0x294   : > { %v10798_v24 = vpop.f32.mrf.mxu0  ;;  %v4034_v58 = vadd.f32 %v10528_v16, %v10452_v1 }
 0x295   : > { %v14635_v0 = vpop.f32.mrf.mxu1  ;;  %v4925_v15 = vpack.c.bf16 %v4134_v25, %v4131_v55  ;;  %v4155_v52 = vadd.f32 %v10798_v24, %v4042_v30  ;;  %v10473_v30 = vadd.f32 %v14559_v49, %v14550_v31 }
 0x296   : > { %17170 = vst [vmem:[#allocation77_spill] sm:$0xff] %v14635_v0  ;;  %v4146_v6 = vpop.f32.mrf.mxu0 }
 0x297   : > { %v14641_v59 = vpop.f32.mrf.mxu1  ;;  %v4147_v0 = vadd.f32 %v4146_v6, %v4034_v58 }
 0x298   : > { %17171 = vst [vmem:[#allocation78_spill] sm:$0xff] %v14641_v59  ;;  %v10799_v20 = vpop.f32.mrf.mxu0 }
 0x299   : > { %v4341_v53 = vpop.f32.mrf.mxu1  ;;  %v4158_v47 = vadd.f32 %v10799_v20, %v4045_v45  ;;  %v17173_v45 = vpack.c.bf16 %v14611_v2, %v14606_v56  ;;  %v17175_v2 = vpack.c.bf16 %v14585_v10, %v14580_v19 }
 0x29a   : > { %v4149_v18 = vpop.f32.mrf.mxu0  ;;  %v17174_v53 = vpack.c.bf16 %v14575_v36, %v14572_v27  ;;  %v1466_v27 = vadd.f32 %v13094_v37, %v13092_v32  ;;  %v17176_v32 = vpack.c.bf16 %v13235_v63, %v13213_v40  ;;  %v1476_v37 = vadd.f32 %v13130_v60, %v13128_v50  ;;  %v17178_v40 = vld [vmem:[#allocation2_spill] sm:$0xff]  ;;  %v17179_v50 = vld [vmem:[#allocation7_spill] sm:$0xff] }
 0x29b   : > { %v4342_v11 = vpop.f32.mrf.mxu1  ;;  %v4928_v51 = vpack.c.bf16 %v4158_v47, %v4155_v52  ;;  %v4150_v55 = vadd.f32 %v4149_v18, %v4037_v22  ;;  %v1486_v63 = vadd.f32 %v17178_v40, %v13165_v38 }
 0x29c   : > { %v10802_v25 = vpop.f32.mrf.mxu0  ;;  %v1549_v22 = vadd.f32 %v13264_v35, %v1466_v27  ;;  %v17188_v27 = vld [vmem:[#allocation3_spill] sm:$0xff] }
 0x29d   : > { %v4449_v59 = vpop.f32.mrf.mxu1  ;;  %4948 = vmatpush1.bf16.msra.mxu1 %v4928_v51  ;;  %v4927_v28 = vpack.c.bf16 %v4150_v55, %v4147_v0 }
 0x29e   : > { %v4162_v44 = vpop.f32.mrf.mxu0  ;;  %4949 = vmatprep.subr.bf16.mxu1 %v17133_v54  ;;  %v4914_v11 = vpack.c.bf16 %v1549_v22, %v13258_v3 }
 0x29f   : > { %v14648_v17 = vpop.f32.mrf.mxu1  ;;  %v4163_v14 = vadd.f32 %v4162_v44, %v14538_v12  ;;  %v17172_v12 = vpack.c.bf16 %v14601_v57, %v14598_v21 }
 0x2a0   : > { %v10803_v42 = vpop.f32.mrf.mxu0 }
 0x2a1   : > { %v4453_v9 = vpop.f32.mrf.mxu1  ;;  %4950 = vmatpush1.bf16.msra.mxu1 %v4927_v28 }
 0x2a2   : > { %v4165_v34 = vpop.f32.mrf.mxu0  ;;  %4951 = vmatprep.subr.bf16.mxu1 %v17133_v54 }
 0x2a3   : > { %v14651_v39 = vpop.f32.mrf.mxu1  ;;  %v4166_v24 = vadd.f32 %v4165_v34, %v14546_v29 }
 0x2a5   : > { %v4459_v43 = vpop.f32.mrf.mxu1  ;;  %v4929_v26 = vpack.c.bf16 %v4166_v24, %v4163_v14  ;;  %4952 = vmatpush1.bf16.msra.mxu1 %v4926_v5  ;;  %v17180_v14 = vld [vmem:[#allocation72_spill] sm:$0xff]  ;;  %v17181_v24 = vld [vmem:[#allocation73_spill] sm:$0xff] }
 0x2a6   : > { %4953 = vmatprep.subr.bf16.mxu1 %v17133_v54 }
 0x2a7   : > { %v14656_v6 = vpop.f32.mrf.mxu1 }
 0x2a9   : > { %v4463_v0 = vpop.f32.mrf.mxu1  ;;  %4954 = vmatpush1.bf16.msra.mxu1 %v4925_v15  ;;  %v10549_v15 = vadd.f32 %v14561_v48, %v14552_v23  ;;  %v4171_v48 = vadd.f32 %v10802_v25, %v14557_v8 }
 0x2aa   : > { %4955 = vmatprep.subr.bf16.mxu1 %v17133_v54 }
 0x2ab   : > { %v14659_v1 = vpop.f32.mrf.mxu1  ;;  %v4061_v20 = vadd.f32 %v10549_v15, %v10473_v30  ;;  %v17183_v30 = vld [vmem:[#allocation4_spill] sm:$0xff] }
 0x2ad   : > { %v14661_v16 = vpop.f32.mrf.mxu1  ;;  %4956 = vmatpush1.bf16.msra.mxu1 %v17172_v12  ;;  %v4174_v23 = vadd.f32 %v10803_v42, %v4061_v20  ;;  %v17185_v20 = vld [vmem:[#allocation74_spill] sm:$0xff] }
 0x2ae   : > { %4957 = vmatprep.subr.bf16.mxu1 %v17133_v54 }
 0x2af   : > { %v14667_v29 = vpop.f32.mrf.mxu1  ;;  %v4930_v52 = vpack.c.bf16 %v4174_v23, %v4171_v48 }
 0x2b1   : > { %v14669_v5 = vpop.f32.mrf.mxu1  ;;  %4958 = vmatpush1.bf16.msra.mxu1 %v17173_v45 }
 0x2b2   : > { %4959 = vmatprep.subr.bf16.mxu1 %v17133_v54 }
 0x2b3   : > { %v14679_v21 = vpop.f32.mrf.mxu1 }
 0x2b5   : > { %v14681_v57 = vpop.f32.mrf.mxu1  ;;  %4960 = vmatpush1.bf16.msra.mxu1 %v17174_v53  ;;  %v17186_v53 = vld [vmem:[#allocation13_spill] sm:$0xff] }
 0x2b6   : > { %4961 = vmatprep.subr.bf16.mxu1 %v17133_v54  ;;  %v1569_v23 = vadd.f32 %v17186_v53, %v1486_v63 }
 0x2b7   : > { %v14687_v31 = vpop.f32.mrf.mxu1 }
 0x2b9   : > { %v4483_v49 = vpop.f32.mrf.mxu1  ;;  %4962 = vmatpush1.bf16.msra.mxu1 %v17175_v2 }
 0x2ba   : > { %4975 = vmatprep.subr.bf16.mxu1 %v17133_v54 }
 0x2bb   : > { %v4484_v56 = vpop.f32.mrf.mxu1 }
 0x2bc   : > { %v4378_v47 = vpop.f32.mrf.mxu0  ;;  %v17187_v56 = vld [vmem:[#allocation75_spill] sm:$0xff] }
 0x2bd   : > { %4976 = vmatpush2.bf16.msra.mxu1 %v4930_v52  ;;  %v4379_v8 = vadd.f32 %v4378_v47, %v14563_v13 }
 0x2be   : > { %v4380_v36 = vpop.f32.mrf.mxu0  ;;  %4977 = vmatprep.subr.bf16.mxu1 %v17133_v54 }
 0x2bf   : > { %v4450_v58 = vadd.f32 %v4449_v59, %v4379_v8 }
 0x2c0   : > { %v4382_v18 = vpop.f32.mrf.mxu0 }
 0x2c1   : > { %v4383_v19 = vadd.f32 %v4382_v18, %v14569_v4  ;;  %4978 = vmatpush2.bf16.msra.mxu1 %v4929_v26  ;;  %v1559_v4 = vadd.f32 %v13291_v7, %v1476_v37  ;;  %v4381_v7 = vadd.f32 %v4380_v36, %v17180_v14  ;;  %v12019_v26 = vmov 65535   ;;  %v17189_v36 = vld [vmem:[#allocation9_spill] sm:$0xff]  ;;  %v17190_v18 = vld [vmem:[#allocation76_spill] sm:$0xff] }
 0x2c2   : > { %v4384_v10 = vpop.f32.mrf.mxu0  ;;  %v1496_v22 = vadd.f32 %v17189_v36, %v17188_v27 }
 0x2c3   : > { %v4454_v51 = vadd.f32 %v4453_v9, %v4383_v19  ;;  %v4916_v60 = vpack.c.bf16 %v1559_v4, %v17179_v50 }
 0x2c4   : > { %v4388_v55 = vpop.f32.mrf.mxu0  ;;  %4980 = vmatmul.mubr.bf16.vlgmr.msra.gmra.mxu1 %v17176_v32 }
 0x2c5   : > { %v14706_v35 = vpack.c.bf16 %v4454_v51, %v4450_v58  ;;  %10251 = vmatprep.mubr.msk.bf16.mxu1 %vm4931_vm1, %v4914_v11  ;;  %v4389_v25 = vadd.f32 %v4388_v55, %v14587_v61  ;;  %v4385_v61 = vadd.f32 %v4384_v10, %v17181_v24  ;;  %v17192_v58 = vld [vmem:[#allocation11_spill] sm:$0xff] }
 0x2c6   : > { %v4390_v13 = vpop.f32.mrf.mxu0  ;;  %v4918_v51 = vpack.c.bf16 %v1569_v23, %v17192_v58 }
 0x2c7   : > { %17177 = vst [vmem:[#allocation79_spill] sm:$0xff] %v14706_v35  ;;  %v4391_v59 = vadd.f32 %v4390_v13, %v14591_v41  ;;  %v4460_v42 = vadd.f32 %v4459_v43, %v4389_v25  ;;  %v5501_v41 = vsel %vm5499_vm2, 4294967295, %v12019_v26  ;;  %v4456_v48 = vadd.f32 %v14651_v39, %v4385_v61  ;;  %v17195_v25 = vld [vmem:[#allocation8_spill] sm:$0xff] }
 0x2c8   : > { %v4392_v3 = vpop.f32.mrf.mxu0  ;;  %v14728_v2 = vsel %vm5500_vm3, %v5501_v41, 0 }
 0x2c9   : > { %v4393_v44 = vadd.f32 %v4392_v3, %v14595_v62  ;;  %v17182_v62 = vld [vmem:[#allocation5_spill] sm:$0xff]  ;;  %v4462_v38 = vadd.f32 %v14656_v6, %v4391_v59  ;;  %v17196_v3 = vld [vmem:[#allocation6_spill] sm:$0xff] }
 0x2ca   : > { %v4394_v28 = vpop.f32.mrf.mxu0  ;;  %v17184_v15 = vpack.c.bf16 %v17182_v62, %v17183_v30  ;;  %v17197_v59 = vpack.c.bf16 %v17195_v25, %v17196_v3  ;;  %v17209_v25 = vld [vmem:[#allocation14_spill] sm:$0xff] }
 0x2cb   : > { %v4395_v9 = vadd.f32 %v4394_v28, %v14603_v33  ;;  %v4464_v34 = vadd.f32 %v4463_v0, %v4393_v44  ;;  %v17198_v44 = vld [vmem:[#allocation77_spill] sm:$0xff] }
 0x2cc   : > { %v4398_v12 = vpop.f32.mrf.mxu0  ;;  %4988 = vmatmul.mubr.bf16.gmra.mxu1 %v17184_v15 }
 0x2cd   : > { %v4896_v45 = vpack.c.bf16 %v4464_v34, %v4460_v42  ;;  %v4399_v43 = vadd.f32 %v4398_v12, %v17185_v20  ;;  %v4466_v33 = vadd.f32 %v14659_v1, %v4395_v9  ;;  %10252 = vmatprep.mubr.msk.bf16.mxu1 %vm4931_vm1, %v4916_v60  ;;  %v4452_v1 = vadd.f32 %v14648_v17, %v4381_v7  ;;  %v17200_v34 = vld [vmem:[#allocation78_spill] sm:$0xff] }
 0x2ce   : > { %v4400_v0 = vpop.f32.mrf.mxu0 }
 0x2cf   : > { %v4897_v49 = vpack.c.bf16 %v4466_v33, %v4462_v38  ;;  %v4401_v52 = vadd.f32 %v4400_v0, %v17187_v56  ;;  %v4470_v47 = vadd.f32 %v14661_v16, %v4399_v43  ;;  %v6121_v8 = vshrl.u32 %v4896_v45, 16  ;;  %v17201_v38 = vld [vmem:[#allocation15_spill] sm:$0xff]  ;;  %v17202_v56 = vld [vmem:[#allocation12_spill] sm:$0xff] }
 0x2d0   : > { %v4402_v6 = vpop.f32.mrf.mxu0  ;;  %v14742_v55 = vand.u32 %v14728_v2, %v4896_v45  ;;  %v6124_v16 = vshll.u32 %v4896_v45, 16  ;;  %v14745_v37 = vpack.c.bf16 %v4456_v48, %v4452_v1 }
 0x2d1   : > { %v4403_v19 = vadd.f32 %v4402_v6, %v17190_v18  ;;  %v4472_v10 = vadd.f32 %v14667_v29, %v4401_v52  ;;  %v14738_v39 = vand.u32 %v14728_v2, %v4897_v49  ;;  %v6137_v17 = vshrl.u32 %v4897_v49, 16  ;;  %v17203_v52 = vld [vmem:[#allocation10_spill] sm:$0xff] }
 0x2d2   : > { %v4404_v11 = vpop.f32.mrf.mxu0  ;;  %17193 = vst [vmem:[#allocation7_spill] sm:$0xff] %v14742_v55  ;;  %17194 = vst [vmem:[#allocation72_spill] sm:$0xff] %v14745_v37  ;;  %v6140_v13 = vshll.u32 %v4897_v49, 16  ;;  %v6123_v50 = vrot.slane %v6121_v8, 4  ;;  %v6126_v42 = vrot.slane %v6124_v16, 5 }
 0x2d3   : > { %17191 = vst [vmem:[#allocation2_spill] sm:$0xff] %v14738_v39  ;;  %v4405_v32 = vadd.f32 %v4404_v11, %v14629_v46  ;;  %v4474_v4 = vadd.f32 %v14669_v5, %v4403_v19  ;;  %5530 = vmatprep.subr.bf16.mxu0 %v14738_v39  ;;  %v17199_v46 = vld [vmem:[#allocation17_spill] sm:$0xff]  ;;  %v6139_v26 = vrot.slane %v6137_v17, 4 }
 0x2d4   : > { %v4408_v29 = vpop.f32.mrf.mxu0  ;;  %4996 = vmatmul.mubr.bf16.gmra.mxu1 %v17197_v59  ;;  %5531 = vmatpush1.bf16.msra.mxu0 %v14742_v55  ;;  %v1579_v28 = vadd.f32 %v17199_v46, %v1496_v22  ;;  %v6142_v41 = vrot.slane %v6140_v13, 5 }
 0x2d5   : > { %v4409_v40 = vadd.f32 %v4408_v29, %v17198_v44  ;;  %v4476_v63 = vadd.f32 %v14679_v21, %v4405_v32  ;;  %10253 = vmatprep.mubr.msk.bf16.mxu1 %vm4931_vm1, %v4918_v51  ;;  %v4901_v60 = vpack.c.bf16 %v4474_v4, %v4470_v47  ;;  %5532 = vmatprep.subr.bf16.mxu0 %v14745_v37  ;;  %v17208_v29 = vld [vmem:[#allocation16_spill] sm:$0xff] }
 0x2d6   : > { %v4410_v5 = vpop.f32.mrf.mxu0  ;;  %v4920_v45 = vpack.c.bf16 %v1579_v28, %v17201_v38  ;;  %v17204_v47 = vpack.c.bf16 %v17202_v56, %v17203_v52  ;;  %v6143_v1 = vor.u32 %v6142_v41, %v6139_v26  ;;  %v17210_v3 = vpack.c.bf16 %v17208_v29, %v17209_v25 }
 0x2d7   : > { %v4902_v9 = vpack.c.bf16 %v4476_v63, %v4472_v10  ;;  %v4411_v14 = vadd.f32 %v4410_v5, %v17200_v34  ;;  %v4480_v7 = vadd.f32 %v14681_v57, %v4409_v40  ;;  %v6129_v24 = vshrl.u32 %v4901_v60, 16 }
 0x2d8   : > { %v6132_v61 = vshll.u32 %v4901_v60, 16  ;;  %v4412_v21 = vpop.f32.mrf.mxu0  ;;  %5533 = vmatpush1.bf16.msra.mxu0 %v14706_v35  ;;  %v17251_v35 = vld [vmem:[#allocation19_spill] sm:$0xff] }
 0x2d9   : > { %v6145_v12 = vshrl.u32 %v4902_v9, 16  ;;  %v6148_v62 = vshll.u32 %v4902_v9, 16  ;;  %v4906_v30 = vpack.c.bf16 %v4480_v7, %v4480_v7  ;;  %v4482_v15 = vadd.f32 %v14687_v31, %v4411_v14 }
 0x2da   : > { %v6131_v20 = vrot.slane %v6129_v24, 4  ;;  %v6134_v43 = vrot.slane %v6132_v61, 5  ;;  %v4413_v33 = vpop.f32.mrf.mxu0  ;;  %v6127_v31 = vor.u32 %v6126_v42, %v6123_v50  ;;  %v5021_v37 = vmul.f32 %v17251_v35, %v17251_v35 }
 0x2db   : > { %v6147_v0 = vrot.slane %v6145_v12, 4  ;;  %v6150_v57 = vrot.slane %v6148_v62, 5  ;;  %v6202_v53 = vshrl.u32 %v4906_v30, 16  ;;  %v6205_v23 = vshll.u32 %v4906_v30, 16 }
 0x2dc   : > { %v6135_v49 = vor.u32 %v6134_v43, %v6131_v20  ;;  %v4907_v48 = vpack.c.bf16 %v4482_v15, %v4482_v15  ;;  %5004 = vmatmul.mubr.bf16.gmra.mxu1 %v17204_v47 }
 0x2dd   : > { %v4520_v6 = vpop.f32.mrf.mxu1  ;;  %v6151_v27 = vor.u32 %v6150_v57, %v6147_v0  ;;  %v6204_v36 = vrot.slane %v6202_v53, 4  ;;  %v6207_v22 = vrot.slane %v6205_v23, 5  ;;  %10254 = vmatprep.mubr.msk.bf16.mxu1 %vm4931_vm1, %v4920_v45 }
 0x2de   : > { %v6211_v8 = vshrl.u32 %v4907_v48, 16  ;;  %v6214_v18 = vshll.u32 %v4907_v48, 16  ;;  %v14768_v10 = vsel %vm6120_vm4, %v6127_v31, %v6135_v49 }
 0x2df   : > { %v4522_v19 = vpop.f32.mrf.mxu1  ;;  %17205 = vst [vmem:[#allocation73_spill] sm:$0xff] %v14768_v10  ;;  %v6208_v11 = vor.u32 %v6207_v22, %v6204_v36  ;;  %v14771_v58 = vsel %vm6120_vm4, %v6143_v1, %v6151_v27 }
 0x2e0   : > { %17206 = vst [vmem:[#allocation5_spill] sm:$0xff] %v14771_v58  ;;  %v6213_v51 = vrot.slane %v6211_v8, 4  ;;  %v6216_v16 = vrot.slane %v6214_v18, 5 }
 0x2e1   : > { %v4524_v32 = vpop.f32.mrf.mxu1  ;;  %v14774_v17 = vsel %vm6120_vm4, %v6135_v49, %v6208_v11 }
 0x2e2   : > { %17207 = vst [vmem:[#allocation4_spill] sm:$0xff] %v14774_v17  ;;  %v6217_v13 = vor.u32 %v6216_v16, %v6213_v51 }
 0x2e3   : > { %v14776_v4 = vpop.f32.mrf.mxu1 }
 0x2e4   : > { %5012 = vmatmul.mubr.bf16.gmra.mxu1 %v17210_v3  ;;  %v14782_v44 = vsel %vm6120_vm4, %v6151_v27, %v6217_v13 }
 0x2e5   : > { %v4530_v59 = vpop.f32.mrf.mxu1  ;;  %17211 = vst [vmem:[#allocation74_spill] sm:$0xff] %v14782_v44 }
 0x2e7   : > { %v4532_v40 = vpop.f32.mrf.mxu1 }
 0x2e9   : > { %v4534_v63 = vpop.f32.mrf.mxu1 }
 0x2eb   : > { %v4536_v46 = vpop.f32.mrf.mxu1 }
 0x2ed   : > { %v4540_v28 = vpop.f32.mrf.mxu1 }
 0x2ef   : > { %v4542_v50 = vpop.f32.mrf.mxu1 }
 0x2f1   : > { %v4544_v60 = vpop.f32.mrf.mxu1 }
 0x2f3   : > { %v4546_v5 = vpop.f32.mrf.mxu1 }
 0x2f5   : > { %v14784_v42 = vpop.f32.mrf.mxu1 }
 0x2f7   : > { %v14786_v9 = vpop.f32.mrf.mxu1 }
 0x2f9   : > { %v4554_v34 = vpop.f32.mrf.mxu1 }
 0x2fb   : > { %v4555_v14 = vpop.f32.mrf.mxu1 }
 0x2fd   : > { %v4662_v7 = vpop.f32.mrf.mxu1 }
 0x2ff   : > { %v4591_v24 = vpop.f32.mrf.mxu0  ;;  %v4664_v61 = vpop.f32.mrf.mxu1 }
 0x300   : > { %v4592_v21 = vadd.f32 %v4591_v24, %v4520_v6 }
 0x301   : > { %v4593_v26 = vpop.f32.mrf.mxu0  ;;  %v4666_v41 = vpop.f32.mrf.mxu1 }
 0x302   : > { %v4594_v12 = vadd.f32 %v4593_v26, %v4522_v19  ;;  %v4663_v62 = vadd.f32 %v4662_v7, %v4592_v21 }
 0x303   : > { %v4595_v30 = vpop.f32.mrf.mxu0  ;;  %v14788_v15 = vpop.f32.mrf.mxu1 }
 0x304   : > { %v4596_v38 = vadd.f32 %v4595_v30, %v4524_v32  ;;  %v14790_v45 = vadd.f32 %v4664_v61, %v4594_v12 }
 0x305   : > { %v14792_v20 = vpop.f32.mrf.mxu0  ;;  %v4672_v43 = vpop.f32.mrf.mxu1 }
 0x306   : > { %v4667_v33 = vadd.f32 %v4666_v41, %v4596_v38 }
 0x307   : > { %v4601_v0 = vpop.f32.mrf.mxu0  ;;  %v4674_v57 = vpop.f32.mrf.mxu1 }
 0x308   : > { %v14794_v53 = vpack.c.bf16 %v4667_v33, %v4663_v62  ;;  %v4602_v23 = vadd.f32 %v4601_v0, %v4530_v59 }
 0x309   : > { %v4603_v49 = vpop.f32.mrf.mxu0  ;;  %v4676_v48 = vpop.f32.mrf.mxu1 }
 0x30a   : > { %17212 = vst [vmem:[#allocation13_spill] sm:$0xff] %v14794_v53  ;;  %v4604_v56 = vadd.f32 %v4603_v49, %v4532_v40  ;;  %v4673_v52 = vadd.f32 %v4672_v43, %v4602_v23 }
 0x30b   : > { %v4605_v47 = vpop.f32.mrf.mxu0  ;;  %v4678_v6 = vpop.f32.mrf.mxu1 }
 0x30c   : > { %v4606_v31 = vadd.f32 %v4605_v47, %v4534_v63  ;;  %v4675_v22 = vadd.f32 %v4674_v57, %v4604_v56 }
 0x30d   : > { %v4607_v27 = vpop.f32.mrf.mxu0  ;;  %v4682_v36 = vpop.f32.mrf.mxu1 }
 0x30e   : > { %v4608_v1 = vadd.f32 %v4607_v27, %v4536_v46  ;;  %v4677_v8 = vadd.f32 %v4676_v48, %v4606_v31 }
 0x30f   : > { %v4611_v18 = vpop.f32.mrf.mxu0  ;;  %v4684_v19 = vpop.f32.mrf.mxu1 }
 0x310   : > { %v14796_v11 = vpack.c.bf16 %v4677_v8, %v4673_v52  ;;  %v4612_v51 = vadd.f32 %v4611_v18, %v4540_v28  ;;  %v4679_v16 = vadd.f32 %v4678_v6, %v4608_v1 }
 0x311   : > { %v4613_v32 = vpop.f32.mrf.mxu0  ;;  %v4686_v13 = vpop.f32.mrf.mxu1 }
 0x312   : > { %v4899_v29 = vpack.c.bf16 %v4679_v16, %v4675_v22  ;;  %v4614_v25 = vadd.f32 %v4613_v32, %v4542_v50  ;;  %v4683_v3 = vadd.f32 %v4682_v36, %v4612_v51  ;;  %v6153_v63 = vshrl.u32 %v14796_v11, 16 }
 0x313   : > { %v4615_v59 = vpop.f32.mrf.mxu0  ;;  %v4688_v40 = vpop.f32.mrf.mxu1  ;;  %v6156_v34 = vshll.u32 %v14796_v11, 16 }
 0x314   : > { %v6169_v14 = vshrl.u32 %v4899_v29, 16  ;;  %v6172_v46 = vshll.u32 %v4899_v29, 16  ;;  %v4616_v7 = vadd.f32 %v4615_v59, %v4544_v60  ;;  %v14801_v21 = vand.u32 %v14728_v2, %v4899_v29 }
 0x315   : > { %v4617_v24 = vpop.f32.mrf.mxu0  ;;  %v4692_v61 = vpop.f32.mrf.mxu1  ;;  %v4685_v28 = vadd.f32 %v4684_v19, %v4614_v25  ;;  %v6155_v62 = vrot.slane %v6153_v63, 4  ;;  %v6158_v43 = vrot.slane %v6156_v34, 5 }
 0x316   : > { %17213 = vst [vmem:[#allocation75_spill] sm:$0xff] %v14801_v21  ;;  %v4618_v26 = vadd.f32 %v4617_v24, %v4546_v5  ;;  %v4687_v41 = vadd.f32 %v4686_v13, %v4616_v7  ;;  %5583 = vmatprep.subr.bf16.mxu0 %v14801_v21  ;;  %v6171_v57 = vrot.slane %v6169_v14, 4  ;;  %v6174_v23 = vrot.slane %v6172_v46, 5 }
 0x317   : > { %v4621_v12 = vpop.f32.mrf.mxu0  ;;  %v4694_v50 = vpop.f32.mrf.mxu1  ;;  %v6159_v51 = vor.u32 %v6158_v43, %v6155_v62 }
 0x318   : > { %v4689_v30 = vadd.f32 %v4688_v40, %v4618_v26  ;;  %v4622_v38 = vadd.f32 %v4621_v12, %v14784_v42  ;;  %v4903_v33 = vpack.c.bf16 %v4687_v41, %v4683_v3  ;;  %v6175_v19 = vor.u32 %v6174_v23, %v6171_v57 }
 0x319   : > { %v4623_v0 = vpop.f32.mrf.mxu0  ;;  %v4696_v60 = vpop.f32.mrf.mxu1 }
 0x31a   : > { %v4904_v49 = vpack.c.bf16 %v4689_v30, %v4685_v28  ;;  %v4624_v48 = vadd.f32 %v4623_v0, %v14786_v9  ;;  %v4693_v56 = vadd.f32 %v4692_v61, %v4622_v38  ;;  %v6161_v5 = vshrl.u32 %v4903_v33, 16 }
 0x31b   : > { %v6164_v52 = vshll.u32 %v4903_v33, 16  ;;  %v4625_v47 = vpop.f32.mrf.mxu0  ;;  %v4697_v6 = vpop.f32.mrf.mxu1 }
 0x31c   : > { %v6177_v31 = vshrl.u32 %v4904_v49, 16  ;;  %v6180_v27 = vshll.u32 %v4904_v49, 16  ;;  %v4908_v36 = vpack.c.bf16 %v4693_v56, %v4693_v56  ;;  %v4695_v22 = vadd.f32 %v4694_v50, %v4624_v48 }
 0x31d   : > { %v6163_v1 = vrot.slane %v6161_v5, 4  ;;  %v6166_v42 = vrot.slane %v6164_v52, 5  ;;  %v4626_v8 = vpop.f32.mrf.mxu0  ;;  %v10624_v18 = vpop.f32.mrf.mxu1 }
 0x31e   : > { %v6179_v16 = vrot.slane %v6177_v31, 4  ;;  %v6182_v32 = vrot.slane %v6180_v27, 5  ;;  %v6220_v13 = vshrl.u32 %v4908_v36, 16  ;;  %v6223_v29 = vshll.u32 %v4908_v36, 16 }
 0x31f   : > { %v6167_v9 = vor.u32 %v6166_v42, %v6163_v1  ;;  %v4909_v25 = vpack.c.bf16 %v4695_v22, %v4695_v22  ;;  %v10584_v3 = vpop.f32.mrf.mxu0  ;;  %v10625_v59 = vpop.f32.mrf.mxu1 }
 0x320   : > { %v6183_v40 = vor.u32 %v6182_v32, %v6179_v16  ;;  %v6222_v63 = vrot.slane %v6220_v13, 4  ;;  %v6225_v34 = vrot.slane %v6223_v29, 5  ;;  %v10626_v14 = vadd.f32 %v10625_v59, %v10624_v18 }
 0x321   : > { %v6229_v46 = vshrl.u32 %v4909_v25, 16  ;;  %v6232_v7 = vshll.u32 %v4909_v25, 16  ;;  %v10585_v24 = vpop.f32.mrf.mxu0  ;;  %v10627_v61 = vpop.f32.mrf.mxu1  ;;  %v14807_v28 = vsel %vm6120_vm4, %v6159_v51, %v6167_v9 }
 0x322   : > { %17214 = vst [vmem:[#allocation3_spill] sm:$0xff] %v14807_v28  ;;  %v6226_v26 = vor.u32 %v6225_v34, %v6222_v63  ;;  %v10586_v41 = vadd.f32 %v10585_v24, %v10584_v3  ;;  %v14810_v12 = vsel %vm6120_vm4, %v6175_v19, %v6183_v40 }
 0x323   : > { %17215 = vst [vmem:[#allocation9_spill] sm:$0xff] %v14810_v12  ;;  %v6231_v50 = vrot.slane %v6229_v46, 4  ;;  %v6234_v62 = vrot.slane %v6232_v7, 5  ;;  %v10587_v30 = vpop.f32.mrf.mxu0  ;;  %v10628_v38 = vpop.f32.mrf.mxu1 }
 0x324   : > { %v4798_v43 = vadd.f32 %v10626_v14, %v10586_v41  ;;  %v10629_v33 = vadd.f32 %v10628_v38, %v10627_v61  ;;  %v14813_v0 = vsel %vm6120_vm4, %v6167_v9, %v6226_v26 }
 0x325   : > { %v6235_v60 = vor.u32 %v6234_v62, %v6231_v50  ;;  %v10588_v57 = vpop.f32.mrf.mxu0  ;;  %v10630_v23 = vpop.f32.mrf.mxu1 }
 0x326   : > { %v10589_v49 = vadd.f32 %v10588_v57, %v10587_v30 }
 0x327   : > { %v10590_v48 = vpop.f32.mrf.mxu0  ;;  %v10631_v56 = vpop.f32.mrf.mxu1  ;;  %v14816_v5 = vsel %vm6120_vm4, %v6183_v40, %v6235_v60 }
 0x328   : > { %v10632_v52 = vadd.f32 %v10631_v56, %v10630_v23  ;;  %v4801_v47 = vadd.f32 %v10629_v33, %v10589_v49 }
 0x329   : > { %v10591_v6 = vpop.f32.mrf.mxu0  ;;  %v10633_v31 = vpop.f32.mrf.mxu1 }
 0x32a   : > { %v10592_v27 = vadd.f32 %v10591_v6, %v10590_v48 }
 0x32b   : > { %v10593_v36 = vpop.f32.mrf.mxu0  ;;  %v10634_v22 = vpop.f32.mrf.mxu1 }
 0x32c   : > { %v4806_v1 = vadd.f32 %v10632_v52, %v10592_v27  ;;  %v10635_v42 = vadd.f32 %v10634_v22, %v10633_v31 }
 0x32d   : > { %v10594_v8 = vpop.f32.mrf.mxu0  ;;  %v10636_v18 = vpop.f32.mrf.mxu1 }
 0x32e   : > { %v10595_v19 = vadd.f32 %v10594_v8, %v10593_v36 }
 0x32f   : > { %v10596_v51 = vpop.f32.mrf.mxu0  ;;  %v10637_v16 = vpop.f32.mrf.mxu1 }
 0x330   : > { %v4809_v32 = vadd.f32 %v10635_v42, %v10595_v19  ;;  %v10638_v13 = vadd.f32 %v10637_v16, %v10636_v18 }
 0x331   : > { %v10597_v29 = vpop.f32.mrf.mxu0  ;;  %v10639_v9 = vpop.f32.mrf.mxu1 }
 0x332   : > { %v10598_v25 = vadd.f32 %v10597_v29, %v10596_v51 }
 0x333   : > { %v10599_v3 = vpop.f32.mrf.mxu0  ;;  %v10640_v59 = vpop.f32.mrf.mxu1 }
 0x334   : > { %v10641_v40 = vadd.f32 %v10640_v59, %v10639_v9  ;;  %v4814_v63 = vadd.f32 %v10638_v13, %v10598_v25 }
 0x335   : > { %v10600_v34 = vpop.f32.mrf.mxu0  ;;  %v10642_v14 = vpop.f32.mrf.mxu1 }
 0x336   : > { %v10601_v46 = vadd.f32 %v10600_v34, %v10599_v3 }
 0x337   : > { %v10602_v7 = vpop.f32.mrf.mxu0  ;;  %v10643_v24 = vpop.f32.mrf.mxu1 }
 0x338   : > { %v4817_v61 = vadd.f32 %v10641_v40, %v10601_v46  ;;  %v10644_v26 = vadd.f32 %v10643_v24, %v10642_v14 }
 0x339   : > { %v10603_v41 = vpop.f32.mrf.mxu0  ;;  %v10645_v50 = vpop.f32.mrf.mxu1 }
 0x33a   : > { %v10604_v62 = vadd.f32 %v10603_v41, %v10602_v7 }
 0x33b   : > { %v10605_v30 = vpop.f32.mrf.mxu0  ;;  %v10646_v38 = vpop.f32.mrf.mxu1 }
 0x33c   : > { %v4822_v33 = vadd.f32 %v10644_v26, %v10604_v62 }
 0x33d   : > { %v10606_v60 = vpop.f32.mrf.mxu0 }
 0x33f   : > { %v10822_v57 = vpop.f32.mrf.mxu0 }
 0x340   : > { %v4870_v23 = vadd.f32 %v10822_v57, %v4806_v1 }
 0x341   : > { %v4861_v49 = vpop.f32.mrf.mxu0 }
 0x342   : > { %v4862_v56 = vadd.f32 %v4861_v49, %v4798_v43 }
 0x343   : > { %v10823_v48 = vpop.f32.mrf.mxu0 }
 0x344   : > { %v4873_v52 = vadd.f32 %v10823_v48, %v4809_v32 }
 0x345   : > { %v4864_v6 = vpop.f32.mrf.mxu0 }
 0x346   : > { %v4865_v31 = vadd.f32 %v4864_v6, %v4801_v47  ;;  %v14818_v27 = vpack.c.bf16 %v4873_v52, %v4870_v23 }
 0x347   : > { %v10826_v36 = vpop.f32.mrf.mxu0 }
 0x348   : > { %v14820_v22 = vpack.c.bf16 %v4865_v31, %v4862_v56  ;;  %v4886_v8 = vadd.f32 %v10826_v36, %v4822_v33  ;;  %v6185_v19 = vshrl.u32 %v14818_v27, 16  ;;  %v6188_v1 = vshll.u32 %v14818_v27, 16 }
 0x349   : > { %v4877_v42 = vpop.f32.mrf.mxu0 }
 0x34a   : > { %17216 = vst [vmem:[#allocation76_spill] sm:$0xff] %v14820_v22  ;;  %v4878_v18 = vadd.f32 %v4877_v42, %v4814_v63  ;;  %v4910_v16 = vpack.c.bf16 %v4886_v8, %v4886_v8  ;;  %v6187_v9 = vrot.slane %v6185_v19, 4  ;;  %v6190_v47 = vrot.slane %v6188_v1, 5 }
 0x34b   : > { %v10827_v51 = vpop.f32.mrf.mxu0 }
 0x34c   : > { %v6238_v29 = vshrl.u32 %v4910_v16, 16  ;;  %v6241_v43 = vshll.u32 %v4910_v16, 16  ;;  %v6191_v7 = vor.u32 %v6190_v47, %v6187_v9 }
 0x34d   : > { %v4880_v13 = vpop.f32.mrf.mxu0 }
 0x34e   : > { %v4881_v32 = vadd.f32 %v4880_v13, %v4817_v61  ;;  %v6240_v3 = vrot.slane %v6238_v29, 4  ;;  %v6243_v59 = vrot.slane %v6241_v43, 5  ;;  %v5276_v29 = vlaneseq }
 0x350   : > { %v4905_v25 = vpack.c.bf16 %v4881_v32, %v4878_v18  ;;  %v6244_v63 = vor.u32 %v6243_v59, %v6240_v3  ;;  %v14859_v43 = vand.u32 127, %v5276_v29 }
 0x352   : > { %v6193_v40 = vshrl.u32 %v4905_v25, 16  ;;  %v6196_v34 = vshll.u32 %v4905_v25, 16  ;;  %17226 = vst [vmem:[#allocation16_spill] sm:$0xff] %v14859_v43 }
 0x354   : > { %v6195_v14 = vrot.slane %v6193_v40, 4  ;;  %v6198_v46 = vrot.slane %v6196_v34, 5 }
 0x356   : > { %v6199_v24 = vor.u32 %v6198_v46, %v6195_v14 }
 0x358   : > { %v14825_v26 = vsel %vm6120_vm4, %v6199_v24, %v6244_v63  ;;  %v14828_v41 = vsel %vm6120_vm4, %v6191_v7, %v6199_v24 }
 0x359   : > { %17217 = vst [vmem:[#allocation11_spill] sm:$0xff] %v14825_v26  ;;  %17218 = vst [vmem:[#allocation8_spill] sm:$0xff] %v14828_v41 }
 0x384   : > { %v14830_v61 = vpop.f32.mrf.mxu1 }
 0x385   : > { %v5284_v50 = vsel %vm5283_vm5, %v14830_v61, -inf }
 0x386   : > { %5285 = vmax.xlane.f32.xlu0 %v5284_v50  ;;  %v4983_v62 = vpop.f32.mrf.mxu1 }
 0x388   : > { %v14834_v30 = vpop.f32.mrf.mxu1 }
 0x389   : > { %v5287_v38 = vsel %vm5283_vm5, %v14834_v30, -inf }
 0x38a   : > { %5288 = vmax.xlane.f32.xlu0 %v5287_v38  ;;  %v4986_v33 = vpop.f32.mrf.mxu1 }
 0x38c   : > { %v14838_v60 = vpop.f32.mrf.mxu1 }
 0x38d   : > { %v5290_v57 = vsel %vm5283_vm5, %v14838_v60, -inf }
 0x38e   : > { %5291 = vmax.xlane.f32.xlu1 %v5290_v57  ;;  %v4991_v23 = vpop.f32.mrf.mxu1 }
 0x390   : > { %v14842_v49 = vpop.f32.mrf.mxu1 }
 0x391   : > { %17219 = vst [vmem:[#allocation6_spill] sm:$0xff] %v14842_v49  ;;  %v5294_v48 = vsel %vm5293_vm6, %v14842_v49, -inf }
 0x392   : > { %5295 = vmax.xlane.f32.xlu1 %v5294_v48  ;;  %v4994_v56 = vpop.f32.mrf.mxu1 }
 0x394   : > { %v14846_v52 = vpop.f32.mrf.mxu1 }
 0x395   : > { %17220 = vst [vmem:[#allocation77_spill] sm:$0xff] %v14846_v52 }
 0x396   : > { %v4999_v6 = vpop.f32.mrf.mxu1 }
 0x398   : > { %v14848_v31 = vpop.f32.mrf.mxu1 }
 0x399   : > { %17221 = vst [vmem:[#allocation17_spill] sm:$0xff] %v14848_v31 }
 0x39a   : > { %v5002_v36 = vpop.f32.mrf.mxu1 }
 0x39c   : > { %v14850_v42 = vpop.f32.mrf.mxu1 }
 0x39d   : > { %17222 = vst [vmem:[#allocation78_spill] sm:$0xff] %v14850_v42 }
 0x39e   : > { %v5007_v8 = vpop.f32.mrf.mxu1 }
 0x3a0   : > { %v14852_v18 = vpop.f32.mrf.mxu1 }
 0x3a1   : > { %17223 = vst [vmem:[#allocation15_spill] sm:$0xff] %v14852_v18 }
 0x3a2   : > { %v5010_v19 = vpop.f32.mrf.mxu1 }
 0x3a4   : > { %v14854_v51 = vpop.f32.mrf.mxu1 }
 0x3a5   : > { %17224 = vst [vmem:[#allocation12_spill] sm:$0xff] %v14854_v51 }
 0x3a6   : > { %v5015_v16 = vpop.f32.mrf.mxu1 }
 0x3a8   : > { %v14856_v1 = vpop.f32.mrf.mxu1 }
 0x3a9   : > { %17225 = vst [vmem:[#allocation10_spill] sm:$0xff] %v14856_v1  ;;  %v17249_v1 = vld [vmem:[#allocation63_spill] sm:$0xff] }
 0x3aa   : > { %v5018_v13 = vpop.f32.mrf.mxu1  ;;  %v5029_v51 = vmul.f32 %v17249_v1, %v17249_v1 }
 0x40f   : > { %v14861_v32 = vpop.xlane.xlu0 %5285 }
 0x410   : > { %vm5297_vm7 = vcmp.eq.f32.partialorder %v14830_v61, %v14861_v32 }
 0x411   : > { %v5301_v9 = vsel %vm5297_vm7, %v14859_v43, 50 }
 0x412   : > { %v5305_v47 = vsel %vm5283_vm5, %v5301_v9, 2147483647 }
 0x413   : > { %v14867_v25 = vpop.xlane.xlu0 %5288  ;;  %v5307_v3 = vshra.s32 %v5305_v47, 16  ;;  %v5306_v56 = vand.u32 65535, %v5305_v47 }
 0x414   : > { %vm5298_vm8 = vcmp.eq.f32.partialorder %v14834_v30, %v14867_v25 }
 0x415   : > { %v5309_v59 = vcvt.s32.f32 %v5307_v3  ;;  %v5302_v40 = vsel %vm5298_vm8, %v14859_v43, 50  ;;  %v5308_v36 = vcvt.s32.f32 %v5306_v56 }
 0x416   : > { %v5320_v34 = vsel %vm5283_vm5, %v5302_v40, 2147483647 }
 0x417   : > { %5310 = vmin.xlane.f32.xlu0 %v5309_v59  ;;  %v14873_v14 = vpop.xlane.xlu1 %5291  ;;  %v5322_v46 = vshra.s32 %v5320_v34, 16  ;;  %v5321_v8 = vand.u32 65535, %v5320_v34 }
 0x418   : > { %vm5299_vm9 = vcmp.eq.f32.partialorder %v14838_v60, %v14873_v14 }
 0x419   : > { %v5324_v63 = vcvt.s32.f32 %v5322_v46  ;;  %v5303_v7 = vsel %vm5299_vm9, %v14859_v43, 50  ;;  %v5323_v13 = vcvt.s32.f32 %v5321_v8 }
 0x41a   : > { %v5335_v24 = vsel %vm5283_vm5, %v5303_v7, 2147483647 }
 0x41b   : > { %5325 = vmin.xlane.f32.xlu1 %v5324_v63  ;;  %v5296_v50 = vpop.xlane.xlu1 %5295  ;;  %v5337_v62 = vshra.s32 %v5335_v24, 16  ;;  %v5336_v9 = vand.u32 65535, %v5335_v24 }
 0x41c   : > { %vm5300_vm10 = vcmp.eq.f32.partialorder %v14842_v49, %v5296_v50 }
 0x41d   : > { %v5339_v38 = vcvt.s32.f32 %v5337_v62  ;;  %v5304_v33 = vsel %vm5300_vm10, %v14859_v43, 50  ;;  %v5338_v46 = vcvt.s32.f32 %v5336_v9 }
 0x41e   : > { %v5350_v57 = vsel %vm5293_vm6, %v5304_v33, 2147483647 }
 0x41f   : > { %5340 = vmin.xlane.f32.xlu0 %v5339_v38  ;;  %v5352_v23 = vshra.s32 %v5350_v57, 16  ;;  %v5351_v7 = vand.u32 65535, %v5350_v57 }
 0x421   : > { %v5354_v48 = vcvt.s32.f32 %v5352_v23  ;;  %v5353_v47 = vcvt.s32.f32 %v5351_v7 }
 0x423   : > { %5355 = vmin.xlane.f32.xlu1 %v5354_v48 }
 0x4a0   : > { %v5311_v6 = vpop.xlane.xlu0 %5310 }
 0x4a1   : > { %vm5312_vm11 = vcmp.eq.f32.partialorder %v5309_v59, %v5311_v6  ;;  %v5317_v56 = vcvt.f32.s32 %v5311_v6  ;;  %v5370_v6 = vadd.f32 1.0, %v14867_v25 }
 0x4a2   : > { %v5313_v19 = vsel %vm5312_vm11, %v5308_v36, inf }
 0x4a3   : > { %5314 = vmin.xlane.f32.xlu0 %v5313_v19 }
 0x4a4   : > { %v5326_v16 = vpop.xlane.xlu1 %5325 }
 0x4a5   : > { %vm5327_vm12 = vcmp.eq.f32.partialorder %v5324_v63, %v5326_v16  ;;  %v5332_v59 = vcvt.f32.s32 %v5326_v16 }
 0x4a6   : > { %v5328_v3 = vsel %vm5327_vm12, %v5323_v13, inf  ;;  %v5318_v13 = vshll.u32 %v5317_v56, 16 }
 0x4a7   : > { %5329 = vmin.xlane.f32.xlu1 %v5328_v3  ;;  %v5333_v8 = vshll.u32 %v5332_v59, 16 }
 0x4a8   : > { %v5341_v40 = vpop.xlane.xlu0 %5340 }
 0x4a9   : > { %vm5342_vm13 = vcmp.eq.f32.partialorder %v5339_v38, %v5341_v40  ;;  %v5347_v24 = vcvt.f32.s32 %v5341_v40 }
 0x4aa   : > { %v5343_v62 = vsel %vm5342_vm13, %v5338_v46, inf }
 0x4ab   : > { %5344 = vmin.xlane.f32.xlu0 %v5343_v62  ;;  %v5348_v38 = vshll.u32 %v5347_v24, 16 }
 0x4ac   : > { %v5356_v33 = vpop.xlane.xlu1 %5355 }
 0x4ad   : > { %vm5357_vm14 = vcmp.eq.f32.partialorder %v5354_v48, %v5356_v33  ;;  %v5362_v9 = vcvt.f32.s32 %v5356_v33  ;;  %v5369_v33 = vadd.f32 1.0, %v14861_v32 }
 0x4ae   : > { %v5358_v23 = vsel %vm5357_vm14, %v5353_v47, inf  ;;  %v5371_v47 = vadd.f32 1.0, %v14873_v14 }
 0x4af   : > { %5359 = vmin.xlane.f32.xlu1 %v5358_v23  ;;  %v5363_v40 = vshll.u32 %v5362_v9, 16  ;;  %v14914_v9 = vshrl.u32 %v5276_v29, 7 }
 0x4b1   : > { %17227 = vst [vmem:[#allocation14_spill] sm:$0xff] %v14914_v9 }
 0x52c   : > { %v5315_v34 = vpop.xlane.xlu0 %5314 }
 0x52d   : > { %v5316_v63 = vcvt.f32.s32 %v5315_v34  ;;  %v5372_v34 = vadd.f32 1.0, %v5296_v50 }
 0x52f   : > { %v14884_v46 = vadd.s32 %v5318_v13, %v5316_v63 }
 0x530   : > { %v5330_v36 = vpop.xlane.xlu1 %5329 }
 0x531   : > { %v5331_v19 = vcvt.f32.s32 %v5330_v36  ;;  %vm5365_vm0 = vcmp.eq.s32.totalorder %v14859_v43, %v14884_v46 }
 0x532   : > { %v5373_v25 = vsel %vm5365_vm0, %v5369_v33, 0.0 }
 0x533   : > { %v14882_v3 = vadd.s32 %v5333_v8, %v5331_v19  ;;  %v5377_v50 = vsel %vm5283_vm5, %v5373_v25, -inf }
 0x534   : > { %v5345_v57 = vpop.xlane.xlu0 %5344 }
 0x535   : > { %v5346_v7 = vcvt.f32.s32 %v5345_v57  ;;  %vm5366_vm15 = vcmp.eq.s32.totalorder %v14859_v43, %v14882_v3 }
 0x536   : > { %v5374_v23 = vsel %vm5366_vm15, %v5370_v6, 0.0 }
 0x537   : > { %v14886_v48 = vadd.s32 %v5348_v38, %v5346_v7  ;;  %v5378_v32 = vsel %vm5283_vm5, %v5374_v23, -inf }
 0x538   : > { %v5360_v16 = vpop.xlane.xlu1 %5359  ;;  %v5381_v63 = vmax.f32 %v5377_v50, %v5378_v32 }
 0x539   : > { %vm5367_vm1 = vcmp.eq.s32.totalorder %v14859_v43, %v14886_v48  ;;  %v5361_v62 = vcvt.f32.s32 %v5360_v16  ;;  %v14917_v16 = vadd.s32 8, %v14914_v9 }
 0x53a   : > { %v5375_v56 = vsel %vm5367_vm1, %v5371_v47, 0.0 }
 0x53b   : > { %v5364_v59 = vadd.s32 %v5363_v40, %v5361_v62  ;;  %v5379_v36 = vsel %vm5283_vm5, %v5375_v56, -inf  ;;  %17228 = vst [vmem:[#allocation80_spill] sm:$0xff] %v14917_v16  ;;  %v14920_v40 = vadd.s32 16, %v14914_v9  ;;  %v14923_v62 = vadd.s32 24, %v14914_v9 }
 0x53d   : > { %vm5368_vm2 = vcmp.eq.s32.totalorder %v14859_v43, %v5364_v59  ;;  %17229 = vst [vmem:[#allocation81_spill] sm:$0xff] %v14920_v40  ;;  %17230 = vst [vmem:[#allocation82_spill] sm:$0xff] %v14923_v62 }
 0x53e   : > { %v5376_v14 = vsel %vm5368_vm2, %v5372_v34, 0.0 }
 0x53f   : > { %v5380_v8 = vsel %vm5293_vm6, %v5376_v14, -inf }
 0x540   : > { %v5382_v24 = vmax.f32 %v5379_v36, %v5380_v8 }
 0x542   : > { %v5383_v19 = vmax.f32 %v5381_v63, %v5382_v24 }
 0x544   : > { %v5384_v13 = vrot.slane %v5383_v19, 4 }
 0x546   : > { %v5385_v57 = vmax.f32 %v5383_v19, %v5384_v13 }
 0x548   : > { %v5386_v38 = vrot.slane %v5385_v57, 2 }
 0x54a   : > { %v5387_v7 = vmax.f32 %v5385_v57, %v5386_v38 }
 0x54c   : > { %v5388_v6 = vrot.slane %v5387_v7, 1 }
 0x54e   : > { %v5389_v33 = vmax.f32 %v5387_v7, %v5388_v6  ;;  %v17231_v7 = vmov 0.0  }
 0x550   : > { %vm5390_vm3 = vcmp.eq.f32.partialorder %v5373_v25, %v5389_v33  ;;  %vm5391_vm4 = vcmp.eq.f32.partialorder %v5374_v23, %v5389_v33  ;;  %vm5392_vm7 = vcmp.eq.f32.partialorder %v5375_v56, %v5389_v33  ;;  %vm5393_vm8 = vcmp.eq.f32.partialorder %v5376_v14, %v5389_v33 }
 0x551   : > { %v5394_v47 = vsel %vm5390_vm3, %v14914_v9, 25  ;;  %v5395_v29 = vsel %vm5391_vm4, %v14917_v16, 25  ;;  %v5396_v34 = vsel %vm5392_vm7, %v14920_v40, 25  ;;  %v5397_v32 = vsel %vm5393_vm8, %v14923_v62, 25 }
 0x552   : > { %v5398_v36 = vsel %vm5283_vm5, %v5394_v47, 2147483647  ;;  %v5399_v8 = vsel %vm5283_vm5, %v5395_v29, 2147483647  ;;  %v5400_v50 = vsel %vm5283_vm5, %v5396_v34, 2147483647 }
 0x553   : > { %v5401_v24 = vsel %vm5293_vm6, %v5397_v32, 2147483647  ;;  %vm5402_vm9 = vcmp.lt.s32.totalorder %v5398_v36, %v5399_v8 }
 0x554   : > { %v5403_v23 = vsel %vm5402_vm9, %v5398_v36, %v5399_v8  ;;  %vm5404_vm10 = vcmp.lt.s32.totalorder %v5400_v50, %v5401_v24 }
 0x555   : > { %v5405_v25 = vsel %vm5404_vm10, %v5400_v50, %v5401_v24 }
 0x556   : > { %vm5406_vm11 = vcmp.lt.s32.totalorder %v5403_v23, %v5405_v25 }
 0x557   : > { %v5407_v56 = vsel %vm5406_vm11, %v5403_v23, %v5405_v25 }
 0x558   : > { %v5408_v14 = vrot.slane %v5407_v56, 4 }
 0x55a   : > { %vm5409_vm12 = vcmp.lt.s32.totalorder %v5407_v56, %v5408_v14 }
 0x55b   : > { %v5410_v63 = vsel %vm5409_vm12, %v5407_v56, %v5408_v14  ;;  %vm6807_vm12 = vcmask 408577  }
 0x55c   : > { %v5411_v19 = vrot.slane %v5410_v63, 2 }
 0x55e   : > { %vm5412_vm13 = vcmp.lt.s32.totalorder %v5410_v63, %v5411_v19 }
 0x55f   : > { %v5413_v13 = vsel %vm5412_vm13, %v5410_v63, %v5411_v19  ;;  %vm17041_vm13 = vcmask 402432  }
 0x560   : > { %v5414_v57 = vrot.slane %v5413_v13, 1 }
 0x562   : > { %vm5415_vm14 = vcmp.lt.s32.totalorder %v5413_v13, %v5414_v57 }
 0x563   : > { %v5416_v38 = vsel %vm5415_vm14, %v5413_v13, %v5414_v57 }
 0x564   : > { %vm5418_vm3 = vcmp.eq.s32.totalorder %v5416_v38, %v14917_v16  ;;  %vm5417_vm4 = vcmp.eq.s32.totalorder %v5416_v38, %v14914_v9  ;;  %vm5420_vm7 = vcmp.eq.s32.totalorder %v5416_v38, %v14923_v62  ;;  %vm5419_vm9 = vcmp.eq.s32.totalorder %v5416_v38, %v14920_v40  ;;  %v17254_v62 = vld [vmem:[#allocation43_spill] sm:$0xff]  ;;  %v17255_v16 = vld [vmem:[#allocation62_spill] sm:$0xff] }
 0x565   : > { %vm5422_vm8 = vmand %vm5366_vm15, %vm5418_vm3 }
 0x566   : > { %v5426_v6 = vsel %vm5422_vm8, 1.0, %v17231_v7  ;;  %vm5421_vm10 = vmand %vm5365_vm0, %vm5417_vm4  ;;  %vm17040_vm0 = vcmask 203776   ;;  %vm17086_vm8 = vcmask 1040384  }
 0x567   : > { %v5432_v33 = vsel %vm5283_vm5, %v5426_v6, -inf  ;;  %v5425_v47 = vsel %vm5421_vm10, 1.0, %v17231_v7  ;;  %vm5424_vm11 = vmand %vm5368_vm2, %vm5420_vm7  ;;  %vm6060_vm2 = vcmask 401608  }
 0x568   : > { %5433 = vmax.xlane.f32.xlu1 %v5432_v33  ;;  %v5429_v29 = vsel %vm5283_vm5, %v5425_v47, -inf  ;;  %v5428_v3 = vsel %vm5424_vm11, 1.0, %v17231_v7  ;;  %vm5423_vm15 = vmand %vm5367_vm1, %vm5419_vm9  ;;  %vm17038_vm1 = vcmask 408776  }
 0x569   : > { %5430 = vmax.xlane.f32.xlu0 %v5429_v29  ;;  %v5427_v46 = vsel %vm5423_vm15, 1.0, %v17231_v7  ;;  %v5438_v34 = vsel %vm5293_vm6, %v5428_v3, -inf  ;;  %vm17039_vm6 = vcmask 196608  }
 0x56a   : > { %v5435_v32 = vsel %vm5283_vm5, %v5427_v46, -inf }
 0x56c   : > { %5439 = vmax.xlane.f32.xlu1 %v5438_v34 }
 0x56d   : > { %5436 = vmax.xlane.f32.xlu0 %v5435_v32 }
 0x5f1   : > { %v5434_v59 = vpop.xlane.xlu1 %5433 }
 0x5f2   : > { %v14957_v36 = vmul.f32 %v5434_v59, %v14834_v30  ;;  %v5431_v8 = vpop.xlane.xlu0 %5430 }
 0x5f3   : > { %v14960_v50 = vmul.f32 %v5431_v8, %v14830_v61 }
 0x5f4   : > { %v5449_v48 = vsel %vm17040_vm0, %v14957_v36, -inf }
 0x5f5   : > { %5450 = vmax.xlane.f32.xlu1 %v5449_v48  ;;  %v5440_v24 = vpop.xlane.xlu1 %5439  ;;  %v5446_v23 = vsel %vm17040_vm0, %v14960_v50, -inf }
 0x5f6   : > { %v14967_v25 = vmul.f32 %v5440_v24, %v14842_v49  ;;  %5447 = vmax.xlane.f32.xlu0 %v5446_v23  ;;  %v5437_v56 = vpop.xlane.xlu0 %5436 }
 0x5f7   : > { %v14970_v30 = vmul.f32 %v5437_v56, %v14838_v60 }
 0x5f8   : > { %v5456_v61 = vsel %vm17039_vm6, %v14967_v25, -inf }
 0x5f9   : > { %5457 = vmax.xlane.f32.xlu1 %v5456_v61  ;;  %v5452_v14 = vsel %vm17040_vm0, %v14970_v30, -inf  ;;  %v6054_v61 = vsel %vm17038_vm1, %v14957_v36, -inf }
 0x5fa   : > { %5453 = vmax.xlane.f32.xlu0 %v5452_v14  ;;  %v6051_v14 = vsel %vm17038_vm1, %v14960_v50, -inf }
 0x67e   : > { %v5451_v63 = vpop.xlane.xlu1 %5450 }
 0x67f   : > { %v5460_v19 = vsub.f32 %v14957_v36, %v5451_v63  ;;  %v5448_v13 = vpop.xlane.xlu0 %5447  ;;  %v6061_v63 = vsel %vm6060_vm2, %v14967_v25, -inf }
 0x680   : > { %v5459_v57 = vsub.f32 %v14960_v50, %v5448_v13 }
 0x681   : > { %v5465_v38 = vmul.f32 1.442695, %v5460_v19  ;;  %v6057_v19 = vsel %vm17038_vm1, %v14970_v30, -inf }
 0x682   : > { %v5463_v6 = vmul.f32 1.442695, %v5459_v57  ;;  %v5458_v33 = vpop.xlane.xlu1 %5457 }
 0x683   : > { %11547 = vpow2.f32 %v5465_v38  ;;  %v5462_v60 = vsub.f32 %v14967_v25, %v5458_v33  ;;  %v5454_v47 = vpop.xlane.xlu0 %5453 }
 0x684   : > { %11549 = vpow2.f32 %v5463_v6  ;;  %v5461_v29 = vsub.f32 %v14970_v30, %v5454_v47 }
 0x685   : > { %v5469_v3 = vmul.f32 1.442695, %v5462_v60 }
 0x686   : > { %v5467_v46 = vmul.f32 1.442695, %v5461_v29 }
 0x687   : > { %11551 = vpow2.f32 %v5469_v3 }
 0x688   : > { %11553 = vpow2.f32 %v5467_v46  ;;  %v4598_v46 = vadd.f32 %v14792_v20, %v14776_v4  ;;  %v15000_v20 = vand.u32 %v14728_v2, %v14796_v11 }
 0x68a   : > { %17232 = vst [vmem:[#allocation83_spill] sm:$0xff] %v15000_v20 }
 0x690   : > { %v11548_v34 = vpop.eup %11547 }
 0x691   : > { %v11550_v32 = vpop.eup %11549  ;;  %v5474_v59 = vsel %vm17040_vm0, %v11548_v34, 0.0 }
 0x692   : > { %5475 = vadd.xlane.f32.xlu1 %v5474_v59  ;;  %v5471_v8 = vsel %vm17040_vm0, %v11550_v32, 0.0 }
 0x693   : > { %5472 = vadd.xlane.f32.xlu0 %v5471_v8 }
 0x694   : > { %v11552_v48 = vpop.eup %11551 }
 0x695   : > { %v11554_v24 = vpop.eup %11553  ;;  %v5480_v23 = vsel %vm17039_vm6, %v11552_v48, 0.0 }
 0x696   : > { %5481 = vadd.xlane.f32.xlu1 %v5480_v23  ;;  %v5477_v56 = vsel %vm17040_vm0, %v11554_v24, 0.0 }
 0x697   : > { %5478 = vadd.xlane.f32.xlu0 %v5477_v56 }
 0x69a   : > { %6055 = vmax.xlane.f32.xlu1 %v6054_v61 }
 0x69b   : > { %6052 = vmax.xlane.f32.xlu0 %v6051_v14 }
 0x69e   : > { %6062 = vmax.xlane.f32.xlu1 %v6061_v63 }
 0x69f   : > { %6058 = vmax.xlane.f32.xlu0 %v6057_v19 }
 0x71b   : > { %v5476_v13 = vpop.xlane.xlu1 %5475 }
 0x71c   : > { %11555 = vrcp.f32 %v5476_v13  ;;  %v5473_v57 = vpop.xlane.xlu0 %5472 }
 0x71d   : > { %11557 = vrcp.f32 %v5473_v57 }
 0x71f   : > { %v5482_v38 = vpop.xlane.xlu1 %5481 }
 0x720   : > { %11559 = vrcp.f32 %v5482_v38  ;;  %v5479_v6 = vpop.xlane.xlu0 %5478 }
 0x721   : > { %11561 = vrcp.f32 %v5479_v6 }
 0x723   : > { %v6056_v33 = vpop.xlane.xlu1 %6055 }
 0x724   : > { %v6065_v60 = vsub.f32 %v14957_v36, %v6056_v33  ;;  %v6053_v47 = vpop.xlane.xlu0 %6052  ;;  %v4669_v36 = vadd.f32 %v14788_v15, %v4598_v46 }
 0x725   : > { %v6064_v29 = vsub.f32 %v14960_v50, %v6053_v47  ;;  %v17236_v47 = vld [vmem:[#allocation24_spill] sm:$0xff] }
 0x726   : > { %v6070_v3 = vmul.f32 1.442695, %v6065_v60  ;;  %v15003_v33 = vpack.c.bf16 %v4669_v36, %v14790_v45  ;;  %v6808_v60 = vsel %vm6807_vm12, %v14842_v49, -inf }
 0x727   : > { %v6068_v59 = vmul.f32 1.442695, %v6064_v29  ;;  %v6063_v8 = vpop.xlane.xlu1 %6062  ;;  %v5035_v29 = vmul.f32 %v17236_v47, %v17236_v47 }
 0x728   : > { %11563 = vpow2.f32 %v6070_v3  ;;  %v6059_v23 = vpop.xlane.xlu0 %6058  ;;  %v6067_v61 = vsub.f32 %v14967_v25, %v6063_v8  ;;  %17233 = vst [vmem:[#allocation84_spill] sm:$0xff] %v15003_v33  ;;  %v17237_v3 = vld [vmem:[#allocation48_spill] sm:$0xff]  ;;  %v17239_v8 = vld [vmem:[#allocation49_spill] sm:$0xff] }
 0x729   : > { %v11556_v56 = vpop.eup %11555  ;;  %11565 = vpow2.f32 %v6068_v59  ;;  %v6066_v14 = vsub.f32 %v14970_v30, %v6059_v23  ;;  %v15011_v30 = vand.u32 %v14728_v2, %v14818_v27  ;;  %v5037_v46 = vmul.f32 %v17237_v3, %v17237_v3  ;;  %v17238_v59 = vld [vmem:[#allocation38_spill] sm:$0xff] }
 0x72a   : > { %v11558_v63 = vpop.eup %11557  ;;  %v5488_v19 = vmul.f32 %v11556_v56, %v11548_v34  ;;  %v6074_v6 = vmul.f32 1.442695, %v6067_v61  ;;  %v15051_v23 = vadd.f32 %v17239_v8, %v17238_v59  ;;  %v6814_v61 = vsel %vm5283_vm5, %v14848_v31, -inf  ;;  %v17246_v8 = vld [vmem:[#allocation46_spill] sm:$0xff] }
 0x72b   : > { %v5487_v13 = vmul.f32 %v11558_v63, %v11550_v32  ;;  %v6072_v50 = vmul.f32 1.442695, %v6066_v14  ;;  %17234 = vst [vmem:[#allocation85_spill] sm:$0xff] %v15011_v30 }
 0x72c   : > { %v5038_v63 = vmul.f32 %v15051_v23, %v15051_v23 }
 0x72d   : > { %v11560_v57 = vpop.eup %11559  ;;  %v5491_v38 = vpack.c.bf16 %v5488_v19, %v5487_v13  ;;  %11567 = vpow2.f32 %v6072_v50  ;;  %v17240_v19 = vld [vmem:[#allocation65_spill] sm:$0xff]  ;;  %v6818_v13 = vsel %vm17041_vm13, %v14850_v42, -inf }
 0x72e   : > { %v11562_v4 = vpop.eup %11561  ;;  %11569 = vpow2.f32 %v6074_v6  ;;  %v5490_v25 = vmul.f32 %v11560_v57, %v11552_v48  ;;  %v17235_v48 = vld [vmem:[#allocation25_spill] sm:$0xff]  ;;  %v5039_v36 = vmul.f32 %v17240_v19, %v17240_v19 }
 0x72f   : > { %10255 = vmatmul.mubr.msk.bf16.vlgmr.msra.gmra.mxu0 %vm17040_vm0, %v5491_v38  ;;  %v5489_v15 = vmul.f32 %v11562_v4, %v11554_v24  ;;  %v5036_v24 = vmul.f32 %v17235_v48, %v17235_v48  ;;  %v17241_v6 = vld [vmem:[#allocation21_spill] sm:$0xff] }
 0x730   : > { %5584 = vmatpush1.bf16.msra.mxu0 %v15000_v20  ;;  %5560 = vmatprep.mubr.bf16.mxu0 %v17133_v54  ;;  %v5026_v4 = vmul.f32 %v17241_v6, %v17241_v6 }
 0x731   : > { %5585 = vmatprep.subr.bf16.mxu0 %v15003_v33  ;;  %v5492_v45 = vpack.c.bf16 %v5490_v25, %v5489_v15  ;;  %v5088_v56 = vadd.f32 %v5036_v24, %v5035_v29  ;;  %v17242_v15 = vld [vmem:[#allocation22_spill] sm:$0xff] }
 0x732   : > { %v5030_v25 = vmul.f32 %v17242_v15, %v17242_v15 }
 0x733   : > { %v5089_v14 = vadd.f32 %v5088_v56, %v5037_v46  ;;  %v17245_v46 = vld [vmem:[#allocation44_spill] sm:$0xff]  ;;  %v5032_v56 = vmul.f32 %v17246_v8, %v17246_v8 }
 0x734   : > { %5586 = vmatpush1.bf16.msra.mxu0 %v14794_v53  ;;  %v5027_v59 = vmul.f32 %v17245_v46, %v17245_v46 }
 0x735   : > { %v15014_v11 = vpop.eup %11563  ;;  %10828 = vmatprep.subr.bf16.mxu0 %v15011_v30  ;;  %v5090_v50 = vadd.f32 %v5089_v14, %v5038_v63 }
 0x736   : > { %v15017_v34 = vpop.eup %11565  ;;  %6082 = vrot.lane.b32.xlu1 %v15014_v11, %s12020_s30 }
 0x737   : > { %10256 = vmatmul.mubr.msk.bf16.gmra.mxu0 %vm17040_vm0, %v5492_v45  ;;  %6080 = vrot.lane.b32.xlu0 %v15017_v34, %s12020_s30  ;;  %v5091_v57 = vadd.f32 %v5090_v50, %v5039_v36  ;;  %v17247_v36 = vld [vmem:[#allocation45_spill] sm:$0xff] }
 0x738   : > { %5603 = vmatprep.mubr.bf16.mxu0 %v17133_v54 }
 0x73a   : > { %v15025_v27 = vpop.eup %11567 }
 0x73b   : > { %6084 = vrot.lane.b32.xlu1 %v15025_v27, %s12020_s30  ;;  %v15029_v32 = vpop.eup %11569 }
 0x73f   : > { %10257 = vmatmul.mubr.msk.bf16.vlgmr.msra.gmra.mxu0 %vm17040_vm0, %v5491_v38  ;;  %6086 = vrot.lane.b32.xlu1 %v15029_v32, %s12020_s30 }
 0x740   : > { %10829 = vmatpush3.bf16.msra.mxu0 %v15011_v30  ;;  %5613 = vmatprep.mubr.bf16.mxu0 %v17133_v54 }
 0x741   : > { %10830 = vmatprep.subr.bf16.mxu0 %v14820_v22 }
 0x744   : > { %10831 = vmatpush3.bf16.msra.mxu0 %v14820_v22  ;;  %v17250_v22 = vld [vmem:[#allocation18_spill] sm:$0xff] }
 0x745   : > { %v5020_v30 = vmul.f32 %v17250_v22, %v17250_v22 }
 0x747   : > { %10258 = vmatmul.mubr.msk.bf16.gmra.mxu0 %vm17040_vm0, %v5492_v45  ;;  %v5070_v53 = vadd.f32 %v5021_v37, %v5020_v30 }
 0x748   : > { %10832 = vmatprep.mubr.msk.bf16.mxu0 %vm17040_vm0, %v5491_v38  ;;  %v6811_v38 = vsel %vm5283_vm5, %v14846_v52, -inf }
 0x74f   : > { %10833 = vmatmul.mubr.msk.bf16.vlgmr.msra.gmra.mxu0 %vm17040_vm0, %v5492_v45  ;;  %v17243_v45 = vld [vmem:[#allocation23_spill] sm:$0xff] }
 0x750   : > { %v5031_v24 = vmul.f32 %v17243_v45, %v17243_v45 }
 0x752   : > { %v5082_v14 = vadd.f32 %v5031_v24, %v5030_v25  ;;  %v17252_v24 = vld [vmem:[#allocation64_spill] sm:$0xff] }
 0x754   : > { %v5083_v50 = vadd.f32 %v5082_v14, %v5032_v56 }
 0x756   : > { %6809 = vmax.xlane.f32.xlu0 %v6808_v60  ;;  %v17244_v60 = vld [vmem:[#allocation20_spill] sm:$0xff] }
 0x757   : > { %v5025_v29 = vmul.f32 %v17244_v60, %v17244_v60 }
 0x75a   : > { %6815 = vmax.xlane.f32.xlu0 %v6814_v61  ;;  %v5076_v61 = vadd.f32 %v5026_v4, %v5025_v29  ;;  %v5034_v29 = vmul.f32 %v17252_v24, %v17252_v24 }
 0x75c   : > { %v5077_v63 = vadd.f32 %v5076_v61, %v5027_v59  ;;  %v17253_v61 = vld [vmem:[#allocation42_spill] sm:$0xff] }
 0x75d   : > { %v5022_v14 = vmul.f32 %v17253_v61, %v17253_v61 }
 0x75e   : > { %6819 = vmax.xlane.f32.xlu0 %v6818_v13  ;;  %v5028_v13 = vmul.f32 %v17247_v36, %v17247_v36 }
 0x75f   : > { %v5071_v7 = vadd.f32 %v5070_v53, %v5022_v14 }
 0x760   : > { %v5078_v56 = vadd.f32 %v5077_v63, %v5028_v13 }
 0x762   : > { %5092 = vadd.xlane.f32.xlu0 %v5091_v57  ;;  %v17248_v57 = vld [vmem:[#allocation47_spill] sm:$0xff]  ;;  %v5079_v39 = vadd.f32 %v5078_v56, %v5029_v51 }
 0x763   : > { %6812 = vmax.xlane.f32.xlu1 %v6811_v38  ;;  %v5033_v38 = vmul.f32 %v17248_v57, %v17248_v57 }
 0x765   : > { %v5084_v55 = vadd.f32 %v5083_v50, %v5033_v38 }
 0x767   : > { %v5085_v20 = vadd.f32 %v5084_v55, %v5034_v29 }
 0x7a8   : > { %v6083_v18 = vpop.permute.xlu1 %6082 }
 0x7a9   : > { %v6081_v4 = vpop.permute.xlu0 %6080  ;;  %v6095_v25 = vsel %vm17040_vm0, %v6083_v18, 0.0  ;;  %v5023_v18 = vmul.f32 %v17254_v62, %v17254_v62 }
 0x7aa   : > { %v6092_v59 = vsel %vm17040_vm0, %v6081_v4, 0.0  ;;  %6096 = vadd.xlane.f32.xlu0 %v6095_v25  ;;  %v5024_v4 = vmul.f32 %v17255_v16, %v17255_v16 }
 0x7ab   : > { %6093 = vadd.xlane.f32.xlu1 %v6092_v59  ;;  %v5072_v51 = vadd.f32 %v5071_v7, %v5023_v18 }
 0x7ad   : > { %v6085_v33 = vpop.permute.xlu1 %6084  ;;  %v5073_v37 = vadd.f32 %v5072_v51, %v5024_v4 }
 0x7ae   : > { %5080 = vadd.xlane.f32.xlu0 %v5079_v39  ;;  %v6098_v63 = vsel %vm17040_vm0, %v6085_v33, 0.0 }
 0x7af   : > { %5086 = vadd.xlane.f32.xlu1 %v5085_v20 }
 0x7b1   : > { %v6087_v40 = vpop.permute.xlu1 %6086 }
 0x7b2   : > { %v6101_v13 = vsel %vm17039_vm6, %v6087_v40, 0.0 }
 0x7b3   : > { %6099 = vadd.xlane.f32.xlu1 %v6098_v63  ;;  %6102 = vadd.xlane.f32.xlu0 %v6101_v13 }
 0x7b7   : > { %5074 = vadd.xlane.f32.xlu1 %v5073_v37 }
 0x7df   : > { %v15097_v55 = vpop.xlane.xlu0 %6809 }
 0x7e0   : > { %17256 = vst [vmem:[#allocation25_spill] sm:$0xff] %v15097_v55  ;;  %vm6821_vm4 = vcmp.eq.f32.partialorder %v14842_v49, %v15097_v55 }
 0x7e3   : > { %v15099_v39 = vpop.xlane.xlu0 %6815 }
 0x7e4   : > { %17257 = vst [vmem:[#allocation24_spill] sm:$0xff] %v15099_v39  ;;  %vm6823_vm7 = vcmp.eq.f32.partialorder %v14848_v31, %v15099_v39 }
 0x7e7   : > { %v15101_v53 = vpop.xlane.xlu0 %6819 }
 0x7e8   : > { %17258 = vst [vmem:[#allocation48_spill] sm:$0xff] %v15101_v53  ;;  %vm6824_vm10 = vcmp.eq.f32.partialorder %v14850_v42, %v15101_v53 }
 0x7eb   : > { %v5093_v20 = vpop.xlane.xlu0 %5092 }
 0x7ec   : > { %11571 = vrsqrt.f32 %v5093_v20  ;;  %vm5159_vm14 = vcmp.eq.f32.partialorder %v5093_v20, inf  ;;  %v5162_v59 = vand.u32 2147483648, %v5093_v20  ;;  %vm5161_vm3 = vcmp.eq.f32.partialorder %v5093_v20, 0.0  ;;  %v15157_v16 = vpop.xlane.xlu1 %6812 }
 0x7ed   : > { %17263 = vst [vmem:[#allocation22_spill] sm:$0xff] %v15157_v16  ;;  %vm6822_vm9 = vcmp.eq.f32.partialorder %v14846_v52, %v15157_v16 }
 0x7ef   : > { %v15103_v30 = vpop.f32.mrf.mxu0 }
 0x7f1   : > { %v15105_v50 = vpop.f32.mrf.mxu0 }
 0x7f3   : > { %v15107_v33 = vpop.f32.mrf.mxu0 }
 0x7f5   : > { %v15109_v40 = vpop.f32.mrf.mxu0 }
 0x7f7   : > { %v15111_v38 = vpop.f32.mrf.mxu0 }
 0x7f8   : > { %17259 = vst [vmem:[#allocation38_spill] sm:$0xff] %v15111_v38 }
 0x7f9   : > { %v11572_v7 = vpop.eup %11571  ;;  %v15113_v25 = vpop.f32.mrf.mxu0 }
 0x7fa   : > { %v5158_v29 = vmul.f32 %v11572_v7, %v5093_v20  ;;  %v5674_v7 = vmul.f32 %v15105_v50, %v15105_v50  ;;  %v5684_v26 = vmul.f32 %v15113_v25, %v15113_v25 }
 0x7fb   : > { %v15115_v56 = vpop.f32.mrf.mxu0 }
 0x7fc   : > { %17260 = vst [vmem:[#allocation49_spill] sm:$0xff] %v15115_v56  ;;  %v5160_v14 = vsel %vm5159_vm14, %v5093_v20, %v5158_v29  ;;  %v5679_v20 = vmul.f32 %v15109_v40, %v15109_v40  ;;  %v5673_v29 = vmul.f32 %v15103_v30, %v15103_v30 }
 0x7fd   : > { %v5163_v18 = vsel %vm5161_vm3, %v5162_v59, %v5160_v14  ;;  %v15117_v4 = vpop.f32.mrf.mxu0 }
 0x7fe   : > { %17261 = vst [vmem:[#allocation65_spill] sm:$0xff] %v15117_v4  ;;  %v5209_v63 = vadd.f32 1e-16, %v5163_v18  ;;  %v5678_v18 = vmul.f32 %v15107_v33, %v15107_v33  ;;  %v5689_v17 = vmul.f32 %v15117_v4, %v15117_v4 }
 0x7ff   : > { %v15119_v13 = vpop.f32.mrf.mxu0 }
 0x800   : > { %11573 = vrcp.f32 %v5209_v63  ;;  %v5675_v59 = vmul.f32 %v15119_v13, %v15119_v13  ;;  %v5693_v63 = vadd.f32 %v5674_v7, %v5673_v29  ;;  %v5699_v10 = vadd.f32 %v5679_v20, %v5678_v18 }
 0x801   : > { %v15121_v51 = vpop.f32.mrf.mxu0  ;;  %v5683_v20 = vmul.f32 %v15111_v38, %v15111_v38 }
 0x802   : > { %v5694_v54 = vadd.f32 %v5693_v63, %v5675_v59  ;;  %v5676_v44 = vmul.f32 %v15121_v51, %v15121_v51  ;;  %v5688_v63 = vmul.f32 %v15115_v56, %v15115_v56 }
 0x803   : > { %v15123_v37 = vpop.f32.mrf.mxu0 }
 0x804   : > { %v5680_v7 = vmul.f32 %v15123_v37, %v15123_v37 }
 0x805   : > { %v15125_v9 = vpop.f32.mrf.mxu0 }
 0x807   : > { %v15129_v21 = vpop.f32.mrf.mxu0 }
 0x808   : > { %v5685_v18 = vmul.f32 %v15129_v21, %v15129_v21 }
 0x809   : > { %v15137_v14 = vpop.f32.mrf.mxu0 }
 0x80a   : > { %v5686_v49 = vmul.f32 %v15137_v14, %v15137_v14 }
 0x80b   : > { %v15141_v41 = vpop.f32.mrf.mxu0 }
 0x80c   : > { %17262 = vst [vmem:[#allocation21_spill] sm:$0xff] %v15141_v41  ;;  %v5690_v1 = vmul.f32 %v15141_v41, %v15141_v41  ;;  %v6825_v41 = vsel %vm6821_vm4, %v14859_v43, 50 }
 0x80d   : > { %v15147_v58 = vpop.eup %11573  ;;  %v15155_v29 = vpop.f32.mrf.mxu0 }
 0x80e   : > { %v15165_v4 = vmul.f32 %v15147_v58, %v17235_v48  ;;  %v15169_v59 = vmul.f32 %v15147_v58, %v15051_v23  ;;  %v15179_v38 = vmul.f32 %v15147_v58, %v17236_v47  ;;  %v15183_v48 = vmul.f32 %v15147_v58, %v17237_v3 }
 0x80f   : > { %v15175_v28 = vpop.f32.mrf.mxu0  ;;  %v5705_v23 = vadd.f32 %v5684_v26, %v5683_v20  ;;  %v5713_v47 = vsel %vm17086_vm8, %v5689_v17, 0.0  ;;  %v5700_v3 = vadd.f32 %v5699_v10, %v5680_v7  ;;  %v5695_v26 = vadd.f32 %v5694_v54, %v5676_v44 }
 0x810   : > { %17264 = vst [vmem:[#allocation23_spill] sm:$0xff] %v15169_v59  ;;  %17265 = vst [vmem:[#allocation20_spill] sm:$0xff] %v15175_v28  ;;  %5803 = vmatprep.subr.mxu1 %v15165_v4  ;;  %5888 = vmatprep.subr.mxu0 %v15169_v59  ;;  %v5681_v20 = vmul.f32 %v15125_v9, %v15125_v9  ;;  %v5712_v17 = vsel %vm17086_vm8, %v5688_v63, 0.0  ;;  %v5715_v10 = vsel %vm17086_vm8, %v5690_v1, 0.0  ;;  %v6826_v1 = vsel %vm6822_vm9, %v14859_v43, 50 }
 0x811   : > { %17266 = vst [vmem:[#allocation44_spill] sm:$0xff] %v15179_v38  ;;  %17267 = vst [vmem:[#allocation46_spill] sm:$0xff] %v15183_v48  ;;  %v15196_v56 = vpop.f32.mrf.mxu0  ;;  %5804 = vmatpush1.xpose.msra.mxu1 %v15179_v38  ;;  %5889 = vmatpush1.xpose.msra.mxu0 %v15183_v48  ;;  %v5706_v59 = vadd.f32 %v5705_v23, %v5685_v18  ;;  %v5691_v7 = vmul.f32 %v15155_v29, %v15155_v29  ;;  %v6827_v63 = vsel %vm6823_vm7, %v14859_v43, 50 }
 0x812   : > { %17268 = vst [vmem:[#allocation45_spill] sm:$0xff] %v15196_v56  ;;  %v5677_v55 = vmul.f32 %v15196_v56, %v15196_v56  ;;  %v5714_v54 = vadd.f32 %v5713_v47, %v5712_v17  ;;  %v5687_v44 = vmul.f32 %v15175_v28, %v15175_v28  ;;  %v15219_v56 = vsel %vm6807_vm12, %v6825_v41, 2147483647 }
 0x813   : > { %v15210_v38 = vpop.f32.mrf.mxu0  ;;  %v5707_v17 = vadd.f32 %v5706_v59, %v5686_v49  ;;  %v5717_v41 = vsel %vm17086_vm8, %v5691_v7, 0.0  ;;  %v6831_v16 = vshra.s32 %v15219_v56, 16  ;;  %v15237_v31 = vsel %vm5283_vm5, %v6826_v1, 2147483647 }
 0x814   : > { %17269 = vst [vmem:[#allocation47_spill] sm:$0xff] %v15210_v38  ;;  %v5696_v18 = vadd.f32 %v5695_v26, %v5677_v55  ;;  %v5692_v23 = vmul.f32 %v15210_v38, %v15210_v38  ;;  %v5716_v47 = vadd.f32 %v5715_v10, %v5714_v54  ;;  %v5701_v26 = vadd.f32 %v5700_v3, %v5681_v20 }
 0x815   : > { %v15216_v48 = vpop.f32.mrf.mxu0  ;;  %v5708_v52 = vadd.f32 %v5707_v17, %v5687_v44  ;;  %v15240_v10 = vsel %vm5283_vm5, %v6827_v63, 2147483647  ;;  %v6828_v59 = vsel %vm6824_vm10, %v14859_v43, 50  ;;  %v15243_v20 = vcvt.s32.f32 %v6831_v16 }
 0x816   : > { %v5682_v55 = vmul.f32 %v15216_v48, %v15216_v48  ;;  %5697 = vadd.xlane.f32.xlu0 %v5696_v18  ;;  %v5719_v28 = vsel %vm17086_vm8, %v5692_v23, 0.0  ;;  %v5718_v49 = vadd.f32 %v5717_v41, %v5716_v47  ;;  %v6846_v7 = vshra.s32 %v15237_v31, 16 }
 0x817   : > { %v6861_v54 = vshra.s32 %v15240_v10, 16  ;;  %v15248_v44 = vsel %vm17041_vm13, %v6828_v59, 2147483647 }
 0x818   : > { %v5702_v38 = vadd.f32 %v5701_v26, %v5682_v55  ;;  %v5720_v3 = vadd.f32 %v5719_v28, %v5718_v49  ;;  %v15251_v18 = vcvt.s32.f32 %v6846_v7 }
 0x81a   : > { %5703 = vadd.xlane.f32.xlu1 %v5702_v38  ;;  %5709 = vadd.xlane.f32.xlu0 %v5708_v52  ;;  %v15253_v38 = vcvt.s32.f32 %v6861_v54  ;;  %v6876_v52 = vshra.s32 %v15248_v44, 16 }
 0x81c   : > { %v15258_v28 = vcvt.s32.f32 %v6876_v52 }
 0x81e   : > { %5721 = vadd.xlane.f32.xlu1 %v5720_v3  ;;  %6834 = vmin.xlane.f32.xlu0 %v15243_v20 }
 0x822   : > { %6849 = vmin.xlane.f32.xlu1 %v15251_v18  ;;  %6864 = vmin.xlane.f32.xlu0 %v15253_v38 }
 0x826   : > { %6879 = vmin.xlane.f32.xlu1 %v15258_v28 }
 0x833   : > { %v6097_v16 = vpop.xlane.xlu0 %6096 }
 0x834   : > { %v6094_v23 = vpop.xlane.xlu1 %6093  ;;  %11575 = vrcp.f32 %v6097_v16 }
 0x835   : > { %11577 = vrcp.f32 %v6094_v23 }
 0x837   : > { %v5081_v1 = vpop.xlane.xlu0 %5080 }
 0x838   : > { %v5087_v63 = vpop.xlane.xlu1 %5086  ;;  %11579 = vrsqrt.f32 %v5081_v1  ;;  %vm5145_vm11 = vcmp.eq.f32.partialorder %v5081_v1, inf  ;;  %v5148_v23 = vand.u32 2147483648, %v5081_v1  ;;  %vm5147_vm2 = vcmp.eq.f32.partialorder %v5081_v1, 0.0 }
 0x839   : > { %11581 = vrsqrt.f32 %v5087_v63  ;;  %vm5152_vm15 = vcmp.eq.f32.partialorder %v5087_v63, inf  ;;  %vm5154_vm14 = vcmp.eq.f32.partialorder %v5087_v63, 0.0 }
 0x83c   : > { %v6100_v47 = vpop.xlane.xlu1 %6099  ;;  %v6103_v55 = vpop.xlane.xlu0 %6102 }
 0x83d   : > { %11583 = vrcp.f32 %v6100_v47  ;;  %v5155_v47 = vand.u32 2147483648, %v5087_v63 }
 0x83e   : > { %11585 = vrcp.f32 %v6103_v55 }
 0x840   : > { %v5075_v26 = vpop.xlane.xlu1 %5074 }
 0x841   : > { %v11576_v17 = vpop.eup %11575  ;;  %11587 = vrsqrt.f32 %v5075_v26  ;;  %vm5138_vm3 = vcmp.eq.f32.partialorder %v5075_v26, inf  ;;  %vm5140_vm4 = vcmp.eq.f32.partialorder %v5075_v26, 0.0 }
 0x842   : > { %v11578_v41 = vpop.eup %11577  ;;  %v6109_v49 = vmul.f32 %v11576_v17, %v15014_v11 }
 0x843   : > { %v6108_v59 = vmul.f32 %v11578_v41, %v15017_v34 }
 0x845   : > { %v11580_v3 = vpop.eup %11579  ;;  %v6112_v7 = vpack.c.bf16 %v6109_v49, %v6108_v59 }
 0x846   : > { %v11582_v54 = vpop.eup %11581  ;;  %v5144_v52 = vmul.f32 %v11580_v3, %v5081_v1 }
 0x847   : > { %v5151_v16 = vmul.f32 %v11582_v54, %v5087_v63  ;;  %6116 = vrot.lane.b32.xlu0 %v6112_v7, %s12020_s30 }
 0x848   : > { %v5146_v55 = vsel %vm5145_vm11, %v5081_v1, %v5144_v52  ;;  %v5141_v52 = vand.u32 2147483648, %v5075_v26 }
 0x849   : > { %v5153_v42 = vsel %vm5152_vm15, %v5087_v63, %v5151_v16  ;;  %v5149_v53 = vsel %vm5147_vm2, %v5148_v23, %v5146_v55 }
 0x84a   : > { %v11584_v39 = vpop.eup %11583  ;;  %v5156_v11 = vsel %vm5154_vm14, %v5155_v47, %v5153_v42  ;;  %v5207_v17 = vadd.f32 1e-16, %v5149_v53 }
 0x84b   : > { %v11586_v34 = vpop.eup %11585  ;;  %v5208_v41 = vadd.f32 1e-16, %v5156_v11  ;;  %v6110_v49 = vmul.f32 %v11584_v39, %v15025_v27 }
 0x84c   : > { %11589 = vrcp.f32 %v5207_v17  ;;  %v6111_v59 = vmul.f32 %v11586_v34, %v15029_v32 }
 0x84d   : > { %11591 = vrcp.f32 %v5208_v41 }
 0x84e   : > { %v11588_v3 = vpop.eup %11587  ;;  %v6113_v7 = vpack.c.bf16 %v6111_v59, %v6110_v49  ;;  %v6860_v59 = vand.u32 65535, %v15240_v10 }
 0x84f   : > { %v5137_v54 = vmul.f32 %v11588_v3, %v5075_v26 }
 0x850   : > { %6118 = vrot.lane.b32.xlu1 %v6113_v7, %s12020_s30 }
 0x851   : > { %v5139_v1 = vsel %vm5138_vm3, %v5075_v26, %v5137_v54 }
 0x852   : > { %v5142_v63 = vsel %vm5140_vm4, %v5141_v52, %v5139_v1  ;;  %v6862_v1 = vcvt.s32.f32 %v6860_v59 }
 0x853   : > { %v5206_v42 = vadd.f32 1e-16, %v5142_v63 }
 0x855   : > { %11593 = vrcp.f32 %v5206_v42 }
 0x859   : > { %v15267_v53 = vpop.eup %11589 }
 0x85a   : > { %v15269_v16 = vpop.eup %11591 }
 0x85b   : > { %v15273_v27 = vmul.f32 %v15269_v16, %v17243_v45  ;;  %v15277_v32 = vmul.f32 %v15269_v16, %v17248_v57  ;;  %v15281_v39 = vmul.f32 %v15269_v16, %v17242_v15  ;;  %v15285_v26 = vmul.f32 %v15269_v16, %v17246_v8 }
 0x85c   : > { %v15291_v45 = vmul.f32 %v15267_v53, %v17241_v6  ;;  %v15295_v57 = vmul.f32 %v15267_v53, %v17247_v36  ;;  %v15303_v15 = vmul.f32 %v15267_v53, %v17244_v60  ;;  %v15307_v6 = vmul.f32 %v15267_v53, %v17245_v46 }
 0x85d   : > { %5805 = vmatprep.subr.mxu1 %v15273_v27  ;;  %5890 = vmatprep.subr.mxu0 %v15277_v32 }
 0x85e   : > { %5806 = vmatpush1.xpose.msra.mxu1 %v15281_v39  ;;  %5891 = vmatpush1.xpose.msra.mxu0 %v15285_v26 }
 0x85f   : > { %5807 = vmatprep.subr.mxu1 %v15291_v45  ;;  %5892 = vmatprep.subr.mxu0 %v15295_v57 }
 0x862   : > { %v15309_v8 = vpop.eup %11593  ;;  %5808 = vmatpush1.xpose.msra.mxu1 %v15303_v15  ;;  %5893 = vmatpush1.xpose.msra.mxu0 %v15307_v6 }
 0x863   : > { %v15315_v36 = vmul.f32 %v15309_v8, %v17251_v35  ;;  %v15319_v23 = vmul.f32 %v15309_v8, %v17254_v62  ;;  %v15323_v60 = vmul.f32 %v15309_v8, %v17250_v22  ;;  %v15327_v46 = vmul.f32 %v15309_v8, %v17253_v61 }
 0x864   : > { %v15333_v35 = vmul.f32 %v15147_v58, %v17240_v19  ;;  %v15337_v62 = vand.u32 %v14816_v5, %v14728_v2  ;;  %v6830_v58 = vand.u32 65535, %v15219_v56  ;;  %v6845_v5 = vand.u32 65535, %v15237_v31 }
 0x865   : > { %5809 = vmatprep.subr.mxu1 %v15315_v36  ;;  %5894 = vmatprep.subr.mxu0 %v15319_v23  ;;  %v6875_v56 = vand.u32 65535, %v15248_v44 }
 0x866   : > { %17270 = vst [vmem:[#allocation18_spill] sm:$0xff] %v15333_v35  ;;  %17271 = vst [vmem:[#allocation19_spill] sm:$0xff] %v15337_v62  ;;  %5810 = vmatpush1.xpose.msra.mxu1 %v15323_v60  ;;  %5895 = vmatpush1.xpose.msra.mxu0 %v15327_v46  ;;  %v6832_v11 = vcvt.s32.f32 %v6830_v58  ;;  %v6847_v49 = vcvt.s32.f32 %v6845_v5 }
 0x867   : > { %10836 = vmatprep.subr.mxu1 %v15333_v35  ;;  %6337 = vmatprep.subr.bf16.mxu0 %v15337_v62  ;;  %v6877_v52 = vcvt.s32.f32 %v6875_v56 }
 0x89f   : > { %v5698_v22 = vpop.xlane.xlu0 %5697 }
 0x8a0   : > { %11595 = vrsqrt.f32 %v5698_v22  ;;  %vm5725_vm11 = vcmp.eq.f32.partialorder %v5698_v22, inf  ;;  %vm5727_vm15 = vcmp.eq.f32.partialorder %v5698_v22, 0.0 }
 0x8a3   : > { %v5704_v61 = vpop.xlane.xlu1 %5703  ;;  %v5710_v47 = vpop.xlane.xlu0 %5709 }
 0x8a4   : > { %11597 = vrsqrt.f32 %v5704_v61  ;;  %vm5732_vm14 = vcmp.eq.f32.partialorder %v5704_v61, inf  ;;  %vm5734_vm3 = vcmp.eq.f32.partialorder %v5704_v61, 0.0  ;;  %vm5739_vm4 = vcmp.eq.f32.partialorder %v5710_v47, inf }
 0x8a5   : > { %11599 = vrsqrt.f32 %v5710_v47 }
 0x8a7   : > { %v5722_v19 = vpop.xlane.xlu1 %5721  ;;  %v15344_v55 = vpop.xlane.xlu0 %6834 }
 0x8a8   : > { %11601 = vrsqrt.f32 %v5722_v19  ;;  %vm6836_vm7 = vcmp.eq.f32.partialorder %v15243_v20, %v15344_v55  ;;  %v5728_v20 = vand.u32 2147483648, %v5698_v22 }
 0x8a9   : > { %v6837_v17 = vsel %vm6836_vm7, %v6832_v11, inf  ;;  %vm5741_vm7 = vcmp.eq.f32.partialorder %v5710_v47, 0.0 }
 0x8aa   : > { %6838 = vmin.xlane.f32.xlu1 %v6837_v17 }
 0x8ab   : > { %v15349_v34 = vpop.xlane.xlu1 %6849  ;;  %v15351_v41 = vpop.xlane.xlu0 %6864 }
 0x8ac   : > { %vm6851_vm9 = vcmp.eq.f32.partialorder %v15251_v18, %v15349_v34  ;;  %vm6866_vm10 = vcmp.eq.f32.partialorder %v15253_v38, %v15351_v41  ;;  %v5735_v38 = vand.u32 2147483648, %v5704_v61 }
 0x8ad   : > { %v11596_v31 = vpop.eup %11595  ;;  %v6852_v3 = vsel %vm6851_vm9, %v6847_v49, inf  ;;  %v6867_v42 = vsel %vm6866_vm10, %v6862_v1, inf  ;;  %vm5746_vm9 = vcmp.eq.f32.partialorder %v5722_v19, inf  ;;  %vm5748_vm10 = vcmp.eq.f32.partialorder %v5722_v19, 0.0 }
 0x8ae   : > { %v5724_v7 = vmul.f32 %v11596_v31, %v5698_v22  ;;  %6853 = vmin.xlane.f32.xlu0 %v6852_v3 }
 0x8af   : > { %v15359_v54 = vpop.xlane.xlu1 %6879 }
 0x8b0   : > { %v5726_v63 = vsel %vm5725_vm11, %v5698_v22, %v5724_v7  ;;  %vm6881_vm2 = vcmp.eq.f32.partialorder %v15258_v28, %v15359_v54  ;;  %v5742_v22 = vand.u32 2147483648, %v5710_v47 }
 0x8b1   : > { %v11598_v10 = vpop.eup %11597  ;;  %v5729_v44 = vsel %vm5727_vm15, %v5728_v20, %v5726_v63  ;;  %v6882_v18 = vsel %vm6881_vm2, %v6877_v52, inf  ;;  %v5749_v52 = vand.u32 2147483648, %v5722_v19 }
 0x8b2   : > { %v11600_v58 = vpop.eup %11599  ;;  %v5751_v5 = vadd.f32 1e-16, %v5729_v44  ;;  %v5731_v11 = vmul.f32 %v11598_v10, %v5704_v61  ;;  %6883 = vmin.xlane.f32.xlu1 %v6882_v18  ;;  %6868 = vmin.xlane.f32.xlu0 %v6867_v42 }
 0x8b3   : > { %v5738_v17 = vmul.f32 %v11600_v58, %v5710_v47  ;;  %v15369_v58 = vand.u32 %v14813_v0, %v14728_v2 }
 0x8b4   : > { %11603 = vrcp.f32 %v5751_v5  ;;  %v5733_v49 = vsel %vm5732_vm14, %v5704_v61, %v5731_v11  ;;  %v15373_v5 = vmul.f32 %v15269_v16, %v17252_v24 }
 0x8b5   : > { %v11602_v56 = vpop.eup %11601  ;;  %v5736_v59 = vsel %vm5734_vm3, %v5735_v38, %v5733_v49  ;;  %v5740_v28 = vsel %vm5739_vm4, %v5710_v47, %v5738_v17  ;;  %17272 = vst [vmem:[#allocation64_spill] sm:$0xff] %v15369_v58 }
 0x8b6   : > { %v5752_v31 = vadd.f32 1e-16, %v5736_v59  ;;  %v5743_v3 = vsel %vm5741_vm7, %v5742_v22, %v5740_v28  ;;  %v5745_v7 = vmul.f32 %v11602_v56, %v5722_v19  ;;  %v17277_v22 = vld [vmem:[#allocation62_spill] sm:$0xff]  ;;  %v17279_v59 = vld [vmem:[#allocation21_spill] sm:$0xff] }
 0x8b7   : > { %v5753_v20 = vadd.f32 1e-16, %v5743_v3 }
 0x8b8   : > { %11605 = vrcp.f32 %v5752_v31  ;;  %v5747_v1 = vsel %vm5746_vm9, %v5722_v19, %v5745_v7  ;;  %v17280_v31 = vld [vmem:[#allocation45_spill] sm:$0xff] }
 0x8b9   : > { %11607 = vrcp.f32 %v5753_v20  ;;  %v5750_v63 = vsel %vm5748_vm10, %v5749_v52, %v5747_v1  ;;  %v6117_v52 = vpop.permute.xlu0 %6116  ;;  %v17284_v1 = vld [vmem:[#allocation4_spill] sm:$0xff] }
 0x8ba   : > { %v5754_v10 = vadd.f32 1e-16, %v5750_v63  ;;  %v15416_v63 = vand.u32 %v17284_v1, %v14728_v2 }
 0x8bc   : > { %11609 = vrcp.f32 %v5754_v10  ;;  %17285 = vst [vmem:[#allocation43_spill] sm:$0xff] %v15416_v63  ;;  %v17286_v10 = vld [vmem:[#allocation20_spill] sm:$0xff] }
 0x8c1   : > { %v11604_v61 = vpop.eup %11603 }
 0x8c2   : > { %v5760_v44 = vmul.f32 %v11604_v61, %v15105_v50  ;;  %v5762_v18 = vmul.f32 %v11604_v61, %v15121_v51  ;;  %v5759_v47 = vmul.f32 %v11604_v61, %v15103_v30  ;;  %v5761_v42 = vmul.f32 %v11604_v61, %v15119_v13 }
 0x8c3   : > { %v5763_v3 = vmul.f32 %v11604_v61, %v17280_v31 }
 0x8c4   : > { %5843 = vmatprep.mubr.f32.mxu1 %v5760_v44  ;;  %5928 = vmatprep.mubr.f32.mxu0 %v5762_v18  ;;  %v17287_v44 = vld [vmem:[#allocation44_spill] sm:$0xff]  ;;  %v17288_v18 = vld [vmem:[#allocation5_spill] sm:$0xff] }
 0x8c5   : > { %v11606_v19 = vpop.eup %11605  ;;  %5844 = vmatmul.mubr.f32.vlgmr.msra.gmra.mxu1 %v5759_v47  ;;  %5929 = vmatmul.mubr.f32.vlgmr.msra.gmra.mxu0 %v5761_v42  ;;  %v17289_v47 = vld [vmem:[#allocation47_spill] sm:$0xff] }
 0x8c6   : > { %v11608_v50 = vpop.eup %11607  ;;  %10837 = vmatpush3.xpose.msra.mxu1 %v15333_v35  ;;  %6338 = vmatpush1.bf16.msra.mxu0 %v15369_v58  ;;  %v5765_v30 = vmul.f32 %v11606_v19, %v15109_v40  ;;  %v5767_v13 = vmul.f32 %v11606_v19, %v15125_v9  ;;  %v5764_v51 = vmul.f32 %v11606_v19, %v15107_v33  ;;  %v17273_v9 = vld [vmem:[#allocation3_spill] sm:$0xff] }
 0x8c7   : > { %10838 = vmatprep.subr.mxu1 %v15373_v5  ;;  %6339 = vmatprep.subr.bf16.mxu0 %v14810_v12  ;;  %v5766_v0 = vmul.f32 %v11606_v19, %v15123_v37  ;;  %v5770_v16 = vmul.f32 %v11608_v50, %v15113_v25  ;;  %v5772_v11 = vmul.f32 %v11608_v50, %v15137_v14  ;;  %v17274_v33 = vld [vmem:[#allocation63_spill] sm:$0xff]  ;;  %v17275_v37 = vld [vmem:[#allocation38_spill] sm:$0xff]  ;;  %v17276_v25 = vld [vmem:[#allocation65_spill] sm:$0xff] }
 0x8c8   : > { %5848 = vmatprep.mubr.f32.mxu1 %v5765_v30  ;;  %5933 = vmatprep.mubr.f32.mxu0 %v5767_v13  ;;  %v15389_v40 = vmul.f32 %v15267_v53, %v17274_v33  ;;  %v5769_v38 = vmul.f32 %v11608_v50, %v17275_v37  ;;  %v5771_v17 = vmul.f32 %v11608_v50, %v15129_v21  ;;  %v17278_v21 = vld [vmem:[#allocation49_spill] sm:$0xff] }
 0x8c9   : > { %v11610_v24 = vpop.eup %11609  ;;  %5849 = vmatmul.mubr.f32.gmra.mxu1 %v5764_v51  ;;  %5934 = vmatmul.mubr.f32.gmra.mxu0 %v5766_v0  ;;  %v15399_v53 = vmul.f32 %v15309_v8, %v17277_v22  ;;  %v17283_v8 = vmov 0   ;;  %v5768_v20 = vmul.f32 %v11606_v19, %v15216_v48  ;;  %v5773_v61 = vmul.f32 %v11608_v50, %v17286_v10  ;;  %v17290_v48 = vld [vmem:[#allocation11_spill] sm:$0xff]  ;;  %v17292_v30 = vld [vmem:[#allocation73_spill] sm:$0xff]  ;;  %v6119_v50 = vpop.permute.xlu1 %6118 }
 0x8ca   : > { %10839 = vmatpush3.xpose.msra.mxu1 %v15373_v5  ;;  %6340 = vmatpush1.bf16.msra.mxu0 %v17273_v9  ;;  %v5775_v14 = vmul.f32 %v11610_v24, %v17276_v25  ;;  %v5777_v49 = vmul.f32 %v11610_v24, %v15155_v29  ;;  %v5774_v56 = vmul.f32 %v11610_v24, %v17278_v21  ;;  %v17281_v29 = vld [vmem:[#allocation74_spill] sm:$0xff]  ;;  %v17300_v21 = vld [vmem:[#allocation48_spill] sm:$0xff] }
 0x8cb   : > { %5853 = vmatprep.mubr.f32.mxu1 %v5770_v16  ;;  %5938 = vmatprep.mubr.f32.mxu0 %v5772_v11  ;;  %v5776_v28 = vmul.f32 %v11610_v24, %v17279_v59  ;;  %v15408_v7 = vand.u32 %v17281_v29, %v14728_v2  ;;  %v5778_v42 = vmul.f32 %v11610_v24, %v17289_v47 }
 0x8cc   : > { %10840 = vmatprep.subr.mxu1 %v15389_v40  ;;  %6556 = vmatprep.subr.mxu0 %v15165_v4  ;;  %v15428_v19 = vand.u32 %v17290_v48, %v14728_v2  ;;  %v17293_v2 = vld [vmem:[#allocation8_spill] sm:$0xff] }
 0x8cd   : > { %5854 = vmatmul.mubr.f32.gmra.mxu1 %v5769_v38  ;;  %5939 = vmatmul.mubr.f32.gmra.mxu0 %v5771_v17  ;;  %17282 = vst [vmem:[#allocation42_spill] sm:$0xff] %v15408_v7 }
 0x8ce   : > { %10841 = vmatpush3.xpose.msra.mxu1 %v15389_v40  ;;  %5858 = vmatprep.mubr.f32.mxu1 %v5775_v14  ;;  %17291 = vst [vmem:[#allocation63_spill] sm:$0xff] %v15428_v19 }
 0x8cf   : > { %5943 = vmatprep.mubr.f32.mxu0 %v5777_v49  ;;  %10842 = vmatprep.subr.mxu1 %v15399_v53  ;;  %v17299_v49 = vld [vmem:[#allocation24_spill] sm:$0xff] }
 0x8d0   : > { %v6895_v22 = vadd.f32 1.0, %v17299_v49 }
 0x8d1   : > { %5859 = vmatmul.mubr.f32.gmra.mxu1 %v5774_v56  ;;  %5944 = vmatmul.mubr.f32.gmra.mxu0 %v5776_v28  ;;  %v6896_v56 = vadd.f32 1.0, %v17300_v21 }
 0x8d2   : > { %10843 = vmatpush3.xpose.msra.mxu1 %v15399_v53  ;;  %10844 = vmatprep.mubr.f32.mxu1 %v5763_v3 }
 0x8d3   : > { %6284 = vmatprep.subr.bf16.mxu1 %v15408_v7  ;;  %6357 = vmatprep.mubr.bf16.mxu0 %v17283_v8 }
 0x8d5   : > { %10845 = vmatmul.mubr.f32.vlgmr.msra.gmra.mxu1 %v5768_v20  ;;  %10263 = vmatmul.mubr.msk.bf16.vlgmr.msra.gmra.mxu0 %vm17040_vm0, %v6117_v52 }
 0x8d6   : > { %6285 = vmatpush1.bf16.msra.mxu1 %v15416_v63  ;;  %6557 = vmatpush1.xpose.msra.mxu0 %v17287_v44 }
 0x8d7   : > { %10847 = vmatprep.mubr.f32.mxu1 %v5773_v61  ;;  %6286 = vmatprep.subr.bf16.mxu1 %v17288_v18 }
 0x8d8   : > { %6558 = vmatprep.subr.mxu0 %v15273_v27  ;;  %6367 = vmatprep.mubr.bf16.mxu0 %v17283_v8  ;;  %v17294_v27 = vld [vmem:[#allocation23_spill] sm:$0xff] }
 0x8d9   : > { %10848 = vmatmul.mubr.f32.gmra.mxu1 %v5778_v42 }
 0x8da   : > { %6287 = vmatpush1.bf16.msra.mxu1 %v17292_v30  ;;  %6559 = vmatpush1.xpose.msra.mxu0 %v15281_v39  ;;  %v17295_v39 = vld [vmem:[#allocation46_spill] sm:$0xff] }
 0x8db   : > { %10850 = vmatprep.subr.bf16.mxu1 %v15428_v19  ;;  %6560 = vmatprep.subr.mxu0 %v15291_v45  ;;  %v17296_v45 = vld [vmem:[#allocation75_spill] sm:$0xff] }
 0x8dc   : > { %6304 = vmatprep.mubr.bf16.mxu1 %v17283_v8 }
 0x8dd   : > { %10261 = vmatmul.mubr.msk.bf16.vlgmr.msra.gmra.mxu1 %vm17040_vm0, %v6117_v52  ;;  %10264 = vmatmul.mubr.msk.bf16.gmra.mxu0 %vm17040_vm0, %v6119_v50 }
 0x8de   : > { %10851 = vmatpush3.bf16.msra.mxu1 %v15428_v19  ;;  %6561 = vmatpush1.xpose.msra.mxu0 %v15303_v15  ;;  %v6841_v15 = vcvt.f32.s32 %v15344_v55 }
 0x8df   : > { %10852 = vmatprep.subr.bf16.mxu1 %v17293_v2  ;;  %6562 = vmatprep.subr.mxu0 %v15315_v36  ;;  %v6856_v36 = vcvt.f32.s32 %v15349_v34 }
 0x8e0   : > { %6314 = vmatprep.mubr.bf16.mxu1 %v17283_v8  ;;  %v6842_v51 = vshll.u32 %v6841_v15, 16 }
 0x8e1   : > { %v6857_v0 = vshll.u32 %v6856_v36, 16 }
 0x8e2   : > { %10853 = vmatpush3.bf16.msra.mxu1 %v17293_v2  ;;  %6563 = vmatpush1.xpose.msra.mxu0 %v15323_v60 }
 0x8e3   : > { %6641 = vmatprep.subr.mxu1 %v17294_v27  ;;  %10858 = vmatprep.subr.mxu0 %v15333_v35 }
 0x8e5   : > { %10262 = vmatmul.mubr.msk.bf16.gmra.mxu1 %vm17040_vm0, %v6119_v50 }
 0x8e6   : > { %10854 = vmatprep.mubr.msk.bf16.mxu1 %vm17040_vm0, %v6117_v52 }
 0x8ed   : > { %10855 = vmatmul.mubr.msk.bf16.vlgmr.msra.gmra.mxu1 %vm17040_vm0, %v6119_v50  ;;  %v17301_v50 = vld [vmem:[#allocation14_spill] sm:$0xff] }
 0x8ee   : > { %6642 = vmatpush1.xpose.msra.mxu1 %v17295_v39  ;;  %v6918_v15 = vrot.slane %v17301_v50, 7 }
 0x8ef   : > { %6643 = vmatprep.subr.mxu1 %v15277_v32  ;;  %v6871_v32 = vcvt.f32.s32 %v15351_v41 }
 0x8f1   : > { %v6872_v11 = vshll.u32 %v6871_v32, 16 }
 0x8f2   : > { %6644 = vmatpush1.xpose.msra.mxu1 %v15285_v26  ;;  %v6886_v26 = vcvt.f32.s32 %v15359_v54  ;;  %v17298_v54 = vld [vmem:[#allocation25_spill] sm:$0xff] }
 0x8f3   : > { %6645 = vmatprep.subr.mxu1 %v15295_v57  ;;  %v6893_v38 = vadd.f32 1.0, %v17298_v54 }
 0x8f4   : > { %v6887_v55 = vshll.u32 %v6886_v26, 16  ;;  %v17304_v26 = vld [vmem:[#allocation82_spill] sm:$0xff] }
 0x8f6   : > { %6646 = vmatpush1.xpose.msra.mxu1 %v15307_v6 }
 0x8f7   : > { %6647 = vmatprep.subr.mxu1 %v15319_v23 }
 0x8fa   : > { %6648 = vmatpush1.xpose.msra.mxu1 %v15327_v46  ;;  %v17297_v46 = vld [vmem:[#allocation22_spill] sm:$0xff] }
 0x8fb   : > { %7126 = vmatprep.subr.bf16.mxu1 %v17296_v45  ;;  %v6894_v16 = vadd.f32 1.0, %v17297_v46 }
 0x933   : > { %v6839_v60 = vpop.xlane.xlu1 %6838 }
 0x934   : > { %v6840_v13 = vcvt.f32.s32 %v6839_v60  ;;  %v17302_v60 = vld [vmem:[#allocation80_spill] sm:$0xff] }
 0x936   : > { %v15461_v6 = vadd.s32 %v6842_v51, %v6840_v13  ;;  %v6919_v13 = vrot.slane %v17302_v60, 7  ;;  %v17303_v51 = vld [vmem:[#allocation81_spill] sm:$0xff] }
 0x937   : > { %v6854_v57 = vpop.xlane.xlu0 %6853  ;;  %v6921_v32 = vrot.slane %v17303_v51, 7 }
 0x938   : > { %v6855_v23 = vcvt.f32.s32 %v6854_v57  ;;  %vm6889_vm15 = vcmp.eq.s32.totalorder %v14859_v43, %v15461_v6  ;;  %v6923_v57 = vrot.slane %v17304_v26, 7  ;;  %v6920_v46 = vsel %vm17086_vm8, %v6918_v15, %v6919_v13 }
 0x939   : > { %v6897_v59 = vsel %vm6889_vm15, %v6893_v38, 0.0 }
 0x93a   : > { %v15463_v24 = vadd.s32 %v6857_v0, %v6855_v23  ;;  %v6901_v52 = vsel %vm6807_vm12, %v6897_v59, -inf }
 0x93b   : > { %v6884_v33 = vpop.xlane.xlu1 %6883  ;;  %v6869_v34 = vpop.xlane.xlu0 %6868 }
 0x93c   : > { %vm6890_vm11 = vcmp.eq.s32.totalorder %v14859_v43, %v15463_v24  ;;  %v6885_v37 = vcvt.f32.s32 %v6884_v33  ;;  %v6870_v41 = vcvt.f32.s32 %v6869_v34 }
 0x93d   : > { %v6898_v17 = vsel %vm6890_vm11, %v6894_v16, 0.0  ;;  %v6922_v16 = vsel %vm17086_vm8, %v6919_v13, %v6921_v32 }
 0x93e   : > { %v15474_v25 = vadd.s32 %v6887_v55, %v6885_v37  ;;  %v15476_v14 = vadd.s32 %v6872_v11, %v6870_v41  ;;  %v6902_v28 = vsel %vm5283_vm5, %v6898_v17, -inf  ;;  %v6924_v11 = vsel %vm17086_vm8, %v6921_v32, %v6923_v57 }
 0x93f   : > { %v6905_v10 = vmax.f32 %v6901_v52, %v6902_v28  ;;  %v17305_v32 = vmov 0.0  }
 0x940   : > { %vm6892_vm2 = vcmp.eq.s32.totalorder %v14859_v43, %v15474_v25  ;;  %vm6891_vm14 = vcmp.eq.s32.totalorder %v14859_v43, %v15476_v14 }
 0x941   : > { %v6900_v31 = vsel %vm6892_vm2, %v6896_v56, 0.0  ;;  %v6899_v3 = vsel %vm6891_vm14, %v6895_v22, 0.0 }
 0x942   : > { %v6904_v29 = vsel %vm17041_vm13, %v6900_v31, -inf  ;;  %v6903_v20 = vsel %vm5283_vm5, %v6899_v3, -inf }
 0x943   : > { %v6906_v1 = vmax.f32 %v6903_v20, %v6904_v29 }
 0x945   : > { %v6907_v61 = vmax.f32 %v6905_v10, %v6906_v1 }
 0x947   : > { %v6908_v47 = vrot.slane %v6907_v61, 4 }
 0x949   : > { %v6909_v42 = vmax.f32 %v6907_v61, %v6908_v47 }
 0x94b   : > { %v6910_v48 = vrot.slane %v6909_v42, 2 }
 0x94d   : > { %v6911_v36 = vmax.f32 %v6909_v42, %v6910_v48 }
 0x94f   : > { %v6912_v0 = vrot.slane %v6911_v36, 1 }
 0x951   : > { %v6913_v23 = vmax.f32 %v6911_v36, %v6912_v0 }
 0x953   : > { %vm6914_vm3 = vcmp.eq.f32.partialorder %v6897_v59, %v6913_v23  ;;  %vm6915_vm4 = vcmp.eq.f32.partialorder %v6898_v17, %v6913_v23  ;;  %vm6916_vm7 = vcmp.eq.f32.partialorder %v6899_v3, %v6913_v23  ;;  %vm6917_vm9 = vcmp.eq.f32.partialorder %v6900_v31, %v6913_v23 }
 0x954   : > { %v6925_v55 = vsel %vm6914_vm3, %v6918_v15, 25  ;;  %v6926_v33 = vsel %vm6915_vm4, %v6920_v46, 25  ;;  %v6927_v34 = vsel %vm6916_vm7, %v6922_v16, 25  ;;  %v6928_v37 = vsel %vm6917_vm9, %v6924_v11, 25 }
 0x955   : > { %v6929_v41 = vsel %vm6807_vm12, %v6925_v55, 2147483647  ;;  %v6930_v54 = vsel %vm5283_vm5, %v6926_v33, 2147483647  ;;  %v6931_v38 = vsel %vm5283_vm5, %v6927_v34, 2147483647 }
 0x956   : > { %v6932_v49 = vsel %vm17041_vm13, %v6928_v37, 2147483647  ;;  %vm6933_vm10 = vcmp.lt.s32.totalorder %v6929_v41, %v6930_v54 }
 0x957   : > { %v6934_v22 = vsel %vm6933_vm10, %v6929_v41, %v6930_v54  ;;  %vm6935_vm1 = vcmp.lt.s32.totalorder %v6931_v38, %v6932_v49 }
 0x958   : > { %v6936_v21 = vsel %vm6935_vm1, %v6931_v38, %v6932_v49 }
 0x959   : > { %vm6937_vm6 = vcmp.lt.s32.totalorder %v6934_v22, %v6936_v21 }
 0x95a   : > { %v6938_v17 = vsel %vm6937_vm6, %v6934_v22, %v6936_v21 }
 0x95b   : > { %v6939_v56 = vrot.slane %v6938_v17, 4 }
 0x95d   : > { %vm6940_vm0 = vcmp.lt.s32.totalorder %v6938_v17, %v6939_v56 }
 0x95e   : > { %v6941_v59 = vsel %vm6940_vm0, %v6938_v17, %v6939_v56 }
 0x95f   : > { %v6942_v28 = vrot.slane %v6941_v59, 2 }
 0x961   : > { %vm6943_vm3 = vcmp.lt.s32.totalorder %v6941_v59, %v6942_v28 }
 0x962   : > { %v6944_v31 = vsel %vm6943_vm3, %v6941_v59, %v6942_v28 }
 0x963   : > { %v6945_v3 = vrot.slane %v6944_v31, 1 }
 0x965   : > { %vm6946_vm4 = vcmp.lt.s32.totalorder %v6944_v31, %v6945_v3 }
 0x966   : > { %v6947_v29 = vsel %vm6946_vm4, %v6944_v31, %v6945_v3 }
 0x967   : > { %vm6948_vm7 = vcmp.eq.s32.totalorder %v6947_v29, %v17301_v50  ;;  %vm6949_vm9 = vcmp.eq.s32.totalorder %v6947_v29, %v17302_v60  ;;  %vm6950_vm13 = vcmp.eq.s32.totalorder %v6947_v29, %v17303_v51  ;;  %vm6951_vm10 = vcmp.eq.s32.totalorder %v6947_v29, %v17304_v26  ;;  %v17316_v60 = vld [vmem:[#allocation78_spill] sm:$0xff] }
 0x968   : > { %v6952_v20 = vsel %vm6948_vm7, 1, %v17283_v8  ;;  %v6953_v52 = vsel %vm6949_vm9, 1, %v17283_v8  ;;  %v6954_v1 = vsel %vm6950_vm13, 1, %v17283_v8  ;;  %v6955_v10 = vsel %vm6951_vm10, 1, %v17283_v8 }
 0x969   : > { %v6956_v61 = vrot.slane %v6952_v20, 7  ;;  %v6957_v47 = vrot.slane %v6953_v52, 7  ;;  %v6959_v42 = vrot.slane %v6954_v1, 7  ;;  %v6961_v48 = vrot.slane %v6955_v10, 7 }
 0x96a   : > { %vm6991_vm10 = vcmask 203777  }
 0x96b   : > { %vm6963_vm0 = vcmp.ne.s32.totalorder %v6956_v61, 0  ;;  %v6958_v15 = vsel %vm17086_vm8, %v6956_v61, %v6957_v47  ;;  %v6960_v36 = vsel %vm17086_vm8, %v6957_v47, %v6959_v42  ;;  %v6962_v13 = vsel %vm17086_vm8, %v6959_v42, %v6961_v48 }
 0x96c   : > { %vm6967_vm6 = vmand %vm6889_vm15, %vm6963_vm0  ;;  %vm6964_vm1 = vcmp.ne.s32.totalorder %v6958_v15, 0  ;;  %vm6965_vm3 = vcmp.ne.s32.totalorder %v6960_v36, 0  ;;  %vm6966_vm13 = vcmp.ne.s32.totalorder %v6962_v13, 0 }
 0x96d   : > { %v6971_v57 = vsel %vm6967_vm6, 1.0, %v17305_v32  ;;  %vm6968_vm4 = vmand %vm6890_vm11, %vm6964_vm1  ;;  %vm17307_vm11 = vcmask 203776   ;;  %vm7001_vm6 = vcmask 197632  }
 0x96e   : > { %v6975_v0 = vsel %vm6807_vm12, %v6971_v57, -inf  ;;  %v6972_v23 = vsel %vm6968_vm4, 1.0, %v17305_v32  ;;  %vm6969_vm7 = vmand %vm6891_vm14, %vm6965_vm3  ;;  %vm17306_vm12 = vcmask 402432   ;;  %vm17309_vm14 = vcmask 196608  }
 0x96f   : > { %6976 = vmax.xlane.f32.xlu0 %v6975_v0  ;;  %v6978_v6 = vsel %vm5283_vm5, %v6972_v23, -inf  ;;  %v6973_v46 = vsel %vm6969_vm7, 1.0, %v17305_v32  ;;  %vm6970_vm15 = vmand %vm6892_vm2, %vm6966_vm13  ;;  %vm7668_vm13 = vcmask 408777   ;;  %vm17320_vm7 = vcmask 408776  }
 0x970   : > { %6979 = vmax.xlane.f32.xlu1 %v6978_v6  ;;  %v6974_v24 = vsel %vm6970_vm15, 1.0, %v17305_v32  ;;  %v6981_v16 = vsel %vm5283_vm5, %v6973_v46, -inf  ;;  %vm17308_vm2 = vmmov %vm17307_vm11  ;;  %vm7678_vm15 = vcmask 402632  }
 0x971   : > { %v6984_v11 = vsel %vm17306_vm12, %v6974_v24, -inf  ;;  %vm17310_vm9 = vmmov %vm17308_vm2 }
 0x972   : > { %vm17314_vm0 = vmmov %vm17308_vm2 }
 0x973   : > { %6982 = vmax.xlane.f32.xlu0 %v6981_v16  ;;  %vm17317_vm1 = vmmov %vm17314_vm0 }
 0x974   : > { %6985 = vmax.xlane.f32.xlu1 %v6984_v11  ;;  %vm17318_vm3 = vmmov %vm17314_vm0 }
 0x975   : > { %vm17319_vm4 = vmmov %vm17314_vm0 }
 0x985   : > { %v5845_v14 = vpop.f32.mrf.mxu1  ;;  %v5930_v55 = vpop.f32.mrf.mxu0 }
 0x986   : > { %v5931_v33 = vadd.f32 %v5930_v55, %v5845_v14 }
 0x987   : > { %v5847_v34 = vpop.f32.mrf.mxu1  ;;  %v5932_v37 = vpop.f32.mrf.mxu0 }
 0x989   : > { %v5850_v41 = vpop.f32.mrf.mxu1  ;;  %v5935_v54 = vpop.f32.mrf.mxu0 }
 0x98a   : > { %v5936_v38 = vadd.f32 %v5935_v54, %v5850_v41 }
 0x98b   : > { %v5852_v49 = vpop.f32.mrf.mxu1  ;;  %v5937_v25 = vpop.f32.mrf.mxu0 }
 0x98d   : > { %v5855_v22 = vpop.f32.mrf.mxu1  ;;  %v5940_v21 = vpop.f32.mrf.mxu0 }
 0x98e   : > { %v5941_v17 = vadd.f32 %v5940_v21, %v5855_v22 }
 0x98f   : > { %v5857_v56 = vpop.f32.mrf.mxu1  ;;  %v5942_v59 = vpop.f32.mrf.mxu0 }
 0x991   : > { %v5860_v28 = vpop.f32.mrf.mxu1  ;;  %v5945_v31 = vpop.f32.mrf.mxu0 }
 0x992   : > { %v5946_v3 = vadd.f32 %v5945_v31, %v5860_v28 }
 0x993   : > { %v5862_v29 = vpop.f32.mrf.mxu1  ;;  %v5947_v20 = vpop.f32.mrf.mxu0 }
 0x995   : > { %v10846_v52 = vpop.f32.mrf.mxu1  ;;  %v15553_v55 = vpop.f32.mrf.mxu0 }
 0x996   : > { %v6021_v1 = vadd.f32 %v10846_v52, %v5936_v38 }
 0x997   : > { %v6015_v10 = vpop.f32.mrf.mxu1  ;;  %v15557_v34 = vpop.f32.mrf.mxu0 }
 0x998   : > { %v6016_v61 = vadd.f32 %v6015_v10, %v5931_v33  ;;  %v6035_v42 = vsel %vm17307_vm11, %v6021_v1, -inf }
 0x999   : > { %v10849_v47 = vpop.f32.mrf.mxu1  ;;  %v15561_v41 = vpop.f32.mrf.mxu0 }
 0x99a   : > { %v6034_v48 = vsel %vm17308_vm2, %v6016_v61, -inf  ;;  %v6031_v15 = vadd.f32 %v10849_v47, %v5946_v3 }
 0x99b   : > { %v6038_v36 = vmax.f32 %v6034_v48, %v6035_v42  ;;  %v6025_v13 = vpop.f32.mrf.mxu1  ;;  %v15565_v38 = vpop.f32.mrf.mxu0 }
 0x99c   : > { %v6026_v57 = vadd.f32 %v6025_v13, %v5941_v17  ;;  %v6037_v0 = vsel %vm17309_vm14, %v6031_v15, -inf }
 0x99d   : > { %v15545_v24 = vpop.f32.mrf.mxu1  ;;  %v15569_v25 = vpop.f32.mrf.mxu0 }
 0x99e   : > { %v6036_v23 = vsel %vm17310_vm9, %v6026_v57, -inf  ;;  %v6427_v31 = vmul.f32 %v15545_v24, %v15545_v24 }
 0x99f   : > { %v6039_v6 = vmax.f32 %v6036_v23, %v6037_v0  ;;  %v15547_v16 = vpop.f32.mrf.mxu1  ;;  %v15573_v21 = vpop.f32.mrf.mxu0  ;;  %v6429_v0 = vmul.f32 %v15553_v55, %v15553_v55 }
 0x9a0   : > { %v6428_v17 = vmul.f32 %v15547_v16, %v15547_v16 }
 0x9a1   : > { %v15543_v46 = vmax.f32 %v6038_v36, %v6039_v6  ;;  %v15549_v11 = vpop.f32.mrf.mxu1  ;;  %v15585_v3 = vpop.f32.mrf.mxu0  ;;  %v17312_v36 = vld [vmem:[#allocation6_spill] sm:$0xff] }
 0x9a2   : > { %v6432_v52 = vmul.f32 %v15549_v11, %v15549_v11  ;;  %v6447_v1 = vadd.f32 %v6428_v17, %v6427_v31  ;;  %v6444_v48 = vmul.f32 %v15585_v3, %v15585_v3  ;;  %v17313_v17 = vld [vmem:[#allocation77_spill] sm:$0xff]  ;;  %v6434_v31 = vmul.f32 %v15561_v41, %v15561_v41 }
 0x9a3   : > { %17311 = vst [vmem:[#allocation38_spill] sm:$0xff] %v15543_v46  ;;  %v15551_v14 = vpop.f32.mrf.mxu1  ;;  %v15611_v46 = vpop.f32.mrf.mxu0 }
 0x9a4   : > { %v6433_v28 = vmul.f32 %v15551_v14, %v15551_v14 }
 0x9a5   : > { %v15555_v33 = vpop.f32.mrf.mxu1 }
 0x9a6   : > { %v6437_v10 = vmul.f32 %v15555_v33, %v15555_v33  ;;  %v6453_v15 = vadd.f32 %v6433_v28, %v6432_v52  ;;  %v6439_v52 = vmul.f32 %v15569_v25, %v15569_v25 }
 0x9a7   : > { %v15559_v37 = vpop.f32.mrf.mxu1 }
 0x9a8   : > { %v6438_v29 = vmul.f32 %v15559_v37, %v15559_v37  ;;  %v6454_v26 = vadd.f32 %v6453_v15, %v6434_v31  ;;  %v6440_v31 = vmul.f32 %v15573_v21, %v15573_v21 }
 0x9a9   : > { %v15563_v54 = vpop.f32.mrf.mxu1 }
 0x9aa   : > { %v6442_v20 = vmul.f32 %v15563_v54, %v15563_v54  ;;  %v6459_v23 = vadd.f32 %v6438_v29, %v6437_v10  ;;  %v6448_v10 = vadd.f32 %v6447_v1, %v6429_v0  ;;  %v6435_v0 = vmul.f32 %v15565_v38, %v15565_v38 }
 0x9ab   : > { %v15567_v49 = vpop.f32.mrf.mxu1 }
 0x9ac   : > { %v6443_v56 = vmul.f32 %v15567_v49, %v15567_v49  ;;  %v6465_v6 = vsel %vm17086_vm8, %v6442_v20, 0.0  ;;  %v6460_v1 = vadd.f32 %v6459_v23, %v6439_v52 }
 0x9ad   : > { %v15571_v22 = vpop.f32.mrf.mxu1 }
 0x9ae   : > { %v6466_v61 = vsel %vm17086_vm8, %v6443_v56, 0.0  ;;  %v6441_v45 = vmul.f32 %v15571_v22, %v15571_v22 }
 0x9af   : > { %v15579_v59 = vpop.f32.mrf.mxu1  ;;  %v6467_v32 = vadd.f32 %v6466_v61, %v6465_v6  ;;  %v6468_v61 = vsel %vm17086_vm8, %v6444_v48, 0.0 }
 0x9b0   : > { %v6431_v51 = vmul.f32 %v15579_v59, %v15579_v59 }
 0x9b1   : > { %v15596_v47 = vpop.f32.mrf.mxu1  ;;  %v6469_v15 = vadd.f32 %v6468_v61, %v6467_v32  ;;  %v6461_v32 = vadd.f32 %v6460_v1, %v6440_v31 }
 0x9f8   : > { %v6977_v42 = vpop.xlane.xlu0 %6976 }
 0x9f9   : > { %v15601_v13 = vmul.f32 %v6977_v42, %v17312_v36  ;;  %v6980_v57 = vpop.xlane.xlu1 %6979  ;;  %v15617_v42 = vpop.f32.mrf.mxu1  ;;  %v6430_v36 = vmul.f32 %v15557_v34, %v15557_v34 }
 0x9fa   : > { %v15607_v56 = vmul.f32 %v6980_v57, %v17313_v17  ;;  %v17315_v57 = vld [vmem:[#allocation17_spill] sm:$0xff]  ;;  %v6436_v48 = vmul.f32 %v15617_v42, %v15617_v42 }
 0x9fb   : > { %v6992_v28 = vsel %vm6991_vm10, %v15601_v13, -inf  ;;  %v6449_v52 = vadd.f32 %v6448_v10, %v6430_v36 }
 0x9fc   : > { %6993 = vmax.xlane.f32.xlu0 %v6992_v28  ;;  %v6983_v29 = vpop.xlane.xlu0 %6982  ;;  %v6995_v20 = vsel %vm17314_vm0, %v15607_v56, -inf  ;;  %v6445_v28 = vmul.f32 %v15611_v46, %v15611_v46 }
 0x9fd   : > { %v15625_v6 = vmul.f32 %v6983_v29, %v17315_v57  ;;  %6996 = vmax.xlane.f32.xlu1 %v6995_v20  ;;  %v6986_v17 = vpop.xlane.xlu1 %6985  ;;  %v6446_v20 = vmul.f32 %v15596_v47, %v15596_v47  ;;  %v6455_v57 = vadd.f32 %v6454_v26, %v6435_v0  ;;  %v6450_v2 = vadd.f32 %v6449_v52, %v6431_v51 }
 0x9fe   : > { %v15632_v50 = vmul.f32 %v6986_v17, %v17316_v60  ;;  %v6470_v17 = vsel %vm17086_vm8, %v6445_v28, 0.0 }
 0x9ff   : > { %v6998_v29 = vsel %vm17317_vm1, %v15625_v6, -inf  ;;  %v6456_v61 = vadd.f32 %v6455_v57, %v6436_v48  ;;  %v6471_v19 = vadd.f32 %v6470_v17, %v6469_v15  ;;  %v6472_v30 = vsel %vm17086_vm8, %v6446_v20, 0.0 }
 0xa00   : > { %6999 = vmax.xlane.f32.xlu0 %v6998_v29  ;;  %v7002_v23 = vsel %vm7001_vm6, %v15632_v50, -inf  ;;  %v6462_v29 = vadd.f32 %v6461_v32, %v6441_v45 }
 0xa01   : > { %7003 = vmax.xlane.f32.xlu1 %v7002_v23  ;;  %v6473_v18 = vadd.f32 %v6472_v30, %v6471_v19 }
 0xa04   : > { %6451 = vadd.xlane.f32.xlu0 %v6450_v2 }
 0xa05   : > { %6457 = vadd.xlane.f32.xlu1 %v6456_v61 }
 0xa08   : > { %6463 = vadd.xlane.f32.xlu0 %v6462_v29 }
 0xa09   : > { %6474 = vadd.xlane.f32.xlu1 %v6473_v18 }
 0xa85   : > { %v6994_v10 = vpop.xlane.xlu0 %6993 }
 0xa86   : > { %v7005_v26 = vsub.f32 %v15601_v13, %v6994_v10  ;;  %v6997_v36 = vpop.xlane.xlu1 %6996 }
 0xa87   : > { %v7006_v28 = vsub.f32 %v15607_v56, %v6997_v36  ;;  %v7669_v36 = vsel %vm7668_vm13, %v15601_v13, -inf  ;;  %vm17321_vm13 = vmmov %vm17320_vm7 }
 0xa88   : > { %v7009_v0 = vmul.f32 1.442695, %v7005_v26 }
 0xa89   : > { %v7011_v23 = vmul.f32 1.442695, %v7006_v28  ;;  %v7000_v51 = vpop.xlane.xlu0 %6999  ;;  %v7672_v28 = vsel %vm17320_vm7, %v15607_v56, -inf  ;;  %vm17330_vm7 = vcmask 203776  }
 0xa8a   : > { %11611 = vpow2.f32 %v7009_v0  ;;  %v7007_v1 = vsub.f32 %v15625_v6, %v7000_v51  ;;  %v7004_v2 = vpop.xlane.xlu1 %7003 }
 0xa8b   : > { %11613 = vpow2.f32 %v7011_v23  ;;  %v7008_v48 = vsub.f32 %v15632_v50, %v7004_v2 }
 0xa8c   : > { %v7013_v45 = vmul.f32 1.442695, %v7007_v1 }
 0xa8d   : > { %v7015_v19 = vmul.f32 1.442695, %v7008_v48  ;;  %v6452_v30 = vpop.xlane.xlu0 %6451 }
 0xa8e   : > { %11615 = vpow2.f32 %v7013_v45  ;;  %v6458_v18 = vpop.xlane.xlu1 %6457  ;;  %vm6478_vm12 = vcmp.eq.f32.partialorder %v6452_v30, inf  ;;  %vm6480_vm11 = vcmp.eq.f32.partialorder %v6452_v30, 0.0  ;;  %v6481_v51 = vand.u32 2147483648, %v6452_v30 }
 0xa8f   : > { %11617 = vpow2.f32 %v7015_v19  ;;  %vm6485_vm2 = vcmp.eq.f32.partialorder %v6458_v18, inf  ;;  %vm6487_vm14 = vcmp.eq.f32.partialorder %v6458_v18, 0.0  ;;  %v6488_v48 = vand.u32 2147483648, %v6458_v18 }
 0xa90   : > { %11619 = vrsqrt.f32 %v6452_v30 }
 0xa91   : > { %11621 = vrsqrt.f32 %v6458_v18  ;;  %v6464_v15 = vpop.xlane.xlu0 %6463 }
 0xa92   : > { %11623 = vrsqrt.f32 %v6464_v15  ;;  %v6475_v31 = vpop.xlane.xlu1 %6474  ;;  %vm6492_vm9 = vcmp.eq.f32.partialorder %v6464_v15, inf  ;;  %vm6494_vm0 = vcmp.eq.f32.partialorder %v6464_v15, 0.0  ;;  %v6495_v63 = vand.u32 2147483648, %v6464_v15 }
 0xa93   : > { %11625 = vrsqrt.f32 %v6475_v31  ;;  %vm6499_vm1 = vcmp.eq.f32.partialorder %v6475_v31, inf  ;;  %v6502_v62 = vand.u32 2147483648, %v6475_v31 }
 0xa97   : > { %v15654_v20 = vpop.eup %11611 }
 0xa98   : > { %v15656_v52 = vpop.eup %11613  ;;  %v7017_v57 = vsel %vm6991_vm10, %v15654_v20, 0.0 }
 0xa99   : > { %7018 = vadd.xlane.f32.xlu0 %v7017_v57  ;;  %v7020_v17 = vsel %vm17318_vm3, %v15656_v52, 0.0  ;;  %vm6501_vm3 = vcmp.eq.f32.partialorder %v6475_v31, 0.0 }
 0xa9a   : > { %7021 = vadd.xlane.f32.xlu1 %v7020_v17 }
 0xa9b   : > { %v15662_v32 = vpop.eup %11615 }
 0xa9c   : > { %v15664_v61 = vpop.eup %11617  ;;  %v7023_v29 = vsel %vm17319_vm4, %v15662_v32, 0.0  ;;  %vm7039_vm4 = vsmask.f32 7424 }
 0xa9d   : > { %v11620_v10 = vpop.eup %11619  ;;  %7024 = vadd.xlane.f32.xlu0 %v7023_v29  ;;  %v7026_v26 = vsel %vm7001_vm6, %v15664_v61, 0.0 }
 0xa9e   : > { %v11622_v0 = vpop.eup %11621  ;;  %v6477_v23 = vmul.f32 %v11620_v10, %v6452_v30  ;;  %7027 = vadd.xlane.f32.xlu1 %v7026_v26 }
 0xa9f   : > { %v11624_v1 = vpop.eup %11623  ;;  %v6484_v2 = vmul.f32 %v11622_v0, %v6458_v18 }
 0xaa0   : > { %v11626_v45 = vpop.eup %11625  ;;  %v6479_v19 = vsel %vm6478_vm12, %v6452_v30, %v6477_v23  ;;  %v6491_v57 = vmul.f32 %v11624_v1, %v6464_v15  ;;  %v7675_v30 = vsel %vm17321_vm13, %v15625_v6, -inf  ;;  %v17322_v1 = vld [vmem:[#allocation83_spill] sm:$0xff]  ;;  %vm17333_vm12 = vmmov %vm17330_vm7  ;;  %vm17342_vm13 = vcmask 196608  }
 0xaa1   : > { %v6482_v17 = vsel %vm6480_vm11, %v6481_v51, %v6479_v19  ;;  %v6486_v29 = vsel %vm6485_vm2, %v6458_v18, %v6484_v2  ;;  %v6498_v7 = vmul.f32 %v11626_v45, %v6475_v31  ;;  %7670 = vmax.xlane.f32.xlu0 %v7669_v36  ;;  %v7679_v36 = vsel %vm7678_vm15, %v15632_v50, -inf  ;;  %v17324_v2 = vld [vmem:[#allocation13_spill] sm:$0xff]  ;;  %vm17331_vm15 = vmmov %vm17330_vm7 }
 0xaa2   : > { %v6504_v10 = vadd.f32 1e-16, %v6482_v17  ;;  %v6489_v9 = vsel %vm6487_vm14, %v6488_v48, %v6486_v29  ;;  %v6493_v12 = vsel %vm6492_vm9, %v6464_v15, %v6491_v57  ;;  %7673 = vmax.xlane.f32.xlu1 %v7672_v28  ;;  %vm17334_vm11 = vmmov %vm17330_vm7  ;;  %vm8290_vm9 = vcmask 408578  }
 0xaa3   : > { %v6505_v26 = vadd.f32 1e-16, %v6489_v9  ;;  %v6496_v0 = vsel %vm6494_vm0, %v6495_v63, %v6493_v12  ;;  %v6500_v58 = vsel %vm6499_vm1, %v6475_v31, %v6498_v7  ;;  %vm17335_vm2 = vmmov %vm17330_vm7  ;;  %vm17087_vm0 = vcmask 403456  }
 0xaa4   : > { %11627 = vrcp.f32 %v6504_v10  ;;  %v6506_v23 = vadd.f32 1e-16, %v6496_v0  ;;  %v6503_v18 = vsel %vm6501_vm3, %v6502_v62, %v6500_v58  ;;  %vm17336_vm14 = vmmov %vm17335_vm2 }
 0xaa5   : > { %11629 = vrcp.f32 %v6505_v26  ;;  %7676 = vmax.xlane.f32.xlu0 %v7675_v30  ;;  %v6507_v15 = vadd.f32 1e-16, %v6503_v18  ;;  %vm17340_vm1 = vmmov %vm17335_vm2 }
 0xaa6   : > { %7680 = vmax.xlane.f32.xlu1 %v7679_v36  ;;  %11631 = vrcp.f32 %v6506_v23  ;;  %vm17341_vm3 = vmmov %vm17340_vm1 }
 0xaa7   : > { %11633 = vrcp.f32 %v6507_v15 }
 0xab1   : > { %v11628_v9 = vpop.eup %11627 }
 0xab2   : > { %v11630_v12 = vpop.eup %11629  ;;  %v6513_v7 = vmul.f32 %v11628_v9, %v15547_v16  ;;  %v6515_v63 = vmul.f32 %v11628_v9, %v15557_v34  ;;  %v6512_v31 = vmul.f32 %v11628_v9, %v15545_v24  ;;  %v6514_v28 = vmul.f32 %v11628_v9, %v15553_v55 }
 0xab3   : > { %v6518_v62 = vmul.f32 %v11630_v12, %v15551_v14  ;;  %v6520_v58 = vmul.f32 %v11630_v12, %v15565_v38  ;;  %v11632_v51 = vpop.eup %11631  ;;  %v6517_v16 = vmul.f32 %v11630_v12, %v15549_v11  ;;  %v6519_v24 = vmul.f32 %v11630_v12, %v15561_v41  ;;  %v17323_v14 = vld [vmem:[#allocation84_spill] sm:$0xff] }
 0xab4   : > { %6596 = vmatprep.mubr.f32.mxu0 %v6513_v7  ;;  %6681 = vmatprep.mubr.f32.mxu1 %v6515_v63  ;;  %v11634_v55 = vpop.eup %11633  ;;  %v6523_v34 = vmul.f32 %v11632_v51, %v15559_v37  ;;  %v6525_v38 = vmul.f32 %v11632_v51, %v15573_v21  ;;  %v6522_v11 = vmul.f32 %v11632_v51, %v15555_v33  ;;  %v17326_v21 = vld [vmem:[#allocation7_spill] sm:$0xff] }
 0xab5   : > { %6597 = vmatmul.mubr.f32.vlgmr.msra.gmra.mxu0 %v6512_v31  ;;  %6682 = vmatmul.mubr.f32.vlgmr.msra.gmra.mxu1 %v6514_v28  ;;  %v6524_v41 = vmul.f32 %v11632_v51, %v15569_v25  ;;  %v6528_v48 = vmul.f32 %v11634_v55, %v15567_v49  ;;  %v6530_v37 = vmul.f32 %v11634_v55, %v15611_v46  ;;  %v17325_v49 = vld [vmem:[#allocation2_spill] sm:$0xff] }
 0xab6   : > { %10859 = vmatpush3.xpose.msra.mxu0 %v15333_v35  ;;  %7127 = vmatpush1.bf16.msra.mxu1 %v17322_v1  ;;  %v6529_v33 = vmul.f32 %v11634_v55, %v15585_v3  ;;  %v6516_v25 = vmul.f32 %v11628_v9, %v15579_v59  ;;  %v6521_v46 = vmul.f32 %v11630_v12, %v15617_v42  ;;  %v17328_v3 = vld [vmem:[#allocation79_spill] sm:$0xff] }
 0xab7   : > { %6601 = vmatprep.mubr.f32.mxu0 %v6518_v62  ;;  %6686 = vmatprep.mubr.f32.mxu1 %v6520_v58  ;;  %v6531_v59 = vmul.f32 %v11634_v55, %v15596_v47 }
 0xab8   : > { %10860 = vmatprep.subr.mxu0 %v15373_v5  ;;  %7128 = vmatprep.subr.bf16.mxu1 %v17323_v14 }
 0xab9   : > { %6602 = vmatmul.mubr.f32.gmra.mxu0 %v6517_v16  ;;  %6687 = vmatmul.mubr.f32.gmra.mxu1 %v6519_v24 }
 0xaba   : > { %10861 = vmatpush3.xpose.msra.mxu0 %v15373_v5  ;;  %7129 = vmatpush1.bf16.msra.mxu1 %v17324_v2  ;;  %v6527_v5 = vmul.f32 %v11634_v55, %v15563_v54  ;;  %v17327_v54 = vld [vmem:[#allocation72_spill] sm:$0xff] }
 0xabb   : > { %6606 = vmatprep.mubr.f32.mxu0 %v6523_v34  ;;  %6691 = vmatprep.mubr.f32.mxu1 %v6525_v38  ;;  %v17332_v34 = vld [vmem:[#allocation76_spill] sm:$0xff] }
 0xabc   : > { %10862 = vmatprep.subr.mxu0 %v15389_v40 }
 0xabd   : > { %6607 = vmatmul.mubr.f32.gmra.mxu0 %v6522_v11  ;;  %6692 = vmatmul.mubr.f32.gmra.mxu1 %v6524_v41 }
 0xabe   : > { %10863 = vmatpush3.xpose.msra.mxu0 %v15389_v40  ;;  %6611 = vmatprep.mubr.f32.mxu0 %v6528_v48  ;;  %v6526_v40 = vmul.f32 %v11632_v51, %v15571_v22  ;;  %v8291_v48 = vsel %vm8290_vm9, %v17316_v60, -inf }
 0xabf   : > { %6696 = vmatprep.mubr.f32.mxu1 %v6530_v37  ;;  %10864 = vmatprep.subr.mxu0 %v15399_v53  ;;  %v17337_v37 = vld [vmem:[#allocation12_spill] sm:$0xff] }
 0xac1   : > { %6612 = vmatmul.mubr.f32.gmra.mxu0 %v6527_v5  ;;  %6697 = vmatmul.mubr.f32.gmra.mxu1 %v6529_v33  ;;  %v8297_v5 = vsel %vm5283_vm5, %v17337_v37, -inf  ;;  %v17338_v33 = vld [vmem:[#allocation10_spill] sm:$0xff] }
 0xac2   : > { %10865 = vmatpush3.xpose.msra.mxu0 %v15399_v53  ;;  %10866 = vmatprep.mubr.f32.mxu0 %v6516_v25  ;;  %v17329_v53 = vld [vmem:[#allocation85_spill] sm:$0xff]  ;;  %v8301_v25 = vsel %vm17087_vm0, %v17338_v33, -inf }
 0xac3   : > { %7073 = vmatprep.subr.bf16.mxu0 %v17325_v49  ;;  %7146 = vmatprep.mubr.bf16.mxu1 %v17283_v8 }
 0xac5   : > { %10867 = vmatmul.mubr.f32.vlgmr.msra.gmra.mxu0 %v6521_v46  ;;  %v17339_v46 = vld [vmem:[#allocation15_spill] sm:$0xff] }
 0xac6   : > { %7074 = vmatpush1.bf16.msra.mxu0 %v17326_v21  ;;  %10869 = vmatprep.mubr.f32.mxu0 %v6526_v40  ;;  %v8294_v40 = vsel %vm5283_vm5, %v17339_v46, -inf }
 0xac7   : > { %7075 = vmatprep.subr.bf16.mxu0 %v17327_v54 }
 0xac9   : > { %10870 = vmatmul.mubr.f32.gmra.mxu0 %v6531_v59 }
 0xaca   : > { %7076 = vmatpush1.bf16.msra.mxu0 %v17328_v3  ;;  %7093 = vmatprep.mubr.bf16.mxu0 %v17283_v8 }
 0xacb   : > { %10872 = vmatprep.subr.bf16.mxu0 %v17329_v53 }
 0xb22   : > { %v7019_v42 = vpop.xlane.xlu0 %7018 }
 0xb23   : > { %11635 = vrcp.f32 %v7019_v42  ;;  %v7022_v45 = vpop.xlane.xlu1 %7021 }
 0xb24   : > { %11637 = vrcp.f32 %v7022_v45 }
 0xb26   : > { %v7025_v22 = vpop.xlane.xlu0 %7024 }
 0xb27   : > { %11639 = vrcp.f32 %v7025_v22  ;;  %v7028_v19 = vpop.xlane.xlu1 %7027 }
 0xb28   : > { %11641 = vrcp.f32 %v7028_v19 }
 0xb2a   : > { %v7671_v57 = vpop.xlane.xlu0 %7670 }
 0xb2b   : > { %v7682_v17 = vsub.f32 %v15601_v13, %v7671_v57  ;;  %v7674_v29 = vpop.xlane.xlu1 %7673 }
 0xb2c   : > { %v7683_v47 = vsub.f32 %v15607_v56, %v7674_v29 }
 0xb2d   : > { %v7686_v10 = vmul.f32 1.442695, %v7682_v17 }
 0xb2e   : > { %v7688_v26 = vmul.f32 1.442695, %v7683_v47  ;;  %v7677_v0 = vpop.xlane.xlu0 %7676 }
 0xb2f   : > { %11643 = vpow2.f32 %v7686_v10  ;;  %v7684_v30 = vsub.f32 %v15625_v6, %v7677_v0  ;;  %v7681_v23 = vpop.xlane.xlu1 %7680 }
 0xb30   : > { %v11636_v18 = vpop.eup %11635  ;;  %11645 = vpow2.f32 %v7688_v26  ;;  %v7685_v36 = vsub.f32 %v15632_v50, %v7681_v23 }
 0xb31   : > { %v11638_v15 = vpop.eup %11637  ;;  %v7033_v9 = vmul.f32 %v11636_v18, %v15654_v20  ;;  %v7690_v12 = vmul.f32 1.442695, %v7684_v30 }
 0xb32   : > { %v7034_v13 = vmul.f32 %v11638_v15, %v15656_v52  ;;  %v7692_v63 = vmul.f32 1.442695, %v7685_v36 }
 0xb33   : > { %11647 = vpow2.f32 %v7690_v12 }
 0xb34   : > { %v11640_v7 = vpop.eup %11639  ;;  %v7037_v56 = vpack.c.bf16 %v7034_v13, %v7033_v9  ;;  %11649 = vpow2.f32 %v7692_v63 }
 0xb35   : > { %v11642_v31 = vpop.eup %11641  ;;  %v7035_v28 = vmul.f32 %v11640_v7, %v15662_v32 }
 0xb36   : > { %v7043_v62 = vshll.u32 %v7037_v56, 16  ;;  %v7036_v6 = vmul.f32 %v11642_v31, %v15664_v61  ;;  %v7041_v50 = vshrl.u32 %v7037_v56, 16 }
 0xb38   : > { %v7038_v58 = vpack.c.bf16 %v7036_v6, %v7035_v28  ;;  %v7045_v51 = vrot.slane %v7043_v62, 1 }
 0xb3a   : > { %v7048_v16 = vshll.u32 %v7038_v58, 16  ;;  %v7046_v24 = vor.u32 %v7045_v51, %v7041_v50  ;;  %v7052_v38 = vshrl.u32 %v7038_v58, 16 }
 0xb3c   : > { %v15722_v20 = vpop.eup %11643  ;;  %v7050_v52 = vrot.slane %v7048_v16, 1 }
 0xb3d   : > { %v15724_v55 = vpop.eup %11645  ;;  %7698 = vrot.lane.b32.xlu0 %v15722_v20, %s12020_s30 }
 0xb3e   : > { %7700 = vrot.lane.b32.xlu1 %v15724_v55, %s12020_s30  ;;  %v7051_v32 = vsel %vm7039_vm4, %v7046_v24, %v7050_v52  ;;  %v7054_v41 = vor.u32 %v7052_v38, %v7050_v52 }
 0xb3f   : > { %10267 = vmatmul.mubr.msk.bf16.vlgmr.msra.gmra.mxu0 %vm17330_vm7, %v7051_v32  ;;  %10269 = vmatmul.mubr.msk.bf16.vlgmr.msra.gmra.mxu1 %vm17331_vm15, %v7051_v32  ;;  %vm17343_vm7 = vmmov %vm17340_vm1 }
 0xb40   : > { %v15733_v61 = vpop.eup %11647  ;;  %10873 = vmatpush3.bf16.msra.mxu0 %v17329_v53  ;;  %7103 = vmatprep.mubr.bf16.mxu0 %v17283_v8  ;;  %vm17353_vm15 = vmmov %vm17340_vm1 }
 0xb41   : > { %10874 = vmatprep.subr.bf16.mxu0 %v17332_v34  ;;  %7156 = vmatprep.mubr.bf16.mxu1 %v17283_v8  ;;  %v15742_v11 = vpop.eup %11649 }
 0xb42   : > { %7702 = vrot.lane.b32.xlu1 %v15733_v61, %s12020_s30 }
 0xb44   : > { %10875 = vmatpush3.bf16.msra.mxu0 %v17332_v34 }
 0xb46   : > { %7704 = vrot.lane.b32.xlu1 %v15742_v11, %s12020_s30 }
 0xb47   : > { %10268 = vmatmul.mubr.msk.bf16.gmra.mxu0 %vm17333_vm12, %v7054_v41  ;;  %10270 = vmatmul.mubr.msk.bf16.gmra.mxu1 %vm17334_vm11, %v7054_v41 }
 0xb48   : > { %10876 = vmatprep.mubr.msk.bf16.mxu0 %vm17335_vm2, %v7051_v32 }
 0xb4f   : > { %10877 = vmatmul.mubr.msk.bf16.vlgmr.msra.gmra.mxu0 %vm17336_vm14, %v7054_v41  ;;  %v17345_v41 = vld [vmem:[#allocation30_spill] sm:$0xff] }
 0xb5c   : > { %8292 = vmax.xlane.f32.xlu0 %v8291_v48  ;;  %v5050_v48 = vmul.f32 %v17345_v41, %v17345_v41 }
 0xb60   : > { %8298 = vmax.xlane.f32.xlu0 %v8297_v5  ;;  %v17346_v5 = vld [vmem:[#allocation31_spill] sm:$0xff] }
 0xb64   : > { %8302 = vmax.xlane.f32.xlu0 %v8301_v25  ;;  %v5051_v25 = vmul.f32 %v17346_v5, %v17346_v5 }
 0xb6a   : > { %8295 = vmax.xlane.f32.xlu1 %v8294_v40  ;;  %v17347_v40 = vld [vmem:[#allocation54_spill] sm:$0xff] }
 0xb75   : > { %v6598_v59 = vpop.f32.mrf.mxu0  ;;  %v6683_v42 = vpop.f32.mrf.mxu1 }
 0xb76   : > { %v6684_v45 = vadd.f32 %v6683_v42, %v6598_v59  ;;  %v5052_v59 = vmul.f32 %v17347_v40, %v17347_v40  ;;  %v17348_v42 = vld [vmem:[#allocation26_spill] sm:$0xff] }
 0xb77   : > { %v6600_v22 = vpop.f32.mrf.mxu0  ;;  %v6685_v19 = vpop.f32.mrf.mxu1 }
 0xb78   : > { %v17349_v22 = vld [vmem:[#allocation27_spill] sm:$0xff] }
 0xb79   : > { %v6603_v57 = vpop.f32.mrf.mxu0  ;;  %v6688_v17 = vpop.f32.mrf.mxu1  ;;  %v5041_v19 = vmul.f32 %v17349_v22, %v17349_v22 }
 0xb7a   : > { %v6689_v29 = vadd.f32 %v6688_v17, %v6603_v57  ;;  %v17350_v17 = vld [vmem:[#allocation29_spill] sm:$0xff] }
 0xb7b   : > { %v6605_v47 = vpop.f32.mrf.mxu0  ;;  %v6690_v10 = vpop.f32.mrf.mxu1 }
 0xb7c   : > { %v5106_v47 = vadd.f32 %v5051_v25, %v5050_v48 }
 0xb7d   : > { %v6608_v26 = vpop.f32.mrf.mxu0  ;;  %v6693_v0 = vpop.f32.mrf.mxu1 }
 0xb7e   : > { %v6694_v30 = vadd.f32 %v6693_v0, %v6608_v26  ;;  %v17351_v0 = vld [vmem:[#allocation28_spill] sm:$0xff] }
 0xb7f   : > { %v6610_v23 = vpop.f32.mrf.mxu0  ;;  %v6695_v18 = vpop.f32.mrf.mxu1 }
 0xb80   : > { %v17352_v23 = vld [vmem:[#allocation50_spill] sm:$0xff] }
 0xb81   : > { %v6613_v36 = vpop.f32.mrf.mxu0  ;;  %v6698_v15 = vpop.f32.mrf.mxu1  ;;  %v5042_v18 = vmul.f32 %v17352_v23, %v17352_v23 }
 0xb82   : > { %v6699_v9 = vadd.f32 %v6698_v15, %v6613_v36  ;;  %v17354_v15 = vld [vmem:[#allocation52_spill] sm:$0xff] }
 0xb83   : > { %v6615_v12 = vpop.f32.mrf.mxu0  ;;  %v6700_v13 = vpop.f32.mrf.mxu1 }
 0xb84   : > { %v17355_v12 = vld [vmem:[#allocation39_spill] sm:$0xff]  ;;  %v17356_v13 = vld [vmem:[#allocation53_spill] sm:$0xff] }
 0xb85   : > { %v10868_v7 = vpop.f32.mrf.mxu0 }
 0xb86   : > { %v6774_v56 = vadd.f32 %v10868_v7, %v6689_v29  ;;  %v5046_v29 = vmul.f32 %v17350_v17, %v17350_v17  ;;  %v15786_v7 = vadd.f32 %v17356_v13, %v17355_v12 }
 0xb87   : > { %v6768_v63 = vpop.f32.mrf.mxu0 }
 0xb88   : > { %v6769_v31 = vadd.f32 %v6768_v63, %v6684_v45  ;;  %v6788_v62 = vsel %vm17340_vm1, %v6774_v56, -inf  ;;  %v5040_v45 = vmul.f32 %v17348_v42, %v17348_v42  ;;  %v5107_v56 = vadd.f32 %v5106_v47, %v5052_v59  ;;  %v17357_v63 = vld [vmem:[#allocation55_spill] sm:$0xff] }
 0xb89   : > { %v10871_v28 = vpop.f32.mrf.mxu0  ;;  %v5048_v48 = vmul.f32 %v15786_v7, %v15786_v7 }
 0xb8a   : > { %v6787_v6 = vsel %vm17341_vm3, %v6769_v31, -inf  ;;  %v6784_v58 = vadd.f32 %v10871_v28, %v6699_v9  ;;  %v5047_v9 = vmul.f32 %v17354_v15, %v17354_v15  ;;  %v5053_v31 = vmul.f32 %v17357_v63, %v17357_v63 }
 0xb8b   : > { %v6791_v51 = vmax.f32 %v6787_v6, %v6788_v62  ;;  %v6778_v50 = vpop.f32.mrf.mxu0  ;;  %v5094_v28 = vadd.f32 %v5041_v19, %v5040_v45  ;;  %v17361_v45 = vld [vmem:[#allocation66_spill] sm:$0xff] }
 0xb8c   : > { %v6779_v16 = vadd.f32 %v6778_v50, %v6694_v30  ;;  %v6790_v24 = vsel %vm17342_vm13, %v6784_v58, -inf  ;;  %v5045_v30 = vmul.f32 %v17351_v0, %v17351_v0  ;;  %v17358_v58 = vld [vmem:[#allocation68_spill] sm:$0xff]  ;;  %v5108_v25 = vadd.f32 %v5107_v56, %v5053_v31 }
 0xb8d   : > { %v5095_v50 = vadd.f32 %v5094_v28, %v5042_v18  ;;  %v5044_v19 = vmul.f32 %v17361_v45, %v17361_v45 }
 0xb8e   : > { %v6789_v52 = vsel %vm17343_vm7, %v6779_v16, -inf  ;;  %v5100_v62 = vadd.f32 %v5046_v29, %v5045_v30  ;;  %v17362_v29 = vld [vmem:[#allocation67_spill] sm:$0xff] }
 0xb8f   : > { %v6792_v32 = vmax.f32 %v6789_v52, %v6790_v24  ;;  %v17360_v24 = vld [vmem:[#allocation51_spill] sm:$0xff]  ;;  %v5049_v47 = vmul.f32 %v17362_v29, %v17362_v29 }
 0xb90   : > { %v5043_v52 = vmul.f32 %v17360_v24, %v17360_v24 }
 0xb91   : > { %v15762_v38 = vmax.f32 %v6791_v51, %v6792_v32  ;;  %v5054_v51 = vmul.f32 %v17358_v58, %v17358_v58  ;;  %v5101_v32 = vadd.f32 %v5100_v62, %v5047_v9 }
 0xb93   : > { %17344 = vst [vmem:[#allocation65_spill] sm:$0xff] %v15762_v38  ;;  %v5102_v30 = vadd.f32 %v5101_v32, %v5048_v48 }
 0xbaf   : > { %v7699_v57 = vpop.permute.xlu0 %7698 }
 0xbb0   : > { %v7701_v10 = vpop.permute.xlu1 %7700  ;;  %v7710_v26 = vsel %vm6991_vm10, %v7699_v57, 0.0  ;;  %vm17359_vm10 = vmmov %vm17340_vm1  ;;  %v5109_v57 = vadd.f32 %v5108_v25, %v5054_v51 }
 0xbb1   : > { %7711 = vadd.xlane.f32.xlu0 %v7710_v26  ;;  %v7713_v36 = vsel %vm17353_vm15, %v7701_v10, 0.0  ;;  %v5096_v26 = vadd.f32 %v5095_v50, %v5043_v52 }
 0xbb2   : > { %7714 = vadd.xlane.f32.xlu1 %v7713_v36  ;;  %v5103_v36 = vadd.f32 %v5102_v30, %v5049_v47 }
 0xbb3   : > { %v5097_v18 = vadd.f32 %v5096_v26, %v5044_v19 }
 0xbb4   : > { %v7703_v6 = vpop.permute.xlu1 %7702 }
 0xbb5   : > { %v7716_v16 = vsel %vm17359_vm10, %v7703_v6, 0.0 }
 0xbb6   : > { %7717 = vadd.xlane.f32.xlu0 %v7716_v16 }
 0xbb8   : > { %v7705_v59 = vpop.permute.xlu1 %7704 }
 0xbb9   : > { %v7719_v10 = vsel %vm7001_vm6, %v7705_v59, 0.0 }
 0xbba   : > { %5110 = vadd.xlane.f32.xlu0 %v5109_v57  ;;  %7720 = vadd.xlane.f32.xlu1 %v7719_v10 }
 0xbbe   : > { %5098 = vadd.xlane.f32.xlu0 %v5097_v18  ;;  %5104 = vadd.xlane.f32.xlu1 %v5103_v36 }
 0xbe5   : > { %v15824_v52 = vpop.xlane.xlu0 %8292 }
 0xbe6   : > { %17363 = vst [vmem:[#allocation62_spill] sm:$0xff] %v15824_v52  ;;  %vm8304_vm6 = vcmp.eq.f32.partialorder %v17316_v60, %v15824_v52 }
 0xbe9   : > { %v15852_v38 = vpop.xlane.xlu0 %8298 }
 0xbea   : > { %17367 = vst [vmem:[#allocation74_spill] sm:$0xff] %v15852_v38  ;;  %vm8306_vm12 = vcmp.eq.f32.partialorder %v17337_v37, %v15852_v38 }
 0xbed   : > { %v15893_v60 = vpop.xlane.xlu0 %8302 }
 0xbee   : > { %17373 = vst [vmem:[#allocation23_spill] sm:$0xff] %v15893_v60  ;;  %vm8307_vm2 = vcmp.eq.f32.partialorder %v17338_v33, %v15893_v60 }
 0xbf3   : > { %v15864_v49 = vpop.xlane.xlu1 %8295 }
 0xbf4   : > { %17369 = vst [vmem:[#allocation20_spill] sm:$0xff] %v15864_v49  ;;  %vm8305_vm11 = vcmp.eq.f32.partialorder %v17339_v46, %v15864_v49  ;;  %v8310_v49 = vsel %vm8306_vm12, %v14859_v43, 50 }
 0xbf5   : > { %v15916_v37 = vsel %vm5283_vm5, %v8310_v49, 2147483647 }
 0xbff   : > { %v15802_v9 = vpop.f32.mrf.mxu0  ;;  %v15804_v12 = vpop.f32.mrf.mxu1 }
 0xc00   : > { %v7216_v32 = vmul.f32 %v15802_v9, %v15802_v9  ;;  %v7218_v26 = vmul.f32 %v15804_v12, %v15804_v12 }
 0xc01   : > { %v15806_v13 = vpop.f32.mrf.mxu0  ;;  %v15808_v56 = vpop.f32.mrf.mxu1 }
 0xc02   : > { %v7217_v51 = vmul.f32 %v15806_v13, %v15806_v13 }
 0xc03   : > { %v15810_v31 = vpop.f32.mrf.mxu0  ;;  %v15812_v28 = vpop.f32.mrf.mxu1 }
 0xc04   : > { %v7236_v59 = vadd.f32 %v7217_v51, %v7216_v32  ;;  %v7221_v30 = vmul.f32 %v15810_v31, %v15810_v31 }
 0xc05   : > { %v15814_v62 = vpop.f32.mrf.mxu0  ;;  %v15816_v6 = vpop.f32.mrf.mxu1 }
 0xc06   : > { %v7222_v57 = vmul.f32 %v15814_v62, %v15814_v62 }
 0xc07   : > { %v15820_v50 = vpop.f32.mrf.mxu0  ;;  %v15822_v16 = vpop.f32.mrf.mxu1 }
 0xc08   : > { %v7226_v19 = vmul.f32 %v15820_v50, %v15820_v50  ;;  %v7242_v34 = vadd.f32 %v7222_v57, %v7221_v30  ;;  %v7228_v53 = vmul.f32 %v15822_v16, %v15822_v16  ;;  %v7223_v57 = vmul.f32 %v15812_v28, %v15812_v28 }
 0xc09   : > { %v15828_v48 = vpop.f32.mrf.mxu0  ;;  %v15830_v25 = vpop.f32.mrf.mxu1 }
 0xc0a   : > { %v7227_v47 = vmul.f32 %v15828_v48, %v15828_v48 }
 0xc0b   : > { %v15838_v10 = vpop.f32.mrf.mxu0  ;;  %v15846_v51 = vpop.f32.mrf.mxu1 }
 0xc0c   : > { %17364 = vst [vmem:[#allocation49_spill] sm:$0xff] %v15838_v10  ;;  %v7248_v18 = vadd.f32 %v7227_v47, %v7226_v19  ;;  %v7231_v36 = vmul.f32 %v15838_v10, %v15838_v10  ;;  %17365 = vst [vmem:[#allocation21_spill] sm:$0xff] %v15846_v51  ;;  %v7237_v19 = vadd.f32 %v7236_v59, %v7218_v26  ;;  %v8308_v26 = vsel %vm8304_vm6, %v14859_v43, 50 }
 0xc0d   : > { %v15850_v32 = vpop.f32.mrf.mxu0  ;;  %v7219_v47 = vmul.f32 %v15808_v56, %v15808_v56  ;;  %v7233_v54 = vmul.f32 %v15846_v51, %v15846_v51  ;;  %v15870_v14 = vpop.f32.mrf.mxu1  ;;  %v7229_v51 = vmul.f32 %v15830_v25, %v15830_v25  ;;  %v7243_v10 = vadd.f32 %v7242_v34, %v7223_v57 }
 0xc0e   : > { %17366 = vst [vmem:[#allocation45_spill] sm:$0xff] %v15850_v32  ;;  %v7232_v3 = vmul.f32 %v15850_v32, %v15850_v32  ;;  %v7254_v30 = vsel %vm17086_vm8, %v7231_v36, 0.0  ;;  %17370 = vst [vmem:[#allocation44_spill] sm:$0xff] %v15870_v14  ;;  %v7249_v59 = vadd.f32 %v7248_v18, %v7228_v53  ;;  %v7224_v53 = vmul.f32 %v15816_v6, %v15816_v6 }
 0xc0f   : > { %v15862_v21 = vpop.f32.mrf.mxu0  ;;  %v7238_v36 = vadd.f32 %v7237_v19, %v7219_v47  ;;  %v7257_v18 = vsel %vm17086_vm8, %v7233_v54, 0.0  ;;  %v15902_v54 = vsel %vm8290_vm9, %v8308_v26, 2147483647 }
 0xc10   : > { %17368 = vst [vmem:[#allocation4_spill] sm:$0xff] %v15862_v21  ;;  %v7255_v2 = vsel %vm17086_vm8, %v7232_v3, 0.0  ;;  %v7230_v52 = vmul.f32 %v15862_v21, %v15862_v21  ;;  %v7250_v34 = vadd.f32 %v7249_v59, %v7229_v51 }
 0xc11   : > { %v7256_v1 = vadd.f32 %v7255_v2, %v7254_v30  ;;  %v15878_v8 = vpop.f32.mrf.mxu0  ;;  %v7234_v2 = vmul.f32 %v15870_v14, %v15870_v14 }
 0xc12   : > { %17371 = vst [vmem:[#allocation47_spill] sm:$0xff] %v15878_v8  ;;  %v7220_v3 = vmul.f32 %v15878_v8, %v15878_v8  ;;  %v8309_v8 = vsel %vm8305_vm11, %v14859_v43, 50  ;;  %v7251_v26 = vadd.f32 %v7250_v34, %v7230_v52  ;;  %v8344_v52 = vshra.s32 %v15916_v37, 16 }
 0xc13   : > { %v15891_v30 = vpop.f32.mrf.mxu0  ;;  %v7258_v47 = vadd.f32 %v7257_v18, %v7256_v1  ;;  %v7244_v1 = vadd.f32 %v7243_v10, %v7224_v53  ;;  %v7259_v51 = vsel %vm17086_vm8, %v7234_v2, 0.0  ;;  %v8314_v18 = vshra.s32 %v15902_v54, 16 }
 0xc14   : > { %17372 = vst [vmem:[#allocation11_spill] sm:$0xff] %v15891_v30  ;;  %v7239_v19 = vadd.f32 %v7238_v36, %v7220_v3  ;;  %v7235_v57 = vmul.f32 %v15891_v30, %v15891_v30  ;;  %v15919_v38 = vsel %vm5283_vm5, %v8309_v8, 2147483647  ;;  %v8311_v10 = vsel %vm8307_vm2, %v14859_v43, 50 }
 0xc15   : > { %v15899_v46 = vpop.f32.mrf.mxu0  ;;  %v7260_v36 = vadd.f32 %v7259_v51, %v7258_v47  ;;  %v8329_v2 = vshra.s32 %v15919_v38, 16  ;;  %v15928_v34 = vsel %vm17087_vm0, %v8311_v10, 2147483647  ;;  %v15931_v8 = vcvt.s32.f32 %v8344_v52 }
 0xc16   : > { %17374 = vst [vmem:[#allocation46_spill] sm:$0xff] %v15899_v46  ;;  %v7225_v3 = vmul.f32 %v15899_v46, %v15899_v46  ;;  %7240 = vadd.xlane.f32.xlu1 %v7239_v19  ;;  %v7261_v30 = vsel %vm17086_vm8, %v7235_v57, 0.0  ;;  %v15923_v19 = vcvt.s32.f32 %v8314_v18  ;;  %v8359_v47 = vshra.s32 %v15928_v34, 16 }
 0xc17   : > { %v7262_v53 = vadd.f32 %v7261_v30, %v7260_v36  ;;  %v15933_v49 = vcvt.s32.f32 %v8329_v2 }
 0xc18   : > { %v7245_v59 = vadd.f32 %v7244_v1, %v7225_v3  ;;  %v15938_v30 = vcvt.s32.f32 %v8359_v47 }
 0xc1a   : > { %7246 = vadd.xlane.f32.xlu0 %v7245_v59  ;;  %7252 = vadd.xlane.f32.xlu1 %v7251_v26 }
 0xc1e   : > { %7263 = vadd.xlane.f32.xlu0 %v7262_v53  ;;  %8317 = vmin.xlane.f32.xlu1 %v15923_v19 }
 0xc22   : > { %8347 = vmin.xlane.f32.xlu1 %v15931_v8  ;;  %8332 = vmin.xlane.f32.xlu0 %v15933_v49 }
 0xc26   : > { %8362 = vmin.xlane.f32.xlu0 %v15938_v30 }
 0xc3a   : > { %v7712_v57 = vpop.xlane.xlu0 %7711 }
 0xc3b   : > { %11651 = vrcp.f32 %v7712_v57  ;;  %v7715_v3 = vpop.xlane.xlu1 %7714 }
 0xc3c   : > { %11653 = vrcp.f32 %v7715_v3 }
 0xc3f   : > { %v7718_v1 = vpop.xlane.xlu0 %7717 }
 0xc40   : > { %11655 = vrcp.f32 %v7718_v1 }
 0xc43   : > { %v5111_v51 = vpop.xlane.xlu0 %5110  ;;  %v7721_v59 = vpop.xlane.xlu1 %7720 }
 0xc44   : > { %11657 = vrsqrt.f32 %v5111_v51  ;;  %vm5180_vm14 = vcmp.eq.f32.partialorder %v5111_v51, inf  ;;  %v5183_v60 = vand.u32 2147483648, %v5111_v51  ;;  %vm5182_vm1 = vcmp.eq.f32.partialorder %v5111_v51, 0.0 }
 0xc45   : > { %11659 = vrcp.f32 %v7721_v59 }
 0xc47   : > { %v5099_v26 = vpop.xlane.xlu0 %5098  ;;  %v5105_v36 = vpop.xlane.xlu1 %5104 }
 0xc48   : > { %v11652_v18 = vpop.eup %11651  ;;  %11661 = vrsqrt.f32 %v5099_v26  ;;  %vm5166_vm3 = vcmp.eq.f32.partialorder %v5099_v26, inf  ;;  %vm5168_vm13 = vcmp.eq.f32.partialorder %v5099_v26, 0.0  ;;  %vm5173_vm7 = vcmp.eq.f32.partialorder %v5105_v36, inf }
 0xc49   : > { %v11654_v10 = vpop.eup %11653  ;;  %11663 = vrsqrt.f32 %v5105_v36  ;;  %v7726_v53 = vmul.f32 %v11652_v18, %v15722_v20  ;;  %vm5175_vm15 = vcmp.eq.f32.partialorder %v5105_v36, 0.0 }
 0xc4a   : > { %v7727_v52 = vmul.f32 %v11654_v10, %v15724_v55 }
 0xc4c   : > { %v7730_v2 = vpack.c.bf16 %v7727_v52, %v7726_v53  ;;  %v5169_v53 = vand.u32 2147483648, %v5099_v26 }
 0xc4d   : > { %v11656_v47 = vpop.eup %11655 }
 0xc4e   : > { %v7735_v57 = vshll.u32 %v7730_v2, 16  ;;  %v7728_v59 = vmul.f32 %v11656_v47, %v15733_v61  ;;  %v7733_v52 = vshrl.u32 %v7730_v2, 16 }
 0xc50   : > { %v7737_v46 = vrot.slane %v7735_v57, 1 }
 0xc51   : > { %v11658_v3 = vpop.eup %11657 }
 0xc52   : > { %v11660_v33 = vpop.eup %11659  ;;  %v5179_v1 = vmul.f32 %v11658_v3, %v5111_v51 }
 0xc53   : > { %v7729_v43 = vmul.f32 %v11660_v33, %v15742_v11  ;;  %v5176_v11 = vand.u32 2147483648, %v5105_v36  ;;  %v7738_v33 = vor.u32 %v7737_v46, %v7733_v52 }
 0xc54   : > { %v5181_v21 = vsel %vm5180_vm14, %v5111_v51, %v5179_v1 }
 0xc55   : > { %v11662_v14 = vpop.eup %11661  ;;  %v5184_v35 = vsel %vm5182_vm1, %v5183_v60, %v5181_v21  ;;  %v7731_v20 = vpack.c.bf16 %v7729_v43, %v7728_v59 }
 0xc56   : > { %v11664_v55 = vpop.eup %11663  ;;  %v5212_v18 = vadd.f32 1e-16, %v5184_v35  ;;  %v5165_v10 = vmul.f32 %v11662_v14, %v5099_v26 }
 0xc57   : > { %v5172_v3 = vmul.f32 %v11664_v55, %v5105_v36  ;;  %v7740_v32 = vshll.u32 %v7731_v20, 16  ;;  %v7744_v60 = vshrl.u32 %v7731_v20, 16 }
 0xc58   : > { %11665 = vrcp.f32 %v5212_v18  ;;  %v5167_v61 = vsel %vm5166_vm3, %v5099_v26, %v5165_v10 }
 0xc59   : > { %v5170_v51 = vsel %vm5168_vm13, %v5169_v53, %v5167_v61  ;;  %v5174_v47 = vsel %vm5173_vm7, %v5105_v36, %v5172_v3  ;;  %v7742_v57 = vrot.slane %v7740_v32, 1 }
 0xc5a   : > { %v5210_v21 = vadd.f32 1e-16, %v5170_v51  ;;  %v5177_v1 = vsel %vm5175_vm15, %v5176_v11, %v5174_v47 }
 0xc5b   : > { %v5211_v43 = vadd.f32 1e-16, %v5177_v1  ;;  %v7743_v35 = vsel %vm7039_vm4, %v7738_v33, %v7742_v57  ;;  %v7746_v14 = vor.u32 %v7744_v60, %v7742_v57  ;;  %vm17085_vm4 = vcmask 1046528  }
 0xc5c   : > { %11667 = vrcp.f32 %v5210_v21  ;;  %7747 = vrot.lane.b32.xlu1 %v7743_v35, %s12020_s30  ;;  %v7345_v35 = vrot.slane %v15165_v4, 1 }
 0xc5d   : > { %11669 = vrcp.f32 %v5211_v43  ;;  %7749 = vrot.lane.b32.xlu0 %v7746_v14, %s12020_s30  ;;  %v7351_v14 = vrot.slane %v17294_v27, 1 }
 0xc65   : > { %v11666_v2 = vpop.eup %11665 }
 0xc66   : > { %v15949_v26 = vmul.f32 %v11666_v2, %v17346_v5  ;;  %v15952_v46 = vmul.f32 %v11666_v2, %v17357_v63  ;;  %v15955_v32 = vmul.f32 %v11666_v2, %v17345_v41  ;;  %v15958_v36 = vmul.f32 %v11666_v2, %v17347_v40 }
 0xc68   : > { %v15961_v59 = vrot.slane %v15949_v26, 1  ;;  %v15964_v20 = vrot.slane %v15952_v46, 1  ;;  %v15967_v55 = vrot.slane %v15955_v32, 1  ;;  %v15970_v5 = vrot.slane %v15958_v36, 1 }
 0xc69   : > { %v11668_v63 = vpop.eup %11667 }
 0xc6a   : > { %v11670_v18 = vpop.eup %11669  ;;  %7421 = vmatprep.subr.mxu1 %v15961_v59  ;;  %7506 = vmatprep.subr.mxu0 %v15964_v20  ;;  %v5247_v41 = vmul.f32 %v11668_v63, %v17349_v22  ;;  %v5249_v40 = vmul.f32 %v11668_v63, %v17360_v24  ;;  %v5246_v33 = vmul.f32 %v11668_v63, %v17348_v42 }
 0xc6b   : > { %7422 = vmatpush1.xpose.msra.mxu1 %v15967_v55  ;;  %7507 = vmatpush1.xpose.msra.mxu0 %v15970_v5  ;;  %v5252_v10 = vmul.f32 %v11670_v18, %v17350_v17  ;;  %v5254_v53 = vmul.f32 %v11670_v18, %v15786_v7  ;;  %v5251_v52 = vmul.f32 %v11670_v18, %v17351_v0 }
 0xc6c   : > { %v5253_v3 = vmul.f32 %v11670_v18, %v17354_v15  ;;  %v7346_v61 = vrot.slane %v5247_v41, 1  ;;  %v7352_v11 = vrot.slane %v5249_v40, 1  ;;  %v5248_v47 = vmul.f32 %v11668_v63, %v17352_v23 }
 0xc6d   : > { %v7359_v22 = vrot.slane %v5252_v10, 1  ;;  %v7363_v51 = vrot.slane %v5254_v53, 1  ;;  %v7357_v24 = vrot.slane %v5251_v52, 1  ;;  %v7343_v15 = vrot.slane %v5246_v33, 1 }
 0xc6e   : > { %v7361_v57 = vrot.slane %v5253_v3, 1  ;;  %v7349_v60 = vrot.slane %v5248_v47, 1  ;;  %v16011_v1 = vmul.f32 %v11670_v18, %v17362_v29  ;;  %v16014_v43 = vmul.f32 %v11668_v63, %v17361_v45  ;;  %v17375_v3 = vld [vmem:[#allocation19_spill] sm:$0xff] }
 0xc6f   : > { %v15986_v17 = vsel %vm17085_vm4, %v7359_v22, %v15961_v59  ;;  %v15990_v7 = vsel %vm17085_vm4, %v7363_v51, %v15964_v20  ;;  %v15994_v0 = vsel %vm17085_vm4, %v7357_v24, %v15967_v55  ;;  %v16003_v23 = vsel %vm17085_vm4, %v7346_v61, %v7359_v22 }
 0xc70   : > { %7423 = vmatprep.subr.mxu1 %v15986_v17  ;;  %7508 = vmatprep.subr.mxu0 %v15990_v7  ;;  %v16000_v42 = vsel %vm17085_vm4, %v7361_v57, %v15970_v5  ;;  %v16008_v21 = vsel %vm17085_vm4, %v7352_v11, %v7363_v51  ;;  %v7365_v41 = vrot.slane %v16011_v1, 1  ;;  %v17084_v40 = vrot.slane %v16014_v43, 1 }
 0xc71   : > { %7424 = vmatpush1.xpose.msra.mxu1 %v15994_v0  ;;  %7509 = vmatpush1.xpose.msra.mxu0 %v16000_v42  ;;  %v16023_v10 = vsel %vm17085_vm4, %v7343_v15, %v7357_v24  ;;  %v16026_v29 = vsel %vm17085_vm4, %v7349_v60, %v7361_v57  ;;  %v16029_v45 = vmul.f32 %v11666_v2, %v17358_v58  ;;  %v7342_v58 = vrot.slane %v17287_v44, 1 }
 0xc72   : > { %7425 = vmatprep.subr.mxu1 %v16003_v23  ;;  %7510 = vmatprep.subr.mxu0 %v16008_v21  ;;  %v16034_v4 = vsel %vm17085_vm4, %v7345_v35, %v7346_v61  ;;  %v16037_v27 = vsel %vm17085_vm4, %v7351_v14, %v7352_v11  ;;  %v16044_v63 = vsel %vm17085_vm4, %v17084_v40, %v7365_v41  ;;  %v7348_v2 = vrot.slane %v17295_v39, 1 }
 0xc73   : > { %v16051_v18 = vsel %vm17085_vm4, %v7342_v58, %v7343_v15  ;;  %v16057_v52 = vrot.slane %v16029_v45, 1  ;;  %v8313_v11 = vand.u32 65535, %v15902_v54  ;;  %v8328_v51 = vand.u32 65535, %v15919_v38 }
 0xc74   : > { %v16054_v53 = vsel %vm17085_vm4, %v7348_v2, %v7349_v60  ;;  %v8343_v24 = vand.u32 65535, %v15916_v37  ;;  %v8358_v14 = vand.u32 65535, %v15928_v34 }
 0xc75   : > { %7426 = vmatpush1.xpose.msra.mxu1 %v16023_v10  ;;  %7511 = vmatpush1.xpose.msra.mxu0 %v16026_v29  ;;  %v8315_v47 = vcvt.s32.f32 %v8313_v11  ;;  %v8330_v54 = vcvt.s32.f32 %v8328_v51 }
 0xc76   : > { %7427 = vmatprep.subr.mxu1 %v16034_v4  ;;  %7512 = vmatprep.subr.mxu0 %v16037_v27  ;;  %v8345_v35 = vcvt.s32.f32 %v8343_v24  ;;  %v8360_v51 = vcvt.s32.f32 %v8358_v14 }
 0xc79   : > { %7428 = vmatpush1.xpose.msra.mxu1 %v16051_v18  ;;  %7513 = vmatpush1.xpose.msra.mxu0 %v16054_v53 }
 0xc7a   : > { %10880 = vmatprep.subr.mxu1 %v16057_v52  ;;  %7822 = vmatprep.subr.bf16.mxu0 %v17375_v3 }
 0xc9f   : > { %v7241_v44 = vpop.xlane.xlu1 %7240 }
 0xca0   : > { %11671 = vrsqrt.f32 %v7241_v44  ;;  %vm7267_vm11 = vcmp.eq.f32.partialorder %v7241_v44, inf  ;;  %v7270_v2 = vand.u32 2147483648, %v7241_v44  ;;  %vm7269_vm2 = vcmp.eq.f32.partialorder %v7241_v44, 0.0 }
 0xca3   : > { %v7247_v39 = vpop.xlane.xlu0 %7246  ;;  %v7253_v61 = vpop.xlane.xlu1 %7252 }
 0xca4   : > { %11673 = vrsqrt.f32 %v7247_v39  ;;  %vm7274_vm1 = vcmp.eq.f32.partialorder %v7247_v39, inf  ;;  %vm7276_vm3 = vcmp.eq.f32.partialorder %v7247_v39, 0.0  ;;  %vm7281_vm13 = vcmp.eq.f32.partialorder %v7253_v61, inf }
 0xca5   : > { %11675 = vrsqrt.f32 %v7253_v61  ;;  %v7284_v14 = vand.u32 2147483648, %v7253_v61  ;;  %vm7283_vm7 = vcmp.eq.f32.partialorder %v7253_v61, 0.0 }
 0xca7   : > { %v7264_v33 = vpop.xlane.xlu0 %7263  ;;  %v16064_v22 = vpop.xlane.xlu1 %8317 }
 0xca8   : > { %11677 = vrsqrt.f32 %v7264_v33  ;;  %vm8319_vm10 = vcmp.eq.f32.partialorder %v15923_v19, %v16064_v22  ;;  %vm7288_vm15 = vcmp.eq.f32.partialorder %v7264_v33, inf }
 0xca9   : > { %v8320_v57 = vsel %vm8319_vm10, %v8315_v47, inf  ;;  %vm7290_vm10 = vcmp.eq.f32.partialorder %v7264_v33, 0.0 }
 0xcaa   : > { %8321 = vmin.xlane.f32.xlu1 %v8320_v57 }
 0xcab   : > { %v16070_v15 = vpop.xlane.xlu0 %8332  ;;  %v16072_v60 = vpop.xlane.xlu1 %8347 }
 0xcac   : > { %vm8334_vm6 = vcmp.eq.f32.partialorder %v15933_v49, %v16070_v15  ;;  %vm8349_vm12 = vcmp.eq.f32.partialorder %v15931_v8, %v16072_v60 }
 0xcad   : > { %v11672_v37 = vpop.eup %11671  ;;  %v8335_v38 = vsel %vm8334_vm6, %v8330_v54, inf  ;;  %v8350_v58 = vsel %vm8349_vm12, %v8345_v35, inf  ;;  %v7277_v35 = vand.u32 2147483648, %v7247_v39  ;;  %vm17389_vm6 = vcmask 203776  }
 0xcae   : > { %v7266_v19 = vmul.f32 %v11672_v37, %v7241_v44  ;;  %8336 = vmin.xlane.f32.xlu0 %v8335_v38  ;;  %8351 = vmin.xlane.f32.xlu1 %v8350_v58  ;;  %vm17396_vm12 = vmmov %vm17389_vm6 }
 0xcaf   : > { %v16079_v11 = vpop.xlane.xlu0 %8362 }
 0xcb0   : > { %v7268_v24 = vsel %vm7267_vm11, %v7241_v44, %v7266_v19  ;;  %vm8364_vm14 = vcmp.eq.f32.partialorder %v15938_v30, %v16079_v11  ;;  %vm17397_vm11 = vmmov %vm17389_vm6 }
 0xcb1   : > { %v11674_v34 = vpop.eup %11673  ;;  %v7271_v49 = vsel %vm7269_vm2, %v7270_v2, %v7268_v24  ;;  %v8365_v47 = vsel %vm8364_vm14, %v8360_v51, inf  ;;  %v7291_v24 = vand.u32 2147483648, %v7264_v33  ;;  %vm17399_vm2 = vmmov %vm17389_vm6 }
 0xcb2   : > { %v11676_v8 = vpop.eup %11675  ;;  %v7293_v57 = vadd.f32 1e-16, %v7271_v49  ;;  %v7273_v54 = vmul.f32 %v11674_v34, %v7247_v39  ;;  %8366 = vmin.xlane.f32.xlu0 %v8365_v47  ;;  %vm17400_vm14 = vmmov %vm17399_vm2 }
 0xcb3   : > { %v7280_v37 = vmul.f32 %v11676_v8, %v7253_v61 }
 0xcb4   : > { %11679 = vrcp.f32 %v7293_v57  ;;  %v7275_v38 = vsel %vm7274_vm1, %v7247_v39, %v7273_v54  ;;  %vm17401_vm1 = vmmov %vm17399_vm2 }
 0xcb5   : > { %v11678_v58 = vpop.eup %11677  ;;  %v7278_v44 = vsel %vm7276_vm3, %v7277_v35, %v7275_v38  ;;  %v7282_v19 = vsel %vm7281_vm13, %v7253_v61, %v7280_v37  ;;  %v17377_v37 = vld [vmem:[#allocation9_spill] sm:$0xff] }
 0xcb6   : > { %v7294_v30 = vadd.f32 1e-16, %v7278_v44  ;;  %v7285_v40 = vsel %vm7283_vm7, %v7284_v14, %v7282_v19  ;;  %v7287_v2 = vmul.f32 %v11678_v58, %v7264_v33  ;;  %v17380_v44 = vld [vmem:[#allocation18_spill] sm:$0xff] }
 0xcb7   : > { %v7295_v51 = vadd.f32 1e-16, %v7285_v40 }
 0xcb8   : > { %11681 = vrcp.f32 %v7294_v30  ;;  %v7289_v34 = vsel %vm7288_vm15, %v7264_v33, %v7287_v2  ;;  %v16091_v33 = vsel %vm17085_vm4, %v7365_v41, %v16057_v52  ;;  %v17382_v30 = vrot.slane %v16014_v43, 1  ;;  %v17384_v2 = vld [vmem:[#allocation21_spill] sm:$0xff] }
 0xcb9   : > { %11683 = vrcp.f32 %v7295_v51  ;;  %v7292_v49 = vsel %vm7290_vm10, %v7291_v24, %v7289_v34  ;;  %v17385_v24 = vld [vmem:[#allocation47_spill] sm:$0xff]  ;;  %v17387_v43 = vmov 0   ;;  %vm8401_vm10 = vcmask 1041408  }
 0xcba   : > { %v7296_v47 = vadd.f32 1e-16, %v7292_v49  ;;  %v17386_v49 = vld [vmem:[#allocation42_spill] sm:$0xff] }
 0xcbc   : > { %11685 = vrcp.f32 %v7296_v47  ;;  %v17388_v47 = vld [vmem:[#allocation46_spill] sm:$0xff] }
 0xcc1   : > { %v11680_v39 = vpop.eup %11679 }
 0xcc2   : > { %v7302_v8 = vmul.f32 %v11680_v39, %v15806_v13  ;;  %v7304_v57 = vmul.f32 %v11680_v39, %v15808_v56  ;;  %v7301_v61 = vmul.f32 %v11680_v39, %v15802_v9  ;;  %v7303_v54 = vmul.f32 %v11680_v39, %v15804_v12  ;;  %v17376_v13 = vld [vmem:[#allocation64_spill] sm:$0xff] }
 0xcc3   : > { %v7305_v34 = vmul.f32 %v11680_v39, %v17385_v24  ;;  %v17392_v39 = vld [vmem:[#allocation5_spill] sm:$0xff] }
 0xcc4   : > { %7461 = vmatprep.mubr.f32.mxu1 %v7302_v8  ;;  %7546 = vmatprep.mubr.f32.mxu0 %v7304_v57 }
 0xcc5   : > { %v11682_v40 = vpop.eup %11681  ;;  %7462 = vmatmul.mubr.f32.vlgmr.msra.gmra.mxu1 %v7301_v61  ;;  %7547 = vmatmul.mubr.f32.vlgmr.msra.gmra.mxu0 %v7303_v54  ;;  %v17390_v61 = vld [vmem:[#allocation4_spill] sm:$0xff] }
 0xcc6   : > { %v11684_v35 = vpop.eup %11683  ;;  %10881 = vmatpush3.xpose.msra.mxu1 %v16057_v52  ;;  %7823 = vmatpush1.bf16.msra.mxu0 %v17376_v13  ;;  %v7307_v9 = vmul.f32 %v11682_v40, %v15814_v62  ;;  %v7309_v12 = vmul.f32 %v11682_v40, %v15816_v6  ;;  %v7306_v56 = vmul.f32 %v11682_v40, %v15810_v31  ;;  %v17378_v62 = vld [vmem:[#allocation3_spill] sm:$0xff] }
 0xcc7   : > { %10882 = vmatprep.subr.mxu1 %v16091_v33  ;;  %7824 = vmatprep.subr.bf16.mxu0 %v17377_v37  ;;  %v7308_v1 = vmul.f32 %v11682_v40, %v15812_v28  ;;  %v7312_v38 = vmul.f32 %v11684_v35, %v15828_v48  ;;  %v7314_v14 = vmul.f32 %v11684_v35, %v15830_v25  ;;  %v17379_v28 = vld [vmem:[#allocation45_spill] sm:$0xff]  ;;  %v7354_v48 = vrot.slane %v17380_v44, 1  ;;  %v17381_v25 = vld [vmem:[#allocation44_spill] sm:$0xff]  ;;  %v17406_v44 = vld [vmem:[#allocation74_spill] sm:$0xff] }
 0xcc8   : > { %7466 = vmatprep.mubr.f32.mxu1 %v7307_v9  ;;  %7551 = vmatprep.mubr.f32.mxu0 %v7309_v12  ;;  %v7311_v31 = vmul.f32 %v11684_v35, %v15820_v50  ;;  %v7313_v6 = vmul.f32 %v11684_v35, %v15822_v16  ;;  %v17383_v16 = vld [vmem:[#allocation49_spill] sm:$0xff]  ;;  %v7310_v8 = vmul.f32 %v11682_v40, %v17388_v47  ;;  %v17391_v9 = vld [vmem:[#allocation43_spill] sm:$0xff] }
 0xcc9   : > { %v11686_v41 = vpop.eup %11685  ;;  %7467 = vmatmul.mubr.f32.gmra.mxu1 %v7306_v56  ;;  %7552 = vmatmul.mubr.f32.gmra.mxu0 %v7308_v1  ;;  %v16116_v50 = vsel %vm17085_vm4, %v7354_v48, %v17382_v30  ;;  %v7315_v54 = vmul.f32 %v11684_v35, %v17390_v61  ;;  %v17393_v12 = vld [vmem:[#allocation11_spill] sm:$0xff]  ;;  %v17394_v40 = vld [vmem:[#allocation73_spill] sm:$0xff] }
 0xcca   : > { %10883 = vmatpush3.xpose.msra.mxu1 %v16091_v33  ;;  %7825 = vmatpush1.bf16.msra.mxu0 %v17378_v62  ;;  %v7317_v58 = vmul.f32 %v11686_v41, %v17379_v28  ;;  %v7319_v19 = vmul.f32 %v11686_v41, %v17381_v25  ;;  %v7318_v51 = vmul.f32 %v11686_v41, %v17384_v2  ;;  %v17395_v1 = vld [vmem:[#allocation63_spill] sm:$0xff] }
 0xccb   : > { %7471 = vmatprep.mubr.f32.mxu1 %v7312_v38  ;;  %7556 = vmatprep.mubr.f32.mxu0 %v7314_v14  ;;  %v7320_v56 = vmul.f32 %v11686_v41, %v17393_v12 }
 0xccc   : > { %10884 = vmatprep.subr.mxu1 %v16044_v63  ;;  %8041 = vmatprep.subr.mxu0 %v15961_v59  ;;  %v7316_v59 = vmul.f32 %v11686_v41, %v17383_v16 }
 0xccd   : > { %7472 = vmatmul.mubr.f32.gmra.mxu1 %v7311_v31  ;;  %7557 = vmatmul.mubr.f32.gmra.mxu0 %v7313_v6  ;;  %v17405_v31 = vld [vmem:[#allocation20_spill] sm:$0xff] }
 0xcce   : > { %10885 = vmatpush3.xpose.msra.mxu1 %v16044_v63  ;;  %7476 = vmatprep.mubr.f32.mxu1 %v7317_v58  ;;  %v7748_v57 = vpop.permute.xlu1 %7747  ;;  %v8377_v6 = vadd.f32 1.0, %v17405_v31 }
 0xccf   : > { %7561 = vmatprep.mubr.f32.mxu0 %v7319_v19  ;;  %10886 = vmatprep.subr.mxu1 %v16116_v50  ;;  %v7750_v35 = vpop.permute.xlu0 %7749 }
 0xcd1   : > { %7477 = vmatmul.mubr.f32.gmra.mxu1 %v7316_v59  ;;  %7562 = vmatmul.mubr.f32.gmra.mxu0 %v7318_v51  ;;  %v17407_v51 = vld [vmem:[#allocation23_spill] sm:$0xff] }
 0xcd2   : > { %10887 = vmatpush3.xpose.msra.mxu1 %v16116_v50  ;;  %10888 = vmatprep.mubr.f32.mxu1 %v7305_v34  ;;  %v8379_v24 = vadd.f32 1.0, %v17407_v51 }
 0xcd3   : > { %7769 = vmatprep.subr.bf16.mxu1 %v17386_v49  ;;  %7842 = vmatprep.mubr.bf16.mxu0 %v17387_v43 }
 0xcd5   : > { %10889 = vmatmul.mubr.f32.vlgmr.msra.gmra.mxu1 %v7310_v8  ;;  %10275 = vmatmul.mubr.msk.bf16.vlgmr.msra.gmra.mxu0 %vm17389_vm6, %v7748_v57 }
 0xcd6   : > { %7770 = vmatpush1.bf16.msra.mxu1 %v17391_v9  ;;  %8042 = vmatpush1.xpose.msra.mxu0 %v15967_v55  ;;  %v17398_v55 = vld [vmem:[#allocation8_spill] sm:$0xff] }
 0xcd7   : > { %10891 = vmatprep.mubr.f32.mxu1 %v7315_v54  ;;  %7771 = vmatprep.subr.bf16.mxu1 %v17392_v39 }
 0xcd8   : > { %8043 = vmatprep.subr.mxu0 %v15986_v17  ;;  %7852 = vmatprep.mubr.bf16.mxu0 %v17387_v43  ;;  %v8324_v17 = vcvt.f32.s32 %v16064_v22  ;;  %v17404_v22 = vld [vmem:[#allocation16_spill] sm:$0xff] }
 0xcd9   : > { %10892 = vmatmul.mubr.f32.gmra.mxu1 %v7320_v56 }
 0xcda   : > { %7772 = vmatpush1.bf16.msra.mxu1 %v17394_v40  ;;  %8044 = vmatpush1.xpose.msra.mxu0 %v15994_v0  ;;  %v8339_v0 = vcvt.f32.s32 %v16070_v15 }
 0xcdb   : > { %10894 = vmatprep.subr.bf16.mxu1 %v17395_v1  ;;  %8045 = vmatprep.subr.mxu0 %v16003_v23 }
 0xcdc   : > { %7789 = vmatprep.mubr.bf16.mxu1 %v17387_v43 }
 0xcdd   : > { %10273 = vmatmul.mubr.msk.bf16.vlgmr.msra.gmra.mxu1 %vm17396_vm12, %v7748_v57  ;;  %10276 = vmatmul.mubr.msk.bf16.gmra.mxu0 %vm17397_vm11, %v7750_v35 }
 0xcde   : > { %10895 = vmatpush3.bf16.msra.mxu1 %v17395_v1  ;;  %8046 = vmatpush1.xpose.msra.mxu0 %v16023_v10 }
 0xcdf   : > { %10896 = vmatprep.subr.bf16.mxu1 %v17398_v55  ;;  %8047 = vmatprep.subr.mxu0 %v16034_v4  ;;  %v17403_v4 = vld [vmem:[#allocation62_spill] sm:$0xff] }
 0xce0   : > { %7799 = vmatprep.mubr.bf16.mxu1 %v17387_v43 }
 0xce2   : > { %10897 = vmatpush3.bf16.msra.mxu1 %v17398_v55  ;;  %8048 = vmatpush1.xpose.msra.mxu0 %v16051_v18  ;;  %v8340_v18 = vshll.u32 %v8339_v0, 16  ;;  %v17409_v0 = vld [vmem:[#allocation80_spill] sm:$0xff] }
 0xce3   : > { %8126 = vmatprep.subr.mxu1 %v15964_v20  ;;  %10902 = vmatprep.subr.mxu0 %v16057_v52  ;;  %v17402_v20 = vld [vmem:[#allocation75_spill] sm:$0xff] }
 0xce5   : > { %10274 = vmatmul.mubr.msk.bf16.gmra.mxu1 %vm17399_vm2, %v7750_v35 }
 0xce6   : > { %10898 = vmatprep.mubr.msk.bf16.mxu1 %vm17400_vm14, %v7748_v57 }
 0xced   : > { %10899 = vmatmul.mubr.msk.bf16.vlgmr.msra.gmra.mxu1 %vm17401_vm1, %v7750_v35 }
 0xcee   : > { %8127 = vmatpush1.xpose.msra.mxu1 %v15970_v5  ;;  %v8325_v5 = vshll.u32 %v8324_v17, 16 }
 0xcef   : > { %8128 = vmatprep.subr.mxu1 %v15990_v7  ;;  %v8354_v7 = vcvt.f32.s32 %v16072_v60 }
 0xcf1   : > { %v8355_v38 = vshll.u32 %v8354_v7, 16 }
 0xcf2   : > { %8129 = vmatpush1.xpose.msra.mxu1 %v16000_v42 }
 0xcf3   : > { %8130 = vmatprep.subr.mxu1 %v16008_v21 }
 0xcf6   : > { %8131 = vmatpush1.xpose.msra.mxu1 %v16026_v29  ;;  %v8376_v29 = vadd.f32 1.0, %v17403_v4 }
 0xcf7   : > { %8132 = vmatprep.subr.mxu1 %v16037_v27  ;;  %v8369_v27 = vcvt.f32.s32 %v16079_v11  ;;  %v8378_v11 = vadd.f32 1.0, %v17406_v44 }
 0xcf9   : > { %v8370_v48 = vshll.u32 %v8369_v27, 16 }
 0xcfa   : > { %8133 = vmatpush1.xpose.msra.mxu1 %v16054_v53 }
 0xcfb   : > { %8600 = vmatprep.subr.bf16.mxu1 %v17402_v20  ;;  %v17408_v20 = vld [vmem:[#allocation14_spill] sm:$0xff] }
 0xcfc   : > { %v8402_v17 = vrot.slane %v17408_v20, 6 }
 0xd33   : > { %v8322_v23 = vpop.xlane.xlu1 %8321 }
 0xd34   : > { %v8323_v10 = vcvt.f32.s32 %v8322_v23  ;;  %v8403_v23 = vrot.slane %v17409_v0, 6 }
 0xd36   : > { %v16164_v42 = vadd.s32 %v8325_v5, %v8323_v10  ;;  %v17410_v5 = vld [vmem:[#allocation81_spill] sm:$0xff]  ;;  %v17411_v10 = vld [vmem:[#allocation82_spill] sm:$0xff] }
 0xd37   : > { %v8337_v21 = vpop.xlane.xlu0 %8336  ;;  %v8352_v41 = vpop.xlane.xlu1 %8351  ;;  %v8405_v7 = vrot.slane %v17410_v5, 6 }
 0xd38   : > { %v8338_v53 = vcvt.f32.s32 %v8337_v21  ;;  %vm8372_vm3 = vcmp.eq.s32.totalorder %v17404_v22, %v16164_v42  ;;  %v8353_v15 = vcvt.f32.s32 %v8352_v41  ;;  %v8407_v21 = vrot.slane %v17411_v10, 6 }
 0xd39   : > { %v8380_v60 = vsel %vm8372_vm3, %v8376_v29, 0.0  ;;  %v8406_v27 = vsel %vm8401_vm10, %v8403_v23, %v8405_v7 }
 0xd3a   : > { %v16173_v14 = vadd.s32 %v8340_v18, %v8338_v53  ;;  %v16176_v28 = vadd.s32 %v8355_v38, %v8353_v15  ;;  %v8384_v30 = vsel %vm8290_vm9, %v8380_v60, -inf  ;;  %v8404_v18 = vsel %vm8401_vm10, %v8402_v17, %v8403_v23 }
 0xd3b   : > { %v8367_v58 = vpop.xlane.xlu0 %8366  ;;  %v8408_v53 = vsel %vm8401_vm10, %v8405_v7, %v8407_v21  ;;  %v17412_v23 = vmov 0.0  }
 0xd3c   : > { %vm8373_vm13 = vcmp.eq.s32.totalorder %v17404_v22, %v16173_v14  ;;  %v8368_v25 = vcvt.f32.s32 %v8367_v58  ;;  %vm8374_vm7 = vcmp.eq.s32.totalorder %v17404_v22, %v16176_v28 }
 0xd3d   : > { %v8381_v19 = vsel %vm8373_vm13, %v8377_v6, 0.0  ;;  %v8382_v59 = vsel %vm8374_vm7, %v8378_v11, 0.0 }
 0xd3e   : > { %v8385_v16 = vsel %vm5283_vm5, %v8381_v19, -inf  ;;  %v16191_v2 = vadd.s32 %v8370_v48, %v8368_v25  ;;  %v8386_v8 = vsel %vm5283_vm5, %v8382_v59, -inf }
 0xd3f   : > { %v8388_v34 = vmax.f32 %v8384_v30, %v8385_v16 }
 0xd40   : > { %vm8375_vm15 = vcmp.eq.s32.totalorder %v17404_v22, %v16191_v2 }
 0xd41   : > { %v8383_v47 = vsel %vm8375_vm15, %v8379_v24, 0.0 }
 0xd42   : > { %v8387_v57 = vsel %vm17087_vm0, %v8383_v47, -inf }
 0xd43   : > { %v8389_v61 = vmax.f32 %v8386_v8, %v8387_v57 }
 0xd45   : > { %v8390_v54 = vmax.f32 %v8388_v34, %v8389_v61 }
 0xd47   : > { %v8391_v12 = vrot.slane %v8390_v54, 4 }
 0xd49   : > { %v8392_v56 = vmax.f32 %v8390_v54, %v8391_v12 }
 0xd4b   : > { %v8393_v35 = vrot.slane %v8392_v56, 2 }
 0xd4d   : > { %v8394_v4 = vmax.f32 %v8392_v56, %v8393_v35 }
 0xd4f   : > { %v8395_v29 = vrot.slane %v8394_v4, 1 }
 0xd51   : > { %v8396_v41 = vmax.f32 %v8394_v4, %v8395_v29 }
 0xd53   : > { %vm8397_vm6 = vcmp.eq.f32.partialorder %v8380_v60, %v8396_v41  ;;  %vm8398_vm12 = vcmp.eq.f32.partialorder %v8381_v19, %v8396_v41  ;;  %vm8399_vm11 = vcmp.eq.f32.partialorder %v8382_v59, %v8396_v41  ;;  %vm8400_vm2 = vcmp.eq.f32.partialorder %v8383_v47, %v8396_v41 }
 0xd54   : > { %v8409_v38 = vsel %vm8397_vm6, %v8402_v17, 25  ;;  %v8410_v15 = vsel %vm8398_vm12, %v8404_v18, 25  ;;  %v8411_v31 = vsel %vm8399_vm11, %v8406_v27, 25  ;;  %v8412_v6 = vsel %vm8400_vm2, %v8408_v53, 25 }
 0xd55   : > { %v8413_v58 = vsel %vm8290_vm9, %v8409_v38, 2147483647  ;;  %v8414_v44 = vsel %vm5283_vm5, %v8410_v15, 2147483647  ;;  %v8415_v11 = vsel %vm5283_vm5, %v8411_v31, 2147483647 }
 0xd56   : > { %v8416_v48 = vsel %vm17087_vm0, %v8412_v6, 2147483647  ;;  %vm8417_vm14 = vcmp.lt.s32.totalorder %v8413_v58, %v8414_v44 }
 0xd57   : > { %v8418_v25 = vsel %vm8417_vm14, %v8413_v58, %v8414_v44  ;;  %vm8419_vm1 = vcmp.lt.s32.totalorder %v8415_v11, %v8416_v48 }
 0xd58   : > { %v8420_v30 = vsel %vm8419_vm1, %v8415_v11, %v8416_v48 }
 0xd59   : > { %vm8421_vm4 = vcmp.lt.s32.totalorder %v8418_v25, %v8420_v30 }
 0xd5a   : > { %v8422_v60 = vsel %vm8421_vm4, %v8418_v25, %v8420_v30 }
 0xd5b   : > { %v8423_v19 = vrot.slane %v8422_v60, 4 }
 0xd5d   : > { %vm8424_vm8 = vcmp.lt.s32.totalorder %v8422_v60, %v8423_v19 }
 0xd5e   : > { %v8425_v16 = vsel %vm8424_vm8, %v8422_v60, %v8423_v19 }
 0xd5f   : > { %v8426_v59 = vrot.slane %v8425_v16, 2 }
 0xd61   : > { %vm8427_vm6 = vcmp.lt.s32.totalorder %v8425_v16, %v8426_v59 }
 0xd62   : > { %v8428_v51 = vsel %vm8427_vm6, %v8425_v16, %v8426_v59 }
 0xd63   : > { %v8429_v24 = vrot.slane %v8428_v51, 1 }
 0xd65   : > { %vm8430_vm12 = vcmp.lt.s32.totalorder %v8428_v51, %v8429_v24 }
 0xd66   : > { %v8431_v34 = vsel %vm8430_vm12, %v8428_v51, %v8429_v24 }
 0xd67   : > { %vm8432_vm11 = vcmp.eq.s32.totalorder %v8431_v34, %v17408_v20  ;;  %vm8433_vm2 = vcmp.eq.s32.totalorder %v8431_v34, %v17409_v0  ;;  %vm8434_vm0 = vcmp.eq.s32.totalorder %v8431_v34, %v17410_v5  ;;  %vm8435_vm14 = vcmp.eq.s32.totalorder %v8431_v34, %v17411_v10 }
 0xd68   : > { %v8436_v47 = vsel %vm8432_vm11, 1, %v17387_v43  ;;  %v8437_v8 = vsel %vm8433_vm2, 1, %v17387_v43  ;;  %v8438_v57 = vsel %vm8434_vm0, 1, %v17387_v43  ;;  %v8439_v61 = vsel %vm8435_vm14, 1, %v17387_v43 }
 0xd69   : > { %v8440_v54 = vrot.slane %v8436_v47, 6  ;;  %v8441_v12 = vrot.slane %v8437_v8, 6  ;;  %v8443_v56 = vrot.slane %v8438_v57, 6  ;;  %v8445_v35 = vrot.slane %v8439_v61, 6 }
 0xd6a   : > { %vm17419_vm11 = vcmask 1040384   ;;  %vm8475_vm2 = vcmask 203778  }
 0xd6b   : > { %vm8447_vm8 = vcmp.ne.s32.totalorder %v8440_v54, 0  ;;  %v8442_v20 = vsel %vm8401_vm10, %v8440_v54, %v8441_v12  ;;  %v8444_v17 = vsel %vm8401_vm10, %v8441_v12, %v8443_v56  ;;  %v8446_v0 = vsel %vm8401_vm10, %v8443_v56, %v8445_v35  ;;  %vm17421_vm14 = vmmov %vm17419_vm11 }
 0xd6c   : > { %vm8451_vm4 = vmand %vm8372_vm3, %vm8447_vm8  ;;  %vm8448_vm1 = vcmp.ne.s32.totalorder %v8442_v20, 0  ;;  %vm8449_vm6 = vcmp.ne.s32.totalorder %v8444_v17, 0  ;;  %vm8450_vm0 = vcmp.ne.s32.totalorder %v8446_v0, 0 }
 0xd6d   : > { %v8455_v5 = vsel %vm8451_vm4, 1.0, %v17412_v23  ;;  %vm8452_vm12 = vmand %vm8373_vm13, %vm8448_vm1  ;;  %vm8485_vm4 = vcmask 198656  }
 0xd6e   : > { %v8459_v7 = vsel %vm8290_vm9, %v8455_v5, -inf  ;;  %v8456_v10 = vsel %vm8452_vm12, 1.0, %v17412_v23  ;;  %vm8453_vm10 = vmand %vm8374_vm7, %vm8449_vm6  ;;  %vm17413_vm9 = vcmask 403456   ;;  %vm17416_vm7 = vcmask 196608  }
 0xd6f   : > { %8460 = vmax.xlane.f32.xlu1 %v8459_v7  ;;  %v8462_v42 = vsel %vm5283_vm5, %v8456_v10, -inf  ;;  %v8457_v21 = vsel %vm8453_vm10, 1.0, %v17412_v23  ;;  %vm8454_vm3 = vmand %vm8375_vm15, %vm8450_vm0 }
 0xd70   : > { %8463 = vmax.xlane.f32.xlu0 %v8462_v42  ;;  %v8458_v14 = vsel %vm8454_vm3, 1.0, %v17412_v23  ;;  %v8465_v4 = vsel %vm5283_vm5, %v8457_v21, -inf  ;;  %vm17414_vm5 = vcmask 203776   ;;  %vm17424_vm1 = vmmov %vm17419_vm11  ;;  %vm9137_vm3 = vcmask 408778  }
 0xd71   : > { %v8468_v29 = vsel %vm17413_vm9, %v8458_v14, -inf  ;;  %vm17415_vm13 = vmmov %vm17414_vm5 }
 0xd72   : > { %vm17417_vm15 = vmmov %vm17414_vm5 }
 0xd73   : > { %8466 = vmax.xlane.f32.xlu1 %v8465_v4  ;;  %vm17423_vm8 = vmmov %vm17414_vm5 }
 0xd74   : > { %8469 = vmax.xlane.f32.xlu0 %v8468_v29  ;;  %vm17427_vm6 = vmmov %vm17414_vm5 }
 0xd75   : > { %vm17428_vm0 = vmmov %vm17424_vm1 }
 0xd76   : > { %vm17429_vm12 = vmmov %vm17428_vm0 }
 0xd77   : > { %vm17430_vm10 = vmmov %vm17414_vm5 }
 0xd78   : > { %vm17431_vm9 = vmmov %vm17414_vm5 }
 0xd85   : > { %v7463_v28 = vpop.f32.mrf.mxu1  ;;  %v7548_v18 = vpop.f32.mrf.mxu0 }
 0xd86   : > { %v7549_v27 = vadd.f32 %v7548_v18, %v7463_v28 }
 0xd87   : > { %v7465_v53 = vpop.f32.mrf.mxu1  ;;  %v7550_v41 = vpop.f32.mrf.mxu0 }
 0xd89   : > { %v7468_v38 = vpop.f32.mrf.mxu1  ;;  %v7553_v15 = vpop.f32.mrf.mxu0 }
 0xd8a   : > { %v7554_v31 = vadd.f32 %v7553_v15, %v7468_v38 }
 0xd8b   : > { %v7470_v6 = vpop.f32.mrf.mxu1  ;;  %v7555_v22 = vpop.f32.mrf.mxu0 }
 0xd8d   : > { %v7473_v2 = vpop.f32.mrf.mxu1  ;;  %v7558_v58 = vpop.f32.mrf.mxu0 }
 0xd8e   : > { %v7559_v44 = vadd.f32 %v7558_v58, %v7473_v2 }
 0xd8f   : > { %v7475_v11 = vpop.f32.mrf.mxu1  ;;  %v7560_v48 = vpop.f32.mrf.mxu0 }
 0xd91   : > { %v7478_v25 = vpop.f32.mrf.mxu1  ;;  %v7563_v30 = vpop.f32.mrf.mxu0 }
 0xd92   : > { %v7564_v60 = vadd.f32 %v7563_v30, %v7478_v25 }
 0xd93   : > { %v7480_v19 = vpop.f32.mrf.mxu1  ;;  %v7565_v16 = vpop.f32.mrf.mxu0 }
 0xd95   : > { %v10890_v59 = vpop.f32.mrf.mxu1  ;;  %v16257_v42 = vpop.f32.mrf.mxu0 }
 0xd96   : > { %v7639_v51 = vadd.f32 %v10890_v59, %v7554_v31 }
 0xd97   : > { %v7633_v24 = vpop.f32.mrf.mxu1  ;;  %v16261_v14 = vpop.f32.mrf.mxu0 }
 0xd98   : > { %v7634_v34 = vadd.f32 %v7633_v24, %v7549_v27  ;;  %v7653_v8 = vsel %vm17414_vm5, %v7639_v51, -inf  ;;  %v17420_v24 = vld [vmem:[#allocation78_spill] sm:$0xff]  ;;  %vm17432_vm5 = vcmask 408776  }
 0xd99   : > { %v10893_v47 = vpop.f32.mrf.mxu1  ;;  %v16265_v29 = vpop.f32.mrf.mxu0 }
 0xd9a   : > { %v7652_v57 = vsel %vm17415_vm13, %v7634_v34, -inf  ;;  %v7649_v61 = vadd.f32 %v10893_v47, %v7564_v60  ;;  %vm9147_vm13 = vcmask 403656  }
 0xd9b   : > { %v7656_v54 = vmax.f32 %v7652_v57, %v7653_v8  ;;  %v7643_v12 = vpop.f32.mrf.mxu1  ;;  %v16269_v18 = vpop.f32.mrf.mxu0  ;;  %v7914_v8 = vmul.f32 %v16257_v42, %v16257_v42 }
 0xd9c   : > { %v7644_v56 = vadd.f32 %v7643_v12, %v7559_v44  ;;  %v7655_v35 = vsel %vm17416_vm7, %v7649_v61, -inf }
 0xd9d   : > { %v16249_v23 = vpop.f32.mrf.mxu1  ;;  %v16273_v53 = vpop.f32.mrf.mxu0 }
 0xd9e   : > { %v7654_v20 = vsel %vm17417_vm15, %v7644_v56, -inf  ;;  %v7912_v2 = vmul.f32 %v16249_v23, %v16249_v23  ;;  %v7919_v56 = vmul.f32 %v16265_v29, %v16265_v29 }
 0xd9f   : > { %v7657_v17 = vmax.f32 %v7654_v20, %v7655_v35  ;;  %v16251_v5 = vpop.f32.mrf.mxu1  ;;  %v16277_v38 = vpop.f32.mrf.mxu0 }
 0xda0   : > { %v7913_v15 = vmul.f32 %v16251_v5, %v16251_v5 }
 0xda1   : > { %v16247_v0 = vmax.f32 %v7656_v54, %v7657_v17  ;;  %v16253_v7 = vpop.f32.mrf.mxu1  ;;  %v16289_v58 = vpop.f32.mrf.mxu0  ;;  %v17422_v54 = vld [vmem:[#allocation15_spill] sm:$0xff] }
 0xda2   : > { %v7917_v48 = vmul.f32 %v16253_v7, %v16253_v7  ;;  %v7932_v25 = vadd.f32 %v7913_v15, %v7912_v2  ;;  %v7929_v59 = vmul.f32 %v16289_v58, %v16289_v58  ;;  %v7924_v15 = vmul.f32 %v16273_v53, %v16273_v53 }
 0xda3   : > { %17418 = vst [vmem:[#allocation22_spill] sm:$0xff] %v16247_v0  ;;  %v16255_v10 = vpop.f32.mrf.mxu1  ;;  %v16315_v35 = vpop.f32.mrf.mxu0 }
 0xda4   : > { %v7918_v22 = vmul.f32 %v16255_v10, %v16255_v10 }
 0xda5   : > { %v16259_v21 = vpop.f32.mrf.mxu1 }
 0xda6   : > { %v7922_v30 = vmul.f32 %v16259_v21, %v16259_v21  ;;  %v7938_v51 = vadd.f32 %v7918_v22, %v7917_v48  ;;  %v7953_v48 = vsel %vm17424_vm1, %v7929_v59, 0.0 }
 0xda7   : > { %v16263_v4 = vpop.f32.mrf.mxu1 }
 0xda8   : > { %v7923_v44 = vmul.f32 %v16263_v4, %v16263_v4 }
 0xda9   : > { %v16267_v28 = vpop.f32.mrf.mxu1 }
 0xdaa   : > { %v7927_v11 = vmul.f32 %v16267_v28, %v16267_v28  ;;  %v7944_v57 = vadd.f32 %v7923_v44, %v7922_v30  ;;  %v7939_v30 = vadd.f32 %v7938_v51, %v7919_v56 }
 0xdab   : > { %v16271_v27 = vpop.f32.mrf.mxu1 }
 0xdac   : > { %v7928_v31 = vmul.f32 %v16271_v27, %v16271_v27  ;;  %v7950_v61 = vsel %vm17421_vm14, %v7927_v11, 0.0  ;;  %v7915_v11 = vmul.f32 %v16261_v14, %v16261_v14 }
 0xdad   : > { %v16275_v41 = vpop.f32.mrf.mxu1 }
 0xdae   : > { %v7951_v60 = vsel %vm17419_vm11, %v7928_v31, 0.0  ;;  %v7933_v31 = vadd.f32 %v7932_v25, %v7914_v8  ;;  %v7930_v25 = vmul.f32 %v16315_v35, %v16315_v35 }
 0xdaf   : > { %v16283_v6 = vpop.f32.mrf.mxu1  ;;  %v7952_v20 = vadd.f32 %v7951_v60, %v7950_v61  ;;  %v17425_v60 = vld [vmem:[#allocation12_spill] sm:$0xff]  ;;  %v17426_v61 = vld [vmem:[#allocation10_spill] sm:$0xff] }
 0xdb0   : > { %v7916_v8 = vmul.f32 %v16283_v6, %v16283_v6 }
 0xdb1   : > { %v16300_v19 = vpop.f32.mrf.mxu1  ;;  %v7954_v59 = vadd.f32 %v7953_v48, %v7952_v20  ;;  %v7955_v20 = vsel %vm17428_vm0, %v7930_v25, 0.0  ;;  %v7926_v48 = vmul.f32 %v16275_v41, %v16275_v41 }
 0xdb3   : > { %v16321_v22 = vpop.f32.mrf.mxu1  ;;  %v7956_v55 = vadd.f32 %v7955_v20, %v7954_v59 }
 0xdb4   : > { %v7921_v51 = vmul.f32 %v16321_v22, %v16321_v22 }
 0xdf8   : > { %v8461_v16 = vpop.xlane.xlu1 %8460 }
 0xdf9   : > { %v16305_v34 = vmul.f32 %v8461_v16, %v17420_v24  ;;  %v8464_v47 = vpop.xlane.xlu0 %8463 }
 0xdfa   : > { %v16311_v12 = vmul.f32 %v8464_v47, %v17422_v54  ;;  %v7945_v47 = vadd.f32 %v7944_v57, %v7924_v15  ;;  %v7934_v57 = vadd.f32 %v7933_v31, %v7915_v11  ;;  %v7931_v15 = vmul.f32 %v16300_v19, %v16300_v19 }
 0xdfb   : > { %v8476_v17 = vsel %vm8475_vm2, %v16305_v34, -inf }
 0xdfc   : > { %8477 = vmax.xlane.f32.xlu1 %v8476_v17  ;;  %v8467_v2 = vpop.xlane.xlu1 %8466  ;;  %v8479_v44 = vsel %vm17423_vm8, %v16311_v12, -inf  ;;  %v7920_v17 = vmul.f32 %v16269_v18, %v16269_v18  ;;  %v7957_v31 = vsel %vm17429_vm12, %v7931_v15, 0.0  ;;  %vm17433_vm12 = vmmov %vm17432_vm5 }
 0xdfd   : > { %v16329_v16 = vmul.f32 %v8467_v2, %v17425_v60  ;;  %8480 = vmax.xlane.f32.xlu0 %v8479_v44  ;;  %v8470_v24 = vpop.xlane.xlu0 %8469  ;;  %v7925_v2 = vmul.f32 %v16277_v38, %v16277_v38 }
 0xdfe   : > { %v16336_v54 = vmul.f32 %v8470_v24, %v17426_v61  ;;  %v7940_v60 = vadd.f32 %v7939_v30, %v7920_v17  ;;  %v7935_v61 = vadd.f32 %v7934_v57, %v7916_v8 }
 0xdff   : > { %v8482_v56 = vsel %vm17427_vm6, %v16329_v16, -inf  ;;  %v7946_v24 = vadd.f32 %v7945_v47, %v7925_v2 }
 0xe00   : > { %8483 = vmax.xlane.f32.xlu1 %v8482_v56  ;;  %v8486_v44 = vsel %vm8485_vm4, %v16336_v54, -inf  ;;  %v7941_v0 = vadd.f32 %v7940_v60, %v7921_v51  ;;  %v7958_v56 = vadd.f32 %v7957_v31, %v7956_v55 }
 0xe01   : > { %8487 = vmax.xlane.f32.xlu0 %v8486_v44  ;;  %v7947_v11 = vadd.f32 %v7946_v24, %v7926_v48 }
 0xe04   : > { %7936 = vadd.xlane.f32.xlu1 %v7935_v61 }
 0xe05   : > { %7942 = vadd.xlane.f32.xlu0 %v7941_v0 }
 0xe08   : > { %7948 = vadd.xlane.f32.xlu1 %v7947_v11 }
 0xe09   : > { %7959 = vadd.xlane.f32.xlu0 %v7958_v56 }
 0xe85   : > { %v8478_v1 = vpop.xlane.xlu1 %8477 }
 0xe86   : > { %v8489_v30 = vsub.f32 %v16305_v34, %v8478_v1  ;;  %v8481_v17 = vpop.xlane.xlu0 %8480 }
 0xe87   : > { %v8490_v25 = vsub.f32 %v16311_v12, %v8481_v17  ;;  %v9141_v17 = vsel %vm17432_vm5, %v16311_v12, -inf }
 0xe88   : > { %v8493_v44 = vmul.f32 1.442695, %v8489_v30  ;;  %v9138_v30 = vsel %vm9137_vm3, %v16305_v34, -inf  ;;  %vm17443_vm3 = vmmov %vm17431_vm9 }
 0xe89   : > { %v8495_v40 = vmul.f32 1.442695, %v8490_v25  ;;  %v8484_v47 = vpop.xlane.xlu1 %8483  ;;  %vm17446_vm5 = vmmov %vm17443_vm3 }
 0xe8a   : > { %11687 = vpow2.f32 %v8493_v44  ;;  %v8491_v8 = vsub.f32 %v16329_v16, %v8484_v47  ;;  %v8488_v59 = vpop.xlane.xlu0 %8487 }
 0xe8b   : > { %11689 = vpow2.f32 %v8495_v40  ;;  %v8492_v0 = vsub.f32 %v16336_v54, %v8488_v59 }
 0xe8c   : > { %v8497_v51 = vmul.f32 1.442695, %v8491_v8 }
 0xe8d   : > { %v8499_v55 = vmul.f32 1.442695, %v8492_v0  ;;  %v7937_v2 = vpop.xlane.xlu1 %7936 }
 0xe8e   : > { %11691 = vpow2.f32 %v8497_v51  ;;  %v7943_v57 = vpop.xlane.xlu0 %7942  ;;  %vm7963_vm7 = vcmp.eq.f32.partialorder %v7937_v2, inf  ;;  %vm7965_vm15 = vcmp.eq.f32.partialorder %v7937_v2, 0.0  ;;  %v7966_v47 = vand.u32 2147483648, %v7937_v2 }
 0xe8f   : > { %11693 = vpow2.f32 %v8499_v55  ;;  %vm7970_vm11 = vcmp.eq.f32.partialorder %v7943_v57, inf  ;;  %vm7972_vm14 = vcmp.eq.f32.partialorder %v7943_v57, 0.0  ;;  %v7973_v0 = vand.u32 2147483648, %v7943_v57 }
 0xe90   : > { %11695 = vrsqrt.f32 %v7937_v2 }
 0xe91   : > { %11697 = vrsqrt.f32 %v7943_v57  ;;  %v7949_v1 = vpop.xlane.xlu1 %7948 }
 0xe92   : > { %11699 = vrsqrt.f32 %v7949_v1  ;;  %v7960_v15 = vpop.xlane.xlu0 %7959  ;;  %vm7977_vm8 = vcmp.eq.f32.partialorder %v7949_v1, inf  ;;  %vm7979_vm1 = vcmp.eq.f32.partialorder %v7949_v1, 0.0  ;;  %v7980_v39 = vand.u32 2147483648, %v7949_v1 }
 0xe93   : > { %11701 = vrsqrt.f32 %v7960_v15  ;;  %vm7984_vm6 = vcmp.eq.f32.partialorder %v7960_v15, inf  ;;  %v7987_v13 = vand.u32 2147483648, %v7960_v15  ;;  %vm7986_vm0 = vcmp.eq.f32.partialorder %v7960_v15, 0.0 }
 0xe97   : > { %v16358_v60 = vpop.eup %11687 }
 0xe98   : > { %v16360_v20 = vpop.eup %11689  ;;  %v8501_v40 = vsel %vm8475_vm2, %v16358_v60, 0.0 }
 0xe99   : > { %8502 = vadd.xlane.f32.xlu1 %v8501_v40  ;;  %v8504_v48 = vsel %vm17430_vm10, %v16360_v20, 0.0  ;;  %vm17442_vm10 = vcmask 1046528  }
 0xe9a   : > { %8505 = vadd.xlane.f32.xlu0 %v8504_v48 }
 0xe9b   : > { %v16366_v24 = vpop.eup %11691 }
 0xe9c   : > { %v16368_v61 = vpop.eup %11693  ;;  %v8507_v31 = vsel %vm17431_vm9, %v16366_v24, 0.0  ;;  %vm17444_vm9 = vmmov %vm17443_vm3 }
 0xe9d   : > { %v11696_v11 = vpop.eup %11695  ;;  %8508 = vadd.xlane.f32.xlu1 %v8507_v31  ;;  %v8510_v56 = vsel %vm8485_vm4, %v16368_v61, 0.0 }
 0xe9e   : > { %v11698_v25 = vpop.eup %11697  ;;  %v7962_v44 = vmul.f32 %v11696_v11, %v7937_v2  ;;  %8511 = vadd.xlane.f32.xlu0 %v8510_v56 }
 0xe9f   : > { %v11700_v8 = vpop.eup %11699  ;;  %v7969_v59 = vmul.f32 %v11698_v25, %v7943_v57 }
 0xea0   : > { %v11702_v51 = vpop.eup %11701  ;;  %v7964_v55 = vsel %vm7963_vm7, %v7937_v2, %v7962_v44  ;;  %v7976_v40 = vmul.f32 %v11700_v8, %v7949_v1  ;;  %v9144_v2 = vsel %vm17433_vm12, %v16329_v16, -inf  ;;  %v17434_v8 = vld [vmem:[#allocation83_spill] sm:$0xff]  ;;  %vm17448_vm7 = vmmov %vm17443_vm3 }
 0xea1   : > { %v7967_v48 = vsel %vm7965_vm15, %v7966_v47, %v7964_v55  ;;  %v7971_v31 = vsel %vm7970_vm11, %v7943_v57, %v7969_v59  ;;  %v7983_v9 = vmul.f32 %v11702_v51, %v7960_v15  ;;  %9139 = vmax.xlane.f32.xlu1 %v9138_v30  ;;  %v9148_v30 = vsel %vm9147_vm13, %v16336_v54, -inf  ;;  %vm17447_vm13 = vmmov %vm17443_vm3 }
 0xea2   : > { %v7989_v11 = vadd.f32 1e-16, %v7967_v48  ;;  %v7974_v49 = vsel %vm7972_vm14, %v7973_v0, %v7971_v31  ;;  %v7978_v62 = vsel %vm7977_vm8, %v7949_v1, %v7976_v40  ;;  %9142 = vmax.xlane.f32.xlu0 %v9141_v17  ;;  %vm17449_vm15 = vmmov %vm17443_vm3  ;;  %vm17452_vm8 = vcmask 196608  }
 0xea3   : > { %v7990_v56 = vadd.f32 1e-16, %v7974_v49  ;;  %v7981_v25 = vsel %vm7979_vm1, %v7980_v39, %v7978_v62  ;;  %v7985_v37 = vsel %vm7984_vm6, %v7960_v15, %v7983_v9  ;;  %vm17450_vm11 = vmmov %vm17443_vm3  ;;  %vm5124_vm6 = vcmask 1042432  }
 0xea4   : > { %11703 = vrcp.f32 %v7989_v11  ;;  %v7991_v44 = vadd.f32 1e-16, %v7981_v25  ;;  %v7988_v57 = vsel %vm7986_vm0, %v7987_v13, %v7985_v37  ;;  %vm17451_vm14 = vmmov %vm17443_vm3 }
 0xea5   : > { %11705 = vrcp.f32 %v7990_v56  ;;  %9145 = vmax.xlane.f32.xlu1 %v9144_v2  ;;  %v7992_v1 = vadd.f32 1e-16, %v7988_v57  ;;  %vm17453_vm1 = vmmov %vm17443_vm3 }
 0xea6   : > { %9149 = vmax.xlane.f32.xlu0 %v9148_v30  ;;  %11707 = vrcp.f32 %v7991_v44  ;;  %vm17468_vm0 = vmmov %vm17453_vm1 }
 0xea7   : > { %11709 = vrcp.f32 %v7992_v1 }
 0xeb1   : > { %v11704_v49 = vpop.eup %11703 }
 0xeb2   : > { %v11706_v62 = vpop.eup %11705  ;;  %v7998_v9 = vmul.f32 %v11704_v49, %v16251_v5  ;;  %v8000_v39 = vmul.f32 %v11704_v49, %v16261_v14  ;;  %v7997_v15 = vmul.f32 %v11704_v49, %v16249_v23  ;;  %v7999_v17 = vmul.f32 %v11704_v49, %v16257_v42 }
 0xeb3   : > { %v8003_v13 = vmul.f32 %v11706_v62, %v16255_v10  ;;  %v8005_v37 = vmul.f32 %v11706_v62, %v16269_v18  ;;  %v11708_v47 = vpop.eup %11707  ;;  %v8002_v5 = vmul.f32 %v11706_v62, %v16253_v7  ;;  %v8004_v23 = vmul.f32 %v11706_v62, %v16265_v29  ;;  %v17435_v10 = vld [vmem:[#allocation84_spill] sm:$0xff] }
 0xeb4   : > { %8081 = vmatprep.mubr.f32.mxu0 %v7998_v9  ;;  %8166 = vmatprep.mubr.f32.mxu1 %v8000_v39  ;;  %v11710_v42 = vpop.eup %11709  ;;  %v8008_v14 = vmul.f32 %v11708_v47, %v16263_v4  ;;  %v8010_v18 = vmul.f32 %v11708_v47, %v16277_v38  ;;  %v8007_v7 = vmul.f32 %v11708_v47, %v16259_v21 }
 0xeb5   : > { %8082 = vmatmul.mubr.f32.vlgmr.msra.gmra.mxu0 %v7997_v15  ;;  %8167 = vmatmul.mubr.f32.vlgmr.msra.gmra.mxu1 %v7999_v17  ;;  %v8009_v29 = vmul.f32 %v11708_v47, %v16273_v53  ;;  %v8013_v59 = vmul.f32 %v11710_v42, %v16271_v27  ;;  %v8015_v4 = vmul.f32 %v11710_v42, %v16315_v35  ;;  %v17437_v27 = vld [vmem:[#allocation2_spill] sm:$0xff]  ;;  %v17438_v35 = vld [vmem:[#allocation7_spill] sm:$0xff] }
 0xeb6   : > { %10903 = vmatpush3.xpose.msra.mxu0 %v16057_v52  ;;  %8601 = vmatpush1.bf16.msra.mxu1 %v17434_v8  ;;  %v17436_v52 = vld [vmem:[#allocation13_spill] sm:$0xff]  ;;  %v8014_v21 = vmul.f32 %v11710_v42, %v16289_v58  ;;  %v8001_v53 = vmul.f32 %v11704_v49, %v16283_v6  ;;  %v8006_v38 = vmul.f32 %v11706_v62, %v16321_v22  ;;  %v17440_v58 = vld [vmem:[#allocation79_spill] sm:$0xff] }
 0xeb7   : > { %8086 = vmatprep.mubr.f32.mxu0 %v8003_v13  ;;  %8171 = vmatprep.mubr.f32.mxu1 %v8005_v37  ;;  %v8016_v6 = vmul.f32 %v11710_v42, %v16300_v19 }
 0xeb8   : > { %10904 = vmatprep.subr.mxu0 %v16091_v33  ;;  %8602 = vmatprep.subr.bf16.mxu1 %v17435_v10 }
 0xeb9   : > { %8087 = vmatmul.mubr.f32.gmra.mxu0 %v8002_v5  ;;  %8172 = vmatmul.mubr.f32.gmra.mxu1 %v8004_v23 }
 0xeba   : > { %10905 = vmatpush3.xpose.msra.mxu0 %v16091_v33  ;;  %8603 = vmatpush1.bf16.msra.mxu1 %v17436_v52  ;;  %v8012_v33 = vmul.f32 %v11710_v42, %v16267_v28  ;;  %v17439_v28 = vld [vmem:[#allocation72_spill] sm:$0xff] }
 0xebb   : > { %8091 = vmatprep.mubr.f32.mxu0 %v8008_v14  ;;  %8176 = vmatprep.mubr.f32.mxu1 %v8010_v18 }
 0xebc   : > { %10906 = vmatprep.subr.mxu0 %v16044_v63 }
 0xebd   : > { %8092 = vmatmul.mubr.f32.gmra.mxu0 %v8007_v7  ;;  %8177 = vmatmul.mubr.f32.gmra.mxu1 %v8009_v29 }
 0xebe   : > { %10907 = vmatpush3.xpose.msra.mxu0 %v16044_v63  ;;  %8096 = vmatprep.mubr.f32.mxu0 %v8013_v59  ;;  %v8011_v63 = vmul.f32 %v11708_v47, %v16275_v41 }
 0xebf   : > { %8181 = vmatprep.mubr.f32.mxu1 %v8015_v4  ;;  %10908 = vmatprep.subr.mxu0 %v16116_v50 }
 0xec1   : > { %8097 = vmatmul.mubr.f32.gmra.mxu0 %v8012_v33  ;;  %8182 = vmatmul.mubr.f32.gmra.mxu1 %v8014_v21 }
 0xec2   : > { %10909 = vmatpush3.xpose.msra.mxu0 %v16116_v50  ;;  %10910 = vmatprep.mubr.f32.mxu0 %v8001_v53  ;;  %v17441_v50 = vld [vmem:[#allocation85_spill] sm:$0xff] }
 0xec3   : > { %8547 = vmatprep.subr.bf16.mxu0 %v17437_v27  ;;  %8620 = vmatprep.mubr.bf16.mxu1 %v17387_v43 }
 0xec5   : > { %10911 = vmatmul.mubr.f32.vlgmr.msra.gmra.mxu0 %v8006_v38 }
 0xec6   : > { %8548 = vmatpush1.bf16.msra.mxu0 %v17438_v35  ;;  %10913 = vmatprep.mubr.f32.mxu0 %v8011_v63 }
 0xec7   : > { %8549 = vmatprep.subr.bf16.mxu0 %v17439_v28 }
 0xec9   : > { %10914 = vmatmul.mubr.f32.gmra.mxu0 %v8016_v6 }
 0xeca   : > { %8550 = vmatpush1.bf16.msra.mxu0 %v17440_v58  ;;  %8567 = vmatprep.mubr.bf16.mxu0 %v17387_v43 }
 0xecb   : > { %10916 = vmatprep.subr.bf16.mxu0 %v17441_v50 }
 0xf22   : > { %v8503_v22 = vpop.xlane.xlu1 %8502 }
 0xf23   : > { %11711 = vrcp.f32 %v8503_v22  ;;  %v8506_v0 = vpop.xlane.xlu0 %8505 }
 0xf24   : > { %11713 = vrcp.f32 %v8506_v0 }
 0xf26   : > { %v8509_v41 = vpop.xlane.xlu1 %8508 }
 0xf27   : > { %11715 = vrcp.f32 %v8509_v41  ;;  %v8512_v51 = vpop.xlane.xlu0 %8511 }
 0xf28   : > { %11717 = vrcp.f32 %v8512_v51 }
 0xf2a   : > { %v9140_v55 = vpop.xlane.xlu1 %9139 }
 0xf2b   : > { %v9151_v40 = vsub.f32 %v16305_v34, %v9140_v55  ;;  %v9143_v48 = vpop.xlane.xlu0 %9142 }
 0xf2c   : > { %v9152_v19 = vsub.f32 %v16311_v12, %v9143_v48 }
 0xf2d   : > { %v9155_v31 = vmul.f32 1.442695, %v9151_v40 }
 0xf2e   : > { %v9157_v11 = vmul.f32 1.442695, %v9152_v19  ;;  %v9146_v56 = vpop.xlane.xlu1 %9145 }
 0xf2f   : > { %11719 = vpow2.f32 %v9155_v31  ;;  %v9153_v25 = vsub.f32 %v16329_v16, %v9146_v56  ;;  %v9150_v2 = vpop.xlane.xlu0 %9149 }
 0xf30   : > { %v11712_v44 = vpop.eup %11711  ;;  %11721 = vpow2.f32 %v9157_v11  ;;  %v9154_v57 = vsub.f32 %v16336_v54, %v9150_v2  ;;  %v17455_v2 = vld [vmem:[#allocation37_spill] sm:$0xff] }
 0xf31   : > { %v11714_v30 = vpop.eup %11713  ;;  %v9159_v1 = vmul.f32 1.442695, %v9153_v25  ;;  %v8517_v49 = vmul.f32 %v11712_v44, %v16358_v60  ;;  %v5066_v44 = vmul.f32 %v17455_v2, %v17455_v2 }
 0xf32   : > { %v8518_v34 = vmul.f32 %v11714_v30, %v16360_v20  ;;  %v9161_v62 = vmul.f32 1.442695, %v9154_v57  ;;  %v17445_v20 = vld [vmem:[#allocation76_spill] sm:$0xff] }
 0xf33   : > { %11723 = vpow2.f32 %v9159_v1  ;;  %v17456_v57 = vld [vmem:[#allocation36_spill] sm:$0xff] }
 0xf34   : > { %v11716_v12 = vpop.eup %11715  ;;  %v8521_v15 = vpack.c.bf16 %v8518_v34, %v8517_v49  ;;  %11725 = vpow2.f32 %v9161_v62  ;;  %v5065_v30 = vmul.f32 %v17456_v57, %v17456_v57  ;;  %v17457_v1 = vld [vmem:[#allocation60_spill] sm:$0xff]  ;;  %v17458_v34 = vld [vmem:[#allocation41_spill] sm:$0xff] }
 0xf35   : > { %v11718_v9 = vpop.eup %11717  ;;  %v8519_v39 = vmul.f32 %v11716_v12, %v16366_v24  ;;  %v5067_v49 = vmul.f32 %v17457_v1, %v17457_v1  ;;  %v17459_v62 = vld [vmem:[#allocation61_spill] sm:$0xff] }
 0xf36   : > { %v8520_v16 = vmul.f32 %v11718_v9, %v16368_v61  ;;  %v8526_v37 = vrot.slane %v8521_v15, 1  ;;  %v16468_v12 = vadd.f32 %v17459_v62, %v17458_v34  ;;  %v5126_v9 = vsel %vm5124_vm6, %v5066_v44, 0.0  ;;  %v17473_v34 = vld [vmem:[#allocation70_spill] sm:$0xff] }
 0xf37   : > { %v5128_v15 = vsel %vm5124_vm6, %v5067_v49, 0.0  ;;  %v5064_v62 = vmul.f32 %v17473_v34, %v17473_v34 }
 0xf38   : > { %v8522_v17 = vpack.c.bf16 %v8520_v16, %v8519_v39  ;;  %v5125_v39 = vsel %vm5124_vm6, %v5065_v30, 0.0  ;;  %v5068_v16 = vmul.f32 %v16468_v12, %v16468_v12 }
 0xf3a   : > { %v8527_v13 = vrot.slane %v8522_v17, 1  ;;  %v17460_v17 = vld [vmem:[#allocation33_spill] sm:$0xff] }
 0xf3c   : > { %v16426_v54 = vpop.eup %11719  ;;  %v8528_v47 = vsel %vm17442_vm10, %v8526_v37, %v8527_v13  ;;  %v5127_v37 = vadd.f32 %v5126_v9, %v5125_v39 }
 0xf3d   : > { %v16429_v60 = vpop.eup %11721  ;;  %9167 = vrot.lane.b32.xlu1 %v16426_v54, %s12020_s30  ;;  %10279 = vmatmul.mubr.msk.bf16.vlgmr.msra.gmra.mxu0 %vm17443_vm3, %v8528_v47 }
 0xf3e   : > { %10281 = vmatmul.mubr.msk.bf16.vlgmr.msra.gmra.mxu1 %vm17444_vm9, %v8528_v47  ;;  %10917 = vmatpush3.bf16.msra.mxu0 %v17441_v50 }
 0xf3f   : > { %10918 = vmatprep.subr.bf16.mxu0 %v17445_v20  ;;  %9169 = vrot.lane.b32.xlu0 %v16429_v60, %s12020_s30 }
 0xf40   : > { %v16439_v24 = vpop.eup %11723  ;;  %8577 = vmatprep.mubr.bf16.mxu0 %v17387_v43  ;;  %8630 = vmatprep.mubr.bf16.mxu1 %v17387_v43 }
 0xf41   : > { %9171 = vrot.lane.b32.xlu1 %v16439_v24, %s12020_s30  ;;  %v16446_v61 = vpop.eup %11725 }
 0xf42   : > { %10919 = vmatpush3.bf16.msra.mxu0 %v17445_v20 }
 0xf45   : > { %10280 = vmatmul.mubr.msk.bf16.gmra.mxu0 %vm17446_vm5, %v8527_v13  ;;  %9173 = vrot.lane.b32.xlu1 %v16446_v61, %s12020_s30 }
 0xf46   : > { %10282 = vmatmul.mubr.msk.bf16.gmra.mxu1 %vm17447_vm13, %v8527_v13  ;;  %10920 = vmatprep.mubr.msk.bf16.mxu0 %vm17448_vm7, %v8528_v47  ;;  %v17461_v47 = vld [vmem:[#allocation71_spill] sm:$0xff] }
 0xf47   : > { %v5069_v20 = vmul.f32 %v17461_v47, %v17461_v47 }
 0xf4d   : > { %10921 = vmatmul.mubr.msk.bf16.vlgmr.msra.gmra.mxu0 %vm17449_vm15, %v8527_v13  ;;  %v5056_v13 = vmul.f32 %v17460_v17, %v17460_v17 }
 0xf75   : > { %v8083_v8 = vpop.f32.mrf.mxu0  ;;  %v8168_v5 = vpop.f32.mrf.mxu1 }
 0xf76   : > { %v8169_v23 = vadd.f32 %v8168_v5, %v8083_v8  ;;  %v17462_v8 = vld [vmem:[#allocation32_spill] sm:$0xff] }
 0xf77   : > { %v8085_v10 = vpop.f32.mrf.mxu0  ;;  %v8170_v42 = vpop.f32.mrf.mxu1  ;;  %v5055_v5 = vmul.f32 %v17462_v8, %v17462_v8 }
 0xf78   : > { %v17464_v42 = vld [vmem:[#allocation40_spill] sm:$0xff] }
 0xf79   : > { %v8088_v14 = vpop.f32.mrf.mxu0  ;;  %v8173_v18 = vpop.f32.mrf.mxu1 }
 0xf7a   : > { %v8174_v52 = vadd.f32 %v8173_v18, %v8088_v14  ;;  %v17465_v14 = vld [vmem:[#allocation57_spill] sm:$0xff] }
 0xf7b   : > { %v8090_v7 = vpop.f32.mrf.mxu0  ;;  %v8175_v29 = vpop.f32.mrf.mxu1  ;;  %v16485_v18 = vadd.f32 %v17465_v14, %v17464_v42 }
 0xf7c   : > { %v5130_v7 = vsel %vm5124_vm6, %v5068_v16, 0.0  ;;  %v5112_v29 = vadd.f32 %v5056_v13, %v5055_v5 }
 0xf7d   : > { %v8093_v59 = vpop.f32.mrf.mxu0  ;;  %v8178_v4 = vpop.f32.mrf.mxu1 }
 0xf7e   : > { %v8179_v33 = vadd.f32 %v8178_v4, %v8093_v59  ;;  %v17466_v4 = vld [vmem:[#allocation34_spill] sm:$0xff] }
 0xf7f   : > { %v8095_v21 = vpop.f32.mrf.mxu0  ;;  %v8180_v53 = vpop.f32.mrf.mxu1 }
 0xf80   : > { %v5132_v53 = vsel %vm5124_vm6, %v5069_v20, 0.0 }
 0xf81   : > { %v8098_v27 = vpop.f32.mrf.mxu0  ;;  %v8183_v38 = vpop.f32.mrf.mxu1 }
 0xf82   : > { %v8184_v63 = vadd.f32 %v8183_v38, %v8098_v27  ;;  %v17467_v27 = vld [vmem:[#allocation35_spill] sm:$0xff] }
 0xf83   : > { %v8100_v35 = vpop.f32.mrf.mxu0  ;;  %v8185_v28 = vpop.f32.mrf.mxu1  ;;  %v5061_v38 = vmul.f32 %v17467_v27, %v17467_v27 }
 0xf84   : > { %v5058_v35 = vmul.f32 %v16485_v18, %v16485_v18 }
 0xf85   : > { %v10912_v6 = vpop.f32.mrf.mxu0 }
 0xf86   : > { %v8259_v58 = vadd.f32 %v10912_v6, %v8174_v52  ;;  %v5129_v52 = vadd.f32 %v5128_v15, %v5127_v37 }
 0xf87   : > { %v8253_v50 = vpop.f32.mrf.mxu0 }
 0xf88   : > { %v8254_v22 = vadd.f32 %v8253_v50, %v8169_v23  ;;  %v8273_v41 = vsel %vm17450_vm11, %v8259_v58, -inf  ;;  %v17463_v23 = vld [vmem:[#allocation56_spill] sm:$0xff]  ;;  %v5131_v6 = vadd.f32 %v5130_v7, %v5129_v52  ;;  %v17469_v50 = vld [vmem:[#allocation58_spill] sm:$0xff] }
 0xf89   : > { %v10915_v0 = vpop.f32.mrf.mxu0  ;;  %v5057_v10 = vmul.f32 %v17463_v23, %v17463_v23 }
 0xf8a   : > { %v8272_v51 = vsel %vm17451_vm14, %v8254_v22, -inf  ;;  %v8269_v55 = vadd.f32 %v10915_v0, %v8184_v63  ;;  %v5062_v22 = vmul.f32 %v17469_v50, %v17469_v50 }
 0xf8b   : > { %v8276_v40 = vmax.f32 %v8272_v51, %v8273_v41  ;;  %v8263_v48 = vpop.f32.mrf.mxu0  ;;  %v5113_v63 = vadd.f32 %v5112_v29, %v5057_v10  ;;  %v5133_v41 = vadd.f32 %v5132_v53, %v5131_v6  ;;  %v17470_v51 = vld [vmem:[#allocation69_spill] sm:$0xff] }
 0xf8c   : > { %v8264_v19 = vadd.f32 %v8263_v48, %v8179_v33  ;;  %v8275_v31 = vsel %vm17452_vm8, %v8269_v55, -inf  ;;  %v5060_v33 = vmul.f32 %v17466_v4, %v17466_v4  ;;  %v5059_v55 = vmul.f32 %v17470_v51, %v17470_v51 }
 0xf8d   : > { %vm17480_vm8 = vcmask 1046528  }
 0xf8e   : > { %v8274_v11 = vsel %vm17453_vm1, %v8264_v19, -inf  ;;  %v5118_v48 = vadd.f32 %v5061_v38, %v5060_v33  ;;  %v5114_v19 = vadd.f32 %v5113_v63, %v5058_v35  ;;  %vm8810_vm1 = vcmask 1045504  }
 0xf8f   : > { %v8277_v56 = vmax.f32 %v8274_v11, %v8275_v31  ;;  %v17472_v11 = vld [vmem:[#allocation59_spill] sm:$0xff] }
 0xf90   : > { %v5119_v31 = vadd.f32 %v5118_v48, %v5062_v22  ;;  %v5115_v30 = vadd.f32 %v5114_v19, %v5059_v55 }
 0xf91   : > { %v16458_v25 = vmax.f32 %v8276_v40, %v8277_v56  ;;  %v5063_v56 = vmul.f32 %v17472_v11, %v17472_v11 }
 0xf93   : > { %17454 = vst [vmem:[#allocation25_spill] sm:$0xff] %v16458_v25  ;;  %v5120_v9 = vadd.f32 %v5119_v31, %v5063_v56 }
 0xf95   : > { %v5121_v39 = vadd.f32 %v5120_v9, %v5064_v62 }
 0xfaf   : > { %v9168_v59 = vpop.permute.xlu1 %9167 }
 0xfb0   : > { %v9179_v21 = vsel %vm8475_vm2, %v9168_v59, 0.0  ;;  %vm17471_vm2 = vmmov %vm17468_vm0 }
 0xfb1   : > { %v9170_v28 = vpop.permute.xlu0 %9169  ;;  %9180 = vadd.xlane.f32.xlu1 %v9179_v21 }
 0xfb2   : > { %v9182_v58 = vsel %vm17468_vm0, %v9170_v28, 0.0 }
 0xfb3   : > { %9183 = vadd.xlane.f32.xlu0 %v9182_v58  ;;  %v9172_v0 = vpop.permute.xlu1 %9171 }
 0xfb4   : > { %v9185_v40 = vsel %vm17471_vm2, %v9172_v0, 0.0 }
 0xfb5   : > { %5134 = vadd.xlane.f32.xlu1 %v5133_v41 }
 0xfb7   : > { %9186 = vadd.xlane.f32.xlu0 %v9185_v40  ;;  %v9174_v44 = vpop.permute.xlu1 %9173 }
 0xfb8   : > { %v9188_v49 = vsel %vm8485_vm4, %v9174_v44, 0.0  ;;  %vm17474_vm4 = vcmask 1040384  }
 0xfb9   : > { %5116 = vadd.xlane.f32.xlu1 %v5115_v30  ;;  %vm17475_vm12 = vmmov %vm17474_vm4 }
 0xfba   : > { %vm17476_vm10 = vmmov %vm17474_vm4 }
 0xfbb   : > { %9189 = vadd.xlane.f32.xlu0 %v9188_v49  ;;  %vm17478_vm3 = vmmov %vm17474_vm4 }
 0xfbc   : > { %vm17479_vm9 = vmmov %vm17478_vm3 }
 0xfbf   : > { %5122 = vadd.xlane.f32.xlu0 %v5121_v39 }
 0xffd   : > { %v16507_v15 = vpop.f32.mrf.mxu0 }
 0xffe   : > { %v16509_v16 = vpop.f32.mrf.mxu1  ;;  %v8690_v7 = vmul.f32 %v16507_v15, %v16507_v15 }
 0xfff   : > { %v16511_v13 = vpop.f32.mrf.mxu0  ;;  %v8692_v28 = vmul.f32 %v16509_v16, %v16509_v16 }
0x1000   : > { %v16513_v37 = vpop.f32.mrf.mxu1  ;;  %v8691_v42 = vmul.f32 %v16511_v13, %v16511_v13 }
0x1001   : > { %v16515_v20 = vpop.f32.mrf.mxu0  ;;  %v8693_v31 = vmul.f32 %v16513_v37, %v16513_v37 }
0x1002   : > { %v16517_v5 = vpop.f32.mrf.mxu1  ;;  %v8710_v33 = vadd.f32 %v8691_v42, %v8690_v7  ;;  %v8695_v6 = vmul.f32 %v16515_v20, %v16515_v20 }
0x1003   : > { %v16519_v10 = vpop.f32.mrf.mxu0  ;;  %v8697_v30 = vmul.f32 %v16517_v5, %v16517_v5 }
0x1004   : > { %v16523_v14 = vpop.f32.mrf.mxu1  ;;  %v8696_v21 = vmul.f32 %v16519_v10, %v16519_v10  ;;  %v8711_v55 = vadd.f32 %v8710_v33, %v8692_v28 }
0x1005   : > { %v16525_v52 = vpop.f32.mrf.mxu0  ;;  %v8698_v28 = vmul.f32 %v16523_v14, %v16523_v14 }
0x1006   : > { %v16529_v29 = vpop.f32.mrf.mxu1  ;;  %v8700_v53 = vmul.f32 %v16525_v52, %v16525_v52  ;;  %v8716_v40 = vadd.f32 %v8696_v21, %v8695_v6  ;;  %v8712_v33 = vadd.f32 %v8711_v55, %v8693_v31 }
0x1007   : > { %v16531_v59 = vpop.f32.mrf.mxu0  ;;  %v8702_v48 = vmul.f32 %v16529_v29, %v16529_v29 }
0x1008   : > { %v8701_v38 = vmul.f32 %v16531_v59, %v16531_v59  ;;  %v16539_v63 = vpop.f32.mrf.mxu1  ;;  %v8717_v21 = vadd.f32 %v8716_v40, %v8697_v30 }
0x1009   : > { %v16541_v35 = vpop.f32.mrf.mxu0 }
0x100a   : > { %v8722_v58 = vadd.f32 %v8701_v38, %v8700_v53  ;;  %v8705_v22 = vmul.f32 %v16541_v35, %v16541_v35  ;;  %v16549_v0 = vpop.f32.mrf.mxu1  ;;  %v8703_v53 = vmul.f32 %v16539_v63, %v16539_v63 }
0x100b   : > { %v16551_v41 = vpop.f32.mrf.mxu0  ;;  %v8707_v56 = vmul.f32 %v16549_v0, %v16549_v0 }
0x100c   : > { %v8706_v19 = vmul.f32 %v16551_v41, %v16551_v41  ;;  %v8723_v49 = vadd.f32 %v8722_v58, %v8702_v48  ;;  %v8728_v62 = vsel %vm17474_vm4, %v8705_v22, 0.0  ;;  %v16567_v39 = vpop.f32.mrf.mxu1 }
0x100d   : > { %v16561_v44 = vpop.f32.mrf.mxu0  ;;  %v8731_v6 = vsel %vm17476_vm10, %v8707_v56, 0.0  ;;  %v8708_v58 = vmul.f32 %v16567_v39, %v16567_v39 }
0x100e   : > { %v8729_v9 = vsel %vm17475_vm12, %v8706_v19, 0.0  ;;  %v8724_v48 = vadd.f32 %v8723_v49, %v8703_v53  ;;  %v8704_v55 = vmul.f32 %v16561_v44, %v16561_v44 }
0x100f   : > { %v8730_v42 = vadd.f32 %v8729_v9, %v8728_v62  ;;  %v16569_v7 = vpop.f32.mrf.mxu0  ;;  %v8718_v62 = vadd.f32 %v8717_v21, %v8698_v28  ;;  %v8733_v9 = vsel %vm17478_vm3, %v8708_v58, 0.0 }
0x1010   : > { %v8694_v38 = vmul.f32 %v16569_v7, %v16569_v7  ;;  %v8725_v43 = vadd.f32 %v8724_v48, %v8704_v55 }
0x1011   : > { %v16580_v22 = vpop.f32.mrf.mxu0  ;;  %v8732_v19 = vadd.f32 %v8731_v6, %v8730_v42 }
0x1012   : > { %17477 = vst [vmem:[#allocation24_spill] sm:$0xff] %v16580_v22  ;;  %v8713_v40 = vadd.f32 %v8712_v33, %v8694_v38  ;;  %v8709_v31 = vmul.f32 %v16580_v22, %v16580_v22 }
0x1013   : > { %v16586_v30 = vpop.f32.mrf.mxu0  ;;  %v8734_v25 = vadd.f32 %v8733_v9, %v8732_v19 }
0x1014   : > { %v8699_v56 = vmul.f32 %v16586_v30, %v16586_v30  ;;  %8714 = vadd.xlane.f32.xlu0 %v8713_v40  ;;  %v8735_v42 = vsel %vm17479_vm9, %v8709_v31, 0.0 }
0x1015   : > { %v8736_v33 = vadd.f32 %v8735_v42, %v8734_v25 }
0x1016   : > { %v8719_v49 = vadd.f32 %v8718_v62, %v8699_v56 }
0x1018   : > { %8720 = vadd.xlane.f32.xlu1 %v8719_v49  ;;  %8726 = vadd.xlane.f32.xlu0 %v8725_v43 }
0x101c   : > { %8737 = vadd.xlane.f32.xlu1 %v8736_v33 }
0x103a   : > { %v9181_v53 = vpop.xlane.xlu1 %9180 }
0x103b   : > { %11727 = vrcp.f32 %v9181_v53 }
0x103c   : > { %v9184_v38 = vpop.xlane.xlu0 %9183 }
0x103d   : > { %11729 = vrcp.f32 %v9184_v38 }
0x103e   : > { %v5135_v21 = vpop.xlane.xlu1 %5134 }
0x103f   : > { %11731 = vrsqrt.f32 %v5135_v21  ;;  %vm5201_vm5 = vcmp.eq.f32.partialorder %v5135_v21, inf  ;;  %v5204_v25 = vand.u32 2147483648, %v5135_v21  ;;  %vm5203_vm13 = vcmp.eq.f32.partialorder %v5135_v21, 0.0 }
0x1040   : > { %v9187_v28 = vpop.xlane.xlu0 %9186 }
0x1041   : > { %11733 = vrcp.f32 %v9187_v28 }
0x1042   : > { %v5117_v6 = vpop.xlane.xlu1 %5116 }
0x1043   : > { %11735 = vrsqrt.f32 %v5117_v6  ;;  %vm5187_vm7 = vcmp.eq.f32.partialorder %v5117_v6, inf  ;;  %vm5189_vm15 = vcmp.eq.f32.partialorder %v5117_v6, 0.0  ;;  %v5190_v28 = vand.u32 2147483648, %v5117_v6 }
0x1044   : > { %v9190_v58 = vpop.xlane.xlu0 %9189 }
0x1045   : > { %11737 = vrcp.f32 %v9190_v58 }
0x1048   : > { %v5123_v48 = vpop.xlane.xlu0 %5122  ;;  %v11728_v19 = vpop.eup %11727 }
0x1049   : > { %11739 = vrsqrt.f32 %v5123_v48  ;;  %v9195_v31 = vmul.f32 %v11728_v19, %v16426_v54  ;;  %vm5194_vm11 = vcmp.eq.f32.partialorder %v5123_v48, inf  ;;  %vm5196_vm14 = vcmp.eq.f32.partialorder %v5123_v48, 0.0 }
0x104a   : > { %v11730_v55 = vpop.eup %11729 }
0x104b   : > { %v9196_v62 = vmul.f32 %v11730_v55, %v16429_v60 }
0x104c   : > { %v11732_v40 = vpop.eup %11731 }
0x104d   : > { %v5200_v43 = vmul.f32 %v11732_v40, %v5135_v21  ;;  %v9199_v58 = vpack.c.bf16 %v9196_v62, %v9195_v31 }
0x104e   : > { %v11734_v56 = vpop.eup %11733 }
0x104f   : > { %v5202_v9 = vsel %vm5201_vm5, %v5135_v21, %v5200_v43  ;;  %v9197_v22 = vmul.f32 %v11734_v56, %v16439_v24  ;;  %vm17486_vm5 = vcmask 203776  }
0x1050   : > { %v11736_v49 = vpop.eup %11735  ;;  %v5205_v42 = vsel %vm5203_vm13, %v5204_v25, %v5202_v9  ;;  %v9203_v9 = vrot.slane %v9199_v58, 1  ;;  %vm17492_vm13 = vmmov %vm17486_vm5 }
0x1051   : > { %v5215_v33 = vadd.f32 1e-16, %v5205_v42  ;;  %v5186_v53 = vmul.f32 %v11736_v49, %v5117_v6  ;;  %v5197_v49 = vand.u32 2147483648, %v5123_v48 }
0x1052   : > { %v11738_v38 = vpop.eup %11737 }
0x1053   : > { %11741 = vrcp.f32 %v5215_v33  ;;  %v5188_v40 = vsel %vm5187_vm7, %v5117_v6, %v5186_v53  ;;  %v9198_v54 = vmul.f32 %v11738_v38, %v16446_v61  ;;  %vm17493_vm7 = vmmov %vm17486_vm5 }
0x1054   : > { %v5191_v19 = vsel %vm5189_vm15, %v5190_v28, %v5188_v40  ;;  %vm17495_vm15 = vmmov %vm17486_vm5 }
0x1055   : > { %v5213_v60 = vadd.f32 1e-16, %v5191_v19  ;;  %v9200_v55 = vpack.c.bf16 %v9198_v54, %v9197_v22 }
0x1056   : > { %v11740_v43 = vpop.eup %11739 }
0x1057   : > { %11743 = vrcp.f32 %v5213_v60  ;;  %v5193_v21 = vmul.f32 %v11740_v43, %v5123_v48  ;;  %v9204_v25 = vrot.slane %v9200_v55, 1 }
0x1059   : > { %v5195_v42 = vsel %vm5194_vm11, %v5123_v48, %v5193_v21  ;;  %9208 = vrot.lane.b32.xlu1 %v9204_v25, %s12020_s30  ;;  %v9205_v6 = vsel %vm17480_vm8, %v9203_v9, %v9204_v25  ;;  %vm17496_vm11 = vmmov %vm17486_vm5 }
0x105a   : > { %v5198_v31 = vsel %vm5196_vm14, %v5197_v49, %v5195_v42  ;;  %9206 = vrot.lane.b32.xlu0 %v9205_v6, %s12020_s30  ;;  %vm17497_vm14 = vmmov %vm17486_vm5 }
0x105b   : > { %v5214_v24 = vadd.f32 1e-16, %v5198_v31  ;;  %vm17500_vm8 = vmmov %vm17486_vm5 }
0x105d   : > { %11745 = vrcp.f32 %v5214_v24 }
0x1060   : > { %v11742_v61 = vpop.eup %11741 }
0x1061   : > { %v5272_v22 = vmul.f32 %v11742_v61, %v17455_v2  ;;  %v5274_v62 = vmul.f32 %v11742_v61, %v16468_v12  ;;  %v5271_v56 = vmul.f32 %v11742_v61, %v17456_v57  ;;  %v5273_v33 = vmul.f32 %v11742_v61, %v17457_v1 }
0x1062   : > { %v5275_v57 = vmul.f32 %v11742_v61, %v17461_v47  ;;  %v8823_v12 = vrot.slane %v16029_v45, 2 }
0x1063   : > { %v16603_v53 = vrot.slane %v5272_v22, 2  ;;  %v16605_v48 = vrot.slane %v5274_v62, 2  ;;  %v16607_v38 = vrot.slane %v5271_v56, 2  ;;  %v16609_v28 = vrot.slane %v5273_v33, 2 }
0x1064   : > { %v11744_v58 = vpop.eup %11743  ;;  %v16628_v25 = vrot.slane %v5275_v57, 2  ;;  %v8814_v56 = vrot.slane %v15949_v26, 2  ;;  %v8820_v33 = vrot.slane %v15952_v46, 2  ;;  %v8811_v26 = vrot.slane %v15955_v32, 2 }
0x1065   : > { %8890 = vmatprep.subr.mxu1 %v16603_v53  ;;  %8975 = vmatprep.subr.mxu0 %v16605_v48  ;;  %v5265_v2 = vmul.f32 %v11744_v58, %v17470_v51  ;;  %v5262_v54 = vmul.f32 %v11744_v58, %v17460_v17  ;;  %v5264_v19 = vmul.f32 %v11744_v58, %v16485_v18  ;;  %v8817_v46 = vrot.slane %v15958_v36, 2 }
0x1066   : > { %8891 = vmatpush1.xpose.msra.mxu1 %v16607_v38  ;;  %8976 = vmatpush1.xpose.msra.mxu0 %v16609_v28  ;;  %v5261_v47 = vmul.f32 %v11744_v58, %v17462_v8 }
0x1067   : > { %v8824_v1 = vrot.slane %v5265_v2, 2  ;;  %v8815_v42 = vrot.slane %v5262_v54, 2  ;;  %v8821_v6 = vrot.slane %v5264_v19, 2 }
0x1068   : > { %v8812_v22 = vrot.slane %v5261_v47, 2 }
0x1069   : > { %v16621_v60 = vsel %vm8810_vm1, %v8823_v12, %v8824_v1  ;;  %v16678_v57 = vsel %vm8810_vm1, %v8814_v56, %v8815_v42 }
0x106a   : > { %v11746_v40 = vpop.eup %11745  ;;  %v16688_v12 = vsel %vm8810_vm1, %v8811_v26, %v8812_v22 }
0x106b   : > { %v5267_v55 = vmul.f32 %v11746_v40, %v17467_v27  ;;  %v5269_v43 = vmul.f32 %v11746_v40, %v17472_v11  ;;  %v5266_v51 = vmul.f32 %v11746_v40, %v17466_v4  ;;  %v5268_v21 = vmul.f32 %v11746_v40, %v17469_v50 }
0x106c   : > { %v5270_v45 = vmul.f32 %v11746_v40, %v17473_v34  ;;  %v5263_v27 = vmul.f32 %v11744_v58, %v17463_v23 }
0x106d   : > { %v8828_v17 = vrot.slane %v5267_v55, 2  ;;  %v8832_v9 = vrot.slane %v5269_v43, 2  ;;  %v8826_v18 = vrot.slane %v5266_v51, 2  ;;  %v8830_v49 = vrot.slane %v5268_v21, 2 }
0x106e   : > { %v8834_v31 = vrot.slane %v5270_v45, 2  ;;  %v8818_v62 = vrot.slane %v5263_v27, 2 }
0x106f   : > { %v16634_v4 = vsel %vm8810_vm1, %v8828_v17, %v16603_v53  ;;  %v16638_v8 = vsel %vm8810_vm1, %v8832_v9, %v16605_v48  ;;  %v16642_v50 = vsel %vm8810_vm1, %v8826_v18, %v16607_v38  ;;  %v16646_v11 = vsel %vm8810_vm1, %v8830_v49, %v16609_v28 }
0x1070   : > { %8892 = vmatprep.subr.mxu1 %v16634_v4  ;;  %8977 = vmatprep.subr.mxu0 %v16638_v8  ;;  %v16651_v23 = vsel %vm8810_vm1, %v8815_v42, %v8828_v17  ;;  %v16656_v34 = vsel %vm8810_vm1, %v8821_v6, %v8832_v9  ;;  %v16660_v24 = vsel %vm8810_vm1, %v8834_v31, %v16628_v25 }
0x1071   : > { %8893 = vmatpush1.xpose.msra.mxu1 %v16642_v50  ;;  %8978 = vmatpush1.xpose.msra.mxu0 %v16646_v11  ;;  %v16663_v61 = vsel %vm8810_vm1, %v8824_v1, %v8834_v31  ;;  %v16670_v58 = vsel %vm8810_vm1, %v8812_v22, %v8826_v18  ;;  %v16673_v2 = vsel %vm8810_vm1, %v8818_v62, %v8830_v49 }
0x1072   : > { %8894 = vmatprep.subr.mxu1 %v16651_v23  ;;  %8979 = vmatprep.subr.mxu0 %v16656_v34  ;;  %v16681_v1 = vsel %vm8810_vm1, %v8820_v33, %v8821_v6  ;;  %v16691_v40 = vsel %vm8810_vm1, %v8817_v46, %v8818_v62  ;;  %vm17501_vm1 = vmmov %vm17486_vm5 }
0x1075   : > { %8895 = vmatpush1.xpose.msra.mxu1 %v16670_v58  ;;  %8980 = vmatpush1.xpose.msra.mxu0 %v16673_v2 }
0x1076   : > { %8896 = vmatprep.subr.mxu1 %v16678_v57  ;;  %8981 = vmatprep.subr.mxu0 %v16681_v1 }
0x1079   : > { %8897 = vmatpush1.xpose.msra.mxu1 %v16688_v12  ;;  %8982 = vmatpush1.xpose.msra.mxu0 %v16691_v40 }
0x107a   : > { %10924 = vmatprep.subr.mxu1 %v16628_v25  ;;  %9281 = vmatprep.subr.bf16.mxu0 %v17375_v3 }
0x109d   : > { %v8715_v54 = vpop.xlane.xlu0 %8714 }
0x109e   : > { %11747 = vrsqrt.f32 %v8715_v54  ;;  %vm8741_vm6 = vcmp.eq.f32.partialorder %v8715_v54, inf  ;;  %v8744_v51 = vand.u32 2147483648, %v8715_v54  ;;  %vm8743_vm0 = vcmp.eq.f32.partialorder %v8715_v54, 0.0 }
0x10a1   : > { %v8721_v19 = vpop.xlane.xlu1 %8720  ;;  %v8727_v32 = vpop.xlane.xlu0 %8726 }
0x10a2   : > { %11749 = vrsqrt.f32 %v8721_v19  ;;  %vm8748_vm2 = vcmp.eq.f32.partialorder %v8721_v19, inf  ;;  %vm8750_vm4 = vcmp.eq.f32.partialorder %v8721_v19, 0.0  ;;  %v8751_v3 = vand.u32 2147483648, %v8721_v19 }
0x10a3   : > { %11751 = vrsqrt.f32 %v8727_v32  ;;  %vm8755_vm12 = vcmp.eq.f32.partialorder %v8727_v32, inf  ;;  %v8758_v6 = vand.u32 2147483648, %v8727_v32  ;;  %vm8757_vm10 = vcmp.eq.f32.partialorder %v8727_v32, 0.0 }
0x10a5   : > { %v8738_v36 = vpop.xlane.xlu1 %8737 }
0x10a6   : > { %11753 = vrsqrt.f32 %v8738_v36  ;;  %vm8762_vm3 = vcmp.eq.f32.partialorder %v8738_v36, inf  ;;  %v8765_v46 = vand.u32 2147483648, %v8738_v36  ;;  %vm8764_vm9 = vcmp.eq.f32.partialorder %v8738_v36, 0.0 }
0x10ab   : > { %v11748_v55 = vpop.eup %11747 }
0x10ac   : > { %v8740_v43 = vmul.f32 %v11748_v55, %v8715_v54 }
0x10ae   : > { %v8742_v21 = vsel %vm8741_vm6, %v8715_v54, %v8740_v43  ;;  %vm17502_vm6 = vcmask 196608  }
0x10af   : > { %v11750_v47 = vpop.eup %11749  ;;  %v8745_v45 = vsel %vm8743_vm0, %v8744_v51, %v8742_v21  ;;  %vm17504_vm0 = vmmov %vm17501_vm1 }
0x10b0   : > { %v11752_v17 = vpop.eup %11751  ;;  %v8767_v9 = vadd.f32 1e-16, %v8745_v45  ;;  %v8747_v18 = vmul.f32 %v11750_v47, %v8721_v19 }
0x10b1   : > { %v8754_v49 = vmul.f32 %v11752_v17, %v8727_v32 }
0x10b2   : > { %11755 = vrcp.f32 %v8767_v9  ;;  %v8749_v42 = vsel %vm8748_vm2, %v8721_v19, %v8747_v18  ;;  %vm17506_vm2 = vcmask 1040384  }
0x10b3   : > { %v11754_v27 = vpop.eup %11753  ;;  %v8752_v31 = vsel %vm8750_vm4, %v8751_v3, %v8749_v42  ;;  %v8756_v22 = vsel %vm8755_vm12, %v8727_v32, %v8754_v49  ;;  %vm17507_vm4 = vmmov %vm17506_vm2 }
0x10b4   : > { %v8768_v62 = vadd.f32 1e-16, %v8752_v31  ;;  %v8759_v56 = vsel %vm8757_vm10, %v8758_v6, %v8756_v22  ;;  %v8761_v33 = vmul.f32 %v11754_v27, %v8738_v36  ;;  %v17489_v6 = vld [vmem:[#allocation24_spill] sm:$0xff]  ;;  %v17491_v31 = vld [vmem:[#allocation63_spill] sm:$0xff]  ;;  %vm17508_vm12 = vmmov %vm17506_vm2 }
0x10b5   : > { %v8769_v26 = vadd.f32 1e-16, %v8759_v56  ;;  %vm17509_vm10 = vmmov %vm17506_vm2 }
0x10b6   : > { %11757 = vrcp.f32 %v8768_v62  ;;  %v8763_v54 = vsel %vm8762_vm3, %v8738_v36, %v8761_v33  ;;  %v17481_v36 = vld [vmem:[#allocation64_spill] sm:$0xff]  ;;  %vm17510_vm3 = vmmov %vm17506_vm2 }
0x10b7   : > { %11759 = vrcp.f32 %v8769_v26  ;;  %v8766_v55 = vsel %vm8764_vm9, %v8765_v46, %v8763_v54  ;;  %vm17511_vm9 = vmmov %vm17504_vm0 }
0x10b8   : > { %v8770_v43 = vadd.f32 1e-16, %v8766_v55 }
0x10ba   : > { %11761 = vrcp.f32 %v8770_v43 }
0x10bf   : > { %v11756_v19 = vpop.eup %11755 }
0x10c0   : > { %v8776_v51 = vmul.f32 %v11756_v19, %v16511_v13  ;;  %v8778_v21 = vmul.f32 %v11756_v19, %v16513_v37  ;;  %v8775_v32 = vmul.f32 %v11756_v19, %v16507_v15  ;;  %v8777_v47 = vmul.f32 %v11756_v19, %v16509_v16  ;;  %v17482_v15 = vld [vmem:[#allocation9_spill] sm:$0xff] }
0x10c2   : > { %8930 = vmatprep.mubr.f32.mxu1 %v8776_v51  ;;  %9015 = vmatprep.mubr.f32.mxu0 %v8778_v21 }
0x10c3   : > { %v11758_v45 = vpop.eup %11757  ;;  %8931 = vmatmul.mubr.f32.vlgmr.msra.gmra.mxu1 %v8775_v32  ;;  %9016 = vmatmul.mubr.f32.vlgmr.msra.gmra.mxu0 %v8777_v47 }
0x10c4   : > { %v11760_v17 = vpop.eup %11759  ;;  %10925 = vmatpush3.xpose.msra.mxu1 %v16628_v25  ;;  %9282 = vmatpush1.bf16.msra.mxu0 %v17481_v36  ;;  %v8781_v9 = vmul.f32 %v11758_v45, %v16519_v10  ;;  %v8783_v13 = vmul.f32 %v11758_v45, %v16523_v14  ;;  %v8780_v37 = vmul.f32 %v11758_v45, %v16515_v20  ;;  %v17483_v10 = vld [vmem:[#allocation3_spill] sm:$0xff] }
0x10c5   : > { %10926 = vmatprep.subr.mxu1 %v16660_v24  ;;  %9283 = vmatprep.subr.bf16.mxu0 %v17482_v15  ;;  %v8782_v16 = vmul.f32 %v11758_v45, %v16517_v5  ;;  %v8786_v3 = vmul.f32 %v11760_v17, %v16531_v59  ;;  %v8788_v49 = vmul.f32 %v11760_v17, %v16539_v63 }
0x10c6   : > { %8935 = vmatprep.mubr.f32.mxu1 %v8781_v9  ;;  %9020 = vmatprep.mubr.f32.mxu0 %v8783_v13  ;;  %v8785_v20 = vmul.f32 %v11760_v17, %v16525_v52  ;;  %v8787_v14 = vmul.f32 %v11760_v17, %v16529_v29  ;;  %v8779_v63 = vmul.f32 %v11756_v19, %v16569_v7  ;;  %v17488_v7 = vld [vmem:[#allocation5_spill] sm:$0xff] }
0x10c7   : > { %v11762_v18 = vpop.eup %11761  ;;  %8936 = vmatmul.mubr.f32.gmra.mxu1 %v8780_v37  ;;  %9021 = vmatmul.mubr.f32.gmra.mxu0 %v8782_v16  ;;  %v17498_v9 = vld [vmem:[#allocation65_spill] sm:$0xff] }
0x10c8   : > { %10927 = vmatpush3.xpose.msra.mxu1 %v16660_v24  ;;  %9284 = vmatpush1.bf16.msra.mxu0 %v17483_v10  ;;  %v8791_v5 = vmul.f32 %v11762_v18, %v16551_v41  ;;  %v8793_v59 = vmul.f32 %v11762_v18, %v16567_v39  ;;  %v8790_v52 = vmul.f32 %v11762_v18, %v16541_v35  ;;  %v17484_v41 = vld [vmem:[#allocation42_spill] sm:$0xff]  ;;  %v17485_v39 = vmov 0  }
0x10c9   : > { %8940 = vmatprep.mubr.f32.mxu1 %v8786_v3  ;;  %9025 = vmatprep.mubr.f32.mxu0 %v8788_v49  ;;  %v8792_v29 = vmul.f32 %v11762_v18, %v16549_v0  ;;  %v8789_v35 = vmul.f32 %v11760_v17, %v16561_v44  ;;  %v17487_v0 = vld [vmem:[#allocation43_spill] sm:$0xff]  ;;  %v8794_v27 = vmul.f32 %v11762_v18, %v17489_v6  ;;  %v6794_v13 = vrot.slane %v17498_v9, 4  ;;  %v17499_v3 = vld [vmem:[#allocation38_spill] sm:$0xff] }
0x10ca   : > { %10928 = vmatprep.subr.mxu1 %v16663_v61  ;;  %9500 = vmatprep.subr.mxu0 %v16603_v53  ;;  %v8784_v53 = vmul.f32 %v11758_v45, %v16586_v30  ;;  %v17490_v30 = vld [vmem:[#allocation73_spill] sm:$0xff]  ;;  %v6041_v49 = vrot.slane %v17499_v3, 4 }
0x10cb   : > { %8941 = vmatmul.mubr.f32.gmra.mxu1 %v8785_v20  ;;  %9026 = vmatmul.mubr.f32.gmra.mxu0 %v8787_v14  ;;  %v9209_v44 = vpop.permute.xlu1 %9208 }
0x10cc   : > { %10929 = vmatpush3.xpose.msra.mxu1 %v16663_v61  ;;  %8945 = vmatprep.mubr.f32.mxu1 %v8791_v5  ;;  %v9207_v42 = vpop.permute.xlu0 %9206 }
0x10cd   : > { %9030 = vmatprep.mubr.f32.mxu0 %v8793_v59  ;;  %10930 = vmatprep.subr.mxu1 %v16621_v60 }
0x10cf   : > { %8946 = vmatmul.mubr.f32.gmra.mxu1 %v8790_v52  ;;  %9031 = vmatmul.mubr.f32.gmra.mxu0 %v8792_v29  ;;  %v6795_v52 = vmax.f32 %v17498_v9, %v6794_v13 }
0x10d0   : > { %10931 = vmatpush3.xpose.msra.mxu1 %v16621_v60  ;;  %10932 = vmatprep.mubr.f32.mxu1 %v8779_v63 }
0x10d1   : > { %9228 = vmatprep.subr.bf16.mxu1 %v17484_v41  ;;  %9301 = vmatprep.mubr.bf16.mxu0 %v17485_v39 }
0x10d3   : > { %10933 = vmatmul.mubr.f32.vlgmr.msra.gmra.mxu1 %v8784_v53  ;;  %10287 = vmatmul.mubr.msk.bf16.vlgmr.msra.gmra.mxu0 %vm17486_vm5, %v9207_v42  ;;  %v6042_v53 = vmax.f32 %v17499_v3, %v6041_v49  ;;  %vm17512_vm5 = vmmov %vm17504_vm0 }
0x10d4   : > { %9229 = vmatpush1.bf16.msra.mxu1 %v17487_v0  ;;  %9501 = vmatpush1.xpose.msra.mxu0 %v16607_v38  ;;  %v17494_v38 = vld [vmem:[#allocation8_spill] sm:$0xff] }
0x10d5   : > { %10935 = vmatprep.mubr.f32.mxu1 %v8789_v35  ;;  %9230 = vmatprep.subr.bf16.mxu1 %v17488_v7 }
0x10d6   : > { %9502 = vmatprep.subr.mxu0 %v16634_v4  ;;  %9311 = vmatprep.mubr.bf16.mxu0 %v17485_v39 }
0x10d7   : > { %10936 = vmatmul.mubr.f32.gmra.mxu1 %v8794_v27 }
0x10d8   : > { %9231 = vmatpush1.bf16.msra.mxu1 %v17490_v30  ;;  %9503 = vmatpush1.xpose.msra.mxu0 %v16642_v50 }
0x10d9   : > { %10938 = vmatprep.subr.bf16.mxu1 %v17491_v31  ;;  %9504 = vmatprep.subr.mxu0 %v16651_v23 }
0x10da   : > { %9248 = vmatprep.mubr.bf16.mxu1 %v17485_v39 }
0x10db   : > { %10285 = vmatmul.mubr.msk.bf16.vlgmr.msra.gmra.mxu1 %vm17492_vm13, %v9207_v42  ;;  %10288 = vmatmul.mubr.msk.bf16.gmra.mxu0 %vm17493_vm7, %v9209_v44  ;;  %vm17513_vm13 = vmmov %vm17504_vm0 }
0x10dc   : > { %10939 = vmatpush3.bf16.msra.mxu1 %v17491_v31  ;;  %9505 = vmatpush1.xpose.msra.mxu0 %v16670_v58  ;;  %vm17514_vm7 = vmmov %vm17504_vm0 }
0x10dd   : > { %10940 = vmatprep.subr.bf16.mxu1 %v17494_v38  ;;  %9506 = vmatprep.subr.mxu0 %v16678_v57 }
0x10de   : > { %9258 = vmatprep.mubr.bf16.mxu1 %v17485_v39 }
0x10e0   : > { %10941 = vmatpush3.bf16.msra.mxu1 %v17494_v38  ;;  %9507 = vmatpush1.xpose.msra.mxu0 %v16688_v12 }
0x10e1   : > { %9585 = vmatprep.subr.mxu1 %v16605_v48  ;;  %10946 = vmatprep.subr.mxu0 %v16628_v25 }
0x10e3   : > { %10286 = vmatmul.mubr.msk.bf16.gmra.mxu1 %vm17495_vm15, %v9209_v44  ;;  %vm17515_vm15 = vmmov %vm17504_vm0 }
0x10e4   : > { %10942 = vmatprep.mubr.msk.bf16.mxu1 %vm17496_vm11, %v9207_v42  ;;  %v17503_v42 = vld [vmem:[#allocation25_spill] sm:$0xff]  ;;  %vm6803_vm11 = vcmask 7168  }
0x10e5   : > { %v8279_v35 = vrot.slane %v17503_v42, 4 }
0x10eb   : > { %10943 = vmatmul.mubr.msk.bf16.vlgmr.msra.gmra.mxu1 %vm17497_vm14, %v9209_v44  ;;  %v17505_v44 = vld [vmem:[#allocation22_spill] sm:$0xff]  ;;  %vm6805_vm14 = vcmask 8192  }
0x10ec   : > { %9586 = vmatpush1.xpose.msra.mxu1 %v16609_v28  ;;  %v7659_v38 = vrot.slane %v17505_v44, 4 }
0x10ed   : > { %9587 = vmatprep.subr.mxu1 %v16638_v8 }
0x10f0   : > { %9588 = vmatpush1.xpose.msra.mxu1 %v16646_v11 }
0x10f1   : > { %9589 = vmatprep.subr.mxu1 %v16656_v34 }
0x10f4   : > { %9590 = vmatpush1.xpose.msra.mxu1 %v16673_v2 }
0x10f5   : > { %9591 = vmatprep.subr.mxu1 %v16681_v1 }
0x10f8   : > { %9592 = vmatpush1.xpose.msra.mxu1 %v16691_v40 }
0x1183   : > { %v8932_v48 = vpop.f32.mrf.mxu1  ;;  %v9017_v4 = vpop.f32.mrf.mxu0 }
0x1184   : > { %v9018_v45 = vadd.f32 %v9017_v4, %v8932_v48 }
0x1185   : > { %v8934_v50 = vpop.f32.mrf.mxu1  ;;  %v9019_v23 = vpop.f32.mrf.mxu0 }
0x1186   : > { %v6796_v50 = vrot.slane %v6795_v52, 2 }
0x1187   : > { %v8937_v58 = vpop.f32.mrf.mxu1  ;;  %v9022_v57 = vpop.f32.mrf.mxu0 }
0x1188   : > { %v9023_v15 = vadd.f32 %v9022_v57, %v8937_v58 }
0x1189   : > { %v8939_v12 = vpop.f32.mrf.mxu1  ;;  %v9024_v28 = vpop.f32.mrf.mxu0 }
0x118a   : > { %v8280_v28 = vmax.f32 %v17503_v42, %v8279_v35 }
0x118b   : > { %v8942_v22 = vpop.f32.mrf.mxu1  ;;  %v9027_v8 = vpop.f32.mrf.mxu0 }
0x118c   : > { %v9028_v21 = vadd.f32 %v9027_v8, %v8942_v22  ;;  %v8281_v49 = vrot.slane %v8280_v28, 2 }
0x118d   : > { %v8944_v62 = vpop.f32.mrf.mxu1  ;;  %v9029_v11 = vpop.f32.mrf.mxu0 }
0x118f   : > { %v8947_v56 = vpop.f32.mrf.mxu1  ;;  %v9032_v34 = vpop.f32.mrf.mxu0 }
0x1190   : > { %v9033_v17 = vadd.f32 %v9032_v34, %v8947_v56  ;;  %v6043_v56 = vrot.slane %v6042_v53, 2 }
0x1191   : > { %v8949_v33 = vpop.f32.mrf.mxu1  ;;  %v9034_v2 = vpop.f32.mrf.mxu0 }
0x1192   : > { %v6044_v35 = vmax.f32 %v6042_v53, %v6043_v56 }
0x1193   : > { %v10934_v26 = vpop.f32.mrf.mxu1  ;;  %v16762_v1 = vpop.f32.mrf.mxu0 }
0x1194   : > { %v9108_v14 = vadd.f32 %v10934_v26, %v9023_v15  ;;  %v9373_v23 = vmul.f32 %v16762_v1, %v16762_v1 }
0x1195   : > { %v9102_v40 = vpop.f32.mrf.mxu1  ;;  %v16764_v46 = vpop.f32.mrf.mxu0 }
0x1196   : > { %v9103_v16 = vadd.f32 %v9102_v40, %v9018_v45  ;;  %v9122_v27 = vsel %vm17504_vm0, %v9108_v14, -inf  ;;  %v7660_v40 = vmax.f32 %v17505_v44, %v7659_v38  ;;  %v6797_v45 = vmax.f32 %v6795_v52, %v6796_v50 }
0x1197   : > { %v10937_v54 = vpop.f32.mrf.mxu1  ;;  %v16766_v55 = vpop.f32.mrf.mxu0  ;;  %v8282_v50 = vmax.f32 %v8280_v28, %v8281_v49 }
0x1198   : > { %v9118_v18 = vadd.f32 %v10937_v54, %v9033_v17  ;;  %v9121_v63 = vsel %vm17501_vm1, %v9103_v16, -inf  ;;  %v9374_v54 = vmul.f32 %v16764_v46, %v16764_v46  ;;  %v6798_v42 = vrot.slane %v6797_v45, 1 }
0x1199   : > { %v9112_v43 = vpop.f32.mrf.mxu1  ;;  %v16768_v19 = vpop.f32.mrf.mxu0  ;;  %v9125_v48 = vmax.f32 %v9121_v63, %v9122_v27  ;;  %v8283_v28 = vrot.slane %v8282_v50, 1 }
0x119a   : > { %v9113_v36 = vadd.f32 %v9112_v43, %v9028_v21  ;;  %v9124_v41 = vsel %vm17502_vm6, %v9118_v18, -inf  ;;  %v9378_v43 = vmul.f32 %v16766_v55, %v16766_v55  ;;  %v9379_v63 = vmul.f32 %v16768_v19, %v16768_v19 }
0x119b   : > { %v16770_v51 = vpop.f32.mrf.mxu1  ;;  %v16772_v32 = vpop.f32.mrf.mxu0 }
0x119c   : > { %v9123_v5 = vsel %vm17500_vm8, %v9113_v36, -inf  ;;  %v9371_v39 = vmul.f32 %v16770_v51, %v16770_v51  ;;  %v9383_v16 = vmul.f32 %v16772_v32, %v16772_v32 }
0x119d   : > { %v16774_v47 = vpop.f32.mrf.mxu1  ;;  %v16780_v10 = vpop.f32.mrf.mxu0  ;;  %v9126_v0 = vmax.f32 %v9123_v5, %v9124_v41 }
0x119e   : > { %v9372_v59 = vmul.f32 %v16774_v47, %v16774_v47 }
0x119f   : > { %v16777_v37 = vpop.f32.mrf.mxu1  ;;  %v16796_v7 = vpop.f32.mrf.mxu0  ;;  %v9127_v22 = vmax.f32 %v9125_v48, %v9126_v0 }
0x11a0   : > { %v9391_v30 = vadd.f32 %v9372_v59, %v9371_v39  ;;  %v9376_v58 = vmul.f32 %v16777_v37, %v16777_v37  ;;  %v9388_v8 = vmul.f32 %v16796_v7, %v16796_v7 }
0x11a1   : > { %v16782_v20 = vpop.f32.mrf.mxu1  ;;  %v16817_v62 = vpop.f32.mrf.mxu0  ;;  %v9128_v15 = vrot.slane %v9127_v22, 4 }
0x11a2   : > { %v9377_v31 = vmul.f32 %v16782_v20, %v16782_v20  ;;  %v9392_v34 = vadd.f32 %v9391_v30, %v9373_v23  ;;  %v9389_v17 = vmul.f32 %v16817_v62, %v16817_v62  ;;  %v9412_v14 = vsel %vm17508_vm12, %v9388_v8, 0.0 }
0x11a3   : > { %v16788_v29 = vpop.f32.mrf.mxu1  ;;  %v9129_v44 = vmax.f32 %v9127_v22, %v9128_v15  ;;  %v7661_v23 = vrot.slane %v7660_v40, 2 }
0x11a4   : > { %v9397_v33 = vadd.f32 %v9377_v31, %v9376_v58  ;;  %v9381_v2 = vmul.f32 %v16788_v29, %v16788_v29  ;;  %v9393_v52 = vadd.f32 %v9392_v34, %v9374_v54  ;;  %v9414_v0 = vsel %vm17509_vm10, %v9389_v17, 0.0 }
0x11a5   : > { %v16798_v6 = vpop.f32.mrf.mxu1  ;;  %v9384_v58 = vmul.f32 %v16780_v10, %v16780_v10  ;;  %v9130_v54 = vrot.slane %v9129_v44, 2 }
0x11a6   : > { %v9382_v57 = vmul.f32 %v16798_v6, %v16798_v6  ;;  %v9398_v5 = vadd.f32 %v9397_v33, %v9378_v43  ;;  %v6045_v33 = vrot.slane %v6044_v35, 1 }
0x11a7   : > { %v16804_v4 = vpop.f32.mrf.mxu1  ;;  %v9131_v15 = vmax.f32 %v9129_v44, %v9130_v54 }
0x11a8   : > { %v9386_v12 = vmul.f32 %v16804_v4, %v16804_v4  ;;  %v9403_v36 = vadd.f32 %v9382_v57, %v9381_v2  ;;  %v6799_v2 = vmax.f32 %v6797_v45, %v6798_v42  ;;  %v6046_v17 = vmax.f32 %v6044_v35, %v6045_v33 }
0x11a9   : > { %v16819_v11 = vpop.f32.mrf.mxu1  ;;  %v9132_v45 = vrot.slane %v9131_v15, 1 }
0x11aa   : > { %v9387_v26 = vmul.f32 %v16819_v11, %v16819_v11  ;;  %v9409_v9 = vsel %vm17506_vm2, %v9386_v12, 0.0  ;;  %v9404_v27 = vadd.f32 %v9403_v36, %v9383_v16  ;;  %v9399_v12 = vadd.f32 %v9398_v5, %v9379_v63 }
0x11ab   : > { %v16830_v21 = vpop.f32.mrf.mxu1  ;;  %v6800_v36 = vsel %vm17511_vm9, %v6799_v2, 0.0 }
0x11ac   : > { %v9410_v13 = vsel %vm17507_vm4, %v9387_v26, 0.0  ;;  %v9385_v56 = vmul.f32 %v16830_v21, %v16830_v21  ;;  %v9405_v22 = vadd.f32 %v9404_v27, %v9384_v58  ;;  %v7662_v26 = vmax.f32 %v7660_v40, %v7661_v23 }
0x11ad   : > { %v9411_v18 = vadd.f32 %v9410_v13, %v9409_v9  ;;  %v16838_v3 = vpop.f32.mrf.mxu1  ;;  %v8284_v9 = vmax.f32 %v8282_v50, %v8283_v28 }
0x11ae   : > { %v9375_v59 = vmul.f32 %v16838_v3, %v16838_v3  ;;  %v9406_v43 = vadd.f32 %v9405_v22, %v9385_v56  ;;  %v7663_v13 = vrot.slane %v7662_v26, 1 }
0x11af   : > { %v9413_v41 = vadd.f32 %v9412_v14, %v9411_v18  ;;  %v16845_v39 = vpop.f32.mrf.mxu1  ;;  %v8285_v16 = vsel %vm17512_vm5, %v8284_v9, 0.0  ;;  %v6047_v18 = vsel %vm17513_vm13, %v6046_v17, 0.0  ;;  %v9133_v14 = vmax.f32 %v9131_v15, %v9132_v45 }
0x11b0   : > { %v9394_v30 = vadd.f32 %v9393_v52, %v9375_v59  ;;  %v9390_v31 = vmul.f32 %v16845_v39, %v16845_v39  ;;  %v7664_v49 = vmax.f32 %v7662_v26, %v7663_v13 }
0x11b1   : > { %v16850_v38 = vpop.f32.mrf.mxu1  ;;  %v9415_v48 = vadd.f32 %v9414_v0, %v9413_v41  ;;  %v9134_v5 = vsel %vm17515_vm15, %v9133_v14, 0.0 }
0x11b2   : > { %v9416_v57 = vsel %vm17510_vm3, %v9390_v31, 0.0  ;;  %v9380_v53 = vmul.f32 %v16850_v38, %v16850_v38  ;;  %9395 = vadd.xlane.f32.xlu1 %v9394_v30  ;;  %v7665_v40 = vsel %vm17514_vm7, %v7664_v49, 0.0  ;;  %vm17516_vm3 = vmmov %vm17512_vm5  ;;  %vm17518_vm5 = vcmask 196608  }
0x11b3   : > { %v9417_v8 = vadd.f32 %v9416_v57, %v9415_v48  ;;  %vm17517_vm9 = vmmov %vm17516_vm3 }
0x11b4   : > { %v9400_v34 = vadd.f32 %v9399_v12, %v9380_v53  ;;  %vm17519_vm13 = vmmov %vm17516_vm3 }
0x11b5   : > { %vm17520_vm7 = vmmov %vm17516_vm3 }
0x11b6   : > { %9418 = vadd.xlane.f32.xlu1 %v9417_v8  ;;  %9401 = vadd.xlane.f32.xlu0 %v9400_v34 }
0x11ba   : > { %6801 = vadd.xlane.f32.xlu1 %v6800_v36  ;;  %9407 = vadd.xlane.f32.xlu0 %v9406_v43 }
0x11be   : > { %8286 = vadd.xlane.f32.xlu1 %v8285_v16  ;;  %6048 = vadd.xlane.f32.xlu0 %v6047_v18 }
0x11c2   : > { %7666 = vadd.xlane.f32.xlu0 %v7665_v40 }
0x11c6   : > { %9135 = vadd.xlane.f32.xlu0 %v9134_v5 }
0x123b   : > { %v9396_v59 = vpop.xlane.xlu1 %9395 }
0x123c   : > { %11763 = vrsqrt.f32 %v9396_v59  ;;  %vm9422_vm8 = vcmp.eq.f32.partialorder %v9396_v59, inf  ;;  %v9425_v31 = vand.u32 2147483648, %v9396_v59  ;;  %vm9424_vm1 = vcmp.eq.f32.partialorder %v9396_v59, 0.0 }
0x123f   : > { %v9419_v52 = vpop.xlane.xlu1 %9418  ;;  %v9402_v63 = vpop.xlane.xlu0 %9401 }
0x1240   : > { %11765 = vrsqrt.f32 %v9419_v52  ;;  %vm9443_vm6 = vcmp.eq.f32.partialorder %v9419_v52, inf  ;;  %v9446_v56 = vand.u32 2147483648, %v9419_v52  ;;  %vm9429_vm0 = vcmp.eq.f32.partialorder %v9402_v63, inf }
0x1241   : > { %11767 = vrsqrt.f32 %v9402_v63  ;;  %v9432_v33 = vand.u32 2147483648, %v9402_v63  ;;  %vm9445_vm2 = vcmp.eq.f32.partialorder %v9419_v52, 0.0  ;;  %vm9431_vm4 = vcmp.eq.f32.partialorder %v9402_v63, 0.0 }
0x1243   : > { %v9408_v41 = vpop.xlane.xlu0 %9407  ;;  %v6802_v42 = vpop.xlane.xlu1 %6801 }
0x1244   : > { %11769 = vrsqrt.f32 %v9408_v41  ;;  %vm9436_vm12 = vcmp.eq.f32.partialorder %v9408_v41, inf  ;;  %v9439_v36 = vand.u32 2147483648, %v9408_v41  ;;  %vm9438_vm10 = vcmp.eq.f32.partialorder %v9408_v41, 0.0 }
0x1247   : > { %v6049_v35 = vpop.xlane.xlu0 %6048  ;;  %v8287_v44 = vpop.xlane.xlu1 %8286 }
0x1248   : > { %v6804_v0 = vsel %vm6803_vm11, %v6049_v35, %v6802_v42 }
0x1249   : > { %v11764_v27 = vpop.eup %11763  ;;  %6806 = vst.msk [vmem:[%s16868_s9] sm:$0x1] %vm6805_vm14, %v6804_v0 }
0x124a   : > { %v9421_v30 = vmul.f32 %v11764_v27, %v9396_v59 }
0x124b   : > { %v7667_v48 = vpop.xlane.xlu0 %7666 }
0x124c   : > { %v9423_v50 = vsel %vm9422_vm8, %v9396_v59, %v9421_v30  ;;  %v8288_v23 = vsel %vm6803_vm11, %v7667_v48, %v8287_v44 }
0x124d   : > { %v11766_v58 = vpop.eup %11765  ;;  %v9426_v57 = vsel %vm9424_vm1, %v9425_v31, %v9423_v50  ;;  %8289 = vst.msk [vmem:[%s16868_s9 + $0x1] sm:$0x1] %vm6805_vm14, %v8288_v23 }
0x124e   : > { %v11768_v53 = vpop.eup %11767  ;;  %v9448_v12 = vadd.f32 1e-16, %v9426_v57  ;;  %v9442_v8 = vmul.f32 %v11766_v58, %v9419_v52 }
0x124f   : > { %v9428_v22 = vmul.f32 %v11768_v53, %v9402_v63 }
0x1250   : > { %11771 = vrcp.f32 %v9448_v12  ;;  %v9444_v34 = vsel %vm9443_vm6, %v9419_v52, %v9442_v8 }
0x1251   : > { %v11770_v2 = vpop.eup %11769  ;;  %v9430_v28 = vsel %vm9429_vm0, %v9402_v63, %v9428_v22  ;;  %v9447_v26 = vsel %vm9445_vm2, %v9446_v56, %v9444_v34 }
0x1252   : > { %v9433_v54 = vsel %vm9431_vm4, %v9432_v33, %v9430_v28  ;;  %v9435_v43 = vmul.f32 %v11770_v2, %v9408_v41  ;;  %v9451_v13 = vadd.f32 1e-16, %v9447_v26 }
0x1253   : > { %v9449_v17 = vadd.f32 1e-16, %v9433_v54 }
0x1254   : > { %v9437_v9 = vsel %vm9436_vm12, %v9408_v41, %v9435_v43 }
0x1255   : > { %11773 = vrcp.f32 %v9449_v17  ;;  %v9440_v15 = vsel %vm9438_vm10, %v9439_v36, %v9437_v9 }
0x1256   : > { %v9450_v16 = vadd.f32 1e-16, %v9440_v15 }
0x1258   : > { %11775 = vrcp.f32 %v9450_v16 }
0x1259   : > { %11777 = vrcp.f32 %v9451_v13 }
0x125d   : > { %v11772_v18 = vpop.eup %11771 }
0x125e   : > { %v9457_v49 = vmul.f32 %v11772_v18, %v16774_v47  ;;  %v9459_v45 = vmul.f32 %v11772_v18, %v16764_v46  ;;  %v9456_v40 = vmul.f32 %v11772_v18, %v16770_v51  ;;  %v9458_v14 = vmul.f32 %v11772_v18, %v16762_v1 }
0x1260   : > { %9540 = vmatprep.mubr.f32.mxu0 %v9457_v49  ;;  %9625 = vmatprep.mubr.f32.mxu1 %v9459_v45  ;;  %v9136_v45 = vpop.xlane.xlu0 %9135 }
0x1261   : > { %9541 = vmatmul.mubr.f32.vlgmr.msra.gmra.mxu0 %v9456_v40  ;;  %9626 = vmatmul.mubr.f32.vlgmr.msra.gmra.mxu1 %v9458_v14 }
0x1262   : > { %v11774_v5 = vpop.eup %11773  ;;  %10947 = vmatpush3.xpose.msra.mxu0 %v16628_v25 }
0x1263   : > { %10948 = vmatprep.subr.mxu0 %v16660_v24  ;;  %v9462_v59 = vmul.f32 %v11774_v5, %v16782_v20  ;;  %v9464_v52 = vmul.f32 %v11774_v5, %v16768_v19  ;;  %v9461_v47 = vmul.f32 %v11774_v5, %v16777_v37  ;;  %v9463_v46 = vmul.f32 %v11774_v5, %v16766_v55 }
0x1264   : > { %v9465_v20 = vmul.f32 %v11774_v5, %v16850_v38 }
0x1265   : > { %v11776_v51 = vpop.eup %11775  ;;  %9545 = vmatprep.mubr.f32.mxu0 %v9462_v59  ;;  %9630 = vmatprep.mubr.f32.mxu1 %v9464_v52 }
0x1266   : > { %v11778_v1 = vpop.eup %11777  ;;  %9546 = vmatmul.mubr.f32.gmra.mxu0 %v9461_v47  ;;  %9631 = vmatmul.mubr.f32.gmra.mxu1 %v9463_v46  ;;  %v9467_v63 = vmul.f32 %v11776_v51, %v16798_v6  ;;  %v9469_v25 = vmul.f32 %v11776_v51, %v16780_v10  ;;  %v9466_v41 = vmul.f32 %v11776_v51, %v16788_v29 }
0x1267   : > { %10949 = vmatpush3.xpose.msra.mxu0 %v16660_v24  ;;  %v9468_v19 = vmul.f32 %v11776_v51, %v16772_v32  ;;  %v9472_v55 = vmul.f32 %v11778_v1, %v16819_v11  ;;  %v9474_v37 = vmul.f32 %v11778_v1, %v16817_v62  ;;  %v9471_v24 = vmul.f32 %v11778_v1, %v16804_v4 }
0x1268   : > { %10950 = vmatprep.subr.mxu0 %v16663_v61  ;;  %9550 = vmatprep.mubr.f32.mxu0 %v9467_v63  ;;  %v9473_v32 = vmul.f32 %v11778_v1, %v16796_v7  ;;  %v9460_v10 = vmul.f32 %v11772_v18, %v16838_v3  ;;  %v9470_v29 = vmul.f32 %v11776_v51, %v16830_v21 }
0x1269   : > { %9635 = vmatprep.mubr.f32.mxu1 %v9469_v25 }
0x126a   : > { %9551 = vmatmul.mubr.f32.gmra.mxu0 %v9466_v41  ;;  %9636 = vmatmul.mubr.f32.gmra.mxu1 %v9468_v19 }
0x126b   : > { %10951 = vmatpush3.xpose.msra.mxu0 %v16663_v61  ;;  %9555 = vmatprep.mubr.f32.mxu0 %v9472_v55  ;;  %v9475_v61 = vmul.f32 %v11778_v1, %v16845_v39 }
0x126c   : > { %9640 = vmatprep.mubr.f32.mxu1 %v9474_v37  ;;  %10952 = vmatprep.subr.mxu0 %v16621_v60 }
0x126e   : > { %9556 = vmatmul.mubr.f32.gmra.mxu0 %v9471_v24  ;;  %9641 = vmatmul.mubr.f32.gmra.mxu1 %v9473_v32 }
0x126f   : > { %10953 = vmatpush3.xpose.msra.mxu0 %v16621_v60  ;;  %10954 = vmatprep.mubr.f32.mxu0 %v9460_v10 }
0x1272   : > { %10955 = vmatmul.mubr.f32.vlgmr.msra.gmra.mxu0 %v9465_v20 }
0x1273   : > { %10957 = vmatprep.mubr.f32.mxu0 %v9470_v29 }
0x1276   : > { %10958 = vmatmul.mubr.f32.gmra.mxu0 %v9475_v61 }
0x1321   : > { %v9542_v6 = vpop.f32.mrf.mxu0  ;;  %v9627_v4 = vpop.f32.mrf.mxu1 }
0x1322   : > { %v9628_v50 = vadd.f32 %v9627_v4, %v9542_v6 }
0x1323   : > { %v9544_v62 = vpop.f32.mrf.mxu0  ;;  %v9629_v7 = vpop.f32.mrf.mxu1 }
0x1326   : > { %v9547_v11 = vpop.f32.mrf.mxu0  ;;  %v9632_v3 = vpop.f32.mrf.mxu1 }
0x1327   : > { %v9633_v23 = vadd.f32 %v9632_v3, %v9547_v11 }
0x1328   : > { %v9549_v42 = vpop.f32.mrf.mxu0  ;;  %v9634_v35 = vpop.f32.mrf.mxu1 }
0x132a   : > { %v9552_v0 = vpop.f32.mrf.mxu0  ;;  %v9637_v60 = vpop.f32.mrf.mxu1 }
0x132b   : > { %v9638_v12 = vadd.f32 %v9637_v60, %v9552_v0 }
0x132c   : > { %v9554_v27 = vpop.f32.mrf.mxu0  ;;  %v9639_v30 = vpop.f32.mrf.mxu1 }
0x132e   : > { %v9557_v38 = vpop.f32.mrf.mxu0  ;;  %v9642_v31 = vpop.f32.mrf.mxu1 }
0x132f   : > { %v9643_v58 = vadd.f32 %v9642_v31, %v9557_v38 }
0x1330   : > { %v9559_v21 = vpop.f32.mrf.mxu0  ;;  %v9644_v44 = vpop.f32.mrf.mxu1 }
0x1332   : > { %v10956_v48 = vpop.f32.mrf.mxu0 }
0x1333   : > { %v9718_v8 = vadd.f32 %v10956_v48, %v9633_v23 }
0x1334   : > { %v9712_v39 = vpop.f32.mrf.mxu0 }
0x1335   : > { %v9713_v57 = vadd.f32 %v9712_v39, %v9628_v50  ;;  %v9732_v2 = vsel %vm17517_vm9, %v9718_v8, -inf }
0x1336   : > { %v10959_v53 = vpop.f32.mrf.mxu0 }
0x1337   : > { %v9728_v56 = vadd.f32 %v10959_v53, %v9643_v58  ;;  %v9731_v34 = vsel %vm17516_vm3, %v9713_v57, -inf }
0x1338   : > { %v9722_v22 = vpop.f32.mrf.mxu0  ;;  %v9735_v54 = vmax.f32 %v9731_v34, %v9732_v2 }
0x1339   : > { %v9723_v33 = vadd.f32 %v9722_v22, %v9638_v12  ;;  %v9734_v28 = vsel %vm17518_vm5, %v9728_v56, -inf }
0x133b   : > { %v9733_v26 = vsel %vm17519_vm13, %v9723_v33, -inf }
0x133c   : > { %v9736_v43 = vmax.f32 %v9733_v26, %v9734_v28 }
0x133e   : > { %v9737_v17 = vmax.f32 %v9735_v54, %v9736_v43 }
0x1340   : > { %v9738_v36 = vrot.slane %v9737_v17, 4 }
0x1342   : > { %v9739_v9 = vmax.f32 %v9737_v17, %v9738_v36 }
0x1344   : > { %v9740_v13 = vrot.slane %v9739_v9, 2 }
0x1346   : > { %v9741_v15 = vmax.f32 %v9739_v9, %v9740_v13 }
0x1348   : > { %v9742_v16 = vrot.slane %v9741_v15, 1 }
0x134a   : > { %v9743_v18 = vmax.f32 %v9741_v15, %v9742_v16 }
0x134c   : > { %v9744_v49 = vsel %vm17520_vm7, %v9743_v18, 0.0 }
0x134d   : > { %9745 = vadd.xlane.f32.xlu1 %v9744_v49 }
0x13d6   : > { %v9746_v40 = vpop.xlane.xlu1 %9745 }
0x13d7   : > { %v9747_v14 = vsel %vm6803_vm11, %v9136_v45, %v9746_v40 }
0x13d8   : > { %9748 = vst.msk [vmem:[%s16868_s9 + $0x2] sm:$0x1] %vm6805_vm14, %v9747_v14 }
0x13d9 PF: > { %s16_s21 = sadd.s32 1, %s12014_s21  }
0x13da   : > { %p13_p4 = scmp.ge.s32.totalorder %s16_s21, 4  }
0x13dc   :  { %15 = sbr.rel (!%p13_p4) target bundleno = 1 (0x1), region = 80 }

</bundles_post_ra>
